<compile_context>
chip_gen: v7x
topology: tpu7x:2x2x1
jax: 0.10.0
libtpu: 0.0.40
codegen_flags: <defaults>
</compile_context>

<pallas_src>
import functools

import jax
import jax.numpy as jnp
from jax import lax
from jax.experimental import pallas as pl
from jax.experimental.pallas import tpu as pltpu


LANE = 128


def _round_up(c, m=LANE):
    return ((c + m - 1) // m) * m


def _row_tile(rows):
    for t in (1024, 512, 256, 128, 64, 32, 16, 8):
        if rows % t == 0:
            return t
    return rows


# ----------------------------------------------------------------------------
# Pallas kernels
# ----------------------------------------------------------------------------
def _conv_kernel(x_ref, w_ref, scale_ref, shift_ref, o_ref, acc_ref,
                 *, k, Ho, Wo, leaky):
    """Fused im2col + GEMM + BN + LeakyReLU.

    x_ref:     (Hp, Wp, tc)  padded NHWC input channel tile (f32)
    w_ref:     (k*k, tc, tn) packed weights (bf16)
    scale_ref: (1, tn)       folded BN scale (or 1)
    shift_ref: (1, tn)       folded BN shift (or bias)
    o_ref:     (Ho, Wo, tn)  output tile (f32)
    acc_ref:   (Ho*Wo, tn)   f32 accumulator across the Cin-tile grid axis
    """
    ci = pl.program_id(2)

    @pl.when(ci == 0)
    def _():
        acc_ref[...] = jnp.zeros_like(acc_ref)

    acc = jnp.zeros(acc_ref.shape, jnp.float32)
    for t in range(k * k):                      # static unroll over taps
        di, dj = t // k, t % k
        xs = x_ref[di:di + Ho, dj:dj + Wo, :]   # shifted slab (Ho, Wo, tc)
        xs = xs.reshape(Ho * Wo, xs.shape[-1]).astype(jnp.bfloat16)
        acc = acc + jnp.dot(xs, w_ref[t], preferred_element_type=jnp.float32)
    acc_ref[...] += acc

    @pl.when(ci == pl.num_programs(2) - 1)
    def _():
        y = acc_ref[...] * scale_ref[...] + shift_ref[...]
        if leaky:
            y = jnp.where(y > 0, y, 0.1 * y)
        o_ref[...] = y.reshape(o_ref.shape)


def _add_kernel(a_ref, b_ref, o_ref):
    o_ref[...] = a_ref[...] + b_ref[...]


def _maxpool2_kernel(x_ref, o_ref):
    # x_ref: (Ho, 2, Wo, 2, C) blocked view of the 2x2 windows.
    a = x_ref[:, 0, :, 0, :]
    b = x_ref[:, 0, :, 1, :]
    c = x_ref[:, 1, :, 0, :]
    d = x_ref[:, 1, :, 1, :]
    o_ref[...] = jnp.maximum(jnp.maximum(a, b), jnp.maximum(c, d))


def _upsample2x_kernel(x_ref, o_ref):
    # Bilinear 2x (align_corners=False, separable 0.25/0.75 weights, clamped).
    x = x_ref[...]                                   # (H, W, C)
    H, W, _ = x.shape
    prev_h = jnp.concatenate([x[0:1], x[:-1]], axis=0)
    next_h = jnp.concatenate([x[1:], x[-1:]], axis=0)
    e = 0.75 * x + 0.25 * prev_h                     # even output rows
    o = 0.75 * x + 0.25 * next_h                     # odd output rows

    col = lax.broadcasted_iota(jnp.int32, x.shape, 1)

    def wmix(t):
        prev_w = jnp.where(col == 0, t, pltpu.roll(t, 1, 1))
        next_w = jnp.where(col == W - 1, t, pltpu.roll(t, W - 1, 1))
        return 0.75 * t + 0.25 * prev_w, 0.75 * t + 0.25 * next_w

    ee, eo = wmix(e)
    oe, oo = wmix(o)
    # o_ref: (H, 2, W, 2, C) -> out[2i+a, 2j+b] lives at [i, a, j, b].
    o_ref[:, 0, :, 0, :] = ee
    o_ref[:, 0, :, 1, :] = eo
    o_ref[:, 1, :, 0, :] = oe
    o_ref[:, 1, :, 1, :] = oo


def _yolo_kernel(x_ref, mul_ref, o_ref, *, bbox, stride):
    # Operates on the NHWC map (G, G, Cp): channel c = a*bbox + b on the lane
    # axis; sigmoid on x/y/obj/classes, masked exp * anchor on w/h, grid-cell
    # offsets from spatial iotas, * stride on the first 4 box attrs.
    p = x_ref[...]                                           # (G, G, Cp)
    lane = lax.broadcasted_iota(jnp.int32, p.shape, 2)
    b = lane % bbox
    hh = lax.broadcasted_iota(jnp.int32, p.shape, 0).astype(jnp.float32)
    ww = lax.broadcasted_iota(jnp.int32, p.shape, 1).astype(jnp.float32)
    is_exp = (b == 2) | (b == 3)
    ex = jnp.exp(jnp.where(is_exp, p, 0.0)) * mul_ref[0, 0]  # masked exp
    y = jnp.where(is_exp, ex, jax.nn.sigmoid(p))
    y = y + jnp.where(b == 0, ww, jnp.where(b == 1, hh, 0.0))
    y = jnp.where(b < 4, y * stride, y)
    o_ref[...] = y


# ----------------------------------------------------------------------------
# Layer wrappers
# ----------------------------------------------------------------------------
def conv_block(x, prep_i, blk):
    k, stride = blk["size"], blk["stride"]
    if stride != 1:
        # TODO(synk): strided convolutions (not used by this cfg).
        raise NotImplementedError("strided conv not implemented")
    pad = (k - 1) // 2 if blk["pad"] else 0
    N, H, W, Cin_p = x.shape
    w, scale, shift = prep_i["w"], prep_i["scale"], prep_i["shift"]
    Cout_p = w.shape[-1]

    if pad:
        x = jnp.pad(x, ((0, 0), (pad, pad), (pad, pad), (0, 0)))
    Hp, Wp = H + 2 * pad, W + 2 * pad
    Ho, Wo = Hp - k + 1, Wp - k + 1

    tc, tn = LANE, LANE
    n_cin, n_cout = Cin_p // tc, Cout_p // tn
    leaky = blk["activation"] == "leaky"

    flops = 2 * N * Ho * Wo * Cin_p * Cout_p * k * k
    bytes_accessed = int(x.size * 4 + w.size * 2 + N * Ho * Wo * Cout_p * 4)

    # TODO(synk): add a spatial (row) grid axis for large H*W images; the full
    # (Hp, Wp, tc) tile per image is fine for the small feature maps here.
    return pl.pallas_call(
        functools.partial(_conv_kernel, k=k, Ho=Ho, Wo=Wo, leaky=leaky),
        out_shape=jax.ShapeDtypeStruct((N, Ho, Wo, Cout_p), jnp.float32),
        grid=(N, n_cout, n_cin),
        in_specs=[
            pl.BlockSpec((None, Hp, Wp, tc), lambda n, j, ci: (n, 0, 0, ci)),
            pl.BlockSpec((k * k, tc, tn), lambda n, j, ci: (0, ci, j)),
            pl.BlockSpec((1, tn), lambda n, j, ci: (0, j)),
            pl.BlockSpec((1, tn), lambda n, j, ci: (0, j)),
        ],
        out_specs=pl.BlockSpec((None, Ho, Wo, tn), lambda n, j, ci: (n, 0, 0, j)),
        scratch_shapes=[pltpu.VMEM((Ho * Wo, tn), jnp.float32)],
        compiler_params=pltpu.CompilerParams(
            dimension_semantics=("parallel", "parallel", "arbitrary"),
            vmem_limit_bytes=32 * 1024 * 1024),
        cost_estimate=pl.CostEstimate(flops=flops, transcendentals=0,
                                      bytes_accessed=bytes_accessed),
    )(x, w, scale, shift)


def shortcut_add(a, b):
    # TODO(synk): could be fused into the preceding conv kernel's finalize.
    N, H, W, Cp = a.shape
    R = N * H * W
    tm = _row_tile(R)
    out = pl.pallas_call(
        _add_kernel,
        out_shape=jax.ShapeDtypeStruct((R, Cp), jnp.float32),
        grid=(R // tm,),
        in_specs=[pl.BlockSpec((tm, Cp), lambda i: (i, 0)),
                  pl.BlockSpec((tm, Cp), lambda i: (i, 0))],
        out_specs=pl.BlockSpec((tm, Cp), lambda i: (i, 0)),
        compiler_params=pltpu.CompilerParams(dimension_semantics=("parallel",)),
    )(a.reshape(R, Cp), b.reshape(R, Cp))
    return out.reshape(N, H, W, Cp)


def maxpool2(x):
    # 2x2 / stride-2 maxpool; window reduced inside the kernel.
    N, H, W, Cp = x.shape
    Ho, Wo = H // 2, W // 2
    xb = x.reshape(N, Ho, 2, Wo, 2, Cp)          # free row-major view
    return pl.pallas_call(
        _maxpool2_kernel,
        out_shape=jax.ShapeDtypeStruct((N, Ho, Wo, Cp), jnp.float32),
        grid=(N,),
        in_specs=[pl.BlockSpec((None, Ho, 2, Wo, 2, Cp),
                               lambda n: (n, 0, 0, 0, 0, 0))],
        out_specs=pl.BlockSpec((None, Ho, Wo, Cp), lambda n: (n, 0, 0, 0)),
        compiler_params=pltpu.CompilerParams(dimension_semantics=("parallel",)),
    )(xb)


def upsample2x_bilinear(x):
    N, H, W, Cp = x.shape
    out = pl.pallas_call(
        _upsample2x_kernel,
        out_shape=jax.ShapeDtypeStruct((N, H, 2, W, 2, Cp), jnp.float32),
        grid=(N,),
        in_specs=[pl.BlockSpec((None, H, W, Cp), lambda n: (n, 0, 0, 0))],
        out_specs=pl.BlockSpec((None, H, 2, W, 2, Cp),
                               lambda n: (n, 0, 0, 0, 0, 0)),
        compiler_params=pltpu.CompilerParams(dimension_semantics=("parallel",)),
    )(x)
    return out.reshape(N, 2 * H, 2 * W, Cp)      # free row-major merge


def predict_transform(x, inp_dim, anchors, num_classes):
    # x: NHWC-padded feature map (N, G, G, Cp) with A*bbox real channels.
    N, G, _, Cp = x.shape
    stride = inp_dim // G
    bbox = 5 + num_classes
    A = len(anchors)

    mul_list = [1.0] * Cp
    for a_i, (aw, ah) in enumerate(anchors):
        mul_list[a_i * bbox + 2] = aw / stride
        mul_list[a_i * bbox + 3] = ah / stride
    mul_lane = jnp.asarray(mul_list, jnp.float32).reshape(1, 1, Cp)

    out = pl.pallas_call(
        functools.partial(_yolo_kernel, bbox=bbox, stride=float(stride)),
        out_shape=jax.ShapeDtypeStruct((N, G, G, Cp), jnp.float32),
        grid=(N,),
        in_specs=[pl.BlockSpec((None, G, G, Cp), lambda n: (n, 0, 0, 0)),
                  pl.BlockSpec((1, 1, Cp), lambda n: (0, 0, 0))],
        out_specs=pl.BlockSpec((None, G, G, Cp), lambda n: (n, 0, 0, 0)),
        compiler_params=pltpu.CompilerParams(dimension_semantics=("parallel",)),
    )(x, mul_lane)
    # channel c = a*bbox + b at cell (h, w)  ->  row (h*G + w)*A + a, col b
    return out[..., :A * bbox].reshape(N, G * G * A, bbox)


# ----------------------------------------------------------------------------
# Synthetic Darknet "cfg" (blocks list) + deterministic params
# ----------------------------------------------------------------------------
_ANCHORS = [(2, 3), (4, 5), (6, 8), (8, 10), (12, 14), (16, 18)]
NUM_CLASSES = 4  # -> bbox_attrs = 9, yolo head filters = 3 * 9 = 27

BLOCKS = [
    {"type": "net", "height": 16, "width": 16, "channels": 3},
    {"type": "convolutional", "batch_normalize": 1, "filters": 8, "size": 3,
     "stride": 1, "pad": 1, "activation": "leaky"},                       # m0
    {"type": "convolutional", "batch_normalize": 1, "filters": 8, "size": 3,
     "stride": 1, "pad": 1, "activation": "leaky"},                       # m1
    {"type": "shortcut", "from": -2, "activation": "linear"},             # m2
    {"type": "maxpool", "size": 2, "stride": 2},                          # m3
    {"type": "convolutional", "batch_normalize": 1, "filters": 16, "size": 3,
     "stride": 1, "pad": 1, "activation": "leaky"},                       # m4
    {"type": "convolutional", "batch_normalize": 0, "filters": 27, "size": 1,
     "stride": 1, "pad": 1, "activation": "linear"},                      # m5
    {"type": "yolo", "mask": [0, 1, 2], "anchors": _ANCHORS,
     "classes": NUM_CLASSES},                                             # m6
    {"type": "route", "layers": [-4]},                                    # m7
    {"type": "upsample", "stride": 2},                                    # m8
    {"type": "route", "layers": [-1, -7]},                                # m9
    {"type": "convolutional", "batch_normalize": 0, "filters": 27, "size": 1,
     "stride": 1, "pad": 1, "activation": "linear"},                      # m10
    {"type": "yolo", "mask": [3, 4, 5], "anchors": _ANCHORS,
     "classes": NUM_CLASSES},                                             # m11
]


def init_params(blocks, key):
    params = {}
    prev_filters = 3
    output_filters = []
    for i, blk in enumerate(blocks[1:]):
        t = blk["type"]
        filters = prev_filters
        if t == "convolutional":
            Cout, k = blk["filters"], blk["size"]
            key, k1, k2, k3, k4, k5 = jax.random.split(key, 6)
            p = {"weight": 0.1 * jax.random.normal(
                k1, (Cout, prev_filters, k, k), jnp.float32)}
            if blk.get("batch_normalize", 0):
                p["gamma"] = jax.random.uniform(k2, (Cout,), jnp.float32, 0.5, 1.5)
                p["beta"] = 0.1 * jax.random.normal(k3, (Cout,), jnp.float32)
                p["mean"] = 0.1 * jax.random.normal(k4, (Cout,), jnp.float32)
                p["var"] = jax.random.uniform(k5, (Cout,), jnp.float32, 0.5, 1.5)
            else:
                p["bias"] = 0.1 * jax.random.normal(k2, (Cout,), jnp.float32)
            params[i] = p
            filters = Cout
        elif t == "route":
            layers = list(blk["layers"])
            start = layers[0]
            end = layers[1] if len(layers) > 1 else 0
            if start > 0:
                start -= i
            if end > 0:
                end -= i
            if end < 0:
                filters = output_filters[i + start] + output_filters[i + end]
            else:
                filters = output_filters[i + start]
        # shortcut / maxpool / upsample / yolo keep previous filter count
        output_filters.append(filters)
        prev_filters = filters
    return params


def prepare_params(raw):
    """Fold BN into scale/shift, pack weights to (k*k, Cin_p, Cout_p) bf16
    respecting the padded channel-segment layout of each layer's input."""
    modules = BLOCKS[1:]
    seg_outputs = {}
    prev = [(BLOCKS[0]["channels"], _round_up(BLOCKS[0]["channels"]))]
    prepared = {}
    for i, blk in enumerate(modules):
        t = blk["type"]
        if t == "convolutional":
            Cout, k = blk["filters"], blk["size"]
            Cin = sum(c for c, _ in prev)
            Cin_p = sum(cp for _, cp in prev)
            Cout_p = _round_up(Cout)
            w = raw[i]["weight"]                                  # (Cout,Cin,k,k)
            w = jnp.transpose(w, (2, 3, 1, 0)).reshape(k * k, Cin, Cout)
            w_packed = jnp.zeros((k * k, Cin_p, Cout_p), jnp.float32)
            a_off = p_off = 0
            for (c, cp) in prev:
                w_packed = w_packed.at[:, p_off:p_off + c, :Cout].set(
                    w[:, a_off:a_off + c, :])
                a_off += c
                p_off += cp
            if blk.get("batch_normalize", 0):
                inv = raw[i]["gamma"] / jnp.sqrt(raw[i]["var"] + 1e-5)
                scale_c = inv
                shift_c = raw[i]["beta"] - raw[i]["mean"] * inv
            else:
                scale_c = jnp.ones((Cout,), jnp.float32)
                shift_c = raw[i]["bias"]
            scale = jnp.zeros((1, Cout_p), jnp.float32).at[0, :Cout].set(scale_c)
            shift = jnp.zeros((1, Cout_p), jnp.float32).at[0, :Cout].set(shift_c)
            prepared[i] = {"w": w_packed.astype(jnp.bfloat16),
                           "scale": scale, "shift": shift}
            out_seg = [(Cout, Cout_p)]
        elif t == "route":
            layers = list(blk["layers"])
            if layers[0] > 0:
                layers[0] -= i
            if len(layers) == 1:
                out_seg = list(seg_outputs[i + layers[0]])
            else:
                if layers[1] > 0:
                    layers[1] -= i
                out_seg = (list(seg_outputs[i + layers[0]]) +
                           list(seg_outputs[i + layers[1]]))
        elif t == "shortcut":
            out_seg = list(seg_outputs[i - 1])
        elif t == "yolo":
            out_seg = list(seg_outputs[i - 1])
        else:  # maxpool / upsample
            out_seg = list(prev)
        seg_outputs[i] = out_seg
        prev = out_seg
    return prepared


# ----------------------------------------------------------------------------
# Darknet.forward equivalent
# ----------------------------------------------------------------------------
def darknet_forward(x_nchw, prep):
    modules = BLOCKS[1:]
    inp_dim = BLOCKS[0]["height"]

    # NCHW -> lane-padded NHWC once at the network entry.
    N, C, H, W = x_nchw.shape
    Cp = _round_up(C)
    x = jnp.transpose(x_nchw, (0, 2, 3, 1))
    x = jnp.pad(x, ((0, 0), (0, 0), (0, 0), (0, Cp - C)))

    outputs = {}
    detections = None
    for i, blk in enumerate(modules):
        t = blk["type"]
        if t == "convolutional":
            x = conv_block(x, prep[i], blk)
            outputs[i] = x
        elif t == "upsample":
            x = upsample2x_bilinear(x)
            outputs[i] = x
        elif t == "maxpool":
            # TODO(synk): only the 2x2/stride-2 maxpool used by this cfg.
            x = maxpool2(x)
            outputs[i] = x
        elif t == "route":
            layers = list(blk["layers"])
            if layers[0] > 0:
                layers[0] -= i
            if len(layers) == 1:
                x = outputs[i + layers[0]]
            else:
                if layers[1] > 0:
                    layers[1] -= i
                x = jnp.concatenate(
                    [outputs[i + layers[0]], outputs[i + layers[1]]], axis=-1)
            outputs[i] = x
        elif t == "shortcut":
            x = shortcut_add(outputs[i - 1], outputs[i + blk["from"]])
            outputs[i] = x
        elif t == "yolo":
            anchors = [blk["anchors"][m] for m in blk["mask"]]
            det = predict_transform(x, inp_dim, anchors, blk["classes"])
            detections = det if detections is None else jnp.concatenate(
                [detections, det], axis=1)
            outputs[i] = outputs[i - 1]
    return detections


# ----------------------------------------------------------------------------
if __name__ == "__main__":
    key = jax.random.PRNGKey(0)
    key, pkey, xkey = jax.random.split(key, 3)
    raw_params = init_params(BLOCKS, pkey)
    prep = prepare_params(raw_params)   # fold/pack once, outside jit

    # input: batch=2, channels=3 (Darknet hardcodes prev_filters=3), 16x16
    x = jax.random.normal(xkey, (2, 3, 16, 16), jnp.float32)

    fwd = jax.jit(darknet_forward)
    det = jax.block_until_ready(fwd(x, prep))

    # 8x8 grid * 3 anchors + 16x16 grid * 3 anchors = 192 + 768 = 960 boxes
    assert det.shape == (2, 960, 5 + NUM_CLASSES), det.shape
    assert det.dtype == jnp.float32
    assert bool(jnp.all(jnp.isfinite(det)))
    print("KERNEL_OK")
</pallas_src>

<mosaic_0001>
module attributes {stable_mosaic.version = 11 : i64} {
  func.func @_conv_kernel(%arg0: i32, %arg1: i32, %arg2: i32, %arg3: memref<1x18x18x128xf32, #tpu.memory_space<vmem>>, %arg4: memref<9x128x128xbf16, #tpu.memory_space<vmem>>, %arg5: memref<1x128xf32, #tpu.memory_space<vmem>>, %arg6: memref<1x128xf32, #tpu.memory_space<vmem>>, %arg7: memref<1x16x16x128xf32, #tpu.memory_space<vmem>>, %arg8: memref<256x128xf32, #tpu.memory_space<vmem>>) attributes {dimension_semantics = [#tpu.dimension_semantics<parallel>, #tpu.dimension_semantics<parallel>, #tpu.dimension_semantics<arbitrary>], iteration_bounds = array<i64: 2, 1, 1>, scalar_prefetch = 0 : i64, scratch_operands = 1 : i64, tpu.core_type = #tpu.core_type<tc>, window_params = [{transform_indices = @transform_0, window_bounds = array<i64: 1, 18, 18, 128>}, {transform_indices = @transform_1, window_bounds = array<i64: 9, 128, 128>}, {transform_indices = @transform_2, window_bounds = array<i64: 1, 128>}, {transform_indices = @transform_3, window_bounds = array<i64: 1, 128>}, {transform_indices = @transform_4, window_bounds = array<i64: 1, 16, 16, 128>}]} {
    %c0_i32 = arith.constant 0 : i32
    %0 = arith.cmpi eq, %arg2, %c0_i32 : i32
    %1 = arith.extui %0 : i1 to i32
    %c0_i32_0 = arith.constant 0 : i32
    %2 = arith.cmpi ne, %1, %c0_i32_0 : i32
    scf.if %2 {
      %cst_70 = arith.constant 0.000000e+00 : f32
      %82 = vector.broadcast %cst_70 : f32 to vector<256x128xf32>
      %c0_71 = arith.constant 0 : index
      %c0_72 = arith.constant 0 : index
      %83 = vector.load %arg8[%c0_71, %c0_72] : memref<256x128xf32, #tpu.memory_space<vmem>>, vector<256x128xf32>
      tpu.vector_store %arg8[%c0_71, %c0_72], %82 {strides = array<i32>} : memref<256x128xf32, #tpu.memory_space<vmem>>, vector<256x128xf32>,
    } else {
    }
    %cst = arith.constant 0.000000e+00 : f32
    %3 = vector.broadcast %cst : f32 to vector<256x128xf32>
    %c0 = arith.constant 0 : index
    %c0_1 = arith.constant 0 : index
    %c0_2 = arith.constant 0 : index
    %c0_3 = arith.constant 0 : index
    %4 = vector.load %arg3[%c0, %c0_1, %c0_2, %c0_3] : memref<1x18x18x128xf32, #tpu.memory_space<vmem>>, vector<1x16x16x128xf32>
    %5 = vector.shape_cast %4 : vector<1x16x16x128xf32> to vector<16x16x128xf32>
    %6 = vector.shape_cast %5 : vector<16x16x128xf32> to vector<256x128xf32>
    %7 = arith.truncf %6 : vector<256x128xf32> to vector<256x128xbf16>
    %c0_4 = arith.constant 0 : index
    %c0_5 = arith.constant 0 : index
    %c0_6 = arith.constant 0 : index
    %8 = vector.load %arg4[%c0_4, %c0_5, %c0_6] : memref<9x128x128xbf16, #tpu.memory_space<vmem>>, vector<1x128x128xbf16>
    %9 = vector.shape_cast %8 : vector<1x128x128xbf16> to vector<128x128xbf16>
    %cst_7 = arith.constant dense<0.000000e+00> : vector<256x128xf32>
    %10 = tpu.matmul %7, %9, %cst_7 {dimension_numbers = #tpu.dot_dimension_numbers<[1], [0], [0], [1], [0, 0, 1, 1], [], []>} : vector<256x128xbf16>, vector<128x128xbf16>, vector<256x128xf32> -> vector<256x128xf32>
    %11 = arith.addf %3, %10 : vector<256x128xf32>
    %c0_8 = arith.constant 0 : index
    %c0_9 = arith.constant 0 : index
    %c1 = arith.constant 1 : index
    %c0_10 = arith.constant 0 : index
    %12 = vector.load %arg3[%c0_8, %c0_9, %c1, %c0_10] : memref<1x18x18x128xf32, #tpu.memory_space<vmem>>, vector<1x16x16x128xf32>
    %13 = vector.shape_cast %12 : vector<1x16x16x128xf32> to vector<16x16x128xf32>
    %14 = vector.shape_cast %13 : vector<16x16x128xf32> to vector<256x128xf32>
    %15 = arith.truncf %14 : vector<256x128xf32> to vector<256x128xbf16>
    %c1_11 = arith.constant 1 : index
    %c0_12 = arith.constant 0 : index
    %c0_13 = arith.constant 0 : index
    %16 = vector.load %arg4[%c1_11, %c0_12, %c0_13] : memref<9x128x128xbf16, #tpu.memory_space<vmem>>, vector<1x128x128xbf16>
    %17 = vector.shape_cast %16 : vector<1x128x128xbf16> to vector<128x128xbf16>
    %cst_14 = arith.constant dense<0.000000e+00> : vector<256x128xf32>
    %18 = tpu.matmul %15, %17, %cst_14 {dimension_numbers = #tpu.dot_dimension_numbers<[1], [0], [0], [1], [0, 0, 1, 1], [], []>} : vector<256x128xbf16>, vector<128x128xbf16>, vector<256x128xf32> -> vector<256x128xf32>
    %19 = arith.addf %11, %18 : vector<256x128xf32>
    %c0_15 = arith.constant 0 : index
    %c0_16 = arith.constant 0 : index
    %c2 = arith.constant 2 : index
    %c0_17 = arith.constant 0 : index
    %20 = vector.load %arg3[%c0_15, %c0_16, %c2, %c0_17] : memref<1x18x18x128xf32, #tpu.memory_space<vmem>>, vector<1x16x16x128xf32>
    %21 = vector.shape_cast %20 : vector<1x16x16x128xf32> to vector<16x16x128xf32>
    %22 = vector.shape_cast %21 : vector<16x16x128xf32> to vector<256x128xf32>
    %23 = arith.truncf %22 : vector<256x128xf32> to vector<256x128xbf16>
    %c2_18 = arith.constant 2 : index
    %c0_19 = arith.constant 0 : index
    %c0_20 = arith.constant 0 : index
    %24 = vector.load %arg4[%c2_18, %c0_19, %c0_20] : memref<9x128x128xbf16, #tpu.memory_space<vmem>>, vector<1x128x128xbf16>
    %25 = vector.shape_cast %24 : vector<1x128x128xbf16> to vector<128x128xbf16>
    %cst_21 = arith.constant dense<0.000000e+00> : vector<256x128xf32>
    %26 = tpu.matmul %23, %25, %cst_21 {dimension_numbers = #tpu.dot_dimension_numbers<[1], [0], [0], [1], [0, 0, 1, 1], [], []>} : vector<256x128xbf16>, vector<128x128xbf16>, vector<256x128xf32> -> vector<256x128xf32>
    %27 = arith.addf %19, %26 : vector<256x128xf32>
    %c0_22 = arith.constant 0 : index
    %c1_23 = arith.constant 1 : index
    %c0_24 = arith.constant 0 : index
    %c0_25 = arith.constant 0 : index
    %28 = vector.load %arg3[%c0_22, %c1_23, %c0_24, %c0_25] : memref<1x18x18x128xf32, #tpu.memory_space<vmem>>, vector<1x16x16x128xf32>
    %29 = vector.shape_cast %28 : vector<1x16x16x128xf32> to vector<16x16x128xf32>
    %30 = vector.shape_cast %29 : vector<16x16x128xf32> to vector<256x128xf32>
    %31 = arith.truncf %30 : vector<256x128xf32> to vector<256x128xbf16>
    %c3 = arith.constant 3 : index
    %c0_26 = arith.constant 0 : index
    %c0_27 = arith.constant 0 : index
    %32 = vector.load %arg4[%c3, %c0_26, %c0_27] : memref<9x128x128xbf16, #tpu.memory_space<vmem>>, vector<1x128x128xbf16>
    %33 = vector.shape_cast %32 : vector<1x128x128xbf16> to vector<128x128xbf16>
    %cst_28 = arith.constant dense<0.000000e+00> : vector<256x128xf32>
    %34 = tpu.matmul %31, %33, %cst_28 {dimension_numbers = #tpu.dot_dimension_numbers<[1], [0], [0], [1], [0, 0, 1, 1], [], []>} : vector<256x128xbf16>, vector<128x128xbf16>, vector<256x128xf32> -> vector<256x128xf32>
    %35 = arith.addf %27, %34 : vector<256x128xf32>
    %c0_29 = arith.constant 0 : index
    %c1_30 = arith.constant 1 : index
    %c1_31 = arith.constant 1 : index
    %c0_32 = arith.constant 0 : index
    %36 = vector.load %arg3[%c0_29, %c1_30, %c1_31, %c0_32] : memref<1x18x18x128xf32, #tpu.memory_space<vmem>>, vector<1x16x16x128xf32>
    %37 = vector.shape_cast %36 : vector<1x16x16x128xf32> to vector<16x16x128xf32>
    %38 = vector.shape_cast %37 : vector<16x16x128xf32> to vector<256x128xf32>
    %39 = arith.truncf %38 : vector<256x128xf32> to vector<256x128xbf16>
    %c4 = arith.constant 4 : index
    %c0_33 = arith.constant 0 : index
    %c0_34 = arith.constant 0 : index
    %40 = vector.load %arg4[%c4, %c0_33, %c0_34] : memref<9x128x128xbf16, #tpu.memory_space<vmem>>, vector<1x128x128xbf16>
    %41 = vector.shape_cast %40 : vector<1x128x128xbf16> to vector<128x128xbf16>
    %cst_35 = arith.constant dense<0.000000e+00> : vector<256x128xf32>
    %42 = tpu.matmul %39, %41, %cst_35 {dimension_numbers = #tpu.dot_dimension_numbers<[1], [0], [0], [1], [0, 0, 1, 1], [], []>} : vector<256x128xbf16>, vector<128x128xbf16>, vector<256x128xf32> -> vector<256x128xf32>
    %43 = arith.addf %35, %42 : vector<256x128xf32>
    %c0_36 = arith.constant 0 : index
    %c1_37 = arith.constant 1 : index
    %c2_38 = arith.constant 2 : index
    %c0_39 = arith.constant 0 : index
    %44 = vector.load %arg3[%c0_36, %c1_37, %c2_38, %c0_39] : memref<1x18x18x128xf32, #tpu.memory_space<vmem>>, vector<1x16x16x128xf32>
    %45 = vector.shape_cast %44 : vector<1x16x16x128xf32> to vector<16x16x128xf32>
    %46 = vector.shape_cast %45 : vector<16x16x128xf32> to vector<256x128xf32>
    %47 = arith.truncf %46 : vector<256x128xf32> to vector<256x128xbf16>
    %c5 = arith.constant 5 : index
    %c0_40 = arith.constant 0 : index
    %c0_41 = arith.constant 0 : index
    %48 = vector.load %arg4[%c5, %c0_40, %c0_41] : memref<9x128x128xbf16, #tpu.memory_space<vmem>>, vector<1x128x128xbf16>
    %49 = vector.shape_cast %48 : vector<1x128x128xbf16> to vector<128x128xbf16>
    %cst_42 = arith.constant dense<0.000000e+00> : vector<256x128xf32>
    %50 = tpu.matmul %47, %49, %cst_42 {dimension_numbers = #tpu.dot_dimension_numbers<[1], [0], [0], [1], [0, 0, 1, 1], [], []>} : vector<256x128xbf16>, vector<128x128xbf16>, vector<256x128xf32> -> vector<256x128xf32>
    %51 = arith.addf %43, %50 : vector<256x128xf32>
    %c0_43 = arith.constant 0 : index
    %c2_44 = arith.constant 2 : index
    %c0_45 = arith.constant 0 : index
    %c0_46 = arith.constant 0 : index
    %52 = vector.load %arg3[%c0_43, %c2_44, %c0_45, %c0_46] : memref<1x18x18x128xf32, #tpu.memory_space<vmem>>, vector<1x16x16x128xf32>
    %53 = vector.shape_cast %52 : vector<1x16x16x128xf32> to vector<16x16x128xf32>
    %54 = vector.shape_cast %53 : vector<16x16x128xf32> to vector<256x128xf32>
    %55 = arith.truncf %54 : vector<256x128xf32> to vector<256x128xbf16>
    %c6 = arith.constant 6 : index
    %c0_47 = arith.constant 0 : index
    %c0_48 = arith.constant 0 : index
    %56 = vector.load %arg4[%c6, %c0_47, %c0_48] : memref<9x128x128xbf16, #tpu.memory_space<vmem>>, vector<1x128x128xbf16>
    %57 = vector.shape_cast %56 : vector<1x128x128xbf16> to vector<128x128xbf16>
    %cst_49 = arith.constant dense<0.000000e+00> : vector<256x128xf32>
    %58 = tpu.matmul %55, %57, %cst_49 {dimension_numbers = #tpu.dot_dimension_numbers<[1], [0], [0], [1], [0, 0, 1, 1], [], []>} : vector<256x128xbf16>, vector<128x128xbf16>, vector<256x128xf32> -> vector<256x128xf32>
    %59 = arith.addf %51, %58 : vector<256x128xf32>
    %c0_50 = arith.constant 0 : index
    %c2_51 = arith.constant 2 : index
    %c1_52 = arith.constant 1 : index
    %c0_53 = arith.constant 0 : index
    %60 = vector.load %arg3[%c0_50, %c2_51, %c1_52, %c0_53] : memref<1x18x18x128xf32, #tpu.memory_space<vmem>>, vector<1x16x16x128xf32>
    %61 = vector.shape_cast %60 : vector<1x16x16x128xf32> to vector<16x16x128xf32>
    %62 = vector.shape_cast %61 : vector<16x16x128xf32> to vector<256x128xf32>
    %63 = arith.truncf %62 : vector<256x128xf32> to vector<256x128xbf16>
    %c7 = arith.constant 7 : index
    %c0_54 = arith.constant 0 : index
    %c0_55 = arith.constant 0 : index
    %64 = vector.load %arg4[%c7, %c0_54, %c0_55] : memref<9x128x128xbf16, #tpu.memory_space<vmem>>, vector<1x128x128xbf16>
    %65 = vector.shape_cast %64 : vector<1x128x128xbf16> to vector<128x128xbf16>
    %cst_56 = arith.constant dense<0.000000e+00> : vector<256x128xf32>
    %66 = tpu.matmul %63, %65, %cst_56 {dimension_numbers = #tpu.dot_dimension_numbers<[1], [0], [0], [1], [0, 0, 1, 1], [], []>} : vector<256x128xbf16>, vector<128x128xbf16>, vector<256x128xf32> -> vector<256x128xf32>
    %67 = arith.addf %59, %66 : vector<256x128xf32>
    %c0_57 = arith.constant 0 : index
    %c2_58 = arith.constant 2 : index
    %c2_59 = arith.constant 2 : index
    %c0_60 = arith.constant 0 : index
    %68 = vector.load %arg3[%c0_57, %c2_58, %c2_59, %c0_60] : memref<1x18x18x128xf32, #tpu.memory_space<vmem>>, vector<1x16x16x128xf32>
    %69 = vector.shape_cast %68 : vector<1x16x16x128xf32> to vector<16x16x128xf32>
    %70 = vector.shape_cast %69 : vector<16x16x128xf32> to vector<256x128xf32>
    %71 = arith.truncf %70 : vector<256x128xf32> to vector<256x128xbf16>
    %c8 = arith.constant 8 : index
    %c0_61 = arith.constant 0 : index
    %c0_62 = arith.constant 0 : index
    %72 = vector.load %arg4[%c8, %c0_61, %c0_62] : memref<9x128x128xbf16, #tpu.memory_space<vmem>>, vector<1x128x128xbf16>
    %73 = vector.shape_cast %72 : vector<1x128x128xbf16> to vector<128x128xbf16>
    %cst_63 = arith.constant dense<0.000000e+00> : vector<256x128xf32>
    %74 = tpu.matmul %71, %73, %cst_63 {dimension_numbers = #tpu.dot_dimension_numbers<[1], [0], [0], [1], [0, 0, 1, 1], [], []>} : vector<256x128xbf16>, vector<128x128xbf16>, vector<256x128xf32> -> vector<256x128xf32>
    %75 = arith.addf %67, %74 : vector<256x128xf32>
    %c0_64 = arith.constant 0 : index
    %c0_65 = arith.constant 0 : index
    %76 = vector.load %arg8[%c0_64, %c0_65] : memref<256x128xf32, #tpu.memory_space<vmem>>, vector<256x128xf32>
    %77 = arith.addf %76, %75 : vector<256x128xf32>
    %c0_66 = arith.constant 0 : index
    %c0_67 = arith.constant 0 : index
    %78 = vector.load %arg8[%c0_66, %c0_67] : memref<256x128xf32, #tpu.memory_space<vmem>>, vector<256x128xf32>
    tpu.vector_store %arg8[%c0_66, %c0_67], %77 {strides = array<i32>} : memref<256x128xf32, #tpu.memory_space<vmem>>, vector<256x128xf32>,
    %c0_i32_68 = arith.constant 0 : i32
    %79 = arith.cmpi eq, %arg2, %c0_i32_68 : i32
    %80 = arith.extui %79 : i1 to i32
    %c0_i32_69 = arith.constant 0 : i32
    %81 = arith.cmpi ne, %80, %c0_i32_69 : i32
    scf.if %81 {
      %c0_70 = arith.constant 0 : index
      %c0_71 = arith.constant 0 : index
      %82 = vector.load %arg8[%c0_70, %c0_71] : memref<256x128xf32, #tpu.memory_space<vmem>>, vector<256x128xf32>
      %c0_72 = arith.constant 0 : index
      %c0_73 = arith.constant 0 : index
      %83 = vector.load %arg5[%c0_72, %c0_73] : memref<1x128xf32, #tpu.memory_space<vmem>>, vector<1x128xf32>
      %84 = vector.broadcast %83 : vector<1x128xf32> to vector<256x128xf32>
      %85 = arith.mulf %82, %84 : vector<256x128xf32>
      %c0_74 = arith.constant 0 : index
      %c0_75 = arith.constant 0 : index
      %86 = vector.load %arg6[%c0_74, %c0_75] : memref<1x128xf32, #tpu.memory_space<vmem>>, vector<1x128xf32>
      %87 = vector.broadcast %86 : vector<1x128xf32> to vector<256x128xf32>
      %88 = arith.addf %85, %87 : vector<256x128xf32>
      %cst_76 = arith.constant 0.000000e+00 : f32
      %89 = vector.broadcast %cst_76 : f32 to vector<256x128xf32>
      %90 = arith.cmpf ogt, %88, %89 : vector<256x128xf32>
      %cst_77 = arith.constant 1.000000e-01 : f32
      %91 = vector.broadcast %cst_77 : f32 to vector<256x128xf32>
      %92 = arith.mulf %91, %88 : vector<256x128xf32>
      %93 = arith.select %90, %88, %92 : vector<256x128xi1>, vector<256x128xf32>
      %94 = vector.shape_cast %93 : vector<256x128xf32> to vector<16x16x128xf32>
      %c0_78 = arith.constant 0 : index
      %c0_79 = arith.constant 0 : index
      %c0_80 = arith.constant 0 : index
      %c0_81 = arith.constant 0 : index
      %95 = vector.load %arg7[%c0_78, %c0_79, %c0_80, %c0_81] : memref<1x16x16x128xf32, #tpu.memory_space<vmem>>, vector<1x16x16x128xf32>
      %96 = vector.shape_cast %95 : vector<1x16x16x128xf32> to vector<16x16x128xf32>
      %97 = vector.shape_cast %94 : vector<16x16x128xf32> to vector<1x16x16x128xf32>
      tpu.vector_store %arg7[%c0_78, %c0_79, %c0_80, %c0_81], %97 {strides = array<i32>} : memref<1x16x16x128xf32, #tpu.memory_space<vmem>>, vector<1x16x16x128xf32>,
    } else {
    }
    return
  }
  func.func @transform_0(%arg0: i32, %arg1: i32, %arg2: i32) -> (i32, i32, i32, i32) {
    %c0_i32 = arith.constant 0 : i32
    %c0_i32_0 = arith.constant 0 : i32
    %c0_i32_1 = arith.constant 0 : i32
    return %arg0, %c0_i32, %c0_i32_0, %arg2 : i32, i32, i32, i32
  }
  func.func @transform_1(%arg0: i32, %arg1: i32, %arg2: i32) -> (i32, i32, i32) {
    %c0_i32 = arith.constant 0 : i32
    %c0_i32_0 = arith.constant 0 : i32
    return %c0_i32, %arg2, %arg1 : i32, i32, i32
  }
  func.func @transform_2(%arg0: i32, %arg1: i32, %arg2: i32) -> (i32, i32) {
    %c0_i32 = arith.constant 0 : i32
    %c0_i32_0 = arith.constant 0 : i32
    return %c0_i32, %arg1 : i32, i32
  }
  func.func @transform_3(%arg0: i32, %arg1: i32, %arg2: i32) -> (i32, i32) {
    %c0_i32 = arith.constant 0 : i32
    %c0_i32_0 = arith.constant 0 : i32
    return %c0_i32, %arg1 : i32, i32
  }
  func.func @transform_4(%arg0: i32, %arg1: i32, %arg2: i32) -> (i32, i32, i32, i32) {
    %c0_i32 = arith.constant 0 : i32
    %c0_i32_0 = arith.constant 0 : i32
    %c0_i32_1 = arith.constant 0 : i32
    return %arg0, %c0_i32, %c0_i32_0, %arg1 : i32, i32, i32, i32
  }
}

module attributes {stable_mosaic.version = 11 : i64} {
  func.func @_add_kernel(%arg0: i32, %arg1: memref<512x128xf32, #tpu.memory_space<vmem>>, %arg2: memref<512x128xf32, #tpu.memory_space<vmem>>, %arg3: memref<512x128xf32, #tpu.memory_space<vmem>>) attributes {dimension_semantics = [#tpu.dimension_semantics<parallel>], iteration_bounds = array<i64: 1>, scalar_prefetch = 0 : i64, scratch_operands = 0 : i64, tpu.core_type = #tpu.core_type<tc>, window_params = [{transform_indices = @transform_0, window_bounds = array<i64: 512, 128>}, {transform_indices = @transform_1, window_bounds = array<i64: 512, 128>}, {transform_indices = @transform_2, window_bounds = array<i64: 512, 128>}]} {
    %c0 = arith.constant 0 : index
    %c0_0 = arith.constant 0 : index
    %0 = vector.load %arg1[%c0, %c0_0] : memref<512x128xf32, #tpu.memory_space<vmem>>, vector<512x128xf32>
    %c0_1 = arith.constant 0 : index
    %c0_2 = arith.constant 0 : index
    %1 = vector.load %arg2[%c0_1, %c0_2] : memref<512x128xf32, #tpu.memory_space<vmem>>, vector<512x128xf32>
    %2 = arith.addf %0, %1 : vector<512x128xf32>
    %c0_3 = arith.constant 0 : index
    %c0_4 = arith.constant 0 : index
    %3 = vector.load %arg3[%c0_3, %c0_4] : memref<512x128xf32, #tpu.memory_space<vmem>>, vector<512x128xf32>
    tpu.vector_store %arg3[%c0_3, %c0_4], %2 {strides = array<i32>} : memref<512x128xf32, #tpu.memory_space<vmem>>, vector<512x128xf32>,
    return
  }
  func.func @transform_0(%arg0: i32) -> (i32, i32) {
    %c0_i32 = arith.constant 0 : i32
    %c0_i32_0 = arith.constant 0 : i32
    return %arg0, %c0_i32 : i32, i32
  }
  func.func @transform_1(%arg0: i32) -> (i32, i32) {
    %c0_i32 = arith.constant 0 : i32
    %c0_i32_0 = arith.constant 0 : i32
    return %arg0, %c0_i32 : i32, i32
  }
  func.func @transform_2(%arg0: i32) -> (i32, i32) {
    %c0_i32 = arith.constant 0 : i32
    %c0_i32_0 = arith.constant 0 : i32
    return %arg0, %c0_i32 : i32, i32
  }
}

module attributes {stable_mosaic.version = 11 : i64} {
  func.func @_maxpool2_kernel(%arg0: i32, %arg1: memref<1x8x2x8x2x128xf32, #tpu.memory_space<vmem>>, %arg2: memref<1x8x8x128xf32, #tpu.memory_space<vmem>>) attributes {dimension_semantics = [#tpu.dimension_semantics<parallel>], iteration_bounds = array<i64: 2>, scalar_prefetch = 0 : i64, scratch_operands = 0 : i64, tpu.core_type = #tpu.core_type<tc>, window_params = [{transform_indices = @transform_0, window_bounds = array<i64: 1, 8, 2, 8, 2, 128>}, {transform_indices = @transform_1, window_bounds = array<i64: 1, 8, 8, 128>}]} {
    %c0 = arith.constant 0 : index
    %c0_0 = arith.constant 0 : index
    %c0_1 = arith.constant 0 : index
    %c0_2 = arith.constant 0 : index
    %c0_3 = arith.constant 0 : index
    %c0_4 = arith.constant 0 : index
    %0 = vector.load %arg1[%c0, %c0_0, %c0_1, %c0_2, %c0_3, %c0_4] : memref<1x8x2x8x2x128xf32, #tpu.memory_space<vmem>>, vector<1x8x1x8x1x128xf32>
    %1 = vector.shape_cast %0 : vector<1x8x1x8x1x128xf32> to vector<8x8x128xf32>
    %c0_5 = arith.constant 0 : index
    %c0_6 = arith.constant 0 : index
    %c0_7 = arith.constant 0 : index
    %c0_8 = arith.constant 0 : index
    %c1 = arith.constant 1 : index
    %c0_9 = arith.constant 0 : index
    %2 = vector.load %arg1[%c0_5, %c0_6, %c0_7, %c0_8, %c1, %c0_9] : memref<1x8x2x8x2x128xf32, #tpu.memory_space<vmem>>, vector<1x8x1x8x1x128xf32>
    %3 = vector.shape_cast %2 : vector<1x8x1x8x1x128xf32> to vector<8x8x128xf32>
    %c0_10 = arith.constant 0 : index
    %c0_11 = arith.constant 0 : index
    %c1_12 = arith.constant 1 : index
    %c0_13 = arith.constant 0 : index
    %c0_14 = arith.constant 0 : index
    %c0_15 = arith.constant 0 : index
    %4 = vector.load %arg1[%c0_10, %c0_11, %c1_12, %c0_13, %c0_14, %c0_15] : memref<1x8x2x8x2x128xf32, #tpu.memory_space<vmem>>, vector<1x8x1x8x1x128xf32>
    %5 = vector.shape_cast %4 : vector<1x8x1x8x1x128xf32> to vector<8x8x128xf32>
    %c0_16 = arith.constant 0 : index
    %c0_17 = arith.constant 0 : index
    %c1_18 = arith.constant 1 : index
    %c0_19 = arith.constant 0 : index
    %c1_20 = arith.constant 1 : index
    %c0_21 = arith.constant 0 : index
    %6 = vector.load %arg1[%c0_16, %c0_17, %c1_18, %c0_19, %c1_20, %c0_21] : memref<1x8x2x8x2x128xf32, #tpu.memory_space<vmem>>, vector<1x8x1x8x1x128xf32>
    %7 = vector.shape_cast %6 : vector<1x8x1x8x1x128xf32> to vector<8x8x128xf32>
    %8 = arith.maximumf %1, %3 : vector<8x8x128xf32>
    %9 = arith.maximumf %5, %7 : vector<8x8x128xf32>
    %10 = arith.maximumf %8, %9 : vector<8x8x128xf32>
    %c0_22 = arith.constant 0 : index
    %c0_23 = arith.constant 0 : index
    %c0_24 = arith.constant 0 : index
    %c0_25 = arith.constant 0 : index
    %11 = vector.load %arg2[%c0_22, %c0_23, %c0_24, %c0_25] : memref<1x8x8x128xf32, #tpu.memory_space<vmem>>, vector<1x8x8x128xf32>
    %12 = vector.shape_cast %11 : vector<1x8x8x128xf32> to vector<8x8x128xf32>
    %13 = vector.shape_cast %10 : vector<8x8x128xf32> to vector<1x8x8x128xf32>
    tpu.vector_store %arg2[%c0_22, %c0_23, %c0_24, %c0_25], %13 {strides = array<i32>} : memref<1x8x8x128xf32, #tpu.memory_space<vmem>>, vector<1x8x8x128xf32>,
    return
  }
  func.func @transform_0(%arg0: i32) -> (i32, i32, i32, i32, i32, i32) {
    %c0_i32 = arith.constant 0 : i32
    %c0_i32_0 = arith.constant 0 : i32
    %c0_i32_1 = arith.constant 0 : i32
    %c0_i32_2 = arith.constant 0 : i32
    %c0_i32_3 = arith.constant 0 : i32
    %c0_i32_4 = arith.constant 0 : i32
    return %arg0, %c0_i32, %c0_i32_0, %c0_i32_1, %c0_i32_2, %c0_i32_3 : i32, i32, i32, i32, i32, i32
  }
  func.func @transform_1(%arg0: i32) -> (i32, i32, i32, i32) {
    %c0_i32 = arith.constant 0 : i32
    %c0_i32_0 = arith.constant 0 : i32
    %c0_i32_1 = arith.constant 0 : i32
    %c0_i32_2 = arith.constant 0 : i32
    return %arg0, %c0_i32, %c0_i32_0, %c0_i32_1 : i32, i32, i32, i32
  }
}

module attributes {stable_mosaic.version = 11 : i64} {
  func.func @_conv_kernel(%arg0: i32, %arg1: i32, %arg2: i32, %arg3: memref<1x10x10x128xf32, #tpu.memory_space<vmem>>, %arg4: memref<9x128x128xbf16, #tpu.memory_space<vmem>>, %arg5: memref<1x128xf32, #tpu.memory_space<vmem>>, %arg6: memref<1x128xf32, #tpu.memory_space<vmem>>, %arg7: memref<1x8x8x128xf32, #tpu.memory_space<vmem>>, %arg8: memref<64x128xf32, #tpu.memory_space<vmem>>) attributes {dimension_semantics = [#tpu.dimension_semantics<parallel>, #tpu.dimension_semantics<parallel>, #tpu.dimension_semantics<arbitrary>], iteration_bounds = array<i64: 2, 1, 1>, scalar_prefetch = 0 : i64, scratch_operands = 1 : i64, tpu.core_type = #tpu.core_type<tc>, window_params = [{transform_indices = @transform_0, window_bounds = array<i64: 1, 10, 10, 128>}, {transform_indices = @transform_1, window_bounds = array<i64: 9, 128, 128>}, {transform_indices = @transform_2, window_bounds = array<i64: 1, 128>}, {transform_indices = @transform_3, window_bounds = array<i64: 1, 128>}, {transform_indices = @transform_4, window_bounds = array<i64: 1, 8, 8, 128>}]} {
    %c0_i32 = arith.constant 0 : i32
    %0 = arith.cmpi eq, %arg2, %c0_i32 : i32
    %1 = arith.extui %0 : i1 to i32
    %c0_i32_0 = arith.constant 0 : i32
    %2 = arith.cmpi ne, %1, %c0_i32_0 : i32
    scf.if %2 {
      %cst_70 = arith.constant 0.000000e+00 : f32
      %82 = vector.broadcast %cst_70 : f32 to vector<64x128xf32>
      %c0_71 = arith.constant 0 : index
      %c0_72 = arith.constant 0 : index
      %83 = vector.load %arg8[%c0_71, %c0_72] : memref<64x128xf32, #tpu.memory_space<vmem>>, vector<64x128xf32>
      tpu.vector_store %arg8[%c0_71, %c0_72], %82 {strides = array<i32>} : memref<64x128xf32, #tpu.memory_space<vmem>>, vector<64x128xf32>,
    } else {
    }
    %cst = arith.constant 0.000000e+00 : f32
    %3 = vector.broadcast %cst : f32 to vector<64x128xf32>
    %c0 = arith.constant 0 : index
    %c0_1 = arith.constant 0 : index
    %c0_2 = arith.constant 0 : index
    %c0_3 = arith.constant 0 : index
    %4 = vector.load %arg3[%c0, %c0_1, %c0_2, %c0_3] : memref<1x10x10x128xf32, #tpu.memory_space<vmem>>, vector<1x8x8x128xf32>
    %5 = vector.shape_cast %4 : vector<1x8x8x128xf32> to vector<8x8x128xf32>
    %6 = vector.shape_cast %5 : vector<8x8x128xf32> to vector<64x128xf32>
    %7 = arith.truncf %6 : vector<64x128xf32> to vector<64x128xbf16>
    %c0_4 = arith.constant 0 : index
    %c0_5 = arith.constant 0 : index
    %c0_6 = arith.constant 0 : index
    %8 = vector.load %arg4[%c0_4, %c0_5, %c0_6] : memref<9x128x128xbf16, #tpu.memory_space<vmem>>, vector<1x128x128xbf16>
    %9 = vector.shape_cast %8 : vector<1x128x128xbf16> to vector<128x128xbf16>
    %cst_7 = arith.constant dense<0.000000e+00> : vector<64x128xf32>
    %10 = tpu.matmul %7, %9, %cst_7 {dimension_numbers = #tpu.dot_dimension_numbers<[1], [0], [0], [1], [0, 0, 1, 1], [], []>} : vector<64x128xbf16>, vector<128x128xbf16>, vector<64x128xf32> -> vector<64x128xf32>
    %11 = arith.addf %3, %10 : vector<64x128xf32>
    %c0_8 = arith.constant 0 : index
    %c0_9 = arith.constant 0 : index
    %c1 = arith.constant 1 : index
    %c0_10 = arith.constant 0 : index
    %12 = vector.load %arg3[%c0_8, %c0_9, %c1, %c0_10] : memref<1x10x10x128xf32, #tpu.memory_space<vmem>>, vector<1x8x8x128xf32>
    %13 = vector.shape_cast %12 : vector<1x8x8x128xf32> to vector<8x8x128xf32>
    %14 = vector.shape_cast %13 : vector<8x8x128xf32> to vector<64x128xf32>
    %15 = arith.truncf %14 : vector<64x128xf32> to vector<64x128xbf16>
    %c1_11 = arith.constant 1 : index
    %c0_12 = arith.constant 0 : index
    %c0_13 = arith.constant 0 : index
    %16 = vector.load %arg4[%c1_11, %c0_12, %c0_13] : memref<9x128x128xbf16, #tpu.memory_space<vmem>>, vector<1x128x128xbf16>
    %17 = vector.shape_cast %16 : vector<1x128x128xbf16> to vector<128x128xbf16>
    %cst_14 = arith.constant dense<0.000000e+00> : vector<64x128xf32>
    %18 = tpu.matmul %15, %17, %cst_14 {dimension_numbers = #tpu.dot_dimension_numbers<[1], [0], [0], [1], [0, 0, 1, 1], [], []>} : vector<64x128xbf16>, vector<128x128xbf16>, vector<64x128xf32> -> vector<64x128xf32>
    %19 = arith.addf %11, %18 : vector<64x128xf32>
    %c0_15 = arith.constant 0 : index
    %c0_16 = arith.constant 0 : index
    %c2 = arith.constant 2 : index
    %c0_17 = arith.constant 0 : index
    %20 = vector.load %arg3[%c0_15, %c0_16, %c2, %c0_17] : memref<1x10x10x128xf32, #tpu.memory_space<vmem>>, vector<1x8x8x128xf32>
    %21 = vector.shape_cast %20 : vector<1x8x8x128xf32> to vector<8x8x128xf32>
    %22 = vector.shape_cast %21 : vector<8x8x128xf32> to vector<64x128xf32>
    %23 = arith.truncf %22 : vector<64x128xf32> to vector<64x128xbf16>
    %c2_18 = arith.constant 2 : index
    %c0_19 = arith.constant 0 : index
    %c0_20 = arith.constant 0 : index
    %24 = vector.load %arg4[%c2_18, %c0_19, %c0_20] : memref<9x128x128xbf16, #tpu.memory_space<vmem>>, vector<1x128x128xbf16>
    %25 = vector.shape_cast %24 : vector<1x128x128xbf16> to vector<128x128xbf16>
    %cst_21 = arith.constant dense<0.000000e+00> : vector<64x128xf32>
    %26 = tpu.matmul %23, %25, %cst_21 {dimension_numbers = #tpu.dot_dimension_numbers<[1], [0], [0], [1], [0, 0, 1, 1], [], []>} : vector<64x128xbf16>, vector<128x128xbf16>, vector<64x128xf32> -> vector<64x128xf32>
    %27 = arith.addf %19, %26 : vector<64x128xf32>
    %c0_22 = arith.constant 0 : index
    %c1_23 = arith.constant 1 : index
    %c0_24 = arith.constant 0 : index
    %c0_25 = arith.constant 0 : index
    %28 = vector.load %arg3[%c0_22, %c1_23, %c0_24, %c0_25] : memref<1x10x10x128xf32, #tpu.memory_space<vmem>>, vector<1x8x8x128xf32>
    %29 = vector.shape_cast %28 : vector<1x8x8x128xf32> to vector<8x8x128xf32>
    %30 = vector.shape_cast %29 : vector<8x8x128xf32> to vector<64x128xf32>
    %31 = arith.truncf %30 : vector<64x128xf32> to vector<64x128xbf16>
    %c3 = arith.constant 3 : index
    %c0_26 = arith.constant 0 : index
    %c0_27 = arith.constant 0 : index
    %32 = vector.load %arg4[%c3, %c0_26, %c0_27] : memref<9x128x128xbf16, #tpu.memory_space<vmem>>, vector<1x128x128xbf16>
    %33 = vector.shape_cast %32 : vector<1x128x128xbf16> to vector<128x128xbf16>
    %cst_28 = arith.constant dense<0.000000e+00> : vector<64x128xf32>
    %34 = tpu.matmul %31, %33, %cst_28 {dimension_numbers = #tpu.dot_dimension_numbers<[1], [0], [0], [1], [0, 0, 1, 1], [], []>} : vector<64x128xbf16>, vector<128x128xbf16>, vector<64x128xf32> -> vector<64x128xf32>
    %35 = arith.addf %27, %34 : vector<64x128xf32>
    %c0_29 = arith.constant 0 : index
    %c1_30 = arith.constant 1 : index
    %c1_31 = arith.constant 1 : index
    %c0_32 = arith.constant 0 : index
    %36 = vector.load %arg3[%c0_29, %c1_30, %c1_31, %c0_32] : memref<1x10x10x128xf32, #tpu.memory_space<vmem>>, vector<1x8x8x128xf32>
    %37 = vector.shape_cast %36 : vector<1x8x8x128xf32> to vector<8x8x128xf32>
    %38 = vector.shape_cast %37 : vector<8x8x128xf32> to vector<64x128xf32>
    %39 = arith.truncf %38 : vector<64x128xf32> to vector<64x128xbf16>
    %c4 = arith.constant 4 : index
    %c0_33 = arith.constant 0 : index
    %c0_34 = arith.constant 0 : index
    %40 = vector.load %arg4[%c4, %c0_33, %c0_34] : memref<9x128x128xbf16, #tpu.memory_space<vmem>>, vector<1x128x128xbf16>
    %41 = vector.shape_cast %40 : vector<1x128x128xbf16> to vector<128x128xbf16>
    %cst_35 = arith.constant dense<0.000000e+00> : vector<64x128xf32>
    %42 = tpu.matmul %39, %41, %cst_35 {dimension_numbers = #tpu.dot_dimension_numbers<[1], [0], [0], [1], [0, 0, 1, 1], [], []>} : vector<64x128xbf16>, vector<128x128xbf16>, vector<64x128xf32> -> vector<64x128xf32>
    %43 = arith.addf %35, %42 : vector<64x128xf32>
    %c0_36 = arith.constant 0 : index
    %c1_37 = arith.constant 1 : index
    %c2_38 = arith.constant 2 : index
    %c0_39 = arith.constant 0 : index
    %44 = vector.load %arg3[%c0_36, %c1_37, %c2_38, %c0_39] : memref<1x10x10x128xf32, #tpu.memory_space<vmem>>, vector<1x8x8x128xf32>
    %45 = vector.shape_cast %44 : vector<1x8x8x128xf32> to vector<8x8x128xf32>
    %46 = vector.shape_cast %45 : vector<8x8x128xf32> to vector<64x128xf32>
    %47 = arith.truncf %46 : vector<64x128xf32> to vector<64x128xbf16>
    %c5 = arith.constant 5 : index
    %c0_40 = arith.constant 0 : index
    %c0_41 = arith.constant 0 : index
    %48 = vector.load %arg4[%c5, %c0_40, %c0_41] : memref<9x128x128xbf16, #tpu.memory_space<vmem>>, vector<1x128x128xbf16>
    %49 = vector.shape_cast %48 : vector<1x128x128xbf16> to vector<128x128xbf16>
    %cst_42 = arith.constant dense<0.000000e+00> : vector<64x128xf32>
    %50 = tpu.matmul %47, %49, %cst_42 {dimension_numbers = #tpu.dot_dimension_numbers<[1], [0], [0], [1], [0, 0, 1, 1], [], []>} : vector<64x128xbf16>, vector<128x128xbf16>, vector<64x128xf32> -> vector<64x128xf32>
    %51 = arith.addf %43, %50 : vector<64x128xf32>
    %c0_43 = arith.constant 0 : index
    %c2_44 = arith.constant 2 : index
    %c0_45 = arith.constant 0 : index
    %c0_46 = arith.constant 0 : index
    %52 = vector.load %arg3[%c0_43, %c2_44, %c0_45, %c0_46] : memref<1x10x10x128xf32, #tpu.memory_space<vmem>>, vector<1x8x8x128xf32>
    %53 = vector.shape_cast %52 : vector<1x8x8x128xf32> to vector<8x8x128xf32>
    %54 = vector.shape_cast %53 : vector<8x8x128xf32> to vector<64x128xf32>
    %55 = arith.truncf %54 : vector<64x128xf32> to vector<64x128xbf16>
    %c6 = arith.constant 6 : index
    %c0_47 = arith.constant 0 : index
    %c0_48 = arith.constant 0 : index
    %56 = vector.load %arg4[%c6, %c0_47, %c0_48] : memref<9x128x128xbf16, #tpu.memory_space<vmem>>, vector<1x128x128xbf16>
    %57 = vector.shape_cast %56 : vector<1x128x128xbf16> to vector<128x128xbf16>
    %cst_49 = arith.constant dense<0.000000e+00> : vector<64x128xf32>
    %58 = tpu.matmul %55, %57, %cst_49 {dimension_numbers = #tpu.dot_dimension_numbers<[1], [0], [0], [1], [0, 0, 1, 1], [], []>} : vector<64x128xbf16>, vector<128x128xbf16>, vector<64x128xf32> -> vector<64x128xf32>
    %59 = arith.addf %51, %58 : vector<64x128xf32>
    %c0_50 = arith.constant 0 : index
    %c2_51 = arith.constant 2 : index
    %c1_52 = arith.constant 1 : index
    %c0_53 = arith.constant 0 : index
    %60 = vector.load %arg3[%c0_50, %c2_51, %c1_52, %c0_53] : memref<1x10x10x128xf32, #tpu.memory_space<vmem>>, vector<1x8x8x128xf32>
    %61 = vector.shape_cast %60 : vector<1x8x8x128xf32> to vector<8x8x128xf32>
    %62 = vector.shape_cast %61 : vector<8x8x128xf32> to vector<64x128xf32>
    %63 = arith.truncf %62 : vector<64x128xf32> to vector<64x128xbf16>
    %c7 = arith.constant 7 : index
    %c0_54 = arith.constant 0 : index
    %c0_55 = arith.constant 0 : index
    %64 = vector.load %arg4[%c7, %c0_54, %c0_55] : memref<9x128x128xbf16, #tpu.memory_space<vmem>>, vector<1x128x128xbf16>
    %65 = vector.shape_cast %64 : vector<1x128x128xbf16> to vector<128x128xbf16>
    %cst_56 = arith.constant dense<0.000000e+00> : vector<64x128xf32>
    %66 = tpu.matmul %63, %65, %cst_56 {dimension_numbers = #tpu.dot_dimension_numbers<[1], [0], [0], [1], [0, 0, 1, 1], [], []>} : vector<64x128xbf16>, vector<128x128xbf16>, vector<64x128xf32> -> vector<64x128xf32>
    %67 = arith.addf %59, %66 : vector<64x128xf32>
    %c0_57 = arith.constant 0 : index
    %c2_58 = arith.constant 2 : index
    %c2_59 = arith.constant 2 : index
    %c0_60 = arith.constant 0 : index
    %68 = vector.load %arg3[%c0_57, %c2_58, %c2_59, %c0_60] : memref<1x10x10x128xf32, #tpu.memory_space<vmem>>, vector<1x8x8x128xf32>
    %69 = vector.shape_cast %68 : vector<1x8x8x128xf32> to vector<8x8x128xf32>
    %70 = vector.shape_cast %69 : vector<8x8x128xf32> to vector<64x128xf32>
    %71 = arith.truncf %70 : vector<64x128xf32> to vector<64x128xbf16>
    %c8 = arith.constant 8 : index
    %c0_61 = arith.constant 0 : index
    %c0_62 = arith.constant 0 : index
    %72 = vector.load %arg4[%c8, %c0_61, %c0_62] : memref<9x128x128xbf16, #tpu.memory_space<vmem>>, vector<1x128x128xbf16>
    %73 = vector.shape_cast %72 : vector<1x128x128xbf16> to vector<128x128xbf16>
    %cst_63 = arith.constant dense<0.000000e+00> : vector<64x128xf32>
    %74 = tpu.matmul %71, %73, %cst_63 {dimension_numbers = #tpu.dot_dimension_numbers<[1], [0], [0], [1], [0, 0, 1, 1], [], []>} : vector<64x128xbf16>, vector<128x128xbf16>, vector<64x128xf32> -> vector<64x128xf32>
    %75 = arith.addf %67, %74 : vector<64x128xf32>
    %c0_64 = arith.constant 0 : index
    %c0_65 = arith.constant 0 : index
    %76 = vector.load %arg8[%c0_64, %c0_65] : memref<64x128xf32, #tpu.memory_space<vmem>>, vector<64x128xf32>
    %77 = arith.addf %76, %75 : vector<64x128xf32>
    %c0_66 = arith.constant 0 : index
    %c0_67 = arith.constant 0 : index
    %78 = vector.load %arg8[%c0_66, %c0_67] : memref<64x128xf32, #tpu.memory_space<vmem>>, vector<64x128xf32>
    tpu.vector_store %arg8[%c0_66, %c0_67], %77 {strides = array<i32>} : memref<64x128xf32, #tpu.memory_space<vmem>>, vector<64x128xf32>,
    %c0_i32_68 = arith.constant 0 : i32
    %79 = arith.cmpi eq, %arg2, %c0_i32_68 : i32
    %80 = arith.extui %79 : i1 to i32
    %c0_i32_69 = arith.constant 0 : i32
    %81 = arith.cmpi ne, %80, %c0_i32_69 : i32
    scf.if %81 {
      %c0_70 = arith.constant 0 : index
      %c0_71 = arith.constant 0 : index
      %82 = vector.load %arg8[%c0_70, %c0_71] : memref<64x128xf32, #tpu.memory_space<vmem>>, vector<64x128xf32>
      %c0_72 = arith.constant 0 : index
      %c0_73 = arith.constant 0 : index
      %83 = vector.load %arg5[%c0_72, %c0_73] : memref<1x128xf32, #tpu.memory_space<vmem>>, vector<1x128xf32>
      %84 = vector.broadcast %83 : vector<1x128xf32> to vector<64x128xf32>
      %85 = arith.mulf %82, %84 : vector<64x128xf32>
      %c0_74 = arith.constant 0 : index
      %c0_75 = arith.constant 0 : index
      %86 = vector.load %arg6[%c0_74, %c0_75] : memref<1x128xf32, #tpu.memory_space<vmem>>, vector<1x128xf32>
      %87 = vector.broadcast %86 : vector<1x128xf32> to vector<64x128xf32>
      %88 = arith.addf %85, %87 : vector<64x128xf32>
      %cst_76 = arith.constant 0.000000e+00 : f32
      %89 = vector.broadcast %cst_76 : f32 to vector<64x128xf32>
      %90 = arith.cmpf ogt, %88, %89 : vector<64x128xf32>
      %cst_77 = arith.constant 1.000000e-01 : f32
      %91 = vector.broadcast %cst_77 : f32 to vector<64x128xf32>
      %92 = arith.mulf %91, %88 : vector<64x128xf32>
      %93 = arith.select %90, %88, %92 : vector<64x128xi1>, vector<64x128xf32>
      %94 = vector.shape_cast %93 : vector<64x128xf32> to vector<8x8x128xf32>
      %c0_78 = arith.constant 0 : index
      %c0_79 = arith.constant 0 : index
      %c0_80 = arith.constant 0 : index
      %c0_81 = arith.constant 0 : index
      %95 = vector.load %arg7[%c0_78, %c0_79, %c0_80, %c0_81] : memref<1x8x8x128xf32, #tpu.memory_space<vmem>>, vector<1x8x8x128xf32>
      %96 = vector.shape_cast %95 : vector<1x8x8x128xf32> to vector<8x8x128xf32>
      %97 = vector.shape_cast %94 : vector<8x8x128xf32> to vector<1x8x8x128xf32>
      tpu.vector_store %arg7[%c0_78, %c0_79, %c0_80, %c0_81], %97 {strides = array<i32>} : memref<1x8x8x128xf32, #tpu.memory_space<vmem>>, vector<1x8x8x128xf32>,
    } else {
    }
    return
  }
  func.func @transform_0(%arg0: i32, %arg1: i32, %arg2: i32) -> (i32, i32, i32, i32) {
    %c0_i32 = arith.constant 0 : i32
    %c0_i32_0 = arith.constant 0 : i32
    %c0_i32_1 = arith.constant 0 : i32
    return %arg0, %c0_i32, %c0_i32_0, %arg2 : i32, i32, i32, i32
  }
  func.func @transform_1(%arg0: i32, %arg1: i32, %arg2: i32) -> (i32, i32, i32) {
    %c0_i32 = arith.constant 0 : i32
    %c0_i32_0 = arith.constant 0 : i32
    return %c0_i32, %arg2, %arg1 : i32, i32, i32
  }
  func.func @transform_2(%arg0: i32, %arg1: i32, %arg2: i32) -> (i32, i32) {
    %c0_i32 = arith.constant 0 : i32
    %c0_i32_0 = arith.constant 0 : i32
    return %c0_i32, %arg1 : i32, i32
  }
  func.func @transform_3(%arg0: i32, %arg1: i32, %arg2: i32) -> (i32, i32) {
    %c0_i32 = arith.constant 0 : i32
    %c0_i32_0 = arith.constant 0 : i32
    return %c0_i32, %arg1 : i32, i32
  }
  func.func @transform_4(%arg0: i32, %arg1: i32, %arg2: i32) -> (i32, i32, i32, i32) {
    %c0_i32 = arith.constant 0 : i32
    %c0_i32_0 = arith.constant 0 : i32
    %c0_i32_1 = arith.constant 0 : i32
    return %arg0, %c0_i32, %c0_i32_0, %arg1 : i32, i32, i32, i32
  }
}

module attributes {stable_mosaic.version = 11 : i64} {
  func.func @_conv_kernel(%arg0: i32, %arg1: i32, %arg2: i32, %arg3: memref<1x8x8x128xf32, #tpu.memory_space<vmem>>, %arg4: memref<1x128x128xbf16, #tpu.memory_space<vmem>>, %arg5: memref<1x128xf32, #tpu.memory_space<vmem>>, %arg6: memref<1x128xf32, #tpu.memory_space<vmem>>, %arg7: memref<1x8x8x128xf32, #tpu.memory_space<vmem>>, %arg8: memref<64x128xf32, #tpu.memory_space<vmem>>) attributes {dimension_semantics = [#tpu.dimension_semantics<parallel>, #tpu.dimension_semantics<parallel>, #tpu.dimension_semantics<arbitrary>], iteration_bounds = array<i64: 2, 1, 1>, scalar_prefetch = 0 : i64, scratch_operands = 1 : i64, tpu.core_type = #tpu.core_type<tc>, window_params = [{transform_indices = @transform_0, window_bounds = array<i64: 1, 8, 8, 128>}, {transform_indices = @transform_1, window_bounds = array<i64: 1, 128, 128>}, {transform_indices = @transform_2, window_bounds = array<i64: 1, 128>}, {transform_indices = @transform_3, window_bounds = array<i64: 1, 128>}, {transform_indices = @transform_4, window_bounds = array<i64: 1, 8, 8, 128>}]} {
    %c0_i32 = arith.constant 0 : i32
    %0 = arith.cmpi eq, %arg2, %c0_i32 : i32
    %1 = arith.extui %0 : i1 to i32
    %c0_i32_0 = arith.constant 0 : i32
    %2 = arith.cmpi ne, %1, %c0_i32_0 : i32
    scf.if %2 {
      %cst_14 = arith.constant 0.000000e+00 : f32
      %18 = vector.broadcast %cst_14 : f32 to vector<64x128xf32>
      %c0_15 = arith.constant 0 : index
      %c0_16 = arith.constant 0 : index
      %19 = vector.load %arg8[%c0_15, %c0_16] : memref<64x128xf32, #tpu.memory_space<vmem>>, vector<64x128xf32>
      tpu.vector_store %arg8[%c0_15, %c0_16], %18 {strides = array<i32>} : memref<64x128xf32, #tpu.memory_space<vmem>>, vector<64x128xf32>,
    } else {
    }
    %cst = arith.constant 0.000000e+00 : f32
    %3 = vector.broadcast %cst : f32 to vector<64x128xf32>
    %c0 = arith.constant 0 : index
    %c0_1 = arith.constant 0 : index
    %c0_2 = arith.constant 0 : index
    %c0_3 = arith.constant 0 : index
    %4 = vector.load %arg3[%c0, %c0_1, %c0_2, %c0_3] : memref<1x8x8x128xf32, #tpu.memory_space<vmem>>, vector<1x8x8x128xf32>
    %5 = vector.shape_cast %4 : vector<1x8x8x128xf32> to vector<8x8x128xf32>
    %6 = vector.shape_cast %5 : vector<8x8x128xf32> to vector<64x128xf32>
    %7 = arith.truncf %6 : vector<64x128xf32> to vector<64x128xbf16>
    %c0_4 = arith.constant 0 : index
    %c0_5 = arith.constant 0 : index
    %c0_6 = arith.constant 0 : index
    %8 = vector.load %arg4[%c0_4, %c0_5, %c0_6] : memref<1x128x128xbf16, #tpu.memory_space<vmem>>, vector<1x128x128xbf16>
    %9 = vector.shape_cast %8 : vector<1x128x128xbf16> to vector<128x128xbf16>
    %cst_7 = arith.constant dense<0.000000e+00> : vector<64x128xf32>
    %10 = tpu.matmul %7, %9, %cst_7 {dimension_numbers = #tpu.dot_dimension_numbers<[1], [0], [0], [1], [0, 0, 1, 1], [], []>} : vector<64x128xbf16>, vector<128x128xbf16>, vector<64x128xf32> -> vector<64x128xf32>
    %11 = arith.addf %3, %10 : vector<64x128xf32>
    %c0_8 = arith.constant 0 : index
    %c0_9 = arith.constant 0 : index
    %12 = vector.load %arg8[%c0_8, %c0_9] : memref<64x128xf32, #tpu.memory_space<vmem>>, vector<64x128xf32>
    %13 = arith.addf %12, %11 : vector<64x128xf32>
    %c0_10 = arith.constant 0 : index
    %c0_11 = arith.constant 0 : index
    %14 = vector.load %arg8[%c0_10, %c0_11] : memref<64x128xf32, #tpu.memory_space<vmem>>, vector<64x128xf32>
    tpu.vector_store %arg8[%c0_10, %c0_11], %13 {strides = array<i32>} : memref<64x128xf32, #tpu.memory_space<vmem>>, vector<64x128xf32>,
    %c0_i32_12 = arith.constant 0 : i32
    %15 = arith.cmpi eq, %arg2, %c0_i32_12 : i32
    %16 = arith.extui %15 : i1 to i32
    %c0_i32_13 = arith.constant 0 : i32
    %17 = arith.cmpi ne, %16, %c0_i32_13 : i32
    scf.if %17 {
      %c0_14 = arith.constant 0 : index
      %c0_15 = arith.constant 0 : index
      %18 = vector.load %arg8[%c0_14, %c0_15] : memref<64x128xf32, #tpu.memory_space<vmem>>, vector<64x128xf32>
      %c0_16 = arith.constant 0 : index
      %c0_17 = arith.constant 0 : index
      %19 = vector.load %arg5[%c0_16, %c0_17] : memref<1x128xf32, #tpu.memory_space<vmem>>, vector<1x128xf32>
      %20 = vector.broadcast %19 : vector<1x128xf32> to vector<64x128xf32>
      %21 = arith.mulf %18, %20 : vector<64x128xf32>
      %c0_18 = arith.constant 0 : index
      %c0_19 = arith.constant 0 : index
      %22 = vector.load %arg6[%c0_18, %c0_19] : memref<1x128xf32, #tpu.memory_space<vmem>>, vector<1x128xf32>
      %23 = vector.broadcast %22 : vector<1x128xf32> to vector<64x128xf32>
      %24 = arith.addf %21, %23 : vector<64x128xf32>
      %25 = vector.shape_cast %24 : vector<64x128xf32> to vector<8x8x128xf32>
      %c0_20 = arith.constant 0 : index
      %c0_21 = arith.constant 0 : index
      %c0_22 = arith.constant 0 : index
      %c0_23 = arith.constant 0 : index
      %26 = vector.load %arg7[%c0_20, %c0_21, %c0_22, %c0_23] : memref<1x8x8x128xf32, #tpu.memory_space<vmem>>, vector<1x8x8x128xf32>
      %27 = vector.shape_cast %26 : vector<1x8x8x128xf32> to vector<8x8x128xf32>
      %28 = vector.shape_cast %25 : vector<8x8x128xf32> to vector<1x8x8x128xf32>
      tpu.vector_store %arg7[%c0_20, %c0_21, %c0_22, %c0_23], %28 {strides = array<i32>} : memref<1x8x8x128xf32, #tpu.memory_space<vmem>>, vector<1x8x8x128xf32>,
    } else {
    }
    return
  }
  func.func @transform_0(%arg0: i32, %arg1: i32, %arg2: i32) -> (i32, i32, i32, i32) {
    %c0_i32 = arith.constant 0 : i32
    %c0_i32_0 = arith.constant 0 : i32
    %c0_i32_1 = arith.constant 0 : i32
    return %arg0, %c0_i32, %c0_i32_0, %arg2 : i32, i32, i32, i32
  }
  func.func @transform_1(%arg0: i32, %arg1: i32, %arg2: i32) -> (i32, i32, i32) {
    %c0_i32 = arith.constant 0 : i32
    %c0_i32_0 = arith.constant 0 : i32
    return %c0_i32, %arg2, %arg1 : i32, i32, i32
  }
  func.func @transform_2(%arg0: i32, %arg1: i32, %arg2: i32) -> (i32, i32) {
    %c0_i32 = arith.constant 0 : i32
    %c0_i32_0 = arith.constant 0 : i32
    return %c0_i32, %arg1 : i32, i32
  }
  func.func @transform_3(%arg0: i32, %arg1: i32, %arg2: i32) -> (i32, i32) {
    %c0_i32 = arith.constant 0 : i32
    %c0_i32_0 = arith.constant 0 : i32
    return %c0_i32, %arg1 : i32, i32
  }
  func.func @transform_4(%arg0: i32, %arg1: i32, %arg2: i32) -> (i32, i32, i32, i32) {
    %c0_i32 = arith.constant 0 : i32
    %c0_i32_0 = arith.constant 0 : i32
    %c0_i32_1 = arith.constant 0 : i32
    return %arg0, %c0_i32, %c0_i32_0, %arg1 : i32, i32, i32, i32
  }
}

module attributes {stable_mosaic.version = 11 : i64} {
  func.func @_yolo_kernel(%arg0: i32, %arg1: memref<1x8x8x128xf32, #tpu.memory_space<vmem>>, %arg2: memref<1x1x128xf32, #tpu.memory_space<vmem>>, %arg3: memref<1x8x8x128xf32, #tpu.memory_space<vmem>>) attributes {dimension_semantics = [#tpu.dimension_semantics<parallel>], iteration_bounds = array<i64: 2>, scalar_prefetch = 0 : i64, scratch_operands = 0 : i64, tpu.core_type = #tpu.core_type<tc>, window_params = [{transform_indices = @transform_0, window_bounds = array<i64: 1, 8, 8, 128>}, {pipeline_mode = #tpu.pipeline_mode<synchronous>, transform_indices = @transform_1, window_bounds = array<i64: 1, 1, 128>}, {transform_indices = @transform_2, window_bounds = array<i64: 1, 8, 8, 128>}]} {
    %c0 = arith.constant 0 : index
    %c0_0 = arith.constant 0 : index
    %c0_1 = arith.constant 0 : index
    %c0_2 = arith.constant 0 : index
    %0 = vector.load %arg1[%c0, %c0_0, %c0_1, %c0_2] : memref<1x8x8x128xf32, #tpu.memory_space<vmem>>, vector<1x8x8x128xf32>
    %1 = vector.shape_cast %0 : vector<1x8x8x128xf32> to vector<8x8x128xf32>
    %2 = tpu.iota {dimensions = array<i32: 2>} : vector<8x8x128xi32>
    %c9_i32 = arith.constant 9 : i32
    %c0_i32 = arith.constant 0 : i32
    %3 = arith.cmpi eq, %c9_i32, %c0_i32 : i32
    %c1_i32 = arith.constant 1 : i32
    %4 = arith.select %3, %c1_i32, %c9_i32 : i32
    %5 = vector.broadcast %4 : i32 to vector<8x8x128xi32>
    %6 = arith.remsi %2, %5 : vector<8x8x128xi32>
    %c0_i32_3 = arith.constant 0 : i32
    %7 = vector.broadcast %c0_i32_3 : i32 to vector<8x8x128xi32>
    %8 = arith.cmpi ne, %6, %7 : vector<8x8x128xi32>
    %c0_i32_4 = arith.constant 0 : i32
    %9 = vector.broadcast %c0_i32_4 : i32 to vector<8x8x128xi32>
    %10 = arith.cmpi slt, %6, %9 : vector<8x8x128xi32>
    %c0_i32_5 = arith.constant 0 : i32
    %11 = arith.cmpi slt, %4, %c0_i32_5 : i32
    %12 = vector.broadcast %11 : i1 to vector<8x8x128xi1>
    %13 = vector.broadcast %12 : vector<8x8x128xi1> to vector<8x8x128xi1>
    %14 = arith.xori %10, %13 : vector<8x8x128xi1>
    %15 = arith.andi %14, %8 : vector<8x8x128xi1>
    %16 = vector.broadcast %4 : i32 to vector<8x8x128xi32>
    %17 = arith.addi %6, %16 : vector<8x8x128xi32>
    %18 = arith.select %15, %17, %6 : vector<8x8x128xi1>, vector<8x8x128xi32>
    %19 = tpu.iota {dimensions = array<i32: 0>} : vector<8x8x128xi32>
    %20 = arith.sitofp %19 : vector<8x8x128xi32> to vector<8x8x128xf32>
    %21 = tpu.iota {dimensions = array<i32: 1>} : vector<8x8x128xi32>
    %22 = arith.sitofp %21 : vector<8x8x128xi32> to vector<8x8x128xf32>
    %c2_i32 = arith.constant 2 : i32
    %23 = vector.broadcast %c2_i32 : i32 to vector<8x8x128xi32>
    %24 = arith.cmpi eq, %18, %23 : vector<8x8x128xi32>
    %c3_i32 = arith.constant 3 : i32
    %25 = vector.broadcast %c3_i32 : i32 to vector<8x8x128xi32>
    %26 = arith.cmpi eq, %18, %25 : vector<8x8x128xi32>
    %27 = arith.ori %24, %26 : vector<8x8x128xi1>
    %cst = arith.constant 0.000000e+00 : f32
    %28 = vector.broadcast %cst : f32 to vector<8x8x128xf32>
    %29 = arith.select %27, %1, %28 : vector<8x8x128xi1>, vector<8x8x128xf32>
    %30 = math.exp %29 : vector<8x8x128xf32>
    %c0_6 = arith.constant 0 : index
    %c0_7 = arith.constant 0 : index
    %c0_8 = arith.constant 0 : index
    %31 = vector.load %arg2[%c0_6, %c0_7, %c0_8] : memref<1x1x128xf32, #tpu.memory_space<vmem>>, vector<1x1x128xf32>
    %32 = vector.shape_cast %31 : vector<1x1x128xf32> to vector<128xf32>
    %33 = vector.shape_cast %32 : vector<128xf32> to vector<1x1x128xf32>
    %34 = vector.broadcast %33 : vector<1x1x128xf32> to vector<8x8x128xf32>
    %35 = arith.mulf %30, %34 : vector<8x8x128xf32>
    %36 = arith.negf %1 : vector<8x8x128xf32>
    %37 = math.exp %36 : vector<8x8x128xf32>
    %cst_9 = arith.constant 1.000000e+00 : f32
    %38 = vector.broadcast %cst_9 : f32 to vector<8x8x128xf32>
    %39 = arith.addf %38, %37 : vector<8x8x128xf32>
    %40 = arith.divf %38, %39 : vector<8x8x128xf32>
    %41 = arith.select %27, %35, %40 : vector<8x8x128xi1>, vector<8x8x128xf32>
    %c0_i32_10 = arith.constant 0 : i32
    %42 = vector.broadcast %c0_i32_10 : i32 to vector<8x8x128xi32>
    %43 = arith.cmpi eq, %18, %42 : vector<8x8x128xi32>
    %c1_i32_11 = arith.constant 1 : i32
    %44 = vector.broadcast %c1_i32_11 : i32 to vector<8x8x128xi32>
    %45 = arith.cmpi eq, %18, %44 : vector<8x8x128xi32>
    %cst_12 = arith.constant 0.000000e+00 : f32
    %46 = vector.broadcast %cst_12 : f32 to vector<8x8x128xf32>
    %47 = arith.select %45, %20, %46 : vector<8x8x128xi1>, vector<8x8x128xf32>
    %48 = arith.select %43, %22, %47 : vector<8x8x128xi1>, vector<8x8x128xf32>
    %49 = arith.addf %41, %48 : vector<8x8x128xf32>
    %c4_i32 = arith.constant 4 : i32
    %50 = vector.broadcast %c4_i32 : i32 to vector<8x8x128xi32>
    %51 = arith.cmpi slt, %18, %50 : vector<8x8x128xi32>
    %cst_13 = arith.constant 2.000000e+00 : f32
    %52 = vector.broadcast %cst_13 : f32 to vector<8x8x128xf32>
    %53 = arith.mulf %49, %52 : vector<8x8x128xf32>
    %54 = arith.select %51, %53, %49 : vector<8x8x128xi1>, vector<8x8x128xf32>
    %c0_14 = arith.constant 0 : index
    %c0_15 = arith.constant 0 : index
    %c0_16 = arith.constant 0 : index
    %c0_17 = arith.constant 0 : index
    %55 = vector.load %arg3[%c0_14, %c0_15, %c0_16, %c0_17] : memref<1x8x8x128xf32, #tpu.memory_space<vmem>>, vector<1x8x8x128xf32>
    %56 = vector.shape_cast %55 : vector<1x8x8x128xf32> to vector<8x8x128xf32>
    %57 = vector.shape_cast %54 : vector<8x8x128xf32> to vector<1x8x8x128xf32>
    tpu.vector_store %arg3[%c0_14, %c0_15, %c0_16, %c0_17], %57 {strides = array<i32>} : memref<1x8x8x128xf32, #tpu.memory_space<vmem>>, vector<1x8x8x128xf32>,
    return
  }
  func.func @transform_0(%arg0: i32) -> (i32, i32, i32, i32) {
    %c0_i32 = arith.constant 0 : i32
    %c0_i32_0 = arith.constant 0 : i32
    %c0_i32_1 = arith.constant 0 : i32
    %c0_i32_2 = arith.constant 0 : i32
    return %arg0, %c0_i32, %c0_i32_0, %c0_i32_1 : i32, i32, i32, i32
  }
  func.func @transform_1(%arg0: i32) -> (i32, i32, i32) {
    %c0_i32 = arith.constant 0 : i32
    %c0_i32_0 = arith.constant 0 : i32
    %c0_i32_1 = arith.constant 0 : i32
    %c0_i32_2 = arith.constant 0 : i32
    return %c0_i32, %c0_i32_0, %c0_i32_1 : i32, i32, i32
  }
  func.func @transform_2(%arg0: i32) -> (i32, i32, i32, i32) {
    %c0_i32 = arith.constant 0 : i32
    %c0_i32_0 = arith.constant 0 : i32
    %c0_i32_1 = arith.constant 0 : i32
    %c0_i32_2 = arith.constant 0 : i32
    return %arg0, %c0_i32, %c0_i32_0, %c0_i32_1 : i32, i32, i32, i32
  }
}

module attributes {stable_mosaic.version = 11 : i64} {
  func.func @_upsample2x_kernel(%arg0: i32, %arg1: memref<1x8x8x128xf32, #tpu.memory_space<vmem>>, %arg2: memref<1x8x2x8x2x128xf32, #tpu.memory_space<vmem>>) attributes {dimension_semantics = [#tpu.dimension_semantics<parallel>], iteration_bounds = array<i64: 2>, scalar_prefetch = 0 : i64, scratch_operands = 0 : i64, tpu.core_type = #tpu.core_type<tc>, window_params = [{transform_indices = @transform_0, window_bounds = array<i64: 1, 8, 8, 128>}, {transform_indices = @transform_1, window_bounds = array<i64: 1, 8, 2, 8, 2, 128>}]} {
    %c0 = arith.constant 0 : index
    %c0_0 = arith.constant 0 : index
    %c0_1 = arith.constant 0 : index
    %c0_2 = arith.constant 0 : index
    %0 = vector.load %arg1[%c0, %c0_0, %c0_1, %c0_2] : memref<1x8x8x128xf32, #tpu.memory_space<vmem>>, vector<1x8x8x128xf32>
    %1 = vector.shape_cast %0 : vector<1x8x8x128xf32> to vector<8x8x128xf32>
    %2 = vector.extract_strided_slice %1 {offsets = [0, 0, 0], sizes = [1, 8, 128], strides = [1, 1, 1]} : vector<8x8x128xf32> to vector<1x8x128xf32>
    %3 = vector.extract_strided_slice %1 {offsets = [0, 0, 0], sizes = [7, 8, 128], strides = [1, 1, 1]} : vector<8x8x128xf32> to vector<7x8x128xf32>
    %4 = tpu.concatenate %2, %3 in 0 : vector<1x8x128xf32>, vector<7x8x128xf32> -> vector<8x8x128xf32>
    %5 = vector.extract_strided_slice %1 {offsets = [1, 0, 0], sizes = [7, 8, 128], strides = [1, 1, 1]} : vector<8x8x128xf32> to vector<7x8x128xf32>
    %6 = vector.extract_strided_slice %1 {offsets = [7, 0, 0], sizes = [1, 8, 128], strides = [1, 1, 1]} : vector<8x8x128xf32> to vector<1x8x128xf32>
    %7 = tpu.concatenate %5, %6 in 0 : vector<7x8x128xf32>, vector<1x8x128xf32> -> vector<8x8x128xf32>
    %cst = arith.constant 7.500000e-01 : f32
    %8 = vector.broadcast %cst : f32 to vector<8x8x128xf32>
    %9 = arith.mulf %8, %1 : vector<8x8x128xf32>
    %cst_3 = arith.constant 2.500000e-01 : f32
    %10 = vector.broadcast %cst_3 : f32 to vector<8x8x128xf32>
    %11 = arith.mulf %10, %4 : vector<8x8x128xf32>
    %12 = arith.addf %9, %11 : vector<8x8x128xf32>
    %cst_4 = arith.constant 7.500000e-01 : f32
    %13 = vector.broadcast %cst_4 : f32 to vector<8x8x128xf32>
    %14 = arith.mulf %13, %1 : vector<8x8x128xf32>
    %cst_5 = arith.constant 2.500000e-01 : f32
    %15 = vector.broadcast %cst_5 : f32 to vector<8x8x128xf32>
    %16 = arith.mulf %15, %7 : vector<8x8x128xf32>
    %17 = arith.addf %14, %16 : vector<8x8x128xf32>
    %18 = tpu.iota {dimensions = array<i32: 1>} : vector<8x8x128xi32>
    %c0_i32 = arith.constant 0 : i32
    %19 = vector.broadcast %c0_i32 : i32 to vector<8x8x128xi32>
    %20 = arith.cmpi eq, %18, %19 : vector<8x8x128xi32>
    %c1_i32 = arith.constant 1 : i32
    %21 = tpu.dynamic_rotate %12 by %c1_i32 dim 1 : vector<8x8x128xf32>, i32 -> vector<8x8x128xf32>
    %22 = arith.select %20, %12, %21 : vector<8x8x128xi1>, vector<8x8x128xf32>
    %c7_i32 = arith.constant 7 : i32
    %23 = vector.broadcast %c7_i32 : i32 to vector<8x8x128xi32>
    %24 = arith.cmpi eq, %18, %23 : vector<8x8x128xi32>
    %c7_i32_6 = arith.constant 7 : i32
    %25 = tpu.dynamic_rotate %12 by %c7_i32_6 dim 1 : vector<8x8x128xf32>, i32 -> vector<8x8x128xf32>
    %26 = arith.select %24, %12, %25 : vector<8x8x128xi1>, vector<8x8x128xf32>
    %cst_7 = arith.constant 7.500000e-01 : f32
    %27 = vector.broadcast %cst_7 : f32 to vector<8x8x128xf32>
    %28 = arith.mulf %27, %12 : vector<8x8x128xf32>
    %cst_8 = arith.constant 2.500000e-01 : f32
    %29 = vector.broadcast %cst_8 : f32 to vector<8x8x128xf32>
    %30 = arith.mulf %29, %22 : vector<8x8x128xf32>
    %31 = arith.addf %28, %30 : vector<8x8x128xf32>
    %cst_9 = arith.constant 7.500000e-01 : f32
    %32 = vector.broadcast %cst_9 : f32 to vector<8x8x128xf32>
    %33 = arith.mulf %32, %12 : vector<8x8x128xf32>
    %cst_10 = arith.constant 2.500000e-01 : f32
    %34 = vector.broadcast %cst_10 : f32 to vector<8x8x128xf32>
    %35 = arith.mulf %34, %26 : vector<8x8x128xf32>
    %36 = arith.addf %33, %35 : vector<8x8x128xf32>
    %c0_i32_11 = arith.constant 0 : i32
    %37 = vector.broadcast %c0_i32_11 : i32 to vector<8x8x128xi32>
    %38 = arith.cmpi eq, %18, %37 : vector<8x8x128xi32>
    %c1_i32_12 = arith.constant 1 : i32
    %39 = tpu.dynamic_rotate %17 by %c1_i32_12 dim 1 : vector<8x8x128xf32>, i32 -> vector<8x8x128xf32>
    %40 = arith.select %38, %17, %39 : vector<8x8x128xi1>, vector<8x8x128xf32>
    %c7_i32_13 = arith.constant 7 : i32
    %41 = vector.broadcast %c7_i32_13 : i32 to vector<8x8x128xi32>
    %42 = arith.cmpi eq, %18, %41 : vector<8x8x128xi32>
    %c7_i32_14 = arith.constant 7 : i32
    %43 = tpu.dynamic_rotate %17 by %c7_i32_14 dim 1 : vector<8x8x128xf32>, i32 -> vector<8x8x128xf32>
    %44 = arith.select %42, %17, %43 : vector<8x8x128xi1>, vector<8x8x128xf32>
    %cst_15 = arith.constant 7.500000e-01 : f32
    %45 = vector.broadcast %cst_15 : f32 to vector<8x8x128xf32>
    %46 = arith.mulf %45, %17 : vector<8x8x128xf32>
    %cst_16 = arith.constant 2.500000e-01 : f32
    %47 = vector.broadcast %cst_16 : f32 to vector<8x8x128xf32>
    %48 = arith.mulf %47, %40 : vector<8x8x128xf32>
    %49 = arith.addf %46, %48 : vector<8x8x128xf32>
    %cst_17 = arith.constant 7.500000e-01 : f32
    %50 = vector.broadcast %cst_17 : f32 to vector<8x8x128xf32>
    %51 = arith.mulf %50, %17 : vector<8x8x128xf32>
    %cst_18 = arith.constant 2.500000e-01 : f32
    %52 = vector.broadcast %cst_18 : f32 to vector<8x8x128xf32>
    %53 = arith.mulf %52, %44 : vector<8x8x128xf32>
    %54 = arith.addf %51, %53 : vector<8x8x128xf32>
    %c0_19 = arith.constant 0 : index
    %c0_20 = arith.constant 0 : index
    %c0_21 = arith.constant 0 : index
    %c0_22 = arith.constant 0 : index
    %c0_23 = arith.constant 0 : index
    %c0_24 = arith.constant 0 : index
    %55 = vector.load %arg2[%c0_19, %c0_20, %c0_21, %c0_22, %c0_23, %c0_24] : memref<1x8x2x8x2x128xf32, #tpu.memory_space<vmem>>, vector<1x8x1x8x1x128xf32>
    %56 = vector.shape_cast %55 : vector<1x8x1x8x1x128xf32> to vector<8x8x128xf32>
    %57 = vector.shape_cast %31 : vector<8x8x128xf32> to vector<1x8x1x8x1x128xf32>
    tpu.vector_store %arg2[%c0_19, %c0_20, %c0_21, %c0_22, %c0_23, %c0_24], %57 {strides = array<i32>} : memref<1x8x2x8x2x128xf32, #tpu.memory_space<vmem>>, vector<1x8x1x8x1x128xf32>,
    %c0_25 = arith.constant 0 : index
    %c0_26 = arith.constant 0 : index
    %c0_27 = arith.constant 0 : index
    %c0_28 = arith.constant 0 : index
    %c1 = arith.constant 1 : index
    %c0_29 = arith.constant 0 : index
    %58 = vector.load %arg2[%c0_25, %c0_26, %c0_27, %c0_28, %c1, %c0_29] : memref<1x8x2x8x2x128xf32, #tpu.memory_space<vmem>>, vector<1x8x1x8x1x128xf32>
    %59 = vector.shape_cast %58 : vector<1x8x1x8x1x128xf32> to vector<8x8x128xf32>
    %60 = vector.shape_cast %36 : vector<8x8x128xf32> to vector<1x8x1x8x1x128xf32>
    tpu.vector_store %arg2[%c0_25, %c0_26, %c0_27, %c0_28, %c1, %c0_29], %60 {strides = array<i32>} : memref<1x8x2x8x2x128xf32, #tpu.memory_space<vmem>>, vector<1x8x1x8x1x128xf32>,
    %c0_30 = arith.constant 0 : index
    %c0_31 = arith.constant 0 : index
    %c1_32 = arith.constant 1 : index
    %c0_33 = arith.constant 0 : index
    %c0_34 = arith.constant 0 : index
    %c0_35 = arith.constant 0 : index
    %61 = vector.load %arg2[%c0_30, %c0_31, %c1_32, %c0_33, %c0_34, %c0_35] : memref<1x8x2x8x2x128xf32, #tpu.memory_space<vmem>>, vector<1x8x1x8x1x128xf32>
    %62 = vector.shape_cast %61 : vector<1x8x1x8x1x128xf32> to vector<8x8x128xf32>
    %63 = vector.shape_cast %49 : vector<8x8x128xf32> to vector<1x8x1x8x1x128xf32>
    tpu.vector_store %arg2[%c0_30, %c0_31, %c1_32, %c0_33, %c0_34, %c0_35], %63 {strides = array<i32>} : memref<1x8x2x8x2x128xf32, #tpu.memory_space<vmem>>, vector<1x8x1x8x1x128xf32>,
    %c0_36 = arith.constant 0 : index
    %c0_37 = arith.constant 0 : index
    %c1_38 = arith.constant 1 : index
    %c0_39 = arith.constant 0 : index
    %c1_40 = arith.constant 1 : index
    %c0_41 = arith.constant 0 : index
    %64 = vector.load %arg2[%c0_36, %c0_37, %c1_38, %c0_39, %c1_40, %c0_41] : memref<1x8x2x8x2x128xf32, #tpu.memory_space<vmem>>, vector<1x8x1x8x1x128xf32>
    %65 = vector.shape_cast %64 : vector<1x8x1x8x1x128xf32> to vector<8x8x128xf32>
    %66 = vector.shape_cast %54 : vector<8x8x128xf32> to vector<1x8x1x8x1x128xf32>
    tpu.vector_store %arg2[%c0_36, %c0_37, %c1_38, %c0_39, %c1_40, %c0_41], %66 {strides = array<i32>} : memref<1x8x2x8x2x128xf32, #tpu.memory_space<vmem>>, vector<1x8x1x8x1x128xf32>,
    return
  }
  func.func @transform_0(%arg0: i32) -> (i32, i32, i32, i32) {
    %c0_i32 = arith.constant 0 : i32
    %c0_i32_0 = arith.constant 0 : i32
    %c0_i32_1 = arith.constant 0 : i32
    %c0_i32_2 = arith.constant 0 : i32
    return %arg0, %c0_i32, %c0_i32_0, %c0_i32_1 : i32, i32, i32, i32
  }
  func.func @transform_1(%arg0: i32) -> (i32, i32, i32, i32, i32, i32) {
    %c0_i32 = arith.constant 0 : i32
    %c0_i32_0 = arith.constant 0 : i32
    %c0_i32_1 = arith.constant 0 : i32
    %c0_i32_2 = arith.constant 0 : i32
    %c0_i32_3 = arith.constant 0 : i32
    %c0_i32_4 = arith.constant 0 : i32
    return %arg0, %c0_i32, %c0_i32_0, %c0_i32_1, %c0_i32_2, %c0_i32_3 : i32, i32, i32, i32, i32, i32
  }
}

module attributes {stable_mosaic.version = 11 : i64} {
  func.func @_conv_kernel(%arg0: i32, %arg1: i32, %arg2: i32, %arg3: memref<1x16x16x128xf32, #tpu.memory_space<vmem>>, %arg4: memref<1x128x128xbf16, #tpu.memory_space<vmem>>, %arg5: memref<1x128xf32, #tpu.memory_space<vmem>>, %arg6: memref<1x128xf32, #tpu.memory_space<vmem>>, %arg7: memref<1x16x16x128xf32, #tpu.memory_space<vmem>>, %arg8: memref<256x128xf32, #tpu.memory_space<vmem>>) attributes {dimension_semantics = [#tpu.dimension_semantics<parallel>, #tpu.dimension_semantics<parallel>, #tpu.dimension_semantics<arbitrary>], iteration_bounds = array<i64: 2, 1, 2>, scalar_prefetch = 0 : i64, scratch_operands = 1 : i64, tpu.core_type = #tpu.core_type<tc>, window_params = [{transform_indices = @transform_0, window_bounds = array<i64: 1, 16, 16, 128>}, {transform_indices = @transform_1, window_bounds = array<i64: 1, 128, 128>}, {transform_indices = @transform_2, window_bounds = array<i64: 1, 128>}, {transform_indices = @transform_3, window_bounds = array<i64: 1, 128>}, {transform_indices = @transform_4, window_bounds = array<i64: 1, 16, 16, 128>}]} {
    %c0_i32 = arith.constant 0 : i32
    %0 = arith.cmpi eq, %arg2, %c0_i32 : i32
    %1 = arith.extui %0 : i1 to i32
    %c0_i32_0 = arith.constant 0 : i32
    %2 = arith.cmpi ne, %1, %c0_i32_0 : i32
    scf.if %2 {
      %cst_13 = arith.constant 0.000000e+00 : f32
      %18 = vector.broadcast %cst_13 : f32 to vector<256x128xf32>
      %c0_14 = arith.constant 0 : index
      %c0_15 = arith.constant 0 : index
      %19 = vector.load %arg8[%c0_14, %c0_15] : memref<256x128xf32, #tpu.memory_space<vmem>>, vector<256x128xf32>
      tpu.vector_store %arg8[%c0_14, %c0_15], %18 {strides = array<i32>} : memref<256x128xf32, #tpu.memory_space<vmem>>, vector<256x128xf32>,
    } else {
    }
    %cst = arith.constant 0.000000e+00 : f32
    %3 = vector.broadcast %cst : f32 to vector<256x128xf32>
    %c0 = arith.constant 0 : index
    %c0_1 = arith.constant 0 : index
    %c0_2 = arith.constant 0 : index
    %c0_3 = arith.constant 0 : index
    %4 = vector.load %arg3[%c0, %c0_1, %c0_2, %c0_3] : memref<1x16x16x128xf32, #tpu.memory_space<vmem>>, vector<1x16x16x128xf32>
    %5 = vector.shape_cast %4 : vector<1x16x16x128xf32> to vector<16x16x128xf32>
    %6 = vector.shape_cast %5 : vector<16x16x128xf32> to vector<256x128xf32>
    %7 = arith.truncf %6 : vector<256x128xf32> to vector<256x128xbf16>
    %c0_4 = arith.constant 0 : index
    %c0_5 = arith.constant 0 : index
    %c0_6 = arith.constant 0 : index
    %8 = vector.load %arg4[%c0_4, %c0_5, %c0_6] : memref<1x128x128xbf16, #tpu.memory_space<vmem>>, vector<1x128x128xbf16>
    %9 = vector.shape_cast %8 : vector<1x128x128xbf16> to vector<128x128xbf16>
    %cst_7 = arith.constant dense<0.000000e+00> : vector<256x128xf32>
    %10 = tpu.matmul %7, %9, %cst_7 {dimension_numbers = #tpu.dot_dimension_numbers<[1], [0], [0], [1], [0, 0, 1, 1], [], []>} : vector<256x128xbf16>, vector<128x128xbf16>, vector<256x128xf32> -> vector<256x128xf32>
    %11 = arith.addf %3, %10 : vector<256x128xf32>
    %c0_8 = arith.constant 0 : index
    %c0_9 = arith.constant 0 : index
    %12 = vector.load %arg8[%c0_8, %c0_9] : memref<256x128xf32, #tpu.memory_space<vmem>>, vector<256x128xf32>
    %13 = arith.addf %12, %11 : vector<256x128xf32>
    %c0_10 = arith.constant 0 : index
    %c0_11 = arith.constant 0 : index
    %14 = vector.load %arg8[%c0_10, %c0_11] : memref<256x128xf32, #tpu.memory_space<vmem>>, vector<256x128xf32>
    tpu.vector_store %arg8[%c0_10, %c0_11], %13 {strides = array<i32>} : memref<256x128xf32, #tpu.memory_space<vmem>>, vector<256x128xf32>,
    %c1_i32 = arith.constant 1 : i32
    %15 = arith.cmpi eq, %arg2, %c1_i32 : i32
    %16 = arith.extui %15 : i1 to i32
    %c0_i32_12 = arith.constant 0 : i32
    %17 = arith.cmpi ne, %16, %c0_i32_12 : i32
    scf.if %17 {
      %c0_13 = arith.constant 0 : index
      %c0_14 = arith.constant 0 : index
      %18 = vector.load %arg8[%c0_13, %c0_14] : memref<256x128xf32, #tpu.memory_space<vmem>>, vector<256x128xf32>
      %c0_15 = arith.constant 0 : index
      %c0_16 = arith.constant 0 : index
      %19 = vector.load %arg5[%c0_15, %c0_16] : memref<1x128xf32, #tpu.memory_space<vmem>>, vector<1x128xf32>
      %20 = vector.broadcast %19 : vector<1x128xf32> to vector<256x128xf32>
      %21 = arith.mulf %18, %20 : vector<256x128xf32>
      %c0_17 = arith.constant 0 : index
      %c0_18 = arith.constant 0 : index
      %22 = vector.load %arg6[%c0_17, %c0_18] : memref<1x128xf32, #tpu.memory_space<vmem>>, vector<1x128xf32>
      %23 = vector.broadcast %22 : vector<1x128xf32> to vector<256x128xf32>
      %24 = arith.addf %21, %23 : vector<256x128xf32>
      %25 = vector.shape_cast %24 : vector<256x128xf32> to vector<16x16x128xf32>
      %c0_19 = arith.constant 0 : index
      %c0_20 = arith.constant 0 : index
      %c0_21 = arith.constant 0 : index
      %c0_22 = arith.constant 0 : index
      %26 = vector.load %arg7[%c0_19, %c0_20, %c0_21, %c0_22] : memref<1x16x16x128xf32, #tpu.memory_space<vmem>>, vector<1x16x16x128xf32>
      %27 = vector.shape_cast %26 : vector<1x16x16x128xf32> to vector<16x16x128xf32>
      %28 = vector.shape_cast %25 : vector<16x16x128xf32> to vector<1x16x16x128xf32>
      tpu.vector_store %arg7[%c0_19, %c0_20, %c0_21, %c0_22], %28 {strides = array<i32>} : memref<1x16x16x128xf32, #tpu.memory_space<vmem>>, vector<1x16x16x128xf32>,
    } else {
    }
    return
  }
  func.func @transform_0(%arg0: i32, %arg1: i32, %arg2: i32) -> (i32, i32, i32, i32) {
    %c0_i32 = arith.constant 0 : i32
    %c0_i32_0 = arith.constant 0 : i32
    %c0_i32_1 = arith.constant 0 : i32
    return %arg0, %c0_i32, %c0_i32_0, %arg2 : i32, i32, i32, i32
  }
  func.func @transform_1(%arg0: i32, %arg1: i32, %arg2: i32) -> (i32, i32, i32) {
    %c0_i32 = arith.constant 0 : i32
    %c0_i32_0 = arith.constant 0 : i32
    return %c0_i32, %arg2, %arg1 : i32, i32, i32
  }
  func.func @transform_2(%arg0: i32, %arg1: i32, %arg2: i32) -> (i32, i32) {
    %c0_i32 = arith.constant 0 : i32
    %c0_i32_0 = arith.constant 0 : i32
    return %c0_i32, %arg1 : i32, i32
  }
  func.func @transform_3(%arg0: i32, %arg1: i32, %arg2: i32) -> (i32, i32) {
    %c0_i32 = arith.constant 0 : i32
    %c0_i32_0 = arith.constant 0 : i32
    return %c0_i32, %arg1 : i32, i32
  }
  func.func @transform_4(%arg0: i32, %arg1: i32, %arg2: i32) -> (i32, i32, i32, i32) {
    %c0_i32 = arith.constant 0 : i32
    %c0_i32_0 = arith.constant 0 : i32
    %c0_i32_1 = arith.constant 0 : i32
    return %arg0, %c0_i32, %c0_i32_0, %arg1 : i32, i32, i32, i32
  }
}

module attributes {stable_mosaic.version = 11 : i64} {
  func.func @_yolo_kernel(%arg0: i32, %arg1: memref<1x16x16x128xf32, #tpu.memory_space<vmem>>, %arg2: memref<1x1x128xf32, #tpu.memory_space<vmem>>, %arg3: memref<1x16x16x128xf32, #tpu.memory_space<vmem>>) attributes {dimension_semantics = [#tpu.dimension_semantics<parallel>], iteration_bounds = array<i64: 2>, scalar_prefetch = 0 : i64, scratch_operands = 0 : i64, tpu.core_type = #tpu.core_type<tc>, window_params = [{transform_indices = @transform_0, window_bounds = array<i64: 1, 16, 16, 128>}, {pipeline_mode = #tpu.pipeline_mode<synchronous>, transform_indices = @transform_1, window_bounds = array<i64: 1, 1, 128>}, {transform_indices = @transform_2, window_bounds = array<i64: 1, 16, 16, 128>}]} {
    %c0 = arith.constant 0 : index
    %c0_0 = arith.constant 0 : index
    %c0_1 = arith.constant 0 : index
    %c0_2 = arith.constant 0 : index
    %0 = vector.load %arg1[%c0, %c0_0, %c0_1, %c0_2] : memref<1x16x16x128xf32, #tpu.memory_space<vmem>>, vector<1x16x16x128xf32>
    %1 = vector.shape_cast %0 : vector<1x16x16x128xf32> to vector<16x16x128xf32>
    %2 = tpu.iota {dimensions = array<i32: 2>} : vector<16x16x128xi32>
    %c9_i32 = arith.constant 9 : i32
    %c0_i32 = arith.constant 0 : i32
    %3 = arith.cmpi eq, %c9_i32, %c0_i32 : i32
    %c1_i32 = arith.constant 1 : i32
    %4 = arith.select %3, %c1_i32, %c9_i32 : i32
    %5 = vector.broadcast %4 : i32 to vector<16x16x128xi32>
    %6 = arith.remsi %2, %5 : vector<16x16x128xi32>
    %c0_i32_3 = arith.constant 0 : i32
    %7 = vector.broadcast %c0_i32_3 : i32 to vector<16x16x128xi32>
    %8 = arith.cmpi ne, %6, %7 : vector<16x16x128xi32>
    %c0_i32_4 = arith.constant 0 : i32
    %9 = vector.broadcast %c0_i32_4 : i32 to vector<16x16x128xi32>
    %10 = arith.cmpi slt, %6, %9 : vector<16x16x128xi32>
    %c0_i32_5 = arith.constant 0 : i32
    %11 = arith.cmpi slt, %4, %c0_i32_5 : i32
    %12 = vector.broadcast %11 : i1 to vector<16x16x128xi1>
    %13 = vector.broadcast %12 : vector<16x16x128xi1> to vector<16x16x128xi1>
    %14 = arith.xori %10, %13 : vector<16x16x128xi1>
    %15 = arith.andi %14, %8 : vector<16x16x128xi1>
    %16 = vector.broadcast %4 : i32 to vector<16x16x128xi32>
    %17 = arith.addi %6, %16 : vector<16x16x128xi32>
    %18 = arith.select %15, %17, %6 : vector<16x16x128xi1>, vector<16x16x128xi32>
    %19 = tpu.iota {dimensions = array<i32: 0>} : vector<16x16x128xi32>
    %20 = arith.sitofp %19 : vector<16x16x128xi32> to vector<16x16x128xf32>
    %21 = tpu.iota {dimensions = array<i32: 1>} : vector<16x16x128xi32>
    %22 = arith.sitofp %21 : vector<16x16x128xi32> to vector<16x16x128xf32>
    %c2_i32 = arith.constant 2 : i32
    %23 = vector.broadcast %c2_i32 : i32 to vector<16x16x128xi32>
    %24 = arith.cmpi eq, %18, %23 : vector<16x16x128xi32>
    %c3_i32 = arith.constant 3 : i32
    %25 = vector.broadcast %c3_i32 : i32 to vector<16x16x128xi32>
    %26 = arith.cmpi eq, %18, %25 : vector<16x16x128xi32>
    %27 = arith.ori %24, %26 : vector<16x16x128xi1>
    %cst = arith.constant 0.000000e+00 : f32
    %28 = vector.broadcast %cst : f32 to vector<16x16x128xf32>
    %29 = arith.select %27, %1, %28 : vector<16x16x128xi1>, vector<16x16x128xf32>
    %30 = math.exp %29 : vector<16x16x128xf32>
    %c0_6 = arith.constant 0 : index
    %c0_7 = arith.constant 0 : index
    %c0_8 = arith.constant 0 : index
    %31 = vector.load %arg2[%c0_6, %c0_7, %c0_8] : memref<1x1x128xf32, #tpu.memory_space<vmem>>, vector<1x1x128xf32>
    %32 = vector.shape_cast %31 : vector<1x1x128xf32> to vector<128xf32>
    %33 = vector.shape_cast %32 : vector<128xf32> to vector<1x1x128xf32>
    %34 = vector.broadcast %33 : vector<1x1x128xf32> to vector<16x16x128xf32>
    %35 = arith.mulf %30, %34 : vector<16x16x128xf32>
    %36 = arith.negf %1 : vector<16x16x128xf32>
    %37 = math.exp %36 : vector<16x16x128xf32>
    %cst_9 = arith.constant 1.000000e+00 : f32
    %38 = vector.broadcast %cst_9 : f32 to vector<16x16x128xf32>
    %39 = arith.addf %38, %37 : vector<16x16x128xf32>
    %40 = arith.divf %38, %39 : vector<16x16x128xf32>
    %41 = arith.select %27, %35, %40 : vector<16x16x128xi1>, vector<16x16x128xf32>
    %c0_i32_10 = arith.constant 0 : i32
    %42 = vector.broadcast %c0_i32_10 : i32 to vector<16x16x128xi32>
    %43 = arith.cmpi eq, %18, %42 : vector<16x16x128xi32>
    %c1_i32_11 = arith.constant 1 : i32
    %44 = vector.broadcast %c1_i32_11 : i32 to vector<16x16x128xi32>
    %45 = arith.cmpi eq, %18, %44 : vector<16x16x128xi32>
    %cst_12 = arith.constant 0.000000e+00 : f32
    %46 = vector.broadcast %cst_12 : f32 to vector<16x16x128xf32>
    %47 = arith.select %45, %20, %46 : vector<16x16x128xi1>, vector<16x16x128xf32>
    %48 = arith.select %43, %22, %47 : vector<16x16x128xi1>, vector<16x16x128xf32>
    %49 = arith.addf %41, %48 : vector<16x16x128xf32>
    %c4_i32 = arith.constant 4 : i32
    %50 = vector.broadcast %c4_i32 : i32 to vector<16x16x128xi32>
    %51 = arith.cmpi slt, %18, %50 : vector<16x16x128xi32>
    %cst_13 = arith.constant 1.000000e+00 : f32
    %52 = vector.broadcast %cst_13 : f32 to vector<16x16x128xf32>
    %53 = arith.mulf %49, %52 : vector<16x16x128xf32>
    %54 = arith.select %51, %53, %49 : vector<16x16x128xi1>, vector<16x16x128xf32>
    %c0_14 = arith.constant 0 : index
    %c0_15 = arith.constant 0 : index
    %c0_16 = arith.constant 0 : index
    %c0_17 = arith.constant 0 : index
    %55 = vector.load %arg3[%c0_14, %c0_15, %c0_16, %c0_17] : memref<1x16x16x128xf32, #tpu.memory_space<vmem>>, vector<1x16x16x128xf32>
    %56 = vector.shape_cast %55 : vector<1x16x16x128xf32> to vector<16x16x128xf32>
    %57 = vector.shape_cast %54 : vector<16x16x128xf32> to vector<1x16x16x128xf32>
    tpu.vector_store %arg3[%c0_14, %c0_15, %c0_16, %c0_17], %57 {strides = array<i32>} : memref<1x16x16x128xf32, #tpu.memory_space<vmem>>, vector<1x16x16x128xf32>,
    return
  }
  func.func @transform_0(%arg0: i32) -> (i32, i32, i32, i32) {
    %c0_i32 = arith.constant 0 : i32
    %c0_i32_0 = arith.constant 0 : i32
    %c0_i32_1 = arith.constant 0 : i32
    %c0_i32_2 = arith.constant 0 : i32
    return %arg0, %c0_i32, %c0_i32_0, %c0_i32_1 : i32, i32, i32, i32
  }
  func.func @transform_1(%arg0: i32) -> (i32, i32, i32) {
    %c0_i32 = arith.constant 0 : i32
    %c0_i32_0 = arith.constant 0 : i32
    %c0_i32_1 = arith.constant 0 : i32
    %c0_i32_2 = arith.constant 0 : i32
    return %c0_i32, %c0_i32_0, %c0_i32_1 : i32, i32, i32
  }
  func.func @transform_2(%arg0: i32) -> (i32, i32, i32, i32) {
    %c0_i32 = arith.constant 0 : i32
    %c0_i32_0 = arith.constant 0 : i32
    %c0_i32_1 = arith.constant 0 : i32
    %c0_i32_2 = arith.constant 0 : i32
    return %arg0, %c0_i32, %c0_i32_0, %c0_i32_1 : i32, i32, i32, i32
  }
}

</mosaic_0001>

<bundles_post_ra>
// kernel: darknet_forward.12
= control target key start
LH: loop header
LB: loop body
LE: loop exit
PB: predicated region body
PF: predicated region fallthrough
CT: control target
= control target key end

     0   :  { %s862_s0 = inlined_call_operand.vmem [shape: f32[512,128], index: 0, kind: input, shape index: {}]   ;;  %s863_s1 = inlined_call_operand.vmem [shape: f32[512,128], index: 1, kind: input, shape index: {}]   ;;  %s864_s2 = inlined_call_operand.vmem [shape: f32[512,128], index: 2, kind: output, shape index: {}]  }
   0x1   :  { %v11_v0 = vld [vmem:[%s862_s0] sm:$0xff]  ;;  %v12_v2 = vld [vmem:[%s862_s0 + $0x8] sm:$0xff]  ;;  %v13_v5 = vld [vmem:[%s862_s0 + $0x10] sm:$0xff] }
   0x2   :  { %v75_v1 = vld [vmem:[%s863_s1] sm:$0xff]  ;;  %v76_v4 = vld [vmem:[%s863_s1 + $0x8] sm:$0xff]  ;;  %v77_v6 = vld [vmem:[%s863_s1 + $0x10] sm:$0xff] }
   0x3   :  { %v139_v3 = vadd.f32 %v75_v1, %v11_v0  ;;  %v140_v7 = vadd.f32 %v76_v4, %v12_v2  ;;  %v141_v8 = vadd.f32 %v77_v6, %v13_v5  ;;  %v14_v9 = vld [vmem:[%s862_s0 + $0x18] sm:$0xff]  ;;  %v15_v11 = vld [vmem:[%s862_s0 + $0x20] sm:$0xff]  ;;  %v16_v14 = vld [vmem:[%s862_s0 + $0x28] sm:$0xff] }
   0x4   :  { %v78_v10 = vld [vmem:[%s863_s1 + $0x18] sm:$0xff]  ;;  %v79_v13 = vld [vmem:[%s863_s1 + $0x20] sm:$0xff]  ;;  %v80_v15 = vld [vmem:[%s863_s1 + $0x28] sm:$0xff] }
   0x5   :  { %203 = vst [vmem:[%s864_s2] sm:$0xff] %v139_v3  ;;  %v142_v12 = vadd.f32 %v78_v10, %v14_v9  ;;  %204 = vst [vmem:[%s864_s2 + $0x8] sm:$0xff] %v140_v7  ;;  %v143_v16 = vadd.f32 %v79_v13, %v15_v11  ;;  %v144_v17 = vadd.f32 %v80_v15, %v16_v14  ;;  %v17_v18 = vld [vmem:[%s862_s0 + $0x30] sm:$0xff]  ;;  %v18_v20 = vld [vmem:[%s862_s0 + $0x38] sm:$0xff] }
   0x6   :  { %205 = vst [vmem:[%s864_s2 + $0x10] sm:$0xff] %v141_v8  ;;  %v81_v19 = vld [vmem:[%s863_s1 + $0x30] sm:$0xff]  ;;  %v82_v22 = vld [vmem:[%s863_s1 + $0x38] sm:$0xff]  ;;  %v19_v23 = vld [vmem:[%s862_s0 + $0x40] sm:$0xff] }
   0x7   :  { %206 = vst [vmem:[%s864_s2 + $0x18] sm:$0xff] %v142_v12  ;;  %v145_v21 = vadd.f32 %v81_v19, %v17_v18  ;;  %v83_v24 = vld [vmem:[%s863_s1 + $0x40] sm:$0xff]  ;;  %207 = vst [vmem:[%s864_s2 + $0x20] sm:$0xff] %v143_v16  ;;  %v146_v25 = vadd.f32 %v82_v22, %v18_v20  ;;  %v20_v27 = vld [vmem:[%s862_s0 + $0x48] sm:$0xff] }
   0x8   :  { %208 = vst [vmem:[%s864_s2 + $0x28] sm:$0xff] %v144_v17  ;;  %v147_v26 = vadd.f32 %v83_v24, %v19_v23  ;;  %v84_v28 = vld [vmem:[%s863_s1 + $0x48] sm:$0xff]  ;;  %v21_v29 = vld [vmem:[%s862_s0 + $0x50] sm:$0xff]  ;;  %v22_v32 = vld [vmem:[%s862_s0 + $0x58] sm:$0xff] }
   0x9   :  { %209 = vst [vmem:[%s864_s2 + $0x30] sm:$0xff] %v145_v21  ;;  %v148_v30 = vadd.f32 %v84_v28, %v20_v27  ;;  %v85_v31 = vld [vmem:[%s863_s1 + $0x50] sm:$0xff]  ;;  %v86_v33 = vld [vmem:[%s863_s1 + $0x58] sm:$0xff]  ;;  %210 = vst [vmem:[%s864_s2 + $0x38] sm:$0xff] %v146_v25 }
   0xa   :  { %211 = vst [vmem:[%s864_s2 + $0x40] sm:$0xff] %v147_v26  ;;  %v149_v34 = vadd.f32 %v85_v31, %v21_v29  ;;  %v150_v35 = vadd.f32 %v86_v33, %v22_v32  ;;  %v23_v36 = vld [vmem:[%s862_s0 + $0x60] sm:$0xff]  ;;  %v24_v38 = vld [vmem:[%s862_s0 + $0x68] sm:$0xff]  ;;  %v25_v41 = vld [vmem:[%s862_s0 + $0x70] sm:$0xff] }
   0xb   :  { %v87_v37 = vld [vmem:[%s863_s1 + $0x60] sm:$0xff]  ;;  %212 = vst [vmem:[%s864_s2 + $0x48] sm:$0xff] %v148_v30  ;;  %v88_v40 = vld [vmem:[%s863_s1 + $0x68] sm:$0xff]  ;;  %v89_v42 = vld [vmem:[%s863_s1 + $0x70] sm:$0xff] }
   0xc   :  { %v151_v39 = vadd.f32 %v87_v37, %v23_v36  ;;  %213 = vst [vmem:[%s864_s2 + $0x50] sm:$0xff] %v149_v34  ;;  %214 = vst [vmem:[%s864_s2 + $0x58] sm:$0xff] %v150_v35  ;;  %v152_v43 = vadd.f32 %v88_v40, %v24_v38  ;;  %v153_v44 = vadd.f32 %v89_v42, %v25_v41  ;;  %v26_v45 = vld [vmem:[%s862_s0 + $0x78] sm:$0xff]  ;;  %v27_v47 = vld [vmem:[%s862_s0 + $0x80] sm:$0xff] }
   0xd   :  { %v90_v46 = vld [vmem:[%s863_s1 + $0x78] sm:$0xff]  ;;  %v91_v49 = vld [vmem:[%s863_s1 + $0x80] sm:$0xff]  ;;  %v28_v50 = vld [vmem:[%s862_s0 + $0x88] sm:$0xff] }
   0xe   :  { %215 = vst [vmem:[%s864_s2 + $0x60] sm:$0xff] %v151_v39  ;;  %v154_v48 = vadd.f32 %v90_v46, %v26_v45  ;;  %v92_v51 = vld [vmem:[%s863_s1 + $0x88] sm:$0xff]  ;;  %216 = vst [vmem:[%s864_s2 + $0x68] sm:$0xff] %v152_v43  ;;  %v155_v52 = vadd.f32 %v91_v49, %v27_v47  ;;  %v29_v54 = vld [vmem:[%s862_s0 + $0x90] sm:$0xff] }
   0xf   :  { %217 = vst [vmem:[%s864_s2 + $0x70] sm:$0xff] %v153_v44  ;;  %v156_v53 = vadd.f32 %v92_v51, %v28_v50  ;;  %v93_v55 = vld [vmem:[%s863_s1 + $0x90] sm:$0xff]  ;;  %v30_v56 = vld [vmem:[%s862_s0 + $0x98] sm:$0xff]  ;;  %v31_v59 = vld [vmem:[%s862_s0 + $0xa0] sm:$0xff] }
  0x10   :  { %218 = vst [vmem:[%s864_s2 + $0x78] sm:$0xff] %v154_v48  ;;  %v157_v57 = vadd.f32 %v93_v55, %v29_v54  ;;  %v94_v58 = vld [vmem:[%s863_s1 + $0x98] sm:$0xff]  ;;  %v95_v60 = vld [vmem:[%s863_s1 + $0xa0] sm:$0xff]  ;;  %219 = vst [vmem:[%s864_s2 + $0x80] sm:$0xff] %v155_v52 }
  0x11   :  { %220 = vst [vmem:[%s864_s2 + $0x88] sm:$0xff] %v156_v53  ;;  %v158_v61 = vadd.f32 %v94_v58, %v30_v56  ;;  %v159_v62 = vadd.f32 %v95_v60, %v31_v59  ;;  %v32_v63 = vld [vmem:[%s862_s0 + $0xa8] sm:$0xff]  ;;  %v33_v1 = vld [vmem:[%s862_s0 + $0xb0] sm:$0xff]  ;;  %v34_v4 = vld [vmem:[%s862_s0 + $0xb8] sm:$0xff] }
  0x12   :  { %v96_v0 = vld [vmem:[%s863_s1 + $0xa8] sm:$0xff]  ;;  %221 = vst [vmem:[%s864_s2 + $0x90] sm:$0xff] %v157_v57  ;;  %v97_v3 = vld [vmem:[%s863_s1 + $0xb0] sm:$0xff]  ;;  %v98_v5 = vld [vmem:[%s863_s1 + $0xb8] sm:$0xff] }
  0x13   :  { %v160_v2 = vadd.f32 %v96_v0, %v32_v63  ;;  %222 = vst [vmem:[%s864_s2 + $0x98] sm:$0xff] %v158_v61  ;;  %223 = vst [vmem:[%s864_s2 + $0xa0] sm:$0xff] %v159_v62  ;;  %v161_v6 = vadd.f32 %v97_v3, %v33_v1  ;;  %v162_v7 = vadd.f32 %v98_v5, %v34_v4  ;;  %v35_v8 = vld [vmem:[%s862_s0 + $0xc0] sm:$0xff]  ;;  %v36_v10 = vld [vmem:[%s862_s0 + $0xc8] sm:$0xff] }
  0x14   :  { %v99_v9 = vld [vmem:[%s863_s1 + $0xc0] sm:$0xff]  ;;  %v100_v12 = vld [vmem:[%s863_s1 + $0xc8] sm:$0xff]  ;;  %v37_v13 = vld [vmem:[%s862_s0 + $0xd0] sm:$0xff] }
  0x15   :  { %224 = vst [vmem:[%s864_s2 + $0xa8] sm:$0xff] %v160_v2  ;;  %v163_v11 = vadd.f32 %v99_v9, %v35_v8  ;;  %v101_v14 = vld [vmem:[%s863_s1 + $0xd0] sm:$0xff]  ;;  %225 = vst [vmem:[%s864_s2 + $0xb0] sm:$0xff] %v161_v6  ;;  %v164_v15 = vadd.f32 %v100_v12, %v36_v10  ;;  %v38_v17 = vld [vmem:[%s862_s0 + $0xd8] sm:$0xff] }
  0x16   :  { %226 = vst [vmem:[%s864_s2 + $0xb8] sm:$0xff] %v162_v7  ;;  %v165_v16 = vadd.f32 %v101_v14, %v37_v13  ;;  %v102_v18 = vld [vmem:[%s863_s1 + $0xd8] sm:$0xff]  ;;  %v39_v19 = vld [vmem:[%s862_s0 + $0xe0] sm:$0xff]  ;;  %v40_v22 = vld [vmem:[%s862_s0 + $0xe8] sm:$0xff] }
  0x17   :  { %227 = vst [vmem:[%s864_s2 + $0xc0] sm:$0xff] %v163_v11  ;;  %v166_v20 = vadd.f32 %v102_v18, %v38_v17  ;;  %v103_v21 = vld [vmem:[%s863_s1 + $0xe0] sm:$0xff]  ;;  %v104_v23 = vld [vmem:[%s863_s1 + $0xe8] sm:$0xff]  ;;  %228 = vst [vmem:[%s864_s2 + $0xc8] sm:$0xff] %v164_v15 }
  0x18   :  { %229 = vst [vmem:[%s864_s2 + $0xd0] sm:$0xff] %v165_v16  ;;  %v167_v24 = vadd.f32 %v103_v21, %v39_v19  ;;  %v168_v25 = vadd.f32 %v104_v23, %v40_v22  ;;  %v41_v26 = vld [vmem:[%s862_s0 + $0xf0] sm:$0xff]  ;;  %v42_v28 = vld [vmem:[%s862_s0 + $0xf8] sm:$0xff]  ;;  %v43_v31 = vld [vmem:[%s862_s0 + $0x100] sm:$0xff] }
  0x19   :  { %v105_v27 = vld [vmem:[%s863_s1 + $0xf0] sm:$0xff]  ;;  %230 = vst [vmem:[%s864_s2 + $0xd8] sm:$0xff] %v166_v20  ;;  %v106_v30 = vld [vmem:[%s863_s1 + $0xf8] sm:$0xff]  ;;  %v107_v32 = vld [vmem:[%s863_s1 + $0x100] sm:$0xff] }
  0x1a   :  { %v169_v29 = vadd.f32 %v105_v27, %v41_v26  ;;  %231 = vst [vmem:[%s864_s2 + $0xe0] sm:$0xff] %v167_v24  ;;  %232 = vst [vmem:[%s864_s2 + $0xe8] sm:$0xff] %v168_v25  ;;  %v170_v33 = vadd.f32 %v106_v30, %v42_v28  ;;  %v171_v34 = vadd.f32 %v107_v32, %v43_v31  ;;  %v44_v35 = vld [vmem:[%s862_s0 + $0x108] sm:$0xff]  ;;  %v45_v37 = vld [vmem:[%s862_s0 + $0x110] sm:$0xff] }
  0x1b   :  { %v108_v36 = vld [vmem:[%s863_s1 + $0x108] sm:$0xff]  ;;  %v109_v39 = vld [vmem:[%s863_s1 + $0x110] sm:$0xff]  ;;  %v46_v40 = vld [vmem:[%s862_s0 + $0x118] sm:$0xff] }
  0x1c   :  { %233 = vst [vmem:[%s864_s2 + $0xf0] sm:$0xff] %v169_v29  ;;  %v172_v38 = vadd.f32 %v108_v36, %v44_v35  ;;  %v110_v41 = vld [vmem:[%s863_s1 + $0x118] sm:$0xff]  ;;  %234 = vst [vmem:[%s864_s2 + $0xf8] sm:$0xff] %v170_v33  ;;  %v173_v42 = vadd.f32 %v109_v39, %v45_v37  ;;  %v47_v44 = vld [vmem:[%s862_s0 + $0x120] sm:$0xff] }
  0x1d   :  { %235 = vst [vmem:[%s864_s2 + $0x100] sm:$0xff] %v171_v34  ;;  %v174_v43 = vadd.f32 %v110_v41, %v46_v40  ;;  %v111_v45 = vld [vmem:[%s863_s1 + $0x120] sm:$0xff]  ;;  %v48_v46 = vld [vmem:[%s862_s0 + $0x128] sm:$0xff]  ;;  %v49_v49 = vld [vmem:[%s862_s0 + $0x130] sm:$0xff] }
  0x1e   :  { %236 = vst [vmem:[%s864_s2 + $0x108] sm:$0xff] %v172_v38  ;;  %v175_v47 = vadd.f32 %v111_v45, %v47_v44  ;;  %v112_v48 = vld [vmem:[%s863_s1 + $0x128] sm:$0xff]  ;;  %v113_v50 = vld [vmem:[%s863_s1 + $0x130] sm:$0xff]  ;;  %237 = vst [vmem:[%s864_s2 + $0x110] sm:$0xff] %v173_v42 }
  0x1f   :  { %238 = vst [vmem:[%s864_s2 + $0x118] sm:$0xff] %v174_v43  ;;  %v176_v51 = vadd.f32 %v112_v48, %v48_v46  ;;  %v177_v52 = vadd.f32 %v113_v50, %v49_v49  ;;  %v50_v53 = vld [vmem:[%s862_s0 + $0x138] sm:$0xff]  ;;  %v51_v55 = vld [vmem:[%s862_s0 + $0x140] sm:$0xff]  ;;  %v52_v58 = vld [vmem:[%s862_s0 + $0x148] sm:$0xff] }
  0x20   :  { %v114_v54 = vld [vmem:[%s863_s1 + $0x138] sm:$0xff]  ;;  %239 = vst [vmem:[%s864_s2 + $0x120] sm:$0xff] %v175_v47  ;;  %v115_v57 = vld [vmem:[%s863_s1 + $0x140] sm:$0xff]  ;;  %v116_v59 = vld [vmem:[%s863_s1 + $0x148] sm:$0xff] }
  0x21   :  { %v178_v56 = vadd.f32 %v114_v54, %v50_v53  ;;  %240 = vst [vmem:[%s864_s2 + $0x128] sm:$0xff] %v176_v51  ;;  %241 = vst [vmem:[%s864_s2 + $0x130] sm:$0xff] %v177_v52  ;;  %v179_v60 = vadd.f32 %v115_v57, %v51_v55  ;;  %v180_v61 = vadd.f32 %v116_v59, %v52_v58  ;;  %v53_v62 = vld [vmem:[%s862_s0 + $0x150] sm:$0xff]  ;;  %v54_v0 = vld [vmem:[%s862_s0 + $0x158] sm:$0xff] }
  0x22   :  { %v117_v63 = vld [vmem:[%s863_s1 + $0x150] sm:$0xff]  ;;  %v118_v2 = vld [vmem:[%s863_s1 + $0x158] sm:$0xff]  ;;  %v55_v3 = vld [vmem:[%s862_s0 + $0x160] sm:$0xff] }
  0x23   :  { %242 = vst [vmem:[%s864_s2 + $0x138] sm:$0xff] %v178_v56  ;;  %v181_v1 = vadd.f32 %v117_v63, %v53_v62  ;;  %v119_v4 = vld [vmem:[%s863_s1 + $0x160] sm:$0xff]  ;;  %243 = vst [vmem:[%s864_s2 + $0x140] sm:$0xff] %v179_v60  ;;  %v182_v5 = vadd.f32 %v118_v2, %v54_v0  ;;  %v56_v7 = vld [vmem:[%s862_s0 + $0x168] sm:$0xff] }
  0x24   :  { %244 = vst [vmem:[%s864_s2 + $0x148] sm:$0xff] %v180_v61  ;;  %v183_v6 = vadd.f32 %v119_v4, %v55_v3  ;;  %v120_v8 = vld [vmem:[%s863_s1 + $0x168] sm:$0xff]  ;;  %v57_v9 = vld [vmem:[%s862_s0 + $0x170] sm:$0xff]  ;;  %v58_v12 = vld [vmem:[%s862_s0 + $0x178] sm:$0xff] }
  0x25   :  { %245 = vst [vmem:[%s864_s2 + $0x150] sm:$0xff] %v181_v1  ;;  %v184_v10 = vadd.f32 %v120_v8, %v56_v7  ;;  %v121_v11 = vld [vmem:[%s863_s1 + $0x170] sm:$0xff]  ;;  %v122_v13 = vld [vmem:[%s863_s1 + $0x178] sm:$0xff]  ;;  %246 = vst [vmem:[%s864_s2 + $0x158] sm:$0xff] %v182_v5 }
  0x26   :  { %247 = vst [vmem:[%s864_s2 + $0x160] sm:$0xff] %v183_v6  ;;  %v185_v14 = vadd.f32 %v121_v11, %v57_v9  ;;  %v186_v15 = vadd.f32 %v122_v13, %v58_v12  ;;  %v59_v16 = vld [vmem:[%s862_s0 + $0x180] sm:$0xff]  ;;  %v60_v18 = vld [vmem:[%s862_s0 + $0x188] sm:$0xff]  ;;  %v61_v21 = vld [vmem:[%s862_s0 + $0x190] sm:$0xff] }
  0x27   :  { %v123_v17 = vld [vmem:[%s863_s1 + $0x180] sm:$0xff]  ;;  %248 = vst [vmem:[%s864_s2 + $0x168] sm:$0xff] %v184_v10  ;;  %v124_v20 = vld [vmem:[%s863_s1 + $0x188] sm:$0xff]  ;;  %v125_v22 = vld [vmem:[%s863_s1 + $0x190] sm:$0xff] }
  0x28   :  { %v187_v19 = vadd.f32 %v123_v17, %v59_v16  ;;  %249 = vst [vmem:[%s864_s2 + $0x170] sm:$0xff] %v185_v14  ;;  %250 = vst [vmem:[%s864_s2 + $0x178] sm:$0xff] %v186_v15  ;;  %v188_v23 = vadd.f32 %v124_v20, %v60_v18  ;;  %v189_v24 = vadd.f32 %v125_v22, %v61_v21  ;;  %v62_v25 = vld [vmem:[%s862_s0 + $0x198] sm:$0xff]  ;;  %v63_v27 = vld [vmem:[%s862_s0 + $0x1a0] sm:$0xff] }
  0x29   :  { %v126_v26 = vld [vmem:[%s863_s1 + $0x198] sm:$0xff]  ;;  %v127_v29 = vld [vmem:[%s863_s1 + $0x1a0] sm:$0xff]  ;;  %v64_v30 = vld [vmem:[%s862_s0 + $0x1a8] sm:$0xff] }
  0x2a   :  { %251 = vst [vmem:[%s864_s2 + $0x180] sm:$0xff] %v187_v19  ;;  %v190_v28 = vadd.f32 %v126_v26, %v62_v25  ;;  %v128_v31 = vld [vmem:[%s863_s1 + $0x1a8] sm:$0xff]  ;;  %252 = vst [vmem:[%s864_s2 + $0x188] sm:$0xff] %v188_v23  ;;  %v191_v32 = vadd.f32 %v127_v29, %v63_v27  ;;  %v65_v34 = vld [vmem:[%s862_s0 + $0x1b0] sm:$0xff] }
  0x2b   :  { %253 = vst [vmem:[%s864_s2 + $0x190] sm:$0xff] %v189_v24  ;;  %v192_v33 = vadd.f32 %v128_v31, %v64_v30  ;;  %v129_v35 = vld [vmem:[%s863_s1 + $0x1b0] sm:$0xff]  ;;  %v66_v36 = vld [vmem:[%s862_s0 + $0x1b8] sm:$0xff]  ;;  %v67_v39 = vld [vmem:[%s862_s0 + $0x1c0] sm:$0xff] }
  0x2c   :  { %254 = vst [vmem:[%s864_s2 + $0x198] sm:$0xff] %v190_v28  ;;  %v193_v37 = vadd.f32 %v129_v35, %v65_v34  ;;  %v130_v38 = vld [vmem:[%s863_s1 + $0x1b8] sm:$0xff]  ;;  %v131_v40 = vld [vmem:[%s863_s1 + $0x1c0] sm:$0xff]  ;;  %255 = vst [vmem:[%s864_s2 + $0x1a0] sm:$0xff] %v191_v32 }
  0x2d   :  { %256 = vst [vmem:[%s864_s2 + $0x1a8] sm:$0xff] %v192_v33  ;;  %v194_v41 = vadd.f32 %v130_v38, %v66_v36  ;;  %v195_v42 = vadd.f32 %v131_v40, %v67_v39  ;;  %v68_v43 = vld [vmem:[%s862_s0 + $0x1c8] sm:$0xff]  ;;  %v69_v45 = vld [vmem:[%s862_s0 + $0x1d0] sm:$0xff]  ;;  %v70_v48 = vld [vmem:[%s862_s0 + $0x1d8] sm:$0xff] }
  0x2e   :  { %v132_v44 = vld [vmem:[%s863_s1 + $0x1c8] sm:$0xff]  ;;  %257 = vst [vmem:[%s864_s2 + $0x1b0] sm:$0xff] %v193_v37  ;;  %v133_v47 = vld [vmem:[%s863_s1 + $0x1d0] sm:$0xff]  ;;  %v134_v49 = vld [vmem:[%s863_s1 + $0x1d8] sm:$0xff] }
  0x2f   :  { %v196_v46 = vadd.f32 %v132_v44, %v68_v43  ;;  %258 = vst [vmem:[%s864_s2 + $0x1b8] sm:$0xff] %v194_v41  ;;  %259 = vst [vmem:[%s864_s2 + $0x1c0] sm:$0xff] %v195_v42  ;;  %v197_v50 = vadd.f32 %v133_v47, %v69_v45  ;;  %v198_v51 = vadd.f32 %v134_v49, %v70_v48  ;;  %v71_v52 = vld [vmem:[%s862_s0 + $0x1e0] sm:$0xff]  ;;  %v72_v54 = vld [vmem:[%s862_s0 + $0x1e8] sm:$0xff] }
  0x30   :  { %v135_v53 = vld [vmem:[%s863_s1 + $0x1e0] sm:$0xff]  ;;  %v136_v56 = vld [vmem:[%s863_s1 + $0x1e8] sm:$0xff]  ;;  %v73_v57 = vld [vmem:[%s862_s0 + $0x1f0] sm:$0xff] }
  0x31   :  { %260 = vst [vmem:[%s864_s2 + $0x1c8] sm:$0xff] %v196_v46  ;;  %v199_v55 = vadd.f32 %v135_v53, %v71_v52  ;;  %v137_v58 = vld [vmem:[%s863_s1 + $0x1f0] sm:$0xff]  ;;  %261 = vst [vmem:[%s864_s2 + $0x1d0] sm:$0xff] %v197_v50  ;;  %v200_v59 = vadd.f32 %v136_v56, %v72_v54  ;;  %v74_v61 = vld [vmem:[%s862_s0 + $0x1f8] sm:$0xff] }
  0x32   :  { %262 = vst [vmem:[%s864_s2 + $0x1d8] sm:$0xff] %v198_v51  ;;  %v201_v60 = vadd.f32 %v137_v58, %v73_v57  ;;  %v138_v62 = vld [vmem:[%s863_s1 + $0x1f8] sm:$0xff] }
  0x33   :  { %263 = vst [vmem:[%s864_s2 + $0x1e0] sm:$0xff] %v199_v55  ;;  %v202_v63 = vadd.f32 %v138_v62, %v74_v61  ;;  %264 = vst [vmem:[%s864_s2 + $0x1e8] sm:$0xff] %v200_v59 }
  0x34   :  { %265 = vst [vmem:[%s864_s2 + $0x1f0] sm:$0xff] %v201_v60 }
  0x35   :  { %266 = vst [vmem:[%s864_s2 + $0x1f8] sm:$0xff] %v202_v63 }

// kernel: darknet_forward.13
= control target key start
LH: loop header
LB: loop body
LE: loop exit
PB: predicated region body
PF: predicated region fallthrough
CT: control target
= control target key end

     0   :  { %s987_s6 = smov 0   ;;  %s2595_s0 = inlined_call_operand.vmem [shape: f32[2,8,2,8,2,128], index: 0, kind: input, shape index: {}]   ;;  %s2596_s1 = inlined_call_operand.vmem [shape: f32[2,8,8,128], index: 1, kind: output, shape index: {}]  }
   0x1 LB: > { %s820_s7 = sadd.s32 4294967295, %s975_s6   ;;  %p824_p0 = scmp.ge.s32.totalorder %s975_s6, 1  ;;  %s975_s6 = sphi %s987_s6, %s11_s6  }
   0x2   : > { %p87_p1 = scmp.lt.s32.totalorder %s975_s6, 3 }
   0x4   : > { %p88_p2 = pnand %p824_p0, %p87_p1 }
   0x6   : > { %91 = sbr.rel (%p88_p2) target bundleno = 227 (0xe3), region = 24 }
   0xd   : > { %p107_p3 = scmp.lt.s32.totalorder %s820_s7, 1  ;;  %vm631_vm0 = vcmask 1041409   ;;  %vm634_vm1 = vcmask 1042434   ;;  %vm637_vm2 = vcmask 1043459   ;;  %vm640_vm3 = vcmask 1044484  }
   0xe   : > { %vm643_vm4 = vcmask 1045509   ;;  %vm646_vm5 = vcmask 1046534   ;;  %vm649_vm6 = vcmask 1047559  }
   0xf   : > { %s3226_s7 = smov (!%p107_p3, %s820_s7), 1 }
  0x10   : > { %s959_s8 = sshll.u32 %s3226_s7, 8  ;;  %s960_s12 = sshll.u32 %s3226_s7, 6 }
  0x11   : > { %s1001_s11 = scalar_lea.vmem %s2595_s0, %s959_s8  ;;  %s2486_s15 = scalar_lea.vmem %s2596_s1, %s960_s12 }
  0x12   : > { %v1004_v0 = vld [vmem:[%s1001_s11] sm:$0x1]  ;;  %v1007_v1 = vld [vmem:[%s1001_s11 + $0x2] sm:$0x1]  ;;  %v1010_v2 = vld [vmem:[%s1001_s11 + $0x1] sm:$0x1] }
  0x13   : > { %v1013_v3 = vld [vmem:[%s1001_s11 + $0x3] sm:$0x1]  ;;  %v1016_v4 = vld [vmem:[%s1001_s11 + $0x4] sm:$0x1]  ;;  %v1019_v5 = vld [vmem:[%s1001_s11 + $0x6] sm:$0x1] }
  0x14   : > { %v1022_v6 = vld [vmem:[%s1001_s11 + $0x8] sm:$0x1]  ;;  %v1025_v7 = vld [vmem:[%s1001_s11 + $0xa] sm:$0x1]  ;;  %v1028_v8 = vld [vmem:[%s1001_s11 + $0x5] sm:$0x1] }
  0x15   : > { %2754 = vst [vmem:[#allocation2_spill] sm:$0xff] %v1022_v6  ;;  %2755 = vst [vmem:[#allocation3_spill] sm:$0xff] %v1025_v7  ;;  %v1031_v9 = vld [vmem:[%s1001_s11 + $0x7] sm:$0x1]  ;;  %v1034_v10 = vld [vmem:[%s1001_s11 + $0x9] sm:$0x1] }
  0x16   : > { %2756 = vst [vmem:[#allocation4_spill] sm:$0xff] %v1034_v10  ;;  %v1037_v11 = vld [vmem:[%s1001_s11 + $0xb] sm:$0x1]  ;;  %v1040_v12 = vld [vmem:[%s1001_s11 + $0xc] sm:$0x1] }
  0x17   : > { %2757 = vst [vmem:[#allocation5_spill] sm:$0xff] %v1037_v11  ;;  %2758 = vst [vmem:[#allocation6_spill] sm:$0xff] %v1040_v12  ;;  %v1043_v13 = vld [vmem:[%s1001_s11 + $0xe] sm:$0x1]  ;;  %v1046_v14 = vld [vmem:[%s1001_s11 + $0x20] sm:$0x1] }
  0x18   : > { %2759 = vst [vmem:[#allocation7_spill] sm:$0xff] %v1043_v13  ;;  %2760 = vst [vmem:[#allocation8_spill] sm:$0xff] %v1046_v14  ;;  %v1049_v15 = vld [vmem:[%s1001_s11 + $0x22] sm:$0x1]  ;;  %v1052_v16 = vld [vmem:[%s1001_s11 + $0xd] sm:$0x1] }
  0x19   : > { %2761 = vst [vmem:[#allocation9_spill] sm:$0xff] %v1049_v15  ;;  %2762 = vst [vmem:[#allocation10_spill] sm:$0xff] %v1052_v16  ;;  %v1055_v17 = vld [vmem:[%s1001_s11 + $0xf] sm:$0x1]  ;;  %v1058_v18 = vld [vmem:[%s1001_s11 + $0x21] sm:$0x1] }
  0x1a   : > { %2763 = vst [vmem:[#allocation11_spill] sm:$0xff] %v1055_v17  ;;  %2764 = vst [vmem:[#allocation12_spill] sm:$0xff] %v1058_v18  ;;  %v1061_v19 = vld [vmem:[%s1001_s11 + $0x23] sm:$0x1]  ;;  %v1064_v20 = vld [vmem:[%s1001_s11 + $0x24] sm:$0x1] }
  0x1b   : > { %2765 = vst [vmem:[#allocation13_spill] sm:$0xff] %v1061_v19  ;;  %2766 = vst [vmem:[#allocation14_spill] sm:$0xff] %v1064_v20  ;;  %v1067_v21 = vld [vmem:[%s1001_s11 + $0x26] sm:$0x1]  ;;  %v1070_v22 = vld [vmem:[%s1001_s11 + $0x28] sm:$0x1] }
  0x1c   : > { %2767 = vst [vmem:[#allocation15_spill] sm:$0xff] %v1067_v21  ;;  %2768 = vst [vmem:[#allocation16_spill] sm:$0xff] %v1070_v22  ;;  %v1073_v23 = vld [vmem:[%s1001_s11 + $0x2a] sm:$0x1]  ;;  %v1076_v24 = vld [vmem:[%s1001_s11 + $0x25] sm:$0x1] }
  0x1d   : > { %2769 = vst [vmem:[#allocation17_spill] sm:$0xff] %v1073_v23  ;;  %2770 = vst [vmem:[#allocation18_spill] sm:$0xff] %v1076_v24  ;;  %v1079_v25 = vld [vmem:[%s1001_s11 + $0x27] sm:$0x1]  ;;  %v1082_v26 = vld [vmem:[%s1001_s11 + $0x29] sm:$0x1] }
  0x1e   : > { %2771 = vst [vmem:[#allocation19_spill] sm:$0xff] %v1079_v25  ;;  %2772 = vst [vmem:[#allocation20_spill] sm:$0xff] %v1082_v26  ;;  %v1085_v27 = vld [vmem:[%s1001_s11 + $0x2b] sm:$0x1]  ;;  %v1088_v28 = vld [vmem:[%s1001_s11 + $0x2c] sm:$0x1] }
  0x1f   : > { %2773 = vst [vmem:[#allocation21_spill] sm:$0xff] %v1085_v27  ;;  %2774 = vst [vmem:[#allocation22_spill] sm:$0xff] %v1088_v28  ;;  %v1091_v29 = vld [vmem:[%s1001_s11 + $0x2e] sm:$0x1]  ;;  %v1094_v30 = vld [vmem:[%s1001_s11 + $0x40] sm:$0x1] }
  0x20   : > { %2775 = vst [vmem:[#allocation23_spill] sm:$0xff] %v1091_v29  ;;  %2776 = vst [vmem:[#allocation24_spill] sm:$0xff] %v1094_v30  ;;  %v1097_v31 = vld [vmem:[%s1001_s11 + $0x42] sm:$0x1]  ;;  %v1100_v32 = vld [vmem:[%s1001_s11 + $0x2d] sm:$0x1] }
  0x21   : > { %2777 = vst [vmem:[#allocation25_spill] sm:$0xff] %v1097_v31  ;;  %2778 = vst [vmem:[#allocation26_spill] sm:$0xff] %v1100_v32  ;;  %v1103_v33 = vld [vmem:[%s1001_s11 + $0x2f] sm:$0x1]  ;;  %v1106_v34 = vld [vmem:[%s1001_s11 + $0x41] sm:$0x1] }
  0x22   : > { %2779 = vst [vmem:[#allocation27_spill] sm:$0xff] %v1103_v33  ;;  %2780 = vst [vmem:[#allocation28_spill] sm:$0xff] %v1106_v34  ;;  %v1109_v35 = vld [vmem:[%s1001_s11 + $0x43] sm:$0x1]  ;;  %v1112_v36 = vld [vmem:[%s1001_s11 + $0x44] sm:$0x1] }
  0x23   : > { %2781 = vst [vmem:[#allocation29_spill] sm:$0xff] %v1109_v35  ;;  %2782 = vst [vmem:[#allocation30_spill] sm:$0xff] %v1112_v36  ;;  %v1115_v37 = vld [vmem:[%s1001_s11 + $0x46] sm:$0x1]  ;;  %v1118_v38 = vld [vmem:[%s1001_s11 + $0x48] sm:$0x1] }
  0x24   : > { %2783 = vst [vmem:[#allocation31_spill] sm:$0xff] %v1115_v37  ;;  %2784 = vst [vmem:[#allocation32_spill] sm:$0xff] %v1118_v38  ;;  %v1121_v39 = vld [vmem:[%s1001_s11 + $0x4a] sm:$0x1]  ;;  %v1124_v40 = vld [vmem:[%s1001_s11 + $0x45] sm:$0x1] }
  0x25   : > { %2785 = vst [vmem:[#allocation33_spill] sm:$0xff] %v1121_v39  ;;  %2786 = vst [vmem:[#allocation34_spill] sm:$0xff] %v1124_v40  ;;  %v1127_v41 = vld [vmem:[%s1001_s11 + $0x47] sm:$0x1]  ;;  %v1130_v42 = vld [vmem:[%s1001_s11 + $0x49] sm:$0x1] }
  0x26   : > { %2787 = vst [vmem:[#allocation35_spill] sm:$0xff] %v1127_v41  ;;  %2788 = vst [vmem:[#allocation36_spill] sm:$0xff] %v1130_v42  ;;  %v1133_v43 = vld [vmem:[%s1001_s11 + $0x4b] sm:$0x1]  ;;  %v1140_v46 = vld [vmem:[%s1001_s11 + $0x4c] sm:$0x1] }
  0x27   : > { %2789 = vst [vmem:[#allocation37_spill] sm:$0xff] %v1133_v43  ;;  %2790 = vst [vmem:[#allocation38_spill] sm:$0xff] %v1140_v46  ;;  %v1143_v47 = vld [vmem:[%s1001_s11 + $0x4e] sm:$0x1]  ;;  %v1146_v48 = vld [vmem:[%s1001_s11 + $0x60] sm:$0x1] }
  0x28   : > { %2791 = vst [vmem:[#allocation39_spill] sm:$0xff] %v1143_v47  ;;  %2792 = vst [vmem:[#allocation40_spill] sm:$0xff] %v1146_v48  ;;  %v1149_v49 = vld [vmem:[%s1001_s11 + $0x62] sm:$0x1]  ;;  %v1152_v50 = vld [vmem:[%s1001_s11 + $0x4d] sm:$0x1] }
  0x29   : > { %2793 = vst [vmem:[#allocation41_spill] sm:$0xff] %v1149_v49  ;;  %2794 = vst [vmem:[#allocation42_spill] sm:$0xff] %v1152_v50  ;;  %v1155_v51 = vld [vmem:[%s1001_s11 + $0x4f] sm:$0x1]  ;;  %v1158_v52 = vld [vmem:[%s1001_s11 + $0x61] sm:$0x1] }
  0x2a   : > { %2795 = vst [vmem:[#allocation43_spill] sm:$0xff] %v1155_v51  ;;  %2796 = vst [vmem:[#allocation44_spill] sm:$0xff] %v1158_v52  ;;  %v1161_v53 = vld [vmem:[%s1001_s11 + $0x63] sm:$0x1]  ;;  %v1172_v58 = vld [vmem:[%s1001_s11 + $0x64] sm:$0x1] }
  0x2b   : > { %2797 = vst [vmem:[#allocation45_spill] sm:$0xff] %v1161_v53  ;;  %2798 = vst [vmem:[#allocation46_spill] sm:$0xff] %v1172_v58  ;;  %v1175_v59 = vld [vmem:[%s1001_s11 + $0x66] sm:$0x1]  ;;  %v1178_v60 = vld [vmem:[%s1001_s11 + $0x68] sm:$0x1] }
  0x2c   : > { %2799 = vst [vmem:[#allocation47_spill] sm:$0xff] %v1175_v59  ;;  %2800 = vst [vmem:[#allocation48_spill] sm:$0xff] %v1178_v60  ;;  %v1181_v61 = vld [vmem:[%s1001_s11 + $0x6a] sm:$0x1]  ;;  %v1184_v62 = vld [vmem:[%s1001_s11 + $0x65] sm:$0x1] }
  0x2d   : > { %2801 = vst [vmem:[#allocation49_spill] sm:$0xff] %v1181_v61  ;;  %2802 = vst [vmem:[#allocation50_spill] sm:$0xff] %v1184_v62  ;;  %v1187_v63 = vld [vmem:[%s1001_s11 + $0x67] sm:$0x1]  ;;  %v1190_v56 = vld [vmem:[%s1001_s11 + $0x69] sm:$0x1] }
  0x2e   : > { %2803 = vst [vmem:[#allocation51_spill] sm:$0xff] %v1187_v63  ;;  %2804 = vst [vmem:[#allocation52_spill] sm:$0xff] %v1190_v56  ;;  %v1193_v57 = vld [vmem:[%s1001_s11 + $0x6b] sm:$0x1]  ;;  %v1204_v11 = vld [vmem:[%s1001_s11 + $0x6c] sm:$0x1] }
  0x2f   : > { %2805 = vst [vmem:[#allocation53_spill] sm:$0xff] %v1193_v57  ;;  %2806 = vst [vmem:[#allocation54_spill] sm:$0xff] %v1204_v11  ;;  %v1207_v7 = vld [vmem:[%s1001_s11 + $0x6e] sm:$0x1]  ;;  %v1210_v55 = vld [vmem:[%s1001_s11 + $0x80] sm:$0x1] }
  0x30   : > { %2807 = vst [vmem:[#allocation55_spill] sm:$0xff] %v1207_v7  ;;  %2808 = vst [vmem:[#allocation56_spill] sm:$0xff] %v1210_v55  ;;  %v1213_v16 = vld [vmem:[%s1001_s11 + $0x82] sm:$0x1]  ;;  %v1216_v54 = vld [vmem:[%s1001_s11 + $0x6d] sm:$0x1] }
  0x31   : > { %2809 = vst [vmem:[#allocation57_spill] sm:$0xff] %v1213_v16  ;;  %2810 = vst [vmem:[#allocation58_spill] sm:$0xff] %v1216_v54  ;;  %v1219_v45 = vld [vmem:[%s1001_s11 + $0x6f] sm:$0x1]  ;;  %v1222_v18 = vld [vmem:[%s1001_s11 + $0x81] sm:$0x1] }
  0x32   : > { %2811 = vst [vmem:[#allocation59_spill] sm:$0xff] %v1219_v45  ;;  %2812 = vst [vmem:[#allocation60_spill] sm:$0xff] %v1222_v18  ;;  %v1225_v44 = vld [vmem:[%s1001_s11 + $0x83] sm:$0x1]  ;;  %v1236_v13 = vld [vmem:[%s1001_s11 + $0x84] sm:$0x1] }
  0x33   : > { %2813 = vst [vmem:[#allocation61_spill] sm:$0xff] %v1225_v44  ;;  %2814 = vst [vmem:[#allocation62_spill] sm:$0xff] %v1236_v13  ;;  %v1239_v12 = vld [vmem:[%s1001_s11 + $0x86] sm:$0x1]  ;;  %v1242_v19 = vld [vmem:[%s1001_s11 + $0x88] sm:$0x1] }
  0x34   : > { %2815 = vst [vmem:[#allocation63_spill] sm:$0xff] %v1239_v12  ;;  %2816 = vst [vmem:[#allocation64_spill] sm:$0xff] %v1242_v19  ;;  %v1245_v24 = vld [vmem:[%s1001_s11 + $0x8a] sm:$0x1]  ;;  %v1248_v15 = vld [vmem:[%s1001_s11 + $0x85] sm:$0x1] }
  0x35   : > { %2817 = vst [vmem:[#allocation65_spill] sm:$0xff] %v1245_v24  ;;  %2818 = vst [vmem:[#allocation66_spill] sm:$0xff] %v1248_v15  ;;  %v1251_v14 = vld [vmem:[%s1001_s11 + $0x87] sm:$0x1]  ;;  %v1254_v26 = vld [vmem:[%s1001_s11 + $0x89] sm:$0x1] }
  0x36   : > { %2819 = vst [vmem:[#allocation67_spill] sm:$0xff] %v1251_v14  ;;  %2820 = vst [vmem:[#allocation68_spill] sm:$0xff] %v1254_v26  ;;  %v1257_v17 = vld [vmem:[%s1001_s11 + $0x8b] sm:$0x1]  ;;  %v1268_v21 = vld [vmem:[%s1001_s11 + $0x8c] sm:$0x1] }
  0x37   : > { %2821 = vst [vmem:[#allocation69_spill] sm:$0xff] %v1257_v17  ;;  %2822 = vst [vmem:[#allocation70_spill] sm:$0xff] %v1268_v21  ;;  %v1271_v20 = vld [vmem:[%s1001_s11 + $0x8e] sm:$0x1]  ;;  %v1274_v27 = vld [vmem:[%s1001_s11 + $0xa0] sm:$0x1] }
  0x38   : > { %2823 = vst [vmem:[#allocation71_spill] sm:$0xff] %v1271_v20  ;;  %2824 = vst [vmem:[#allocation72_spill] sm:$0xff] %v1274_v27  ;;  %v1277_v32 = vld [vmem:[%s1001_s11 + $0xa2] sm:$0x1]  ;;  %v1280_v23 = vld [vmem:[%s1001_s11 + $0x8d] sm:$0x1] }
  0x39   : > { %2825 = vst [vmem:[#allocation73_spill] sm:$0xff] %v1277_v32  ;;  %2826 = vst [vmem:[#allocation74_spill] sm:$0xff] %v1280_v23  ;;  %v1283_v22 = vld [vmem:[%s1001_s11 + $0x8f] sm:$0x1]  ;;  %v1286_v34 = vld [vmem:[%s1001_s11 + $0xa1] sm:$0x1] }
  0x3a   : > { %2827 = vst [vmem:[#allocation75_spill] sm:$0xff] %v1283_v22  ;;  %2828 = vst [vmem:[#allocation76_spill] sm:$0xff] %v1286_v34  ;;  %v1289_v25 = vld [vmem:[%s1001_s11 + $0xa3] sm:$0x1]  ;;  %v1300_v29 = vld [vmem:[%s1001_s11 + $0xa4] sm:$0x1] }
  0x3b   : > { %2829 = vst [vmem:[#allocation77_spill] sm:$0xff] %v1289_v25  ;;  %2830 = vst [vmem:[#allocation78_spill] sm:$0xff] %v1300_v29  ;;  %v1303_v28 = vld [vmem:[%s1001_s11 + $0xa6] sm:$0x1]  ;;  %v1306_v35 = vld [vmem:[%s1001_s11 + $0xa8] sm:$0x1] }
  0x3c   : > { %2831 = vst [vmem:[#allocation79_spill] sm:$0xff] %v1303_v28  ;;  %2832 = vst [vmem:[#allocation80_spill] sm:$0xff] %v1306_v35  ;;  %v1309_v40 = vld [vmem:[%s1001_s11 + $0xaa] sm:$0x1]  ;;  %v1312_v31 = vld [vmem:[%s1001_s11 + $0xa5] sm:$0x1] }
  0x3d   : > { %2833 = vst [vmem:[#allocation81_spill] sm:$0xff] %v1309_v40  ;;  %2834 = vst [vmem:[#allocation82_spill] sm:$0xff] %v1312_v31  ;;  %v1315_v30 = vld [vmem:[%s1001_s11 + $0xa7] sm:$0x1]  ;;  %v1318_v42 = vld [vmem:[%s1001_s11 + $0xa9] sm:$0x1] }
  0x3e   : > { %2835 = vst [vmem:[#allocation83_spill] sm:$0xff] %v1315_v30  ;;  %2836 = vst [vmem:[#allocation84_spill] sm:$0xff] %v1318_v42  ;;  %v1321_v33 = vld [vmem:[%s1001_s11 + $0xab] sm:$0x1]  ;;  %v1332_v37 = vld [vmem:[%s1001_s11 + $0xac] sm:$0x1] }
  0x3f   : > { %2837 = vst [vmem:[#allocation85_spill] sm:$0xff] %v1321_v33  ;;  %2838 = vst [vmem:[#allocation86_spill] sm:$0xff] %v1332_v37  ;;  %v1335_v36 = vld [vmem:[%s1001_s11 + $0xae] sm:$0x1]  ;;  %v1338_v43 = vld [vmem:[%s1001_s11 + $0xc0] sm:$0x1] }
  0x40   : > { %2839 = vst [vmem:[#allocation87_spill] sm:$0xff] %v1335_v36  ;;  %2840 = vst [vmem:[#allocation88_spill] sm:$0xff] %v1338_v43  ;;  %v1341_v50 = vld [vmem:[%s1001_s11 + $0xc2] sm:$0x1]  ;;  %v1344_v39 = vld [vmem:[%s1001_s11 + $0xad] sm:$0x1] }
  0x41   : > { %2841 = vst [vmem:[#allocation89_spill] sm:$0xff] %v1341_v50  ;;  %2842 = vst [vmem:[#allocation90_spill] sm:$0xff] %v1344_v39  ;;  %v1347_v38 = vld [vmem:[%s1001_s11 + $0xaf] sm:$0x1]  ;;  %v1350_v52 = vld [vmem:[%s1001_s11 + $0xc1] sm:$0x1] }
  0x42   : > { %2843 = vst [vmem:[#allocation91_spill] sm:$0xff] %v1347_v38  ;;  %2844 = vst [vmem:[#allocation92_spill] sm:$0xff] %v1350_v52  ;;  %v1353_v41 = vld [vmem:[%s1001_s11 + $0xc3] sm:$0x1]  ;;  %v1364_v47 = vld [vmem:[%s1001_s11 + $0xc4] sm:$0x1] }
  0x43   : > { %2845 = vst [vmem:[#allocation93_spill] sm:$0xff] %v1353_v41  ;;  %2846 = vst [vmem:[#allocation94_spill] sm:$0xff] %v1364_v47  ;;  %v1367_v46 = vld [vmem:[%s1001_s11 + $0xc6] sm:$0x1]  ;;  %v1370_v53 = vld [vmem:[%s1001_s11 + $0xc8] sm:$0x1] }
  0x44   : > { %2847 = vst [vmem:[#allocation95_spill] sm:$0xff] %v1367_v46  ;;  %2848 = vst [vmem:[#allocation96_spill] sm:$0xff] %v1370_v53  ;;  %v1373_v62 = vld [vmem:[%s1001_s11 + $0xca] sm:$0x1]  ;;  %v1376_v49 = vld [vmem:[%s1001_s11 + $0xc5] sm:$0x1] }
  0x45   : > { %2849 = vst [vmem:[#allocation97_spill] sm:$0xff] %v1373_v62  ;;  %2850 = vst [vmem:[#allocation98_spill] sm:$0xff] %v1376_v49  ;;  %v1379_v48 = vld [vmem:[%s1001_s11 + $0xc7] sm:$0x1]  ;;  %v1382_v56 = vld [vmem:[%s1001_s11 + $0xc9] sm:$0x1] }
  0x46   : > { %2851 = vst [vmem:[#allocation99_spill] sm:$0xff] %v1379_v48  ;;  %2852 = vst [vmem:[#allocation100_spill] sm:$0xff] %v1382_v56  ;;  %v1385_v51 = vld [vmem:[%s1001_s11 + $0xcb] sm:$0x1]  ;;  %v1396_v59 = vld [vmem:[%s1001_s11 + $0xcc] sm:$0x1] }
  0x47   : > { %2853 = vst [vmem:[#allocation101_spill] sm:$0xff] %v1385_v51  ;;  %2854 = vst [vmem:[#allocation102_spill] sm:$0xff] %v1396_v59  ;;  %v1399_v58 = vld [vmem:[%s1001_s11 + $0xce] sm:$0x1]  ;;  %v1402_v57 = vld [vmem:[%s1001_s11 + $0xe0] sm:$0x1] }
  0x48   : > { %2855 = vst [vmem:[#allocation103_spill] sm:$0xff] %v1399_v58  ;;  %2856 = vst [vmem:[#allocation104_spill] sm:$0xff] %v1402_v57  ;;  %v1405_v54 = vld [vmem:[%s1001_s11 + $0xe2] sm:$0x1]  ;;  %v1408_v61 = vld [vmem:[%s1001_s11 + $0xcd] sm:$0x1] }
  0x49   : > { %2857 = vst [vmem:[#allocation105_spill] sm:$0xff] %v1405_v54  ;;  %2858 = vst [vmem:[#allocation106_spill] sm:$0xff] %v1408_v61  ;;  %v1411_v60 = vld [vmem:[%s1001_s11 + $0xcf] sm:$0x1]  ;;  %v1414_v18 = vld [vmem:[%s1001_s11 + $0xe1] sm:$0x1] }
  0x4a   : > { %2859 = vst [vmem:[#allocation107_spill] sm:$0xff] %v1411_v60  ;;  %2860 = vst [vmem:[#allocation108_spill] sm:$0xff] %v1414_v18  ;;  %v1417_v63 = vld [vmem:[%s1001_s11 + $0xe3] sm:$0x1]  ;;  %v1428_v7 = vld [vmem:[%s1001_s11 + $0xe4] sm:$0x1] }
  0x4b   : > { %2861 = vst [vmem:[#allocation109_spill] sm:$0xff] %v1417_v63  ;;  %2862 = vst [vmem:[#allocation110_spill] sm:$0xff] %v1428_v7  ;;  %v1431_v11 = vld [vmem:[%s1001_s11 + $0xe6] sm:$0x1]  ;;  %v1434_v10 = vld [vmem:[%s1001_s11 + $0xe8] sm:$0x1] }
  0x4c   : > { %2863 = vst [vmem:[#allocation111_spill] sm:$0xff] %v1431_v11  ;;  %2864 = vst [vmem:[#allocation112_spill] sm:$0xff] %v1434_v10  ;;  %v1437_v44 = vld [vmem:[%s1001_s11 + $0xea] sm:$0x1]  ;;  %v1440_v15 = vld [vmem:[%s1001_s11 + $0xe5] sm:$0x1] }
  0x4d   : > { %2865 = vst [vmem:[#allocation113_spill] sm:$0xff] %v1437_v44  ;;  %2866 = vst [vmem:[#allocation114_spill] sm:$0xff] %v1440_v15  ;;  %v1443_v16 = vld [vmem:[%s1001_s11 + $0xe7] sm:$0x1]  ;;  %v1446_v55 = vld [vmem:[%s1001_s11 + $0xe9] sm:$0x1] }
  0x4e   : > { %2867 = vst [vmem:[#allocation115_spill] sm:$0xff] %v1443_v16  ;;  %2868 = vst [vmem:[#allocation116_spill] sm:$0xff] %v1446_v55  ;;  %v1449_v26 = vld [vmem:[%s1001_s11 + $0xeb] sm:$0x1]  ;;  %v1460_v14 = vld [vmem:[%s1001_s11 + $0xec] sm:$0x1] }
  0x4f   : > { %2869 = vst [vmem:[#allocation117_spill] sm:$0xff] %v1449_v26  ;;  %2870 = vst [vmem:[#allocation118_spill] sm:$0xff] %v1460_v14  ;;  %v1463_v12 = vld [vmem:[%s1001_s11 + $0xed] sm:$0x1]  ;;  %v1466_v13 = vld [vmem:[%s1001_s11 + $0x10] sm:$0x1] }
  0x50   : > { %2871 = vst [vmem:[#allocation119_spill] sm:$0xff] %v1463_v12  ;;  %v1469_v6 = vld [vmem:[%s1001_s11 + $0x12] sm:$0x1]  ;;  %v1472_v45 = vld [vmem:[%s1001_s11 + $0x14] sm:$0x1] }
  0x51   : > { %v1483_v32 = vld [vmem:[%s1001_s11 + $0xee] sm:$0x1]  ;;  %v1486_v34 = vld [vmem:[%s1001_s11 + $0xef] sm:$0x1]  ;;  %v1489_v27 = vld [vmem:[%s1001_s11 + $0x16] sm:$0x1] }
  0x52   : > { %2872 = vst [vmem:[#allocation120_spill] sm:$0xff] %v1483_v32  ;;  %2873 = vst [vmem:[#allocation121_spill] sm:$0xff] %v1486_v34  ;;  %v1492_v22 = vld [vmem:[%s1001_s11 + $0x18] sm:$0x1]  ;;  %v1495_v17 = vld [vmem:[%s1001_s11 + $0x1a] sm:$0x1] }
  0x53   : > { %v1506_v40 = vld [vmem:[%s1001_s11 + $0x1c] sm:$0x1]  ;;  %v1509_v42 = vld [vmem:[%s1001_s11 + $0x1e] sm:$0x1]  ;;  %v1512_v35 = vld [vmem:[%s1001_s11 + $0x30] sm:$0x1] }
  0x54   : > { %v1523_v41 = vld [vmem:[%s1001_s11 + $0x32] sm:$0x1]  ;;  %v1526_v50 = vld [vmem:[%s1001_s11 + $0x34] sm:$0x1]  ;;  %v1529_v52 = vld [vmem:[%s1001_s11 + $0x36] sm:$0x1] }
  0x55   : > { %v1540_v51 = vld [vmem:[%s1001_s11 + $0x38] sm:$0x1]  ;;  %v1543_v62 = vld [vmem:[%s1001_s11 + $0x3a] sm:$0x1]  ;;  %v1546_v56 = vld [vmem:[%s1001_s11 + $0x3c] sm:$0x1] }
  0x56   : > { %v893_v19 = vld [vmem:[%s1001_s11 + $0x11] sm:$0x1]  ;;  %v894_v61 = vld [vmem:[%s1001_s11 + $0x13] sm:$0x1]  ;;  %v895_v59 = vld [vmem:[%s1001_s11 + $0x15] sm:$0x1] }
  0x57   : > { %v1560_v54 = vld [vmem:[%s1001_s11 + $0x3e] sm:$0x1]  ;;  %v1563_v18 = vld [vmem:[%s1001_s11 + $0x50] sm:$0x1]  ;;  %v1566_v57 = vld [vmem:[%s1001_s11 + $0x52] sm:$0x1]  ;;  %v438_v63 = vmax.f32 %v1466_v13, %v893_v19  ;;  %v439_v26 = vmax.f32 %v1469_v6, %v894_v61  ;;  %v440_v44 = vmax.f32 %v1472_v45, %v895_v59 }
  0x58   : > { %v896_v25 = vld [vmem:[%s1001_s11 + $0x17] sm:$0x1]  ;;  %v1570_v15 = vld [vmem:[%s1001_s11 + $0x19] sm:$0x1]  ;;  %v1573_v33 = vld [vmem:[%s1001_s11 + $0x1b] sm:$0x1] }
  0x59   : > { %v1581_v55 = vld [vmem:[%s1001_s11 + $0x54] sm:$0x1]  ;;  %v1584_v10 = vld [vmem:[%s1001_s11 + $0x56] sm:$0x1]  ;;  %v1587_v16 = vld [vmem:[%s1001_s11 + $0x58] sm:$0x1]  ;;  %v441_v13 = vmax.f32 %v1489_v27, %v896_v25  ;;  %v442_v19 = vmax.f32 %v1492_v22, %v1570_v15  ;;  %v443_v45 = vmax.f32 %v1495_v17, %v1573_v33  ;;  %v2876_v27 = vmax.f32 %v1004_v0, %v1010_v2 }
  0x5a   : > { %v1590_v11 = vld [vmem:[%s1001_s11 + $0x1d] sm:$0x1]  ;;  %v1593_v7 = vld [vmem:[%s1001_s11 + $0x1f] sm:$0x1]  ;;  %v1596_v24 = vld [vmem:[%s1001_s11 + $0x31] sm:$0x1] }
  0x5b   : > { %v1606_v59 = vld [vmem:[%s1001_s11 + $0x5a] sm:$0x1]  ;;  %v1609_v61 = vld [vmem:[%s1001_s11 + $0x5c] sm:$0x1]  ;;  %v1612_v12 = vld [vmem:[%s1001_s11 + $0x5e] sm:$0x1]  ;;  %v1632_v33 = vmax.f32 %v2876_v27, %v438_v63  ;;  %v2879_v27 = vmax.f32 %v1007_v1, %v1013_v3 }
  0x5c   : > { %2874 = vst [vmem:[#allocation122_spill] sm:$0xff] %v1609_v61  ;;  %2875 = vst [vmem:[#allocation123_spill] sm:$0xff] %v1612_v12  ;;  %v1615_v14 = vld [vmem:[%s1001_s11 + $0x33] sm:$0x1]  ;;  %v1618_v6 = vld [vmem:[%s1001_s11 + $0x35] sm:$0x1] }
  0x5d   : > { %v1621_v25 = vld [vmem:[%s1001_s11 + $0x37] sm:$0x1]  ;;  %2877 = vst [vmem:[#allocation124_spill] sm:$0xff] %v1632_v33  ;;  %v1635_v34 = vld [vmem:[%s1001_s11 + $0x70] sm:$0x1]  ;;  %v1661_v22 = vmax.f32 %v2879_v27, %v439_v26  ;;  %v2882_v27 = vmax.f32 %v1016_v4, %v1028_v8 }
  0x5e   : > { %v1638_v32 = vld [vmem:[%s1001_s11 + $0x72] sm:$0x1]  ;;  %v1641_v15 = vld [vmem:[%s1001_s11 + $0x74] sm:$0x1]  ;;  %v1644_v60 = vld [vmem:[%s1001_s11 + $0x39] sm:$0x1] }
  0x5f   : > { %2878 = vst [vmem:[#allocation125_spill] sm:$0xff] %v1641_v15  ;;  %v1647_v17 = vld [vmem:[%s1001_s11 + $0x3b] sm:$0x1]  ;;  %v1650_v58 = vld [vmem:[%s1001_s11 + $0x3d] sm:$0x1]  ;;  %2880 = vst [vmem:[#allocation126_spill] sm:$0xff] %v1661_v22  ;;  %v1690_v63 = vmax.f32 %v2882_v27, %v440_v44  ;;  %v2885_v27 = vmax.f32 %v1019_v5, %v1031_v9 }
  0x60   : > { %v1664_v33 = vld [vmem:[%s1001_s11 + $0x76] sm:$0x1]  ;;  %v1667_v53 = vld [vmem:[%s1001_s11 + $0x78] sm:$0x1]  ;;  %v1670_v0 = vld [vmem:[%s1001_s11 + $0x7a] sm:$0x1] }
  0x61   : > { %2881 = vst [vmem:[#allocation127_spill] sm:$0xff] %v1670_v0  ;;  %v1673_v48 = vld [vmem:[%s1001_s11 + $0x3f] sm:$0x1]  ;;  %v1676_v2 = vld [vmem:[%s1001_s11 + $0x51] sm:$0x1]  ;;  %2883 = vst [vmem:[#allocation128_spill] sm:$0xff] %v1690_v63  ;;  %v1719_v26 = vmax.f32 %v2885_v27, %v441_v13 }
  0x62   : > { %v1679_v46 = vld [vmem:[%s1001_s11 + $0x53] sm:$0x1]  ;;  %v1693_v22 = vld [vmem:[%s1001_s11 + $0x7c] sm:$0x1]  ;;  %v1696_v49 = vld [vmem:[%s1001_s11 + $0x7e] sm:$0x1] }
  0x63   : > { %v1699_v1 = vld [vmem:[%s1001_s11 + $0x90] sm:$0x1]  ;;  %v1702_v47 = vld [vmem:[%s1001_s11 + $0x55] sm:$0x1]  ;;  %v1705_v3 = vld [vmem:[%s1001_s11 + $0x57] sm:$0x1] }
  0x64   : > { %2884 = vst [vmem:[#allocation129_spill] sm:$0xff] %v1699_v1  ;;  %v1708_v43 = vld [vmem:[%s1001_s11 + $0x59] sm:$0x1]  ;;  %2886 = vst [vmem:[#allocation130_spill] sm:$0xff] %v1719_v26  ;;  %v1722_v63 = vld [vmem:[%s1001_s11 + $0x92] sm:$0x1] }
  0x65   : > { %v1725_v38 = vld [vmem:[%s1001_s11 + $0x94] sm:$0x1]  ;;  %v1728_v4 = vld [vmem:[%s1001_s11 + $0x96] sm:$0x1]  ;;  %v1731_v36 = vld [vmem:[%s1001_s11 + $0x5b] sm:$0x1] }
  0x66   : > { %2887 = vst [vmem:[#allocation131_spill] sm:$0xff] %v1728_v4  ;;  %2888 = vst [vmem:[#allocation132_spill] sm:$0xff] %v1731_v36  ;;  %v1734_v8 = vld [vmem:[%s1001_s11 + $0x5d] sm:$0x1]  ;;  %v1737_v39 = vld [vmem:[%s1001_s11 + $0x5f] sm:$0x1] }
  0x67   : > { %2889 = vst [vmem:[#allocation133_spill] sm:$0xff] %v1734_v8  ;;  %2890 = vst [vmem:[#allocation134_spill] sm:$0xff] %v1737_v39  ;;  %v2891_v27 = vld [vmem:[#allocation2_spill] sm:$0xff]  ;;  %v2892_v44 = vld [vmem:[#allocation4_spill] sm:$0xff] }
  0x68   : > { %v2893_v26 = vmax.f32 %v2891_v27, %v2892_v44  ;;  %v1751_v30 = vld [vmem:[%s1001_s11 + $0x98] sm:$0x1]  ;;  %v1754_v28 = vld [vmem:[%s1001_s11 + $0x9a] sm:$0x1]  ;;  %v1757_v5 = vld [vmem:[%s1001_s11 + $0x9c] sm:$0x1] }
  0x69   : > { %2895 = vst [vmem:[#allocation4_spill] sm:$0xff] %v1757_v5  ;;  %v1760_v31 = vld [vmem:[%s1001_s11 + $0x71] sm:$0x1]  ;;  %v1763_v9 = vld [vmem:[%s1001_s11 + $0x73] sm:$0x1]  ;;  %v2900_v13 = vld [vmem:[#allocation5_spill] sm:$0xff] }
  0x6a   : > { %v1748_v37 = vmax.f32 %v2893_v26, %v442_v19  ;;  %2896 = vst [vmem:[#allocation135_spill] sm:$0xff] %v1760_v31  ;;  %2897 = vst [vmem:[#allocation136_spill] sm:$0xff] %v1763_v9  ;;  %v1766_v29 = vld [vmem:[%s1001_s11 + $0x75] sm:$0x1]  ;;  %v1780_v23 = vld [vmem:[%s1001_s11 + $0x9e] sm:$0x1] }
  0x6b   : > { %2898 = vst [vmem:[#allocation137_spill] sm:$0xff] %v1766_v29  ;;  %v2899_v27 = vld [vmem:[#allocation3_spill] sm:$0xff]  ;;  %v1792_v19 = vld [vmem:[%s1001_s11 + $0x79] sm:$0x1]  ;;  %v1795_v8 = vld [vmem:[%s1001_s11 + $0x7b] sm:$0x1] }
  0x6c   : > { %2894 = vst [vmem:[#allocation2_spill] sm:$0xff] %v1748_v37  ;;  %v2901_v37 = vmax.f32 %v2899_v27, %v2900_v13  ;;  %v1783_v21 = vld [vmem:[%s1001_s11 + $0xb0] sm:$0x1]  ;;  %v1786_v44 = vld [vmem:[%s1001_s11 + $0xb2] sm:$0x1]  ;;  %2906 = vst [vmem:[#allocation140_spill] sm:$0xff] %v1792_v19  ;;  %v2908_v27 = vmax.f32 %v1506_v40, %v1590_v11  ;;  %v2918_v40 = vmax.f32 %v1509_v42, %v1593_v7 }
  0x6d   : > { %2903 = vst [vmem:[#allocation5_spill] sm:$0xff] %v1783_v21  ;;  %2904 = vst [vmem:[#allocation138_spill] sm:$0xff] %v1786_v44  ;;  %v1789_v36 = vld [vmem:[%s1001_s11 + $0x77] sm:$0x1]  ;;  %v2909_v26 = vld [vmem:[#allocation6_spill] sm:$0xff] }
  0x6e   : > { %v1777_v20 = vmax.f32 %v2901_v37, %v443_v45  ;;  %2905 = vst [vmem:[#allocation139_spill] sm:$0xff] %v1789_v36  ;;  %2907 = vst [vmem:[#allocation141_spill] sm:$0xff] %v1795_v8  ;;  %v1812_v61 = vld [vmem:[%s1001_s11 + $0xb4] sm:$0x1]  ;;  %v1815_v13 = vld [vmem:[%s1001_s11 + $0xb6] sm:$0x1] }
  0x6f   : > { %v1818_v31 = vld [vmem:[%s1001_s11 + $0xb8] sm:$0x1]  ;;  %v1821_v37 = vld [vmem:[%s1001_s11 + $0x7d] sm:$0x1]  ;;  %v1824_v9 = vld [vmem:[%s1001_s11 + $0x7f] sm:$0x1] }
  0x70   : > { %2902 = vst [vmem:[#allocation3_spill] sm:$0xff] %v1777_v20  ;;  %v2910_v20 = vld [vmem:[#allocation10_spill] sm:$0xff]  ;;  %2914 = vst [vmem:[#allocation142_spill] sm:$0xff] %v1818_v31  ;;  %v1827_v45 = vld [vmem:[%s1001_s11 + $0x91] sm:$0x1] }
  0x71   : > { %v2911_v39 = vmax.f32 %v2909_v26, %v2910_v20  ;;  %2913 = vst [vmem:[#allocation10_spill] sm:$0xff] %v1815_v13  ;;  %2915 = vst [vmem:[#allocation143_spill] sm:$0xff] %v1821_v37  ;;  %v2919_v26 = vld [vmem:[#allocation7_spill] sm:$0xff]  ;;  %v1844_v15 = vld [vmem:[%s1001_s11 + $0xba] sm:$0x1] }
  0x72   : > { %2916 = vst [vmem:[#allocation144_spill] sm:$0xff] %v1824_v9  ;;  %2917 = vst [vmem:[#allocation145_spill] sm:$0xff] %v1827_v45  ;;  %v1847_v11 = vld [vmem:[%s1001_s11 + $0xbc] sm:$0x1]  ;;  %v1850_v36 = vld [vmem:[%s1001_s11 + $0xbe] sm:$0x1] }
  0x73   : > { %v1809_v12 = vmax.f32 %v2911_v39, %v2908_v27  ;;  %v2920_v27 = vld [vmem:[#allocation11_spill] sm:$0xff]  ;;  %v1888_v9 = vld [vmem:[%s1001_s11 + $0x9b] sm:$0x1]  ;;  %v1891_v42 = vld [vmem:[%s1001_s11 + $0x9d] sm:$0x1] }
  0x74   : > { %v1853_v20 = vld [vmem:[%s1001_s11 + $0x93] sm:$0x1]  ;;  %v1856_v19 = vld [vmem:[%s1001_s11 + $0x95] sm:$0x1]  ;;  %v1859_v39 = vld [vmem:[%s1001_s11 + $0x97] sm:$0x1] }
  0x75   : > { %2912 = vst [vmem:[#allocation6_spill] sm:$0xff] %v1809_v12  ;;  %v2921_v12 = vmax.f32 %v2919_v26, %v2920_v27  ;;  %2923 = vst [vmem:[#allocation11_spill] sm:$0xff] %v1853_v20  ;;  %v2927_v26 = vld [vmem:[#allocation8_spill] sm:$0xff]  ;;  %v1876_v0 = vld [vmem:[%s1001_s11 + $0xd0] sm:$0x1] }
  0x76   : > { %2924 = vst [vmem:[#allocation146_spill] sm:$0xff] %v1856_v19  ;;  %2925 = vst [vmem:[#allocation147_spill] sm:$0xff] %v1859_v39  ;;  %v2928_v27 = vld [vmem:[#allocation12_spill] sm:$0xff]  ;;  %v1879_v7 = vld [vmem:[%s1001_s11 + $0xd2] sm:$0x1] }
  0x77   : > { %v1841_v29 = vmax.f32 %v2921_v12, %v2918_v40  ;;  %v2926_v40 = vmax.f32 %v1512_v35, %v1596_v24  ;;  %v1882_v37 = vld [vmem:[%s1001_s11 + $0xd4] sm:$0x1]  ;;  %v1885_v12 = vld [vmem:[%s1001_s11 + $0x99] sm:$0x1]  ;;  %2932 = vst [vmem:[#allocation148_spill] sm:$0xff] %v1888_v9  ;;  %2933 = vst [vmem:[#allocation149_spill] sm:$0xff] %v1891_v42 }
  0x78   : > { %2931 = vst [vmem:[#allocation12_spill] sm:$0xff] %v1885_v12  ;;  %v1908_v1 = vld [vmem:[%s1001_s11 + $0xd6] sm:$0x1]  ;;  %v1911_v24 = vld [vmem:[%s1001_s11 + $0xd8] sm:$0x1] }
  0x79   : > { %2922 = vst [vmem:[#allocation7_spill] sm:$0xff] %v1841_v29  ;;  %v2929_v29 = vmax.f32 %v2927_v26, %v2928_v27  ;;  %v2935_v26 = vld [vmem:[#allocation9_spill] sm:$0xff]  ;;  %v1914_v20 = vld [vmem:[%s1001_s11 + $0xda] sm:$0x1]  ;;  %v1920_v19 = vld [vmem:[%s1001_s11 + $0xb1] sm:$0x1] }
  0x7a   : > { %v2936_v27 = vld [vmem:[#allocation13_spill] sm:$0xff]  ;;  %2940 = vst [vmem:[#allocation150_spill] sm:$0xff] %v1920_v19  ;;  %v1923_v35 = vld [vmem:[%s1001_s11 + $0xb3] sm:$0x1]  ;;  %v1940_v4 = vld [vmem:[%s1001_s11 + $0xdc] sm:$0x1] }
  0x7b   : > { %v1873_v8 = vmax.f32 %v2929_v29, %v2926_v40  ;;  %v2934_v40 = vmax.f32 %v1523_v41, %v1615_v14  ;;  %v1917_v29 = vld [vmem:[%s1001_s11 + $0x9f] sm:$0x1]  ;;  %2941 = vst [vmem:[#allocation151_spill] sm:$0xff] %v1923_v35  ;;  %v1943_v14 = vld [vmem:[%s1001_s11 + $0xde] sm:$0x1] }
  0x7c   : > { %2939 = vst [vmem:[#allocation13_spill] sm:$0xff] %v1917_v29  ;;  %v1946_v12 = vld [vmem:[%s1001_s11 + $0xf0] sm:$0x1]  ;;  %v1949_v41 = vld [vmem:[%s1001_s11 + $0xb5] sm:$0x1] }
  0x7d   : > { %2930 = vst [vmem:[#allocation8_spill] sm:$0xff] %v1873_v8  ;;  %v2937_v8 = vmax.f32 %v2935_v26, %v2936_v27  ;;  %v2943_v26 = vld [vmem:[#allocation14_spill] sm:$0xff]  ;;  %v1952_v9 = vld [vmem:[%s1001_s11 + $0xb7] sm:$0x1]  ;;  %v1972_v5 = vld [vmem:[%s1001_s11 + $0xf2] sm:$0x1] }
  0x7e   : > { %v2944_v27 = vld [vmem:[#allocation18_spill] sm:$0xff]  ;;  %v1978_v29 = vld [vmem:[%s1001_s11 + $0xf6] sm:$0x1]  ;;  %v1984_v19 = vld [vmem:[%s1001_s11 + $0xbd] sm:$0x1] }
  0x7f   : > { %v1905_v45 = vmax.f32 %v2937_v8, %v2934_v40  ;;  %v2942_v40 = vmax.f32 %v1526_v50, %v1618_v6  ;;  %2947 = vst [vmem:[#allocation18_spill] sm:$0xff] %v1952_v9  ;;  %v1955_v8 = vld [vmem:[%s1001_s11 + $0xb9] sm:$0x1]  ;;  %v1975_v50 = vld [vmem:[%s1001_s11 + $0xf4] sm:$0x1] }
  0x80   : > { %2948 = vst [vmem:[#allocation152_spill] sm:$0xff] %v1955_v8  ;;  %v1981_v6 = vld [vmem:[%s1001_s11 + $0xbb] sm:$0x1]  ;;  %v2004_v44 = vld [vmem:[%s1001_s11 + $0xf8] sm:$0x1] }
  0x81   : > { %2938 = vst [vmem:[#allocation9_spill] sm:$0xff] %v1905_v45  ;;  %v2945_v45 = vmax.f32 %v2943_v26, %v2944_v27  ;;  %v2950_v26 = vld [vmem:[#allocation15_spill] sm:$0xff]  ;;  %v2007_v21 = vld [vmem:[%s1001_s11 + $0xfa] sm:$0x1]  ;;  %v2036_v31 = vld [vmem:[%s1001_s11 + $0xfe] sm:$0x1] }
  0x82   : > { %v2951_v27 = vld [vmem:[#allocation19_spill] sm:$0xff] }
  0x83   : > { %v1937_v39 = vmax.f32 %v2945_v45, %v2942_v40  ;;  %v2949_v40 = vmax.f32 %v1529_v52, %v1621_v25  ;;  %v1987_v45 = vld [vmem:[%s1001_s11 + $0xbf] sm:$0x1]  ;;  %v2010_v52 = vld [vmem:[%s1001_s11 + $0xfc] sm:$0x1]  ;;  %v2013_v25 = vld [vmem:[%s1001_s11 + $0xd1] sm:$0x1] }
  0x84   : > { %2954 = vst [vmem:[#allocation19_spill] sm:$0xff] %v1987_v45  ;;  %v2016_v9 = vld [vmem:[%s1001_s11 + $0xd3] sm:$0x1]  ;;  %v2039_v13 = vld [vmem:[%s1001_s11 + $0xd7] sm:$0x1] }
  0x85   : > { %2946 = vst [vmem:[#allocation14_spill] sm:$0xff] %v1937_v39  ;;  %v2952_v39 = vmax.f32 %v2950_v26, %v2951_v27  ;;  %v2956_v26 = vld [vmem:[#allocation16_spill] sm:$0xff] }
  0x86   : > { %v2957_v27 = vld [vmem:[#allocation20_spill] sm:$0xff] }
  0x87   : > { %v1969_v42 = vmax.f32 %v2952_v39, %v2949_v40  ;;  %v2955_v40 = vmax.f32 %v1540_v51, %v1644_v60  ;;  %2960 = vst [vmem:[#allocation20_spill] sm:$0xff] %v2013_v25  ;;  %v2019_v39 = vld [vmem:[%s1001_s11 + $0xd5] sm:$0x1]  ;;  %v2042_v51 = vld [vmem:[%s1001_s11 + $0xd9] sm:$0x1] }
  0x88   : > { %2961 = vst [vmem:[#allocation153_spill] sm:$0xff] %v2019_v39  ;;  %v2045_v60 = vld [vmem:[%s1001_s11 + $0xdb] sm:$0x1]  ;;  %v2062_v45 = vld [vmem:[%s1001_s11 + $0xdd] sm:$0x1] }
  0x89   : > { %2953 = vst [vmem:[#allocation15_spill] sm:$0xff] %v1969_v42  ;;  %v2958_v42 = vmax.f32 %v2956_v26, %v2957_v27  ;;  %v2963_v26 = vld [vmem:[#allocation17_spill] sm:$0xff]  ;;  %v2068_v25 = vld [vmem:[%s1001_s11 + $0xf1] sm:$0x1]  ;;  %v2088_v39 = vld [vmem:[%s1001_s11 + $0xf5] sm:$0x1] }
  0x8a   : > { %v2964_v27 = vld [vmem:[#allocation21_spill] sm:$0xff] }
  0x8b   : > { %v2001_v35 = vmax.f32 %v2958_v42, %v2955_v40  ;;  %v2962_v40 = vmax.f32 %v1543_v62, %v1647_v17  ;;  %v2065_v42 = vld [vmem:[%s1001_s11 + $0xdf] sm:$0x1]  ;;  %v489_v17 = vmax.f32 %v1908_v1, %v2039_v13  ;;  %v2091_v1 = vld [vmem:[%s1001_s11 + $0xf7] sm:$0x1]  ;;  %v492_v13 = vmax.f32 %v1940_v4, %v2062_v45  ;;  %v2982_v45 = vld [vmem:[#allocation29_spill] sm:$0xff] }
  0x8d   : > { %2959 = vst [vmem:[#allocation16_spill] sm:$0xff] %v2001_v35  ;;  %v2965_v35 = vmax.f32 %v2963_v26, %v2964_v27  ;;  %v2969_v26 = vld [vmem:[#allocation26_spill] sm:$0xff] }
  0x8f   : > { %v2033_v8 = vmax.f32 %v2965_v35, %v2962_v40  ;;  %v2967_v35 = vmax.f32 %v1546_v56, %v1650_v58  ;;  %v2968_v40 = vld [vmem:[#allocation22_spill] sm:$0xff]  ;;  %v490_v56 = vmax.f32 %v1911_v24, %v2042_v51  ;;  %v491_v58 = vmax.f32 %v1914_v20, %v2045_v60  ;;  %v2977_v24 = vld [vmem:[#allocation24_spill] sm:$0xff] }
  0x90   : > { %v2970_v27 = vmax.f32 %v2968_v40, %v2969_v26  ;;  %v2973_v40 = vld [vmem:[#allocation23_spill] sm:$0xff]  ;;  %v493_v20 = vmax.f32 %v1943_v14, %v2065_v42  ;;  %v2978_v51 = vld [vmem:[#allocation28_spill] sm:$0xff]  ;;  %v496_v14 = vmax.f32 %v1975_v50, %v2088_v39  ;;  %v2985_v50 = vld [vmem:[#allocation30_spill] sm:$0xff] }
  0x91   : > { %2966 = vst [vmem:[#allocation17_spill] sm:$0xff] %v2033_v8  ;;  %v2974_v26 = vld [vmem:[#allocation27_spill] sm:$0xff]  ;;  %v2979_v60 = vmax.f32 %v2977_v24, %v2978_v51 }
  0x92   : > { %v2059_v8 = vmax.f32 %v2970_v27, %v2967_v35  ;;  %v2972_v35 = vmax.f32 %v1560_v54, %v1673_v48  ;;  %v2975_v27 = vmax.f32 %v2973_v40, %v2974_v26  ;;  %v494_v48 = vmax.f32 %v1946_v12, %v2068_v25  ;;  %v953_v40 = vld [vmem:[%s1001_s11 + $0xf9] sm:$0x1]  ;;  %v954_v26 = vld [vmem:[%s1001_s11 + $0xfb] sm:$0x1] }
  0x93   : > { %v2976_v54 = vmax.f32 %v1563_v18, %v1676_v2  ;;  %v497_v12 = vmax.f32 %v1978_v29, %v2091_v1  ;;  %v2980_v18 = vmax.f32 %v1566_v57, %v1679_v46  ;;  %v2981_v2 = vld [vmem:[#allocation25_spill] sm:$0xff]  ;;  %v498_v24 = vmax.f32 %v2004_v44, %v953_v40  ;;  %v2986_v29 = vld [vmem:[#allocation34_spill] sm:$0xff] }
  0x94   : > { %2971 = vst [vmem:[#allocation21_spill] sm:$0xff] %v2059_v8  ;;  %v2082_v62 = vmax.f32 %v2975_v27, %v2972_v35  ;;  %v2085_v8 = vld [vmem:[%s1001_s11 + $0xf3] sm:$0x1]  ;;  %v955_v27 = vld [vmem:[%s1001_s11 + $0xfd] sm:$0x1]  ;;  %v2983_v25 = vmax.f32 %v2981_v2, %v2982_v45  ;;  %v499_v51 = vmax.f32 %v2007_v21, %v954_v26  ;;  %v2987_v39 = vmax.f32 %v2985_v50, %v2986_v29  ;;  %v2999_v45 = vld [vmem:[#allocation37_spill] sm:$0xff] }
  0x95   : > { %v2105_v35 = vmax.f32 %v2979_v60, %v2976_v54  ;;  %v495_v4 = vmax.f32 %v1972_v5, %v2085_v8  ;;  %v956_v54 = vld [vmem:[%s1001_s11 + $0xff] sm:$0x1]  ;;  %v500_v5 = vmax.f32 %v2010_v52, %v955_v27  ;;  %v2984_v8 = vmax.f32 %v1581_v55, %v1702_v47  ;;  %v2989_v60 = vld [vmem:[#allocation31_spill] sm:$0xff]  ;;  %v3004_v50 = vld [vmem:[#allocation38_spill] sm:$0xff] }
  0x96   : > { %v2122_v42 = vmax.f32 %v2983_v25, %v2980_v18  ;;  %v501_v46 = vmax.f32 %v2036_v31, %v956_v54  ;;  %v2988_v57 = vmax.f32 %v1584_v10, %v1705_v3  ;;  %v2990_v18 = vld [vmem:[#allocation35_spill] sm:$0xff]  ;;  %v2992_v21 = vmax.f32 %v1587_v16, %v1708_v43  ;;  %v2993_v52 = vld [vmem:[#allocation32_spill] sm:$0xff]  ;;  %v2998_v31 = vld [vmem:[#allocation33_spill] sm:$0xff] }
  0x97   : > { %v2134_v1 = vmax.f32 %v2987_v39, %v2984_v8  ;;  %v2991_v44 = vmax.f32 %v2989_v60, %v2990_v18  ;;  %v2994_v47 = vld [vmem:[#allocation36_spill] sm:$0xff]  ;;  %v3000_v25 = vmax.f32 %v2998_v31, %v2999_v45  ;;  %v3001_v3 = vld [vmem:[#allocation122_spill] sm:$0xff]  ;;  %v3002_v54 = vld [vmem:[#allocation133_spill] sm:$0xff] }
  0x98   : > { %v2995_v55 = vmax.f32 %v2993_v52, %v2994_v47  ;;  %v2996_v27 = vld [vmem:[#allocation132_spill] sm:$0xff]  ;;  %v3003_v8 = vmax.f32 %v3001_v3, %v3002_v54  ;;  %v3005_v29 = vld [vmem:[#allocation42_spill] sm:$0xff]  ;;  %v3007_v43 = vld [vmem:[#allocation123_spill] sm:$0xff] }
  0x99   : > { %v2143_v40 = vmax.f32 %v2991_v44, %v2988_v57  ;;  %v2997_v2 = vmax.f32 %v1606_v59, %v2996_v27  ;;  %v3006_v39 = vmax.f32 %v3004_v50, %v3005_v29  ;;  %v3008_v57 = vld [vmem:[#allocation134_spill] sm:$0xff]  ;;  %v3010_v18 = vld [vmem:[#allocation39_spill] sm:$0xff]  ;;  %v3016_v27 = vld [vmem:[#allocation44_spill] sm:$0xff] }
  0x9a   : > { %v2151_v26 = vmax.f32 %v2995_v55, %v2992_v21  ;;  %v3009_v60 = vmax.f32 %v3007_v43, %v3008_v57  ;;  %v3011_v44 = vld [vmem:[#allocation43_spill] sm:$0xff]  ;;  %v3015_v55 = vld [vmem:[#allocation40_spill] sm:$0xff]  ;;  %v3020_v3 = vld [vmem:[#allocation41_spill] sm:$0xff] }
  0x9b   : > { %v2159_v10 = vmax.f32 %v3000_v25, %v2997_v2  ;;  %v2167_v16 = vmax.f32 %v3006_v39, %v3003_v8  ;;  %v3012_v21 = vmax.f32 %v3010_v18, %v3011_v44  ;;  %v3013_v52 = vld [vmem:[#allocation135_spill] sm:$0xff]  ;;  %v3017_v2 = vmax.f32 %v3015_v55, %v3016_v27  ;;  %v3018_v45 = vld [vmem:[#allocation136_spill] sm:$0xff]  ;;  %v3021_v54 = vld [vmem:[#allocation45_spill] sm:$0xff] }
  0x9c   : > { %v3014_v47 = vmax.f32 %v1635_v34, %v3013_v52  ;;  %v3019_v25 = vmax.f32 %v1638_v32, %v3018_v45  ;;  %v3022_v8 = vmax.f32 %v3020_v3, %v3021_v54  ;;  %v3023_v29 = vld [vmem:[#allocation125_spill] sm:$0xff]  ;;  %v3026_v57 = vld [vmem:[#allocation46_spill] sm:$0xff]  ;;  %v3029_v44 = vld [vmem:[#allocation139_spill] sm:$0xff] }
  0x9d   : > { %v2175_v59 = vmax.f32 %v3012_v21, %v3009_v60  ;;  %v3024_v39 = vld [vmem:[#allocation137_spill] sm:$0xff]  ;;  %v3027_v60 = vld [vmem:[#allocation50_spill] sm:$0xff]  ;;  %v3030_v21 = vmax.f32 %v1664_v33, %v3029_v44  ;;  %v3031_v52 = vld [vmem:[#allocation47_spill] sm:$0xff] }
  0x9e   : > { %v2183_v31 = vmax.f32 %v3017_v2, %v3014_v47  ;;  %v2191_v50 = vmax.f32 %v3022_v8, %v3019_v25  ;;  %v3025_v43 = vmax.f32 %v3023_v29, %v3024_v39  ;;  %v3028_v18 = vmax.f32 %v3026_v57, %v3027_v60  ;;  %v3032_v47 = vld [vmem:[#allocation51_spill] sm:$0xff]  ;;  %v3034_v27 = vld [vmem:[#allocation140_spill] sm:$0xff]  ;;  %v3040_v29 = vld [vmem:[#allocation141_spill] sm:$0xff] }
  0x9f   : > { %v3033_v55 = vmax.f32 %v3031_v52, %v3032_v47  ;;  %v3035_v2 = vmax.f32 %v1667_v53, %v3034_v27  ;;  %v3036_v45 = vld [vmem:[#allocation48_spill] sm:$0xff]  ;;  %v3039_v8 = vld [vmem:[#allocation127_spill] sm:$0xff]  ;;  %v3043_v57 = vld [vmem:[#allocation53_spill] sm:$0xff] }
  0xa0   : > { %v2199_v34 = vmax.f32 %v3028_v18, %v3025_v43  ;;  %v3037_v25 = vld [vmem:[#allocation52_spill] sm:$0xff]  ;;  %v3041_v39 = vmax.f32 %v3039_v8, %v3040_v29  ;;  %v3042_v43 = vld [vmem:[#allocation49_spill] sm:$0xff]  ;;  %v3045_v18 = vld [vmem:[#allocation143_spill] sm:$0xff] }
  0xa1   : > { %v2207_v32 = vmax.f32 %v3033_v55, %v3030_v21  ;;  %v3038_v3 = vmax.f32 %v3036_v45, %v3037_v25  ;;  %v3044_v60 = vmax.f32 %v3042_v43, %v3043_v57  ;;  %v3046_v44 = vmax.f32 %v1693_v22, %v3045_v18  ;;  %v3047_v21 = vld [vmem:[#allocation54_spill] sm:$0xff]  ;;  %v3050_v55 = vld [vmem:[#allocation144_spill] sm:$0xff]  ;;  %v3053_v45 = vld [vmem:[#allocation59_spill] sm:$0xff] }
  0xa2   : > { %v3048_v52 = vld [vmem:[#allocation58_spill] sm:$0xff]  ;;  %v3051_v27 = vmax.f32 %v1696_v49, %v3050_v55  ;;  %v3055_v8 = vld [vmem:[#allocation129_spill] sm:$0xff]  ;;  %v3058_v43 = vld [vmem:[#allocation56_spill] sm:$0xff] }
  0xa3   : > { %v2215_v54 = vmax.f32 %v3038_v3, %v3035_v2  ;;  %v2223_v33 = vmax.f32 %v3044_v60, %v3041_v39  ;;  %v3049_v53 = vmax.f32 %v3047_v21, %v3048_v52  ;;  %v3052_v2 = vld [vmem:[#allocation55_spill] sm:$0xff]  ;;  %v3056_v29 = vld [vmem:[#allocation145_spill] sm:$0xff]  ;;  %v3059_v57 = vld [vmem:[#allocation60_spill] sm:$0xff] }
  0xa4   : > { %v3054_v25 = vmax.f32 %v3052_v2, %v3053_v45  ;;  %v3057_v39 = vmax.f32 %v3055_v8, %v3056_v29  ;;  %v3060_v60 = vmax.f32 %v3058_v43, %v3059_v57  ;;  %v3062_v18 = vld [vmem:[#allocation11_spill] sm:$0xff]  ;;  %v3064_v21 = vld [vmem:[#allocation57_spill] sm:$0xff]  ;;  %v3067_v55 = vld [vmem:[#allocation146_spill] sm:$0xff] }
  0xa5   : > { %v2231_v47 = vmax.f32 %v3049_v53, %v3046_v44  ;;  %v3063_v44 = vmax.f32 %v1722_v63, %v3062_v18  ;;  %v3065_v52 = vld [vmem:[#allocation61_spill] sm:$0xff]  ;;  %v3069_v2 = vld [vmem:[#allocation62_spill] sm:$0xff]  ;;  %v3072_v29 = vld [vmem:[#allocation131_spill] sm:$0xff] }
  0xa6   : > { %v2239_v3 = vmax.f32 %v3054_v25, %v3051_v27  ;;  %v2247_v22 = vmax.f32 %v3060_v60, %v3057_v39  ;;  %v3066_v53 = vmax.f32 %v3064_v21, %v3065_v52  ;;  %v3068_v27 = vmax.f32 %v1725_v38, %v3067_v55  ;;  %v3070_v45 = vld [vmem:[#allocation66_spill] sm:$0xff]  ;;  %v3073_v39 = vld [vmem:[#allocation147_spill] sm:$0xff]  ;;  %v3080_v52 = vld [vmem:[#allocation64_spill] sm:$0xff] }
  0xa7   : > { %v3071_v25 = vmax.f32 %v3069_v2, %v3070_v45  ;;  %v3074_v43 = vmax.f32 %v3072_v29, %v3073_v39  ;;  %v3075_v57 = vld [vmem:[#allocation63_spill] sm:$0xff]  ;;  %v3084_v55 = vld [vmem:[#allocation148_spill] sm:$0xff]  ;;  %v3086_v2 = vld [vmem:[#allocation65_spill] sm:$0xff] }
  0xa8   : > { %3061 = vst [vmem:[#allocation22_spill] sm:$0xff] %v2247_v22  ;;  %v2255_v49 = vmax.f32 %v3066_v53, %v3063_v44  ;;  %v3076_v60 = vld [vmem:[#allocation67_spill] sm:$0xff]  ;;  %v3078_v44 = vld [vmem:[#allocation12_spill] sm:$0xff]  ;;  %v3087_v45 = vld [vmem:[#allocation69_spill] sm:$0xff] }
  0xa9   : > { %v2263_v8 = vmax.f32 %v3071_v25, %v3068_v27  ;;  %v3077_v63 = vmax.f32 %v3075_v57, %v3076_v60  ;;  %v3079_v21 = vmax.f32 %v1751_v30, %v3078_v44  ;;  %v3081_v53 = vld [vmem:[#allocation68_spill] sm:$0xff]  ;;  %v3085_v27 = vmax.f32 %v1754_v28, %v3084_v55  ;;  %v3093_v60 = vld [vmem:[#allocation70_spill] sm:$0xff] }
  0xaa   : > { %v3082_v22 = vmax.f32 %v3080_v52, %v3081_v53  ;;  %v3088_v25 = vmax.f32 %v3086_v2, %v3087_v45  ;;  %v3090_v39 = vld [vmem:[#allocation4_spill] sm:$0xff]  ;;  %v3099_v52 = vld [vmem:[#allocation71_spill] sm:$0xff]  ;;  %v3102_v2 = vld [vmem:[#allocation5_spill] sm:$0xff] }
  0xab   : > { %v2271_v18 = vmax.f32 %v3077_v63, %v3074_v43  ;;  %v3091_v43 = vld [vmem:[#allocation149_spill] sm:$0xff]  ;;  %v3094_v63 = vld [vmem:[#allocation74_spill] sm:$0xff]  ;;  %v3100_v53 = vld [vmem:[#allocation75_spill] sm:$0xff] }
  0xac   : > { %v2279_v38 = vmax.f32 %v3082_v22, %v3079_v21  ;;  %v2287_v29 = vmax.f32 %v3088_v25, %v3085_v27  ;;  %v3092_v57 = vmax.f32 %v3090_v39, %v3091_v43  ;;  %v3095_v30 = vmax.f32 %v3093_v60, %v3094_v63  ;;  %v3097_v22 = vld [vmem:[#allocation13_spill] sm:$0xff]  ;;  %v3103_v27 = vld [vmem:[#allocation150_spill] sm:$0xff]  ;;  %v3105_v25 = vld [vmem:[#allocation72_spill] sm:$0xff] }
  0xad   : > { %v3098_v21 = vmax.f32 %v1780_v23, %v3097_v22  ;;  %v3101_v28 = vmax.f32 %v3099_v52, %v3100_v53  ;;  %v3104_v45 = vmax.f32 %v3102_v2, %v3103_v27  ;;  %v3109_v43 = vld [vmem:[#allocation138_spill] sm:$0xff]  ;;  %v3110_v60 = vld [vmem:[#allocation151_spill] sm:$0xff]  ;;  %v3112_v63 = vld [vmem:[#allocation73_spill] sm:$0xff]  ;;  %v3115_v22 = vmax.f32 %v1812_v61, %v1949_v41 }
  0xae   : > { %3083 = vst [vmem:[#allocation26_spill] sm:$0xff] %v2279_v38  ;;  %3089 = vst [vmem:[#allocation23_spill] sm:$0xff] %v2287_v29  ;;  %v2295_v44 = vmax.f32 %v3095_v30, %v3092_v57  ;;  %v3106_v29 = vld [vmem:[#allocation76_spill] sm:$0xff]  ;;  %v3111_v57 = vmax.f32 %v3109_v43, %v3110_v60  ;;  %v3113_v30 = vld [vmem:[#allocation77_spill] sm:$0xff]  ;;  %v3131_v41 = vmax.f32 %v1844_v15, %v1981_v6 }
  0xaf   : > { %v2303_v55 = vmax.f32 %v3101_v28, %v3098_v21  ;;  %v3107_v38 = vmax.f32 %v3105_v25, %v3106_v29  ;;  %v3116_v21 = vld [vmem:[#allocation78_spill] sm:$0xff]  ;;  %v3122_v27 = vld [vmem:[#allocation79_spill] sm:$0xff] }
  0xb0   : > { %3096 = vst [vmem:[#allocation27_spill] sm:$0xff] %v2295_v44  ;;  %v3114_v44 = vmax.f32 %v3112_v63, %v3113_v30  ;;  %v3117_v52 = vld [vmem:[#allocation82_spill] sm:$0xff]  ;;  %v3128_v63 = vld [vmem:[#allocation80_spill] sm:$0xff] }
  0xb1   : > { %v2311_v39 = vmax.f32 %v3107_v38, %v3104_v45  ;;  %v3118_v53 = vmax.f32 %v3116_v21, %v3117_v52  ;;  %v3119_v29 = vld [vmem:[#allocation10_spill] sm:$0xff]  ;;  %v3123_v45 = vld [vmem:[#allocation83_spill] sm:$0xff]  ;;  %v3129_v30 = vld [vmem:[#allocation84_spill] sm:$0xff] }
  0xb2   : > { %v2319_v23 = vmax.f32 %v3114_v44, %v3111_v57  ;;  %v3120_v38 = vld [vmem:[#allocation18_spill] sm:$0xff]  ;;  %v3124_v25 = vmax.f32 %v3122_v27, %v3123_v45  ;;  %v3126_v44 = vld [vmem:[#allocation152_spill] sm:$0xff]  ;;  %v3133_v21 = vld [vmem:[#allocation85_spill] sm:$0xff] }
  0xb3   : > { %3108 = vst [vmem:[#allocation24_spill] sm:$0xff] %v2311_v39  ;;  %v2327_v28 = vmax.f32 %v3118_v53, %v3115_v22  ;;  %v3121_v2 = vmax.f32 %v3119_v29, %v3120_v38  ;;  %v3125_v60 = vld [vmem:[#allocation142_spill] sm:$0xff]  ;;  %v3130_v39 = vmax.f32 %v3128_v63, %v3129_v30  ;;  %v3132_v22 = vld [vmem:[#allocation81_spill] sm:$0xff]  ;;  %v3135_v29 = vmax.f32 %v1847_v11, %v1984_v19  ;;  %v3146_v30 = vld [vmem:[#allocation88_spill] sm:$0xff] }
  0xb4   : > { %v3127_v57 = vmax.f32 %v3125_v60, %v3126_v44  ;;  %v3134_v52 = vmax.f32 %v3132_v22, %v3133_v21  ;;  %v3136_v38 = vld [vmem:[#allocation86_spill] sm:$0xff]  ;;  %v3141_v60 = vld [vmem:[#allocation87_spill] sm:$0xff]  ;;  %v3149_v11 = vmax.f32 %v1879_v7, %v2016_v9  ;;  %v3150_v21 = vld [vmem:[#allocation89_spill] sm:$0xff] }
  0xb5   : > { %v2335_v43 = vmax.f32 %v3124_v25, %v3121_v2  ;;  %v3137_v2 = vld [vmem:[#allocation90_spill] sm:$0xff]  ;;  %v3142_v44 = vld [vmem:[#allocation91_spill] sm:$0xff]  ;;  %v3161_v9 = vld [vmem:[#allocation96_spill] sm:$0xff] }
  0xb6   : > { %v2343_v61 = vmax.f32 %v3130_v39, %v3127_v57  ;;  %v2351_v53 = vmax.f32 %v3134_v52, %v3131_v41  ;;  %v3138_v27 = vmax.f32 %v3136_v38, %v3137_v2  ;;  %v3139_v39 = vld [vmem:[#allocation19_spill] sm:$0xff]  ;;  %v3143_v15 = vmax.f32 %v3141_v60, %v3142_v44  ;;  %v3144_v57 = vld [vmem:[#allocation20_spill] sm:$0xff]  ;;  %v3151_v52 = vld [vmem:[#allocation93_spill] sm:$0xff] }
  0xb7   : > { %v3140_v25 = vmax.f32 %v1850_v36, %v3139_v39  ;;  %v3145_v63 = vmax.f32 %v1876_v0, %v3144_v57  ;;  %v3147_v41 = vld [vmem:[#allocation92_spill] sm:$0xff]  ;;  %v3153_v38 = vld [vmem:[#allocation153_spill] sm:$0xff]  ;;  %v3156_v39 = vld [vmem:[#allocation98_spill] sm:$0xff] }
  0xb8   : > { %v2359_v45 = vmax.f32 %v3138_v27, %v3135_v29  ;;  %v3148_v22 = vmax.f32 %v3146_v30, %v3147_v41  ;;  %v3152_v29 = vmax.f32 %v3150_v21, %v3151_v52  ;;  %v3154_v2 = vmax.f32 %v1882_v37, %v3153_v38  ;;  %v3155_v27 = vld [vmem:[#allocation94_spill] sm:$0xff]  ;;  %v3158_v60 = vld [vmem:[#allocation95_spill] sm:$0xff]  ;;  %v3162_v7 = vld [vmem:[#allocation100_spill] sm:$0xff] }
  0xb9   : > { %v2367_v6 = vmax.f32 %v3143_v15, %v3140_v25  ;;  %v3157_v0 = vmax.f32 %v3155_v27, %v3156_v39  ;;  %v3159_v44 = vld [vmem:[#allocation99_spill] sm:$0xff]  ;;  %v3164_v41 = vld [vmem:[#allocation97_spill] sm:$0xff]  ;;  %v3167_v37 = vld [vmem:[#allocation102_spill] sm:$0xff] }
  0xba   : > { %v2375_v19 = vmax.f32 %v3148_v22, %v3145_v63  ;;  %v2383_v36 = vmax.f32 %v3152_v29, %v3149_v11  ;;  %v3160_v15 = vmax.f32 %v3158_v60, %v3159_v44  ;;  %v3163_v63 = vmax.f32 %v3161_v9, %v3162_v7  ;;  %v3165_v22 = vld [vmem:[#allocation101_spill] sm:$0xff]  ;;  %v3168_v52 = vld [vmem:[#allocation106_spill] sm:$0xff]  ;;  %v3171_v27 = vld [vmem:[#allocation107_spill] sm:$0xff] }
  0xbb   : > { %v2391_v25 = vmax.f32 %v3157_v0, %v3154_v2  ;;  %v3166_v11 = vmax.f32 %v3164_v41, %v3165_v22  ;;  %v3169_v29 = vmax.f32 %v3167_v37, %v3168_v52  ;;  %v3170_v2 = vld [vmem:[#allocation103_spill] sm:$0xff]  ;;  %v3173_v0 = vld [vmem:[#allocation104_spill] sm:$0xff]  ;;  %v3177_v9 = vld [vmem:[#allocation109_spill] sm:$0xff] }
  0xbc   : > { %v2396_v57 = vmax.f32 %v3160_v15, %v489_v17  ;;  %v2401_v30 = vmax.f32 %v3163_v63, %v490_v56  ;;  %v3172_v17 = vmax.f32 %v3170_v2, %v3171_v27  ;;  %v3174_v60 = vld [vmem:[#allocation108_spill] sm:$0xff]  ;;  %v3176_v15 = vld [vmem:[#allocation105_spill] sm:$0xff]  ;;  %v3179_v63 = vld [vmem:[#allocation110_spill] sm:$0xff] }
  0xbd   : > { %v2406_v21 = vmax.f32 %v3166_v11, %v491_v58  ;;  %v2411_v38 = vmax.f32 %v3169_v29, %v492_v13  ;;  %v3175_v56 = vmax.f32 %v3173_v0, %v3174_v60  ;;  %v3178_v58 = vmax.f32 %v3176_v15, %v3177_v9  ;;  %v3180_v41 = vld [vmem:[#allocation114_spill] sm:$0xff]  ;;  %v3182_v11 = vld [vmem:[#allocation111_spill] sm:$0xff]  ;;  %v3185_v29 = vld [vmem:[#allocation112_spill] sm:$0xff] }
  0xbe   : > { %v2416_v39 = vmax.f32 %v3172_v17, %v493_v20  ;;  %v3181_v22 = vmax.f32 %v3179_v63, %v3180_v41  ;;  %v3183_v37 = vld [vmem:[#allocation115_spill] sm:$0xff]  ;;  %v3186_v2 = vld [vmem:[#allocation116_spill] sm:$0xff]  ;;  %v3189_v17 = vld [vmem:[#allocation113_spill] sm:$0xff] }
  0xbf   : > { %v2421_v44 = vmax.f32 %v3175_v56, %v494_v48  ;;  %v2426_v7 = vmax.f32 %v3178_v58, %v495_v4  ;;  %v3184_v52 = vmax.f32 %v3182_v11, %v3183_v37  ;;  %v3187_v48 = vmax.f32 %v3185_v29, %v3186_v2  ;;  %v3190_v0 = vld [vmem:[#allocation117_spill] sm:$0xff]  ;;  %v3193_v56 = vld [vmem:[#allocation118_spill] sm:$0xff]  ;;  %v3194_v15 = vld [vmem:[#allocation119_spill] sm:$0xff] }
  0xc0   : > { %v2431_v13 = vmax.f32 %v3181_v22, %v496_v14  ;;  %v3191_v4 = vmax.f32 %v3189_v17, %v3190_v0  ;;  %v3195_v14 = vmax.f32 %v3193_v56, %v3194_v15  ;;  %v3197_v58 = vld [vmem:[#allocation120_spill] sm:$0xff]  ;;  %v3198_v63 = vld [vmem:[#allocation121_spill] sm:$0xff]  ;;  %v3201_v22 = vld [vmem:[#allocation126_spill] sm:$0xff] }
  0xc1   : > { %v2436_v20 = vmax.f32 %v3184_v52, %v497_v12  ;;  %v2441_v27 = vmax.f32 %v3187_v48, %v498_v24  ;;  %v3199_v41 = vmax.f32 %v3197_v58, %v3198_v63  ;;  %v630_v11 = vrot.slane %v3201_v22, 7  ;;  %v3202_v37 = vld [vmem:[#allocation128_spill] sm:$0xff]  ;;  %v3203_v52 = vld [vmem:[#allocation130_spill] sm:$0xff]  ;;  %v3208_v15 = vld [vmem:[#allocation7_spill] sm:$0xff] }
  0xc2   : > { %v2446_v60 = vmax.f32 %v3191_v4, %v499_v51  ;;  %v2451_v9 = vmax.f32 %v3195_v14, %v500_v5  ;;  %v633_v24 = vrot.slane %v3202_v37, 6  ;;  %v636_v29 = vrot.slane %v3203_v52, 5  ;;  %v3204_v2 = vld [vmem:[#allocation2_spill] sm:$0xff]  ;;  %v3205_v51 = vld [vmem:[#allocation3_spill] sm:$0xff]  ;;  %v3207_v56 = vld [vmem:[#allocation124_spill] sm:$0xff] }
  0xc3   : > { %3188 = vst [vmem:[#allocation28_spill] sm:$0xff] %v2441_v27  ;;  %v2456_v12 = vmax.f32 %v3199_v41, %v501_v46  ;;  %v639_v48 = vrot.slane %v3204_v2, 4  ;;  %v642_v17 = vrot.slane %v3205_v51, 3  ;;  %v3206_v0 = vld [vmem:[#allocation6_spill] sm:$0xff]  ;;  %v632_v5 = vsel %vm631_vm0, %v630_v11, %v3207_v56  ;;  %v3209_v58 = vld [vmem:[#allocation9_spill] sm:$0xff]  ;;  %v3211_v37 = vld [vmem:[#allocation15_spill] sm:$0xff] }
  0xc4   : > { %3192 = vst [vmem:[#allocation25_spill] sm:$0xff] %v2446_v60  ;;  %3196 = vst [vmem:[#allocation29_spill] sm:$0xff] %v2451_v9  ;;  %v645_v4 = vrot.slane %v3206_v0, 2  ;;  %v648_v14 = vrot.slane %v3208_v15, 1  ;;  %v651_v46 = vrot.slane %v3209_v58, 7  ;;  %v3210_v63 = vld [vmem:[#allocation14_spill] sm:$0xff]  ;;  %v635_v22 = vsel %vm634_vm1, %v633_v24, %v632_v5 }
  0xc5   : > { %3200 = vst [vmem:[#allocation30_spill] sm:$0xff] %v2456_v12  ;;  %v653_v41 = vrot.slane %v3210_v63, 6  ;;  %v655_v52 = vrot.slane %v3211_v37, 5  ;;  %v3212_v12 = vld [vmem:[#allocation16_spill] sm:$0xff]  ;;  %v3213_v9 = vld [vmem:[#allocation17_spill] sm:$0xff]  ;;  %v638_v0 = vsel %vm637_vm2, %v636_v29, %v635_v22  ;;  %v663_v58 = vrot.slane %v2082_v62, 1 }
  0xc6   : > { %v657_v2 = vrot.slane %v3212_v12, 4  ;;  %v659_v51 = vrot.slane %v3213_v9, 3  ;;  %v3214_v60 = vld [vmem:[#allocation8_spill] sm:$0xff]  ;;  %v3215_v56 = vld [vmem:[#allocation21_spill] sm:$0xff]  ;;  %v641_v63 = vsel %vm640_vm3, %v639_v48, %v638_v0  ;;  %v665_v24 = vrot.slane %v2122_v42, 7 }
  0xc7   : > { %v652_v11 = vsel %vm631_vm0, %v651_v46, %v3214_v60  ;;  %v661_v15 = vrot.slane %v3215_v56, 2  ;;  %v667_v5 = vrot.slane %v2134_v1, 6  ;;  %v644_v9 = vsel %vm643_vm4, %v642_v17, %v641_v63  ;;  %v3217_v63 = vld [vmem:[#allocation23_spill] sm:$0xff] }
  0xc8   : > { %v654_v27 = vsel %vm634_vm1, %v653_v41, %v652_v11  ;;  %v669_v62 = vrot.slane %v2143_v40, 5  ;;  %v671_v12 = vrot.slane %v2151_v26, 4  ;;  %v647_v29 = vsel %vm646_vm5, %v645_v4, %v644_v9  ;;  %v3219_v9 = vld [vmem:[#allocation27_spill] sm:$0xff] }
  0xc9   : > { %v656_v60 = vsel %vm637_vm2, %v655_v52, %v654_v27  ;;  %v666_v1 = vsel %vm631_vm0, %v665_v24, %v2105_v35  ;;  %v673_v48 = vrot.slane %v2159_v10, 3  ;;  %v650_v46 = vsel %vm649_vm6, %v648_v14, %v647_v29 }
  0xca   : > { %v658_v42 = vsel %vm640_vm3, %v657_v2, %v656_v60  ;;  %v668_v27 = vsel %vm634_vm1, %v667_v5, %v666_v1  ;;  %v675_v40 = vrot.slane %v2167_v16, 2  ;;  %v677_v41 = vrot.slane %v2175_v59, 1  ;;  %757 = vst [vmem:[%s2486_s15] sm:$0xff] %v650_v46 }
  0xcb   : > { %v660_v17 = vsel %vm643_vm4, %v659_v51, %v658_v42  ;;  %v670_v4 = vsel %vm637_vm2, %v669_v62, %v668_v27  ;;  %v679_v22 = vrot.slane %v2191_v50, 7  ;;  %v681_v14 = vrot.slane %v2199_v34, 6 }
  0xcc   : > { %v662_v26 = vsel %vm646_vm5, %v661_v15, %v660_v17  ;;  %v672_v10 = vsel %vm640_vm3, %v671_v12, %v670_v4  ;;  %v683_v37 = vrot.slane %v2207_v32, 5  ;;  %v685_v2 = vrot.slane %v2215_v54, 4  ;;  %v3216_v15 = vld [vmem:[#allocation26_spill] sm:$0xff]  ;;  %v3220_v17 = vld [vmem:[#allocation24_spill] sm:$0xff] }
  0xcd   : > { %v664_v35 = vsel %vm649_vm6, %v663_v58, %v662_v26  ;;  %v674_v52 = vsel %vm643_vm4, %v673_v48, %v672_v10  ;;  %v680_v16 = vsel %vm631_vm0, %v679_v22, %v2183_v31  ;;  %v687_v59 = vrot.slane %v2223_v33, 3 }
  0xce   : > { %758 = vst [vmem:[%s2486_s15 + $0x8] sm:$0xff] %v664_v35  ;;  %v676_v50 = vsel %vm646_vm5, %v675_v40, %v674_v52  ;;  %v682_v51 = vsel %vm634_vm1, %v681_v14, %v680_v16  ;;  %v689_v0 = vrot.slane %v2231_v47, 2  ;;  %v691_v34 = vrot.slane %v2239_v3, 1  ;;  %v3218_v3 = vld [vmem:[#allocation22_spill] sm:$0xff] }
  0xcf   : > { %v678_v32 = vsel %vm649_vm6, %v677_v41, %v676_v50  ;;  %v684_v11 = vsel %vm637_vm2, %v683_v37, %v682_v51  ;;  %v693_v31 = vrot.slane %v2255_v49, 7  ;;  %v695_v56 = vrot.slane %v2263_v8, 6  ;;  %v3221_v50 = vld [vmem:[#allocation28_spill] sm:$0xff] }
  0xd0   : > { %v686_v54 = vsel %vm640_vm3, %v685_v2, %v684_v11  ;;  %v697_v33 = vrot.slane %v2271_v18, 5  ;;  %v699_v58 = vrot.slane %v3216_v15, 4  ;;  %v701_v24 = vrot.slane %v3217_v63, 3  ;;  %759 = vst [vmem:[%s2486_s15 + $0x10] sm:$0xff] %v678_v32  ;;  %v3223_v32 = vld [vmem:[#allocation29_spill] sm:$0xff] }
  0xd1   : > { %v688_v47 = vsel %vm643_vm4, %v687_v59, %v686_v54  ;;  %v694_v5 = vsel %vm631_vm0, %v693_v31, %v3218_v3  ;;  %v703_v60 = vrot.slane %v3219_v9, 2  ;;  %v705_v49 = vrot.slane %v2303_v55, 1  ;;  %v3224_v31 = vld [vmem:[#allocation30_spill] sm:$0xff] }
  0xd2   : > { %v690_v8 = vsel %vm646_vm5, %v689_v0, %v688_v47  ;;  %v696_v62 = vsel %vm634_vm1, %v695_v56, %v694_v5  ;;  %v707_v18 = vrot.slane %v2319_v23, 7  ;;  %v709_v12 = vrot.slane %v2327_v28, 6 }
  0xd3   : > { %v692_v29 = vsel %vm649_vm6, %v691_v34, %v690_v8  ;;  %v698_v42 = vsel %vm637_vm2, %v697_v33, %v696_v62  ;;  %v711_v1 = vrot.slane %v2335_v43, 5  ;;  %v713_v48 = vrot.slane %v2343_v61, 4 }
  0xd4   : > { %v700_v46 = vsel %vm640_vm3, %v699_v58, %v698_v42  ;;  %v708_v55 = vsel %vm631_vm0, %v707_v18, %v3220_v17  ;;  %v715_v27 = vrot.slane %v2351_v53, 3  ;;  %v717_v40 = vrot.slane %v2359_v45, 2  ;;  %760 = vst [vmem:[%s2486_s15 + $0x18] sm:$0xff] %v692_v29 }
  0xd5   : > { %v702_v23 = vsel %vm643_vm4, %v701_v24, %v700_v46  ;;  %v710_v28 = vsel %vm634_vm1, %v709_v12, %v708_v55  ;;  %v719_v26 = vrot.slane %v2367_v6, 1  ;;  %v721_v43 = vrot.slane %v2383_v36, 7 }
  0xd6   : > { %v704_v61 = vsel %vm646_vm5, %v703_v60, %v702_v23  ;;  %v712_v4 = vsel %vm637_vm2, %v711_v1, %v710_v28  ;;  %v723_v41 = vrot.slane %v2391_v25, 6  ;;  %v725_v53 = vrot.slane %v2396_v57, 5 }
  0xd7   : > { %v706_v45 = vsel %vm649_vm6, %v705_v49, %v704_v61  ;;  %v714_v22 = vsel %vm640_vm3, %v713_v48, %v712_v4  ;;  %v722_v35 = vsel %vm631_vm0, %v721_v43, %v2375_v19  ;;  %v727_v10 = vrot.slane %v2401_v30, 4 }
  0xd8   : > { %v716_v6 = vsel %vm643_vm4, %v715_v27, %v714_v22  ;;  %v724_v36 = vsel %vm634_vm1, %v723_v41, %v722_v35  ;;  %v729_v14 = vrot.slane %v2406_v21, 3  ;;  %v731_v25 = vrot.slane %v2411_v38, 2  ;;  %761 = vst [vmem:[%s2486_s15 + $0x20] sm:$0xff] %v706_v45 }
  0xd9   : > { %v718_v57 = vsel %vm646_vm5, %v717_v40, %v716_v6  ;;  %v726_v37 = vsel %vm637_vm2, %v725_v53, %v724_v36  ;;  %v733_v52 = vrot.slane %v2416_v39, 1  ;;  %v735_v19 = vrot.slane %v2426_v7, 7  ;;  %v3222_v39 = vld [vmem:[#allocation25_spill] sm:$0xff] }
  0xda   : > { %v720_v30 = vsel %vm649_vm6, %v719_v26, %v718_v57  ;;  %v728_v16 = vsel %vm640_vm3, %v727_v10, %v726_v37  ;;  %v737_v2 = vrot.slane %v2431_v13, 6  ;;  %v739_v21 = vrot.slane %v2436_v20, 5 }
  0xdb   : > { %v730_v38 = vsel %vm643_vm4, %v729_v14, %v728_v16  ;;  %v736_v59 = vsel %vm631_vm0, %v735_v19, %v2421_v44  ;;  %v741_v51 = vrot.slane %v3221_v50, 4  ;;  %v743_v0 = vrot.slane %v3222_v39, 3  ;;  %762 = vst [vmem:[%s2486_s15 + $0x28] sm:$0xff] %v720_v30 }
  0xdc   : > { %v732_v7 = vsel %vm646_vm5, %v731_v25, %v730_v38  ;;  %v738_v34 = vsel %vm634_vm1, %v737_v2, %v736_v59  ;;  %v745_v11 = vrot.slane %v3223_v32, 2  ;;  %v747_v56 = vrot.slane %v3224_v31, 1 }
  0xdd   : > { %v734_v13 = vsel %vm649_vm6, %v733_v52, %v732_v7  ;;  %v740_v20 = vsel %vm637_vm2, %v739_v21, %v738_v34 }
  0xde   : > { %v742_v54 = vsel %vm640_vm3, %v741_v51, %v740_v20  ;;  %763 = vst [vmem:[%s2486_s15 + $0x30] sm:$0xff] %v734_v13 }
  0xdf   : > { %v744_v44 = vsel %vm643_vm4, %v743_v0, %v742_v54 }
  0xe0   : > { %v746_v33 = vsel %vm646_vm5, %v745_v11, %v744_v44 }
  0xe1   : > { %v748_v15 = vsel %vm649_vm6, %v747_v56, %v746_v33 }
  0xe2   : > { %764 = vst [vmem:[%s2486_s15 + $0x38] sm:$0xff] %v748_v15 }
  0xe3 PF: > { %s11_s6 = sadd.s32 1, %s975_s6  }
  0xe4   : > { %p8_p4 = scmp.ge.s32.totalorder %s11_s6, 4  }
  0xe6   :  { %10 = sbr.rel (!%p8_p4) target bundleno = 1 (0x1), region = 55 }

// kernel: darknet_forward.15
= control target key start
LH: loop header
LB: loop body
LE: loop exit
PB: predicated region body
PF: predicated region fallthrough
CT: control target
= control target key end

     0   :  { %s812_s15 = smov 0   ;;  %s814_s16 = smov 0   ;;  %s892_s0 = inlined_call_operand.vmem [shape: f32[2,8,8,128], index: 0, kind: input, shape index: {}]   ;;  %s893_s1 = inlined_call_operand.vmem [shape: bf16[1,128,128], index: 1, kind: input, shape index: {}]   ;;  %s894_s2 = inlined_call_operand.vmem [shape: f32[1,128], index: 2, kind: input, shape index: {}]   ;;  %s895_s3 = inlined_call_operand.vmem [shape: f32[1,128], index: 3, kind: input, shape index: {}]   ;;  %s896_s4 = inlined_call_operand.vmem [shape: f32[2,8,8,128], index: 4, kind: output, shape index: {}]  }
   0x1   :  { %s816_s17 = smov 0  }
   0x2 LB: > { %s33_s18 = sadd.s32 1, %s781_s16  ;;  %p660_p0 = scmp.ge.s32.totalorder %s785_s17, 1  ;;  %s785_s17 = sphi %s816_s17, %s14_s17   ;;  %s781_s16 = sphi %s814_s16, %s898_s16   ;;  %s777_s15 = sphi %s812_s15, %s897_s15  }
   0x3   : > { %p35_p1 = scmp.ge.s32.totalorder %s33_s18, 2  ;;  %p220_p2 = scmp.lt.s32.totalorder %s785_s17, 3 }
   0x5   : > { %s900_s18 = smov (%p35_p1, %s33_s18), 0  ;;  %p221_p3 = pnand %p660_p0, %p220_p2 }
   0x6   : > { %v755_v0 = vld [vmem:[%s893_s1] sm:$0xff] (!%p221_p3)   ;;  %p266_p4 = scmp.lt.s32.totalorder (!%p221_p3), %s777_s15, 1  ;;  %v756_v1 = vld [vmem:[%s893_s1 + $0x8] sm:$0xff] (!%p221_p3)   ;;  %v757_v2 = vld [vmem:[%s893_s1 + $0x10] sm:$0xff] (!%p221_p3)  }
   0x7   : > { %224 = sbr.rel (%p221_p3) target bundleno = 260 (0x104), region = 36  ;;  %691 = vmatprep.subr.bf16.mxu0 (!%p221_p3), %v755_v0  ;;  %715 = vmatprep.subr.bf16.mxu1 (!%p221_p3), %v755_v0  ;;  %v758_v3 = vld [vmem:[%s893_s1 + $0x18] sm:$0xff] (!%p221_p3)   ;;  %v759_v10 = vld [vmem:[%s893_s1 + $0x20] sm:$0xff] (!%p221_p3)   ;;  %v760_v11 = vld [vmem:[%s893_s1 + $0x28] sm:$0xff] (!%p221_p3)  }
   0x8   : > { %692 = vmatpush3.bf16.msra.mxu0 (!%p221_p3), %v755_v0  ;;  %723 = vmatpush3.bf16.msra.mxu1 (!%p221_p3), %v755_v0  ;;  %v761_v12 = vld [vmem:[%s893_s1 + $0x30] sm:$0xff] (!%p221_p3)   ;;  %v762_v13 = vld [vmem:[%s893_s1 + $0x38] sm:$0xff] (!%p221_p3)   ;;  %v673_v20 = vld [vmem:[%s894_s2] ss:$0 sm:$0xff] (!%p221_p3) }
   0x9   : > { %693 = vmatprep.subr.bf16.mxu0 (!%p221_p3), %v756_v1  ;;  %716 = vmatprep.subr.bf16.mxu1 (!%p221_p3), %v756_v1  ;;  %v674_v22 = vld [vmem:[%s895_s3] ss:$0 sm:$0xff] (!%p221_p3) }
   0xc   : > { %694 = vmatpush3.bf16.msra.mxu0 (!%p221_p3), %v756_v1  ;;  %724 = vmatpush3.bf16.msra.mxu1 (!%p221_p3), %v756_v1 }
   0xd   : > { %695 = vmatprep.subr.bf16.mxu0 (!%p221_p3), %v757_v2  ;;  %717 = vmatprep.subr.bf16.mxu1 (!%p221_p3), %v757_v2 }
   0xe   : > { %s902_s15 = smov (!%p266_p4, %s777_s15), 1 }
   0xf   : > { %s677_s25 = sshll.u32 %s902_s15, 6 }
  0x10   : > { %s847_s28 = scalar_lea.vmem %s892_s0, %s677_s25  ;;  %696 = vmatpush3.bf16.msra.mxu0 %v757_v2  ;;  %725 = vmatpush3.bf16.msra.mxu1 %v757_v2  ;;  %s296_s23 = scalar_lea.vmem %s896_s4, %s677_s25 }
  0x11   : > { %v310_v4 = vld [vmem:[%s847_s28] sm:$0xff]  ;;  %v311_v5 = vld [vmem:[%s847_s28 + $0x8] sm:$0xff]  ;;  %697 = vmatprep.subr.bf16.mxu0 %v758_v3  ;;  %718 = vmatprep.subr.bf16.mxu1 %v758_v3  ;;  %v312_v14 = vld [vmem:[%s847_s28 + $0x10] sm:$0xff] }
  0x12   : > { %v314_v6 = vld [vmem:[%s847_s28 + $0x20] sm:$0xff]  ;;  %v318_v7 = vpack.c.bf16 %v311_v5, %v310_v4  ;;  %v315_v8 = vld [vmem:[%s847_s28 + $0x28] sm:$0xff]  ;;  %v313_v15 = vld [vmem:[%s847_s28 + $0x18] sm:$0xff] }
  0x13   : > { %v320_v9 = vpack.c.bf16 %v315_v8, %v314_v6  ;;  %v316_v16 = vld [vmem:[%s847_s28 + $0x30] sm:$0xff]  ;;  %v317_v17 = vld [vmem:[%s847_s28 + $0x38] sm:$0xff]  ;;  %v319_v18 = vpack.c.bf16 %v313_v15, %v312_v14 }
  0x14   : > { %707 = vmatprep.mubr.bf16.mxu0 %v318_v7  ;;  %698 = vmatpush3.bf16.msra.mxu0 %v758_v3  ;;  %v321_v19 = vpack.c.bf16 %v317_v17, %v316_v16 }
  0x15   : > { %711 = vmatprep.mubr.bf16.mxu1 %v320_v9  ;;  %726 = vmatpush3.bf16.msra.mxu1 %v758_v3 }
  0x16   : > { %699 = vmatprep.subr.bf16.mxu0 %v759_v10  ;;  %719 = vmatprep.subr.bf16.mxu1 %v759_v10 }
  0x18   : > { %700 = vmatpush3.bf16.msra.mxu0 %v759_v10 }
  0x19   : > { %727 = vmatpush3.bf16.msra.mxu1 %v759_v10  ;;  %701 = vmatprep.subr.bf16.mxu0 %v760_v11 }
  0x1a   : > { %720 = vmatprep.subr.bf16.mxu1 %v760_v11 }
  0x1c   : > { %702 = vmatpush3.bf16.msra.mxu0 %v760_v11 }
  0x1d   : > { %728 = vmatpush3.bf16.msra.mxu1 %v760_v11  ;;  %703 = vmatprep.subr.bf16.mxu0 %v761_v12 }
  0x1e   : > { %721 = vmatprep.subr.bf16.mxu1 %v761_v12 }
  0x20   : > { %704 = vmatpush3.bf16.msra.mxu0 %v761_v12 }
  0x21   : > { %729 = vmatpush3.bf16.msra.mxu1 %v761_v12  ;;  %705 = vmatprep.subr.bf16.mxu0 %v762_v13 }
  0x22   : > { %722 = vmatprep.subr.bf16.mxu1 %v762_v13 }
  0x24   : > { %706 = vmatpush3.bf16.msra.mxu0 %v762_v13 }
  0x25   : > { %730 = vmatpush3.bf16.msra.mxu1 %v762_v13 }
  0x27   : > { %708 = vmatmul.mubr.bf16.vlgmr.msra.gmra.mrb[0].mxu0 %v319_v18 }
  0x28   : > { %712 = vmatmul.mubr.bf16.vlgmr.msra.gmra.mrb[0].mxu1 %v321_v19 }
  0xfa   : > { %v709_v21 = vpop.f32.mrb[0].mxu0 }
  0xfb   : > { %v713_v23 = vpop.f32.mrb[0].mxu1  ;;  %v495_v24 = vmul.f32 %v709_v21, %v673_v20  ;;  %v420_v26 = vpop.f32.mrb[1].mxu0 }
  0xfc   : > { %v499_v25 = vmul.f32 %v713_v23, %v673_v20  ;;  %v436_v27 = vpop.f32.mrb[1].mxu1  ;;  %v493_v28 = vmul.f32 %v673_v20, %v420_v26  ;;  %v710_v30 = vpop.f32.mrb[2].mxu0 }
  0xfd   : > { %v497_v29 = vmul.f32 %v673_v20, %v436_v27  ;;  %v714_v31 = vpop.f32.mrb[2].mxu1  ;;  %v510_v32 = vadd.f32 %v674_v22, %v495_v24  ;;  %v496_v34 = vmul.f32 %v710_v30, %v673_v20  ;;  %v423_v36 = vpop.f32.mrb[3].mxu0 }
  0xfe   : > { %v514_v33 = vadd.f32 %v674_v22, %v499_v25  ;;  %v500_v35 = vmul.f32 %v714_v31, %v673_v20  ;;  %v439_v37 = vpop.f32.mrb[3].mxu1  ;;  %v508_v38 = vadd.f32 %v674_v22, %v493_v28  ;;  %v494_v40 = vmul.f32 %v673_v20, %v423_v36 }
  0xff   : > { %v512_v39 = vadd.f32 %v674_v22, %v497_v29  ;;  %v498_v41 = vmul.f32 %v673_v20, %v439_v37  ;;  %518 = vst [vmem:[%s296_s23 + $0x10] sm:$0xff] %v510_v32  ;;  %v511_v42 = vadd.f32 %v674_v22, %v496_v34 }
 0x100   : > { %522 = vst [vmem:[%s296_s23 + $0x30] sm:$0xff] %v514_v33  ;;  %v515_v43 = vadd.f32 %v674_v22, %v500_v35  ;;  %516 = vst [vmem:[%s296_s23] sm:$0xff] %v508_v38  ;;  %v509_v44 = vadd.f32 %v674_v22, %v494_v40 }
 0x101   : > { %520 = vst [vmem:[%s296_s23 + $0x20] sm:$0xff] %v512_v39  ;;  %v513_v45 = vadd.f32 %v674_v22, %v498_v41  ;;  %519 = vst [vmem:[%s296_s23 + $0x18] sm:$0xff] %v511_v42 }
 0x102   : > { %523 = vst [vmem:[%s296_s23 + $0x38] sm:$0xff] %v515_v43  ;;  %517 = vst [vmem:[%s296_s23 + $0x8] sm:$0xff] %v509_v44 }
 0x103   : > { %521 = vst [vmem:[%s296_s23 + $0x28] sm:$0xff] %v513_v45 }
 0x104 PF: > { %s14_s17 = sadd.s32 1, %s785_s17   ;;  %s897_s15 = smov %s781_s16 }
 0x105   : > { %p11_p5 = scmp.ge.s32.totalorder %s14_s17, 4   ;;  %s898_s16 = smov %s900_s18 }
 0x107   :  { %13 = sbr.rel (!%p11_p5) target bundleno = 2 (0x2), region = 83 }

// kernel: darknet_forward.14
= control target key start
LH: loop header
LB: loop body
LE: loop exit
PB: predicated region body
PF: predicated region fallthrough
CT: control target
= control target key end

     0   :  { %s2685_s15 = smov 0   ;;  %s2687_s16 = smov 0   ;;  %s3082_s0 = inlined_call_operand.vmem [shape: f32[2,10,10,128], index: 0, kind: input, shape index: {}]   ;;  %s3083_s1 = inlined_call_operand.vmem [shape: bf16[9,128,128], index: 1, kind: input, shape index: {}]   ;;  %s3084_s2 = inlined_call_operand.vmem [shape: f32[1,128], index: 2, kind: input, shape index: {}]   ;;  %s3085_s3 = inlined_call_operand.vmem [shape: f32[1,128], index: 3, kind: input, shape index: {}]   ;;  %s3086_s4 = inlined_call_operand.vmem [shape: f32[2,8,8,128], index: 4, kind: output, shape index: {}]  }
   0x1   :  { %s2689_s17 = smov 0  }
   0x2 LB: > { %s33_s18 = sadd.s32 1, %s2654_s16  ;;  %p1878_p0 = scmp.ge.s32.totalorder %s2658_s17, 1  ;;  %s2658_s17 = sphi %s2689_s17, %s14_s17   ;;  %s2654_s16 = sphi %s2687_s16, %s3088_s16   ;;  %s2650_s15 = sphi %s2685_s15, %s3087_s15  }
   0x3   : > { %p35_p1 = scmp.ge.s32.totalorder %s33_s18, 2  ;;  %p220_p2 = scmp.lt.s32.totalorder %s2658_s17, 3 }
   0x5   : > { %s3090_s18 = smov (%p35_p1, %s33_s18), 0  ;;  %p221_p3 = pnand %p1878_p0, %p220_p2 }
   0x6   : > { %v2564_v0 = vld [vmem:[%s3083_s1 + $0x40] sm:$0xff] (!%p221_p3)   ;;  %p266_p4 = scmp.lt.s32.totalorder (!%p221_p3), %s2650_s15, 1  ;;  %v2566_v2 = vld [vmem:[%s3083_s1 + $0x48] sm:$0xff] (!%p221_p3)   ;;  %v2568_v4 = vld [vmem:[%s3083_s1 + $0x50] sm:$0xff] (!%p221_p3)  }
   0x7   : > { %224 = sbr.rel (%p221_p3) target bundleno = 397 (0x18d), region = 36  ;;  %v2565_v1 = vld [vmem:[%s3083_s1 + $0x100] sm:$0xff] (!%p221_p3)   ;;  %2243 = vmatprep.subr.bf16.mxu1 (!%p221_p3), %v2564_v0  ;;  %v2567_v3 = vld [vmem:[%s3083_s1 + $0x108] sm:$0xff] (!%p221_p3)   ;;  %v2569_v5 = vld [vmem:[%s3083_s1 + $0x110] sm:$0xff] (!%p221_p3)  }
   0x8   : > { %2339 = vmatprep.subr.bf16.mxu0 (!%p221_p3), %v2565_v1  ;;  %2244 = vmatpush3.bf16.msra.mxu1 (!%p221_p3), %v2564_v0  ;;  %v2570_v6 = vld [vmem:[%s3083_s1 + $0x58] sm:$0xff] (!%p221_p3)   ;;  %v2572_v8 = vld [vmem:[%s3083_s1 + $0x60] sm:$0xff] (!%p221_p3)   ;;  %v2574_v10 = vld [vmem:[%s3083_s1 + $0x68] sm:$0xff] (!%p221_p3)  }
   0x9   : > { %2340 = vmatpush3.bf16.msra.mxu0 (!%p221_p3), %v2565_v1  ;;  %2245 = vmatprep.subr.bf16.mxu1 (!%p221_p3), %v2566_v2  ;;  %v2571_v7 = vld [vmem:[%s3083_s1 + $0x118] sm:$0xff] (!%p221_p3)   ;;  %v2573_v9 = vld [vmem:[%s3083_s1 + $0x120] sm:$0xff] (!%p221_p3)   ;;  %v2575_v13 = vld [vmem:[%s3083_s1 + $0x128] sm:$0xff] (!%p221_p3)  }
   0xa   : > { %2341 = vmatprep.subr.bf16.mxu0 (!%p221_p3), %v2567_v3  ;;  %v2576_v17 = vld [vmem:[%s3083_s1 + $0x70] sm:$0xff] (!%p221_p3)   ;;  %v2578_v19 = vld [vmem:[%s3083_s1 + $0x78] sm:$0xff] (!%p221_p3)   ;;  %v2580_v21 = vld [vmem:[%s3083_s1] sm:$0xff] (!%p221_p3)  }
   0xb   : > { %v2577_v18 = vld [vmem:[%s3083_s1 + $0x130] sm:$0xff] (!%p221_p3)   ;;  %v2579_v20 = vld [vmem:[%s3083_s1 + $0x138] sm:$0xff] (!%p221_p3)   ;;  %v2581_v24 = vld [vmem:[%s3083_s1 + $0x140] sm:$0xff] (!%p221_p3)  }
   0xc   : > { %2246 = vmatpush3.bf16.msra.mxu1 (!%p221_p3), %v2566_v2  ;;  %v2582_v29 = vld [vmem:[%s3083_s1 + $0x8] sm:$0xff] (!%p221_p3)   ;;  %v2584_v34 = vld [vmem:[%s3083_s1 + $0x10] sm:$0xff] (!%p221_p3)   ;;  %v2586_v43 = vld [vmem:[%s3083_s1 + $0x18] sm:$0xff] (!%p221_p3)  }
   0xd   : > { %2342 = vmatpush3.bf16.msra.mxu0 (!%p221_p3), %v2567_v3  ;;  %2247 = vmatprep.subr.bf16.mxu1 (!%p221_p3), %v2568_v4  ;;  %v2583_v30 = vld [vmem:[%s3083_s1 + $0x148] sm:$0xff] (!%p221_p3)   ;;  %v2585_v36 = vld [vmem:[%s3083_s1 + $0x150] sm:$0xff] (!%p221_p3)   ;;  %v2587_v44 = vld [vmem:[%s3083_s1 + $0x158] sm:$0xff] (!%p221_p3)  }
   0xe   : > { %s3092_s15 = smov (!%p266_p4, %s2650_s15), 1  ;;  %2343 = vmatprep.subr.bf16.mxu0 %v2569_v5  ;;  %v2588_v47 = vld [vmem:[%s3083_s1 + $0x20] sm:$0xff]   ;;  %v2590_v49 = vld [vmem:[%s3083_s1 + $0x28] sm:$0xff]   ;;  %v2592_v51 = vld [vmem:[%s3083_s1 + $0x30] sm:$0xff]  }
   0xf   : > { %s2539_s9 = smul.u32 160, %s3092_s15  ;;  %v2589_v48 = vld [vmem:[%s3083_s1 + $0x160] sm:$0xff]   ;;  %v2591_v50 = vld [vmem:[%s3083_s1 + $0x168] sm:$0xff]   ;;  %v2593_v52 = vld [vmem:[%s3083_s1 + $0x170] sm:$0xff]   ;;  %s2134_s22 = sshll.u32 %s3092_s15, 6 }
  0x10   : > { %2248 = vmatpush3.bf16.msra.mxu1 %v2568_v4  ;;  %v2594_v53 = vld [vmem:[%s3083_s1 + $0x38] sm:$0xff]   ;;  %v2596_v57 = vld [vmem:[%s3083_s1 + $0x80] sm:$0xff]   ;;  %v2598_v0 = vld [vmem:[%s3083_s1 + $0x88] sm:$0xff]   ;;  %s3063_s25 = scalar_lea.vmem %s3086_s4, %s2134_s22 }
  0x11   : > { %2344 = vmatpush3.bf16.msra.mxu0 %v2569_v5  ;;  %2249 = vmatprep.subr.bf16.mxu1 %v2570_v6  ;;  %s2739_s20 = scalar_lea.vmem %s3082_s0, %s2539_s9  ;;  %v2595_v54 = vld [vmem:[%s3083_s1 + $0x178] sm:$0xff]   ;;  %v2597_v59 = vld [vmem:[%s3083_s1 + $0x180] sm:$0xff]   ;;  %v2599_v4 = vld [vmem:[%s3083_s1 + $0x188] sm:$0xff]  }
  0x12   : > { %2345 = vmatprep.subr.bf16.mxu0 %v2571_v7  ;;  %v338_v11 = vld [vmem:[%s2739_s20 + $0x1] sm:$0xff]  ;;  %v339_v12 = vld [vmem:[%s2739_s20 + $0x11] sm:$0xff] }
  0x13   : > { %v346_v14 = vpack.c.bf16 %v339_v12, %v338_v11  ;;  %v1971_v15 = vld [vmem:[%s2739_s20 + $0x21] sm:$0xff]  ;;  %v341_v22 = vld [vmem:[%s2739_s20 + $0x31] sm:$0xff] }
  0x14   : > { %2250 = vmatpush3.bf16.msra.mxu1 %v2570_v6  ;;  %v902_v16 = vpack.c.bf16 %v1971_v15, %v339_v12  ;;  %v1973_v23 = vld [vmem:[%s2739_s20 + $0x41] sm:$0xff]  ;;  %v2770_v25 = vpack.c.bf16 %v341_v22, %v1971_v15  ;;  %v343_v26 = vld [vmem:[%s2739_s20 + $0x51] sm:$0xff] }
  0x15   : > { %2346 = vmatpush3.bf16.msra.mxu0 %v2571_v7  ;;  %2251 = vmatprep.subr.bf16.mxu1 %v2572_v8  ;;  %v903_v27 = vpack.c.bf16 %v1973_v23, %v341_v22  ;;  %v1975_v28 = vld [vmem:[%s2739_s20 + $0x61] sm:$0xff]  ;;  %v2780_v31 = vpack.c.bf16 %v343_v26, %v1973_v23  ;;  %v345_v33 = vld [vmem:[%s2739_s20 + $0x71] sm:$0xff] }
  0x16   : > { %2347 = vmatprep.subr.bf16.mxu0 %v2573_v9  ;;  %2259 = vmatprep.mubr.bf16.mxu1 %v346_v14  ;;  %v904_v32 = vpack.c.bf16 %v1975_v28, %v343_v26  ;;  %v2788_v35 = vld [vmem:[%s2739_s20 + $0x81] sm:$0xff]  ;;  %v2794_v37 = vpack.c.bf16 %v345_v33, %v1975_v28  ;;  %v2798_v39 = vld [vmem:[%s2739_s20 + $0x10] sm:$0xff]  ;;  %v2610_v26 = vld [vmem:[%s3083_s1 + $0xb8] sm:$0xff]  }
  0x17   : > { %2355 = vmatprep.mubr.bf16.mxu0 %v902_v16  ;;  %v310_v38 = vld [vmem:[%s2739_s20] sm:$0xff]  ;;  %v905_v40 = vpack.c.bf16 %v2788_v35, %v345_v33  ;;  %v2802_v41 = vld [vmem:[%s2739_s20 + $0x12] sm:$0xff]  ;;  %v2607_v22 = vld [vmem:[%s3083_s1 + $0x1a8] sm:$0xff]  }
  0x18   : > { %2252 = vmatpush3.bf16.msra.mxu1 %v2572_v8  ;;  %v2805_v42 = vld [vmem:[%s2739_s20 + $0x22] sm:$0xff]  ;;  %v318_v45 = vpack.c.bf16 %v2798_v39, %v310_v38  ;;  %v2845_v56 = vld [vmem:[%s2739_s20 + $0x30] sm:$0xff]  ;;  %v2602_v16 = vld [vmem:[%s3083_s1 + $0x98] sm:$0xff]  }
  0x19   : > { %2348 = vmatpush3.bf16.msra.mxu0 %v2573_v9  ;;  %2253 = vmatprep.subr.bf16.mxu1 %v2574_v10  ;;  %v1052_v46 = vpack.c.bf16 %v2805_v42, %v2802_v41  ;;  %v2842_v55 = vld [vmem:[%s2739_s20 + $0x20] sm:$0xff]  ;;  %v2851_v58 = vld [vmem:[%s2739_s20 + $0x32] sm:$0xff]  ;;  %v2615_v33 = vld [vmem:[%s3083_s1 + $0x1c8] sm:$0xff]  }
  0x1a   : > { %2349 = vmatprep.subr.bf16.mxu0 %v2575_v13  ;;  %v2857_v60 = vld [vmem:[%s2739_s20 + $0x42] sm:$0xff]  ;;  %v2863_v62 = vld [vmem:[%s2739_s20 + $0x50] sm:$0xff]  ;;  %v319_v63 = vpack.c.bf16 %v2845_v56, %v2842_v55 }
  0x1b   : > { %v2860_v61 = vld [vmem:[%s2739_s20 + $0x40] sm:$0xff]  ;;  %v2871_v1 = vld [vmem:[%s2739_s20 + $0x52] sm:$0xff]  ;;  %v1053_v2 = vpack.c.bf16 %v2857_v60, %v2851_v58 }
  0x1c   : > { %2254 = vmatpush3.bf16.msra.mxu1 %v2574_v10  ;;  %v2876_v3 = vld [vmem:[%s2739_s20 + $0x62] sm:$0xff]  ;;  %v2883_v5 = vpack.c.bf16 %v2863_v62, %v2860_v61  ;;  %v2600_v7 = vld [vmem:[%s3083_s1 + $0x90] sm:$0xff]  }
  0x1d   : > { %2350 = vmatpush3.bf16.msra.mxu0 %v2575_v13  ;;  %2255 = vmatprep.subr.bf16.mxu1 %v2576_v17  ;;  %v2886_v6 = vld [vmem:[%s2739_s20 + $0x60] sm:$0xff]  ;;  %v1054_v8 = vpack.c.bf16 %v2876_v3, %v2871_v1  ;;  %v2894_v9 = vld [vmem:[%s2739_s20 + $0x70] sm:$0xff] }
  0x1e   : > { %2351 = vmatprep.subr.bf16.mxu0 %v2577_v18  ;;  %v2897_v10 = vld [vmem:[%s2739_s20 + $0x72] sm:$0xff]  ;;  %v2900_v11 = vld [vmem:[%s2739_s20 + $0x82] sm:$0xff]  ;;  %v321_v13 = vpack.c.bf16 %v2894_v9, %v2886_v6 }
  0x1f   : > { %v2601_v12 = vld [vmem:[%s3083_s1 + $0x190] sm:$0xff]   ;;  %v593_v14 = vld [vmem:[%s2739_s20 + $0x2] sm:$0xff]  ;;  %v1055_v15 = vpack.c.bf16 %v2900_v11, %v2897_v10 }
  0x20   : > { %2256 = vmatpush3.bf16.msra.mxu1 %v2576_v17  ;;  %v2603_v17 = vld [vmem:[%s3083_s1 + $0x198] sm:$0xff]   ;;  %v2608_v23 = vld [vmem:[%s3083_s1 + $0xb0] sm:$0xff]   ;;  %v2612_v28 = vld [vmem:[%s3083_s1 + $0xc0] sm:$0xff]  }
  0x21   : > { %2352 = vmatpush3.bf16.msra.mxu0 %v2577_v18  ;;  %2257 = vmatprep.subr.bf16.mxu1 %v2578_v19  ;;  %v601_v18 = vpack.c.bf16 %v2802_v41, %v593_v14  ;;  %v2968_v38 = vld [vmem:[%s2739_s20 + $0x80] sm:$0xff]  ;;  %v2617_v41 = vld [vmem:[%s3083_s1 + $0x1d0] sm:$0xff]  }
  0x22   : > { %2353 = vmatprep.subr.bf16.mxu0 %v2579_v20 }
  0x24   : > { %2258 = vmatpush3.bf16.msra.mxu1 %v2578_v19  ;;  %v2604_v19 = vld [vmem:[%s3083_s1 + $0xa0] sm:$0xff]  }
  0x25   : > { %2354 = vmatpush3.bf16.msra.mxu0 %v2579_v20  ;;  %2267 = vmatprep.subr.bf16.mxu1 %v2580_v21  ;;  %v2605_v20 = vld [vmem:[%s3083_s1 + $0x1a0] sm:$0xff]  }
  0x26   : > { %2363 = vmatprep.subr.bf16.mxu0 %v2581_v24 }
  0x27   : > { %2260 = vmatmul.mubr.bf16.vlgmr.msra.gmra.mrb[0].mxu1 %v2770_v25 }
  0x28   : > { %2268 = vmatpush3.bf16.msra.mxu1 %v2580_v21  ;;  %2356 = vmatmul.mubr.bf16.vlgmr.msra.gmra.mrb[0].mxu0 %v903_v27  ;;  %v2606_v21 = vld [vmem:[%s3083_s1 + $0xa8] sm:$0xff]   ;;  %v2611_v27 = vld [vmem:[%s3083_s1 + $0x1b8] sm:$0xff]  }
  0x29   : > { %2364 = vmatpush3.bf16.msra.mxu0 %v2581_v24  ;;  %2269 = vmatprep.subr.bf16.mxu1 %v2582_v29  ;;  %v2609_v24 = vld [vmem:[%s3083_s1 + $0x1b0] sm:$0xff]  }
  0x2a   : > { %2365 = vmatprep.subr.bf16.mxu0 %v2583_v30  ;;  %2263 = vmatprep.mubr.bf16.mxu1 %v2780_v31 }
  0x2b   : > { %2359 = vmatprep.mubr.bf16.mxu0 %v904_v32  ;;  %v2614_v32 = vld [vmem:[%s3083_s1 + $0xc8] sm:$0xff]  }
  0x2c   : > { %2270 = vmatpush3.bf16.msra.mxu1 %v2582_v29  ;;  %v2613_v29 = vld [vmem:[%s3083_s1 + $0x1c0] sm:$0xff]  }
  0x2d   : > { %2366 = vmatpush3.bf16.msra.mxu0 %v2583_v30  ;;  %2271 = vmatprep.subr.bf16.mxu1 %v2584_v34  ;;  %v2950_v30 = vpack.c.bf16 %v2851_v58, %v2805_v42  ;;  %v2977_v42 = vpack.c.bf16 %v2897_v10, %v2876_v3  ;;  %v2073_v58 = vld [vmem:[%s2739_s20 + $0x91] sm:$0xff] }
  0x2e   : > { %2367 = vmatprep.subr.bf16.mxu0 %v2585_v36 }
  0x2f   : > { %2264 = vmatmul.mubr.bf16.gmra.mrb[4].mxu1 %v2794_v37 }
  0x30   : > { %2272 = vmatpush3.bf16.msra.mxu1 %v2584_v34  ;;  %2360 = vmatmul.mubr.bf16.gmra.mrb[4].mxu0 %v905_v40  ;;  %v2960_v34 = vpack.c.bf16 %v2871_v1, %v2857_v60  ;;  %v2041_v40 = vld [vmem:[%s2739_s20 + $0x90] sm:$0xff]  ;;  %v1356_v60 = vpack.c.bf16 %v2073_v58, %v2788_v35  ;;  %v2633_v35 = vld [vmem:[%s3083_s1 + $0x228] sm:$0xff]  }
  0x31   : > { %2368 = vmatpush3.bf16.msra.mxu0 %v2585_v36  ;;  %2273 = vmatprep.subr.bf16.mxu1 %v2586_v43  ;;  %v2616_v36 = vld [vmem:[%s3083_s1 + $0xd0] sm:$0xff]  }
  0x32   : > { %2369 = vmatprep.subr.bf16.mxu0 %v2587_v44  ;;  %2283 = vmatprep.mubr.bf16.mxu1 %v318_v45  ;;  %v2619_v45 = vld [vmem:[%s3083_s1 + $0x1d8] sm:$0xff]  }
  0x33   : > { %2379 = vmatprep.mubr.bf16.mxu0 %v1052_v46  ;;  %v752_v46 = vpack.c.bf16 %v2842_v55, %v2798_v39  ;;  %v2622_v39 = vld [vmem:[%s3083_s1 + $0xe8] sm:$0xff]  }
  0x34   : > { %2274 = vmatpush3.bf16.msra.mxu1 %v2586_v43  ;;  %v1206_v43 = vpack.c.bf16 %v2041_v40, %v2968_v38  ;;  %v2629_v55 = vld [vmem:[%s3083_s1 + $0x208] sm:$0xff]  }
  0x35   : > { %2370 = vmatpush3.bf16.msra.mxu0 %v2587_v44  ;;  %2275 = vmatprep.subr.bf16.mxu1 %v2588_v47  ;;  %v2618_v44 = vld [vmem:[%s3083_s1 + $0xd8] sm:$0xff]  }
  0x36   : > { %2371 = vmatprep.subr.bf16.mxu0 %v2589_v48 }
  0x38   : > { %2276 = vmatpush3.bf16.msra.mxu1 %v2588_v47  ;;  %v2620_v47 = vld [vmem:[%s3083_s1 + $0xe0] sm:$0xff]  }
  0x39   : > { %2372 = vmatpush3.bf16.msra.mxu0 %v2589_v48  ;;  %2277 = vmatprep.subr.bf16.mxu1 %v2590_v49  ;;  %v2621_v48 = vld [vmem:[%s3083_s1 + $0x1e0] sm:$0xff]  }
  0x3a   : > { %2373 = vmatprep.subr.bf16.mxu0 %v2591_v50 }
  0x3c   : > { %2278 = vmatpush3.bf16.msra.mxu1 %v2590_v49  ;;  %v2623_v49 = vld [vmem:[%s3083_s1 + $0x1e8] sm:$0xff]  }
  0x3d   : > { %2374 = vmatpush3.bf16.msra.mxu0 %v2591_v50  ;;  %2279 = vmatprep.subr.bf16.mxu1 %v2592_v51  ;;  %v2624_v50 = vld [vmem:[%s3083_s1 + $0xf0] sm:$0xff]  }
  0x3e   : > { %2375 = vmatprep.subr.bf16.mxu0 %v2593_v52 }
  0x40   : > { %2280 = vmatpush3.bf16.msra.mxu1 %v2592_v51  ;;  %v2626_v51 = vld [vmem:[%s3083_s1 + $0xf8] sm:$0xff]  }
  0x41   : > { %2376 = vmatpush3.bf16.msra.mxu0 %v2593_v52  ;;  %2281 = vmatprep.subr.bf16.mxu1 %v2594_v53  ;;  %v2627_v52 = vld [vmem:[%s3083_s1 + $0x1f8] sm:$0xff]  }
  0x42   : > { %2377 = vmatprep.subr.bf16.mxu0 %v2595_v54 }
  0x44   : > { %2282 = vmatpush3.bf16.msra.mxu1 %v2594_v53  ;;  %v2628_v53 = vld [vmem:[%s3083_s1 + $0x200] sm:$0xff]  }
  0x45   : > { %2378 = vmatpush3.bf16.msra.mxu0 %v2595_v54  ;;  %2291 = vmatprep.subr.bf16.mxu1 %v2596_v57  ;;  %v753_v54 = vpack.c.bf16 %v2860_v61, %v2845_v56  ;;  %v2630_v56 = vld [vmem:[%s3083_s1 + $0x210] sm:$0xff]  }
  0x46   : > { %2387 = vmatprep.subr.bf16.mxu0 %v2597_v59  ;;  %v2634_v61 = vld [vmem:[%s3083_s1 + $0x230] sm:$0xff]  }
  0x47   : > { %2284 = vmatmul.mubr.bf16.vlgmr.msra.gmra.mrb[0].mxu1 %v319_v63 }
  0x48   : > { %2292 = vmatpush3.bf16.msra.mxu1 %v2596_v57  ;;  %2380 = vmatmul.mubr.bf16.vlgmr.msra.gmra.mrb[0].mxu0 %v1053_v2  ;;  %v754_v57 = vpack.c.bf16 %v2886_v6, %v2863_v62  ;;  %v2635_v62 = vld [vmem:[%s3083_s1 + $0x238] sm:$0xff]  }
  0x49   : > { %2388 = vmatpush3.bf16.msra.mxu0 %v2597_v59  ;;  %2293 = vmatprep.subr.bf16.mxu1 %v2598_v0  ;;  %v755_v59 = vpack.c.bf16 %v2968_v38, %v2894_v9 }
  0x4a   : > { %2389 = vmatprep.subr.bf16.mxu0 %v2599_v4  ;;  %2287 = vmatprep.mubr.bf16.mxu1 %v2883_v5 }
  0x4b   : > { %2383 = vmatprep.mubr.bf16.mxu0 %v1054_v8 }
  0x4c   : > { %2294 = vmatpush3.bf16.msra.mxu1 %v2598_v0 }
  0x4d   : > { %2390 = vmatpush3.bf16.msra.mxu0 %v2599_v4  ;;  %2295 = vmatprep.subr.bf16.mxu1 %v2600_v7 }
  0x4e   : > { %2391 = vmatprep.subr.bf16.mxu0 %v2601_v12 }
  0x4f   : > { %2288 = vmatmul.mubr.bf16.gmra.mrb[4].mxu1 %v321_v13 }
  0x50   : > { %2296 = vmatpush3.bf16.msra.mxu1 %v2600_v7  ;;  %2384 = vmatmul.mubr.bf16.gmra.mrb[4].mxu0 %v1055_v15 }
  0x51   : > { %2392 = vmatpush3.bf16.msra.mxu0 %v2601_v12  ;;  %2297 = vmatprep.subr.bf16.mxu1 %v2602_v16 }
  0x52   : > { %2393 = vmatprep.subr.bf16.mxu0 %v2603_v17  ;;  %2307 = vmatprep.mubr.bf16.mxu1 %v601_v18 }
  0x53   : > { %2403 = vmatprep.mubr.bf16.mxu0 %v319_v63  ;;  %v2105_v63 = vld [vmem:[%s2739_s20 + $0x92] sm:$0xff] }
  0x54   : > { %2298 = vmatpush3.bf16.msra.mxu1 %v2602_v16  ;;  %v1506_v0 = vpack.c.bf16 %v2105_v63, %v2900_v11 }
  0x55   : > { %2394 = vmatpush3.bf16.msra.mxu0 %v2603_v17  ;;  %2299 = vmatprep.subr.bf16.mxu1 %v2604_v19  ;;  %v2130_v17 = vld [vmem:[%s3084_s2] ss:$0 sm:$0xff] }
  0x56   : > { %2395 = vmatprep.subr.bf16.mxu0 %v2605_v20 }
  0x58   : > { %2300 = vmatpush3.bf16.msra.mxu1 %v2604_v19 }
  0x59   : > { %2396 = vmatpush3.bf16.msra.mxu0 %v2605_v20  ;;  %2301 = vmatprep.subr.bf16.mxu1 %v2606_v21 }
  0x5a   : > { %2397 = vmatprep.subr.bf16.mxu0 %v2607_v22 }
  0x5c   : > { %2302 = vmatpush3.bf16.msra.mxu1 %v2606_v21 }
  0x5d   : > { %2398 = vmatpush3.bf16.msra.mxu0 %v2607_v22  ;;  %2303 = vmatprep.subr.bf16.mxu1 %v2608_v23 }
  0x5e   : > { %2399 = vmatprep.subr.bf16.mxu0 %v2609_v24 }
  0x60   : > { %2304 = vmatpush3.bf16.msra.mxu1 %v2608_v23  ;;  %v2131_v23 = vld [vmem:[%s3085_s3] ss:$0 sm:$0xff] }
  0x61   : > { %2400 = vmatpush3.bf16.msra.mxu0 %v2609_v24  ;;  %2305 = vmatprep.subr.bf16.mxu1 %v2610_v26 }
  0x62   : > { %2401 = vmatprep.subr.bf16.mxu0 %v2611_v27 }
  0x64   : > { %2306 = vmatpush3.bf16.msra.mxu1 %v2610_v26 }
  0x65   : > { %2402 = vmatpush3.bf16.msra.mxu0 %v2611_v27  ;;  %2315 = vmatprep.subr.bf16.mxu1 %v2612_v28 }
  0x66   : > { %2411 = vmatprep.subr.bf16.mxu0 %v2613_v29 }
  0x67   : > { %2308 = vmatmul.mubr.bf16.vlgmr.msra.gmra.mrb[0].mxu1 %v2950_v30 }
  0x68   : > { %2316 = vmatpush3.bf16.msra.mxu1 %v2612_v28  ;;  %2404 = vmatmul.mubr.bf16.vlgmr.msra.gmra.mrb[0].mxu0 %v2883_v5 }
  0x69   : > { %2412 = vmatpush3.bf16.msra.mxu0 %v2613_v29  ;;  %2317 = vmatprep.subr.bf16.mxu1 %v2614_v32 }
  0x6a   : > { %2413 = vmatprep.subr.bf16.mxu0 %v2615_v33  ;;  %2311 = vmatprep.mubr.bf16.mxu1 %v2960_v34 }
  0x6b   : > { %2407 = vmatprep.mubr.bf16.mxu0 %v321_v13 }
  0x6c   : > { %2318 = vmatpush3.bf16.msra.mxu1 %v2614_v32 }
  0x6d   : > { %2414 = vmatpush3.bf16.msra.mxu0 %v2615_v33  ;;  %2319 = vmatprep.subr.bf16.mxu1 %v2616_v36 }
  0x6e   : > { %2415 = vmatprep.subr.bf16.mxu0 %v2617_v41 }
  0x6f   : > { %2312 = vmatmul.mubr.bf16.gmra.mrb[4].mxu1 %v2977_v42 }
  0x70   : > { %2320 = vmatpush3.bf16.msra.mxu1 %v2616_v36  ;;  %2408 = vmatmul.mubr.bf16.gmra.mrb[4].mxu0 %v1206_v43 }
  0x71   : > { %2416 = vmatpush3.bf16.msra.mxu0 %v2617_v41  ;;  %2321 = vmatprep.subr.bf16.mxu1 %v2618_v44 }
  0x72   : > { %2417 = vmatprep.subr.bf16.mxu0 %v2619_v45  ;;  %2331 = vmatprep.mubr.bf16.mxu1 %v752_v46 }
  0x73   : > { %2427 = vmatprep.mubr.bf16.mxu0 %v2770_v25  ;;  %v2625_v25 = vld [vmem:[%s3083_s1 + $0x1f0] sm:$0xff]  }
  0x74   : > { %2322 = vmatpush3.bf16.msra.mxu1 %v2618_v44 }
  0x75   : > { %2418 = vmatpush3.bf16.msra.mxu0 %v2619_v45  ;;  %2323 = vmatprep.subr.bf16.mxu1 %v2620_v47 }
  0x76   : > { %2419 = vmatprep.subr.bf16.mxu0 %v2621_v48 }
  0x78   : > { %2324 = vmatpush3.bf16.msra.mxu1 %v2620_v47 }
  0x79   : > { %2420 = vmatpush3.bf16.msra.mxu0 %v2621_v48  ;;  %2325 = vmatprep.subr.bf16.mxu1 %v2622_v39 }
  0x7a   : > { %2421 = vmatprep.subr.bf16.mxu0 %v2623_v49 }
  0x7c   : > { %2326 = vmatpush3.bf16.msra.mxu1 %v2622_v39 }
  0x7d   : > { %2422 = vmatpush3.bf16.msra.mxu0 %v2623_v49  ;;  %2327 = vmatprep.subr.bf16.mxu1 %v2624_v50 }
  0x7e   : > { %2423 = vmatprep.subr.bf16.mxu0 %v2625_v25 }
  0x80   : > { %2328 = vmatpush3.bf16.msra.mxu1 %v2624_v50 }
  0x81   : > { %2424 = vmatpush3.bf16.msra.mxu0 %v2625_v25  ;;  %2329 = vmatprep.subr.bf16.mxu1 %v2626_v51 }
  0x82   : > { %2425 = vmatprep.subr.bf16.mxu0 %v2627_v52 }
  0x84   : > { %2330 = vmatpush3.bf16.msra.mxu1 %v2626_v51 }
  0x85   : > { %2426 = vmatpush3.bf16.msra.mxu0 %v2627_v52  ;;  %2459 = vmatprep.subr.bf16.mxu1 %v2628_v53 }
  0x86   : > { %2435 = vmatprep.subr.bf16.mxu0 %v2628_v53 }
  0x87   : > { %2332 = vmatmul.mubr.bf16.vlgmr.msra.gmra.mrb[0].mxu1 %v753_v54 }
  0x88   : > { %2428 = vmatmul.mubr.bf16.vlgmr.msra.gmra.mrb[0].mxu0 %v2780_v31  ;;  %2467 = vmatpush3.bf16.msra.mxu1 %v2628_v53  ;;  %v2631_v31 = vld [vmem:[%s3083_s1 + $0x218] sm:$0xff]  }
  0x89   : > { %2436 = vmatpush3.bf16.msra.mxu0 %v2628_v53  ;;  %2460 = vmatprep.subr.bf16.mxu1 %v2629_v55 }
  0x8a   : > { %2437 = vmatprep.subr.bf16.mxu0 %v2629_v55  ;;  %2335 = vmatprep.mubr.bf16.mxu1 %v754_v57 }
  0x8b   : > { %2431 = vmatprep.mubr.bf16.mxu0 %v2794_v37  ;;  %v2632_v37 = vld [vmem:[%s3083_s1 + $0x220] sm:$0xff]  }
  0x8c   : > { %2468 = vmatpush3.bf16.msra.mxu1 %v2629_v55 }
  0x8d   : > { %2438 = vmatpush3.bf16.msra.mxu0 %v2629_v55  ;;  %2461 = vmatprep.subr.bf16.mxu1 %v2630_v56 }
  0x8e   : > { %2439 = vmatprep.subr.bf16.mxu0 %v2630_v56 }
  0x8f   : > { %2336 = vmatmul.mubr.bf16.gmra.mrb[4].mxu1 %v755_v59 }
  0x90   : > { %2432 = vmatmul.mubr.bf16.gmra.mrb[4].mxu0 %v1356_v60  ;;  %2469 = vmatpush3.bf16.msra.mxu1 %v2630_v56 }
  0x91   : > { %2440 = vmatpush3.bf16.msra.mxu0 %v2630_v56  ;;  %2462 = vmatprep.subr.bf16.mxu1 %v2631_v31 }
  0x92   : > { %2441 = vmatprep.subr.bf16.mxu0 %v2631_v31  ;;  %2451 = vmatprep.mubr.bf16.mxu0 %v2950_v30 }
  0x93   : > { %2455 = vmatprep.mubr.bf16.mxu1 %v2977_v42 }
  0x94   : > { %2470 = vmatpush3.bf16.msra.mxu1 %v2631_v31 }
  0x95   : > { %2442 = vmatpush3.bf16.msra.mxu0 %v2631_v31  ;;  %2463 = vmatprep.subr.bf16.mxu1 %v2632_v37 }
  0x96   : > { %2443 = vmatprep.subr.bf16.mxu0 %v2632_v37 }
  0x98   : > { %2471 = vmatpush3.bf16.msra.mxu1 %v2632_v37 }
  0x99   : > { %2444 = vmatpush3.bf16.msra.mxu0 %v2632_v37  ;;  %2464 = vmatprep.subr.bf16.mxu1 %v2633_v35 }
  0x9a   : > { %2445 = vmatprep.subr.bf16.mxu0 %v2633_v35 }
  0x9c   : > { %2472 = vmatpush3.bf16.msra.mxu1 %v2633_v35 }
  0x9d   : > { %2446 = vmatpush3.bf16.msra.mxu0 %v2633_v35  ;;  %2465 = vmatprep.subr.bf16.mxu1 %v2634_v61 }
  0x9e   : > { %2447 = vmatprep.subr.bf16.mxu0 %v2634_v61 }
  0xa0   : > { %2473 = vmatpush3.bf16.msra.mxu1 %v2634_v61 }
  0xa1   : > { %2448 = vmatpush3.bf16.msra.mxu0 %v2634_v61  ;;  %2466 = vmatprep.subr.bf16.mxu1 %v2635_v62 }
  0xa2   : > { %2449 = vmatprep.subr.bf16.mxu0 %v2635_v62 }
  0xa4   : > { %2474 = vmatpush3.bf16.msra.mxu1 %v2635_v62 }
  0xa5   : > { %2450 = vmatpush3.bf16.msra.mxu0 %v2635_v62 }
  0xa7   : > { %2456 = vmatmul.mubr.bf16.vlgmr.msra.gmra.mrb[8].mxu1 %v1506_v0 }
  0xa8   : > { %2452 = vmatmul.mubr.bf16.vlgmr.msra.gmra.mrb[0].mxu0 %v2960_v34 }
 0x15a   : > { %v2333_v1 = vpop.f32.mrb[0].mxu1 }
 0x15b   : > { %v855_v2 = vpop.f32.mrb[1].mxu1 }
 0x15c   : > { %v2334_v3 = vpop.f32.mrb[2].mxu1 }
 0x15d   : > { %v858_v4 = vpop.f32.mrb[3].mxu1 }
 0x162   : > { %v2337_v5 = vpop.f32.mrb[4].mxu1 }
 0x163   : > { %v2433_v6 = vpop.f32.mrb[4].mxu0  ;;  %v871_v7 = vpop.f32.mrb[5].mxu1 }
 0x164   : > { %v2479_v8 = vadd.f32 %v2433_v6, %v2337_v5  ;;  %v1472_v9 = vpop.f32.mrb[5].mxu0  ;;  %v2338_v10 = vpop.f32.mrb[6].mxu1 }
 0x165   : > { %v2481_v12 = vadd.f32 %v1472_v9, %v871_v7  ;;  %v2434_v13 = vpop.f32.mrb[6].mxu0  ;;  %v874_v14 = vpop.f32.mrb[7].mxu1 }
 0x166   : > { %v2483_v15 = vadd.f32 %v2434_v13, %v2338_v10  ;;  %v1475_v11 = vpop.f32.mrb[7].mxu0 }
 0x167   : > { %v2485_v16 = vadd.f32 %v1475_v11, %v874_v14 }
 0x17a   : > { %v2457_v18 = vpop.f32.mrb[8].mxu1 }
 0x17b   : > { %v2453_v19 = vpop.f32.mrb[0].mxu0  ;;  %v2480_v20 = vadd.f32 %v2479_v8, %v2457_v18  ;;  %v1622_v21 = vpop.f32.mrb[9].mxu1 }
 0x17c   : > { %v2475_v22 = vadd.f32 %v2453_v19, %v2333_v1  ;;  %v1606_v24 = vpop.f32.mrb[1].mxu0  ;;  %v2482_v26 = vadd.f32 %v2481_v12, %v1622_v21  ;;  %v2458_v27 = vpop.f32.mrb[10].mxu1 }
 0x17d   : > { %v1693_v28 = vmul.f32 %v2480_v20, %v2130_v17  ;;  %v2476_v29 = vadd.f32 %v1606_v24, %v855_v2  ;;  %v2454_v30 = vpop.f32.mrb[2].mxu0  ;;  %v2484_v32 = vadd.f32 %v2483_v15, %v2458_v27  ;;  %v1625_v33 = vpop.f32.mrb[11].mxu1 }
 0x17e   : > { %v1689_v34 = vmul.f32 %v2475_v22, %v2130_v17  ;;  %v1691_v36 = vmul.f32 %v2482_v26, %v2130_v17  ;;  %v2477_v38 = vadd.f32 %v2454_v30, %v2334_v3  ;;  %v1609_v40 = vpop.f32.mrb[3].mxu0  ;;  %v2486_v41 = vadd.f32 %v2485_v16, %v1625_v33 }
 0x17f   : > { %v1708_v42 = vadd.f32 %v2131_v23, %v1693_v28  ;;  %v1687_v43 = vmul.f32 %v2476_v29, %v2130_v17  ;;  %v1694_v44 = vmul.f32 %v2484_v32, %v2130_v17  ;;  %v2478_v45 = vadd.f32 %v1609_v40, %v858_v4 }
 0x180   : > { %v1704_v46 = vadd.f32 %v2131_v23, %v1689_v34  ;;  %v1706_v47 = vadd.f32 %v2131_v23, %v1691_v36  ;;  %v1690_v48 = vmul.f32 %v2477_v38, %v2130_v17  ;;  %v1692_v39 = vmul.f32 %v2486_v41, %v2130_v17 }
 0x181   : > { %vm1716_vm0 = vcmp.gt.f32.partialorder %v1708_v42, 0.0  ;;  %v1724_v49 = vmul.f32 0.1, %v1708_v42  ;;  %v1702_v50 = vadd.f32 %v2131_v23, %v1687_v43  ;;  %v1709_v25 = vadd.f32 %v2131_v23, %v1694_v44 }
 0x182   : > { %vm1712_vm1 = vcmp.gt.f32.partialorder %v1704_v46, 0.0  ;;  %v1720_v51 = vmul.f32 0.1, %v1704_v46  ;;  %vm1714_vm2 = vcmp.gt.f32.partialorder %v1706_v47, 0.0  ;;  %v1722_v52 = vmul.f32 0.1, %v1706_v47 }
 0x183   : > { %v1732_v53 = vsel %vm1716_vm0, %v1708_v42, %v1724_v49  ;;  %vm1710_vm3 = vcmp.gt.f32.partialorder %v1702_v50, 0.0  ;;  %v1718_v54 = vmul.f32 0.1, %v1702_v50  ;;  %v1705_v55 = vadd.f32 %v2131_v23, %v1690_v48 }
 0x184   : > { %v1728_v57 = vsel %vm1712_vm1, %v1704_v46, %v1720_v51  ;;  %1740 = vst [vmem:[%s3063_s25 + $0x30] sm:$0xff] %v1732_v53  ;;  %v1730_v58 = vsel %vm1714_vm2, %v1706_v47, %v1722_v52  ;;  %vm1717_vm4 = vcmp.gt.f32.partialorder %v1709_v25, 0.0  ;;  %v1725_v56 = vmul.f32 0.1, %v1709_v25 }
 0x185   : > { %1736 = vst [vmem:[%s3063_s25 + $0x10] sm:$0xff] %v1728_v57  ;;  %v1726_v59 = vsel %vm1710_vm3, %v1702_v50, %v1718_v54  ;;  %1738 = vst [vmem:[%s3063_s25 + $0x20] sm:$0xff] %v1730_v58  ;;  %vm1713_vm5 = vcmp.gt.f32.partialorder %v1705_v55, 0.0  ;;  %v1721_v60 = vmul.f32 0.1, %v1705_v55  ;;  %v1688_v31 = vmul.f32 %v2478_v45, %v2130_v17 }
 0x186   : > { %1734 = vst [vmem:[%s3063_s25] sm:$0xff] %v1726_v59  ;;  %v1733_v37 = vsel %vm1717_vm4, %v1709_v25, %v1725_v56  ;;  %v1707_v35 = vadd.f32 %v2131_v23, %v1692_v39 }
 0x187   : > { %v1729_v61 = vsel %vm1713_vm5, %v1705_v55, %v1721_v60  ;;  %1741 = vst [vmem:[%s3063_s25 + $0x38] sm:$0xff] %v1733_v37  ;;  %v1703_v62 = vadd.f32 %v2131_v23, %v1688_v31 }
 0x188   : > { %1737 = vst [vmem:[%s3063_s25 + $0x18] sm:$0xff] %v1729_v61  ;;  %vm1715_vm6 = vcmp.gt.f32.partialorder %v1707_v35, 0.0  ;;  %v1723_v63 = vmul.f32 0.1, %v1707_v35 }
 0x189   : > { %vm1711_vm7 = vcmp.gt.f32.partialorder %v1703_v62, 0.0  ;;  %v1719_v0 = vmul.f32 0.1, %v1703_v62 }
 0x18a   : > { %v1731_v1 = vsel %vm1715_vm6, %v1707_v35, %v1723_v63 }
 0x18b   : > { %v1727_v2 = vsel %vm1711_vm7, %v1703_v62, %v1719_v0  ;;  %1739 = vst [vmem:[%s3063_s25 + $0x28] sm:$0xff] %v1731_v1 }
 0x18c   : > { %1735 = vst [vmem:[%s3063_s25 + $0x8] sm:$0xff] %v1727_v2 }
 0x18d PF: > { %s14_s17 = sadd.s32 1, %s2658_s17   ;;  %s3087_s15 = smov %s2654_s16 }
 0x18e   : > { %p11_p5 = scmp.ge.s32.totalorder %s14_s17, 4   ;;  %s3088_s16 = smov %s3090_s18 }
 0x190   :  { %13 = sbr.rel (!%p11_p5) target bundleno = 2 (0x2), region = 93 }

// kernel: darknet_forward.16
= control target key start
LH: loop header
LB: loop body
LE: loop exit
PB: predicated region body
PF: predicated region fallthrough
CT: control target
= control target key end

     0   :  { %s490_s9 = smov 0   ;;  %s644_s0 = inlined_call_operand.vmem [shape: f32[2,8,8,128], index: 0, kind: input, shape index: {}]   ;;  %s645_s1 = inlined_call_operand.vmem [shape: f32[1,1,128], index: 1, kind: input, shape index: {}]   ;;  %s646_s2 = inlined_call_operand.vmem [shape: f32[2,8,8,128], index: 2, kind: output, shape index: {}]  }
   0x1 LB: > { %s385_s10 = sadd.s32 4294967295, %s472_s9   ;;  %p389_p0 = scmp.ge.s32.totalorder %s472_s9, 1  ;;  %s472_s9 = sphi %s490_s9, %s12_s9  }
   0x2   : > { %p112_p1 = scmp.lt.s32.totalorder %s472_s9, 3 }
   0x4   : > { %p113_p2 = pnand %p389_p0, %p112_p1 }
   0x5   : > { %p134_p3 = scmp.lt.s32.totalorder (!%p113_p2), %s385_s10, 1  ;;  %v152_v0 = vlaneseq (!%p113_p2)  ;;  %v544_v56 = vld [vmem:[%s645_s1] ss:$0 sm:$0xff] (!%p113_p2)  ;;  %v474_v60 = vmov (!%p113_p2), 0.0  }
   0x6   : > { %116 = sbr.rel (%p113_p2) target bundleno = 65 (0x41), region = 28 }
   0x7   : > { %v153_v1 = vand.u32 (!%p113_p2), 127, %v152_v0  ;;  %v179_v42 = vshrl.u32 (!%p113_p2), %v152_v0, 7 }
   0x9   : > { %v501_v2 = vmul.u32.u64.low (!%p113_p2), 3817748708, %v153_v1  ;;  %v502_v3 = vmul.u32.u64.high 3817748708, %v153_v1, %v501_v2  ;;  %v535_v51 = vcvt.s32.f32 (!%p113_p2), %v179_v42 }
   0xb   : > { %v160_v10 = vshrl.u32 (!%p113_p2), %v502_v3, 3 }
   0xd   : > { %s650_s10 = smov (!%p134_p3, %s385_s10), 1  ;;  %v161_v15 = vmul.u32 9, %v160_v10 }
   0xe   : > { %s405_s11 = sshll.u32 %s650_s10, 6 }
   0xf   : > { %s138_s14 = scalar_lea.vmem %s644_s0, %s405_s11  ;;  %v162_v18 = vsub.s32 %v153_v1, %v161_v15  ;;  %s575_s19 = scalar_lea.vmem %s646_s2, %s405_s11 }
  0x10   : > { %v144_v4 = vld [vmem:[%s138_s14] sm:$0xff]  ;;  %v145_v5 = vld [vmem:[%s138_s14 + $0x8] sm:$0xff]  ;;  %v146_v6 = vld [vmem:[%s138_s14 + $0x10] sm:$0xff] }
  0x11   : > { %v395_v7 = vmul.f32 -1.442695, %v144_v4  ;;  %v396_v8 = vmul.f32 -1.442695, %v145_v5  ;;  %v397_v9 = vmul.f32 -1.442695, %v146_v6 }
  0x12   : > { %v147_v11 = vld [vmem:[%s138_s14 + $0x18] sm:$0xff]  ;;  %v148_v12 = vld [vmem:[%s138_s14 + $0x20] sm:$0xff]  ;;  %v149_v14 = vld [vmem:[%s138_s14 + $0x28] sm:$0xff]  ;;  %vm165_vm0 = vcmp.ne.s32.totalorder %v162_v18, 0  ;;  %vm166_vm1 = vcmp.lt.s32.totalorder %v162_v18, 0  ;;  %v168_v22 = vadd.s32 9, %v162_v18 }
  0x13   : > { %418 = vpow2.f32 %v395_v7  ;;  %v398_v13 = vmul.f32 -1.442695, %v147_v11  ;;  %v399_v16 = vmul.f32 -1.442695, %v148_v12  ;;  %v150_v17 = vld [vmem:[%s138_s14 + $0x30] sm:$0xff]  ;;  %v510_v21 = vld [vmem:[%s138_s14 + $0x38] sm:$0xff]  ;;  %vm167_vm2 = vmand %vm166_vm1, %vm165_vm0 }
  0x14   : > { %420 = vpow2.f32 %v396_v8  ;;  %v400_v19 = vmul.f32 -1.442695, %v149_v14  ;;  %v401_v20 = vmul.f32 -1.442695, %v150_v17  ;;  %v512_v23 = vsel %vm167_vm2, %v168_v22, %v162_v18 }
  0x15   : > { %422 = vpow2.f32 %v397_v9  ;;  %v402_v24 = vmul.f32 -1.442695, %v510_v21  ;;  %vm181_vm3 = vcmp.eq.s32.totalorder %v512_v23, 2  ;;  %vm182_vm4 = vcmp.eq.s32.totalorder %v512_v23, 3 }
  0x16   : > { %424 = vpow2.f32 %v398_v13  ;;  %vm517_vm5 = vmor %vm181_vm3, %vm182_vm4  ;;  %vm280_vm6 = vcmp.eq.s32.totalorder %v512_v23, 1  ;;  %vm279_vm7 = vcmp.eq.s32.totalorder %v512_v23, 0  ;;  %vm305_vm8 = vcmp.lt.s32.totalorder %v512_v23, 4 }
  0x17   : > { %426 = vpow2.f32 %v399_v16  ;;  %v184_v27 = vsel %vm517_vm5, %v144_v4, 0.0  ;;  %v185_v28 = vsel %vm517_vm5, %v145_v5, 0.0  ;;  %v186_v29 = vsel %vm517_vm5, %v146_v6, 0.0 }
  0x18   : > { %428 = vpow2.f32 %v400_v19  ;;  %v192_v31 = vmul.f32 1.442695, %v184_v27  ;;  %v194_v33 = vmul.f32 1.442695, %v185_v28  ;;  %v187_v36 = vsel %vm517_vm5, %v147_v11, 0.0 }
  0x19   : > { %430 = vpow2.f32 %v401_v20  ;;  %v196_v38 = vmul.f32 1.442695, %v186_v29  ;;  %v188_v40 = vsel %vm517_vm5, %v148_v12, 0.0  ;;  %v198_v43 = vmul.f32 1.442695, %v187_v36 }
  0x1a   : > { %432 = vpow2.f32 %v402_v24  ;;  %v189_v45 = vsel %vm517_vm5, %v149_v14, 0.0  ;;  %v200_v47 = vmul.f32 1.442695, %v188_v40  ;;  %v190_v49 = vsel %vm517_vm5, %v150_v17, 0.0 }
  0x1b   : > { %434 = vpow2.f32 %v192_v31  ;;  %v202_v52 = vmul.f32 1.442695, %v189_v45  ;;  %v191_v54 = vsel %vm517_vm5, %v510_v21, 0.0  ;;  %v204_v57 = vmul.f32 1.442695, %v190_v49 }
  0x1c   : > { %v282_v61 = vsel %vm280_vm6, 1.0, %v474_v60  ;;  %v206_v62 = vmul.f32 1.442695, %v191_v54  ;;  %v289_v1 = vsel %vm279_vm7, %v535_v51, 0.0  ;;  %v283_v4 = vsel %vm280_vm6, 2.0, %v474_v60 }
  0x1d   : > { %v419_v26 = vpop.eup %418  ;;  %v290_v8 = vsel %vm279_vm7, %v535_v51, %v282_v61  ;;  %v284_v11 = vsel %vm280_vm6, 3.0, %v474_v60  ;;  %v291_v15 = vsel %vm279_vm7, %v535_v51, %v283_v4  ;;  %v285_v19 = vsel %vm280_vm6, 4.0, %v474_v60 }
  0x1e   : > { %v421_v30 = vpop.eup %420  ;;  %v247_v32 = vadd.f32 1.0, %v419_v26  ;;  %v292_v24 = vsel %vm279_vm7, %v535_v51, %v284_v11 }
  0x1f   : > { %v423_v34 = vpop.eup %422  ;;  %v248_v35 = vadd.f32 1.0, %v421_v30  ;;  %v286_v30 = vsel %vm280_vm6, 5.0, %v474_v60 }
  0x20   : > { %v425_v37 = vpop.eup %424  ;;  %436 = vrcp.f32 %v247_v32  ;;  %v249_v39 = vadd.f32 1.0, %v423_v34  ;;  %v293_v34 = vsel %vm279_vm7, %v535_v51, %v285_v19 }
  0x21   : > { %v427_v41 = vpop.eup %426  ;;  %438 = vpow2.f32 %v194_v33  ;;  %v250_v44 = vadd.f32 1.0, %v425_v37 }
  0x22   : > { %440 = vrcp.f32 %v248_v35  ;;  %v429_v46 = vpop.eup %428  ;;  %v251_v48 = vadd.f32 1.0, %v427_v41 }
  0x23   : > { %442 = vpow2.f32 %v196_v38  ;;  %v431_v50 = vpop.eup %430  ;;  %v252_v53 = vadd.f32 1.0, %v429_v46 }
  0x24   : > { %444 = vrcp.f32 %v249_v39  ;;  %v433_v55 = vpop.eup %432  ;;  %v253_v58 = vadd.f32 1.0, %v431_v50  ;;  %v287_v39 = vsel %vm280_vm6, 6.0, %v474_v60 }
  0x25   : > { %446 = vpow2.f32 %v198_v43  ;;  %v435_v59 = vpop.eup %434  ;;  %v254_v2 = vadd.f32 1.0, %v433_v55  ;;  %v294_v43 = vsel %vm279_vm7, %v535_v51, %v286_v30 }
  0x26   : > { %448 = vrcp.f32 %v250_v44  ;;  %v215_v0 = vmul.f32 %v435_v59, %v544_v56 }
  0x27   : > { %450 = vpow2.f32 %v200_v47 }
  0x28   : > { %452 = vrcp.f32 %v251_v48  ;;  %v288_v48 = vsel %vm280_vm6, 7.0, %v474_v60 }
  0x29   : > { %454 = vpow2.f32 %v202_v52 }
  0x2a   : > { %v437_v63 = vpop.eup %436  ;;  %456 = vrcp.f32 %v252_v53  ;;  %v295_v53 = vsel %vm279_vm7, %v535_v51, %v287_v39 }
  0x2b   : > { %v439_v3 = vpop.eup %438  ;;  %458 = vpow2.f32 %v204_v57  ;;  %v271_v6 = vsel %vm517_vm5, %v215_v0, %v437_v63 }
  0x2c   : > { %v441_v5 = vpop.eup %440  ;;  %v216_v7 = vmul.f32 %v439_v3, %v544_v56  ;;  %460 = vrcp.f32 %v253_v58  ;;  %v297_v10 = vadd.f32 %v289_v1, %v271_v6 }
  0x2d   : > { %v443_v9 = vpop.eup %442  ;;  %462 = vpow2.f32 %v206_v62  ;;  %v296_v62 = vsel %vm279_vm7, %v535_v51, %v288_v48 }
  0x2e   : > { %v445_v12 = vpop.eup %444  ;;  %v272_v13 = vsel %vm517_vm5, %v216_v7, %v441_v5  ;;  %v217_v14 = vmul.f32 %v443_v9, %v544_v56  ;;  %464 = vrcp.f32 %v254_v2  ;;  %v306_v17 = vmul.f32 2.0, %v297_v10 }
  0x2f   : > { %v447_v16 = vpop.eup %446  ;;  %v298_v18 = vadd.f32 %v290_v8, %v272_v13 }
  0x30   : > { %v449_v20 = vpop.eup %448  ;;  %v273_v21 = vsel %vm517_vm5, %v217_v14, %v445_v12  ;;  %v218_v22 = vmul.f32 %v447_v16, %v544_v56  ;;  %v314_v27 = vsel %vm305_vm8, %v306_v17, %v297_v10 }
  0x31   : > { %v451_v26 = vpop.eup %450  ;;  %v307_v28 = vmul.f32 2.0, %v298_v18  ;;  %v299_v29 = vadd.f32 %v291_v15, %v273_v21  ;;  %322 = vst [vmem:[%s575_s19] sm:$0xff] %v314_v27 }
  0x32   : > { %v453_v31 = vpop.eup %452  ;;  %v274_v32 = vsel %vm517_vm5, %v218_v22, %v449_v20  ;;  %v219_v33 = vmul.f32 %v451_v26, %v544_v56 }
  0x33   : > { %v455_v35 = vpop.eup %454  ;;  %v315_v36 = vsel %vm305_vm8, %v307_v28, %v298_v18  ;;  %v308_v37 = vmul.f32 2.0, %v299_v29  ;;  %v300_v38 = vadd.f32 %v292_v24, %v274_v32 }
  0x34   : > { %v457_v40 = vpop.eup %456  ;;  %323 = vst [vmem:[%s575_s19 + $0x8] sm:$0xff] %v315_v36  ;;  %v275_v41 = vsel %vm517_vm5, %v219_v33, %v453_v31  ;;  %v220_v42 = vmul.f32 %v455_v35, %v544_v56 }
  0x35   : > { %v459_v44 = vpop.eup %458  ;;  %v316_v45 = vsel %vm305_vm8, %v308_v37, %v299_v29  ;;  %v309_v46 = vmul.f32 2.0, %v300_v38  ;;  %v301_v47 = vadd.f32 %v293_v34, %v275_v41 }
  0x36   : > { %v461_v49 = vpop.eup %460  ;;  %324 = vst [vmem:[%s575_s19 + $0x10] sm:$0xff] %v316_v45  ;;  %v276_v50 = vsel %vm517_vm5, %v220_v42, %v457_v40  ;;  %v221_v52 = vmul.f32 %v459_v44, %v544_v56 }
  0x37   : > { %v463_v54 = vpop.eup %462  ;;  %v317_v55 = vsel %vm305_vm8, %v309_v46, %v300_v38  ;;  %v310_v57 = vmul.f32 2.0, %v301_v47  ;;  %v302_v58 = vadd.f32 %v294_v43, %v276_v50 }
  0x38   : > { %v465_v59 = vpop.eup %464  ;;  %325 = vst [vmem:[%s575_s19 + $0x18] sm:$0xff] %v317_v55  ;;  %v277_v60 = vsel %vm517_vm5, %v221_v52, %v461_v49  ;;  %v222_v61 = vmul.f32 %v463_v54, %v544_v56 }
  0x39   : > { %v318_v63 = vsel %vm305_vm8, %v310_v57, %v301_v47  ;;  %v311_v0 = vmul.f32 2.0, %v302_v58  ;;  %v303_v1 = vadd.f32 %v295_v53, %v277_v60 }
  0x3a   : > { %326 = vst [vmem:[%s575_s19 + $0x20] sm:$0xff] %v318_v63  ;;  %v278_v2 = vsel %vm517_vm5, %v222_v61, %v465_v59 }
  0x3b   : > { %v319_v3 = vsel %vm305_vm8, %v311_v0, %v302_v58  ;;  %v312_v4 = vmul.f32 2.0, %v303_v1  ;;  %v304_v5 = vadd.f32 %v296_v62, %v278_v2 }
  0x3c   : > { %327 = vst [vmem:[%s575_s19 + $0x28] sm:$0xff] %v319_v3 }
  0x3d   : > { %v320_v56 = vsel %vm305_vm8, %v312_v4, %v303_v1  ;;  %v313_v6 = vmul.f32 2.0, %v304_v5 }
  0x3e   : > { %328 = vst [vmem:[%s575_s19 + $0x30] sm:$0xff] %v320_v56 }
  0x3f   : > { %v321_v51 = vsel %vm305_vm8, %v313_v6, %v304_v5 }
  0x40   : > { %329 = vst [vmem:[%s575_s19 + $0x38] sm:$0xff] %v321_v51 }
  0x41 PF: > { %s12_s9 = sadd.s32 1, %s472_s9  }
  0x42   : > { %p9_p4 = scmp.ge.s32.totalorder %s12_s9, 4  }
  0x44   :  { %11 = sbr.rel (!%p9_p4) target bundleno = 1 (0x1), region = 58 }

// kernel: darknet_forward.10
= control target key start
LH: loop header
LB: loop body
LE: loop exit
PB: predicated region body
PF: predicated region fallthrough
CT: control target
= control target key end

     0   :  { %s4973_s15 = smov 0   ;;  %s4975_s16 = smov 0   ;;  %s5735_s0 = inlined_call_operand.vmem [shape: f32[2,18,18,128], index: 0, kind: input, shape index: {}]   ;;  %s5736_s1 = inlined_call_operand.vmem [shape: bf16[9,128,128], index: 1, kind: input, shape index: {}]   ;;  %s5737_s2 = inlined_call_operand.vmem [shape: f32[1,128], index: 2, kind: input, shape index: {}]   ;;  %s5738_s3 = inlined_call_operand.vmem [shape: f32[1,128], index: 3, kind: input, shape index: {}]   ;;  %s5739_s4 = inlined_call_operand.vmem [shape: f32[2,16,16,128], index: 4, kind: output, shape index: {}]  }
   0x1   :  { %s4977_s17 = smov 0  }
   0x2 LB: > { %s33_s18 = sadd.s32 1, %s4942_s16  ;;  %p3498_p0 = scmp.ge.s32.totalorder %s4946_s17, 1  ;;  %s4946_s17 = sphi %s4977_s17, %s14_s17   ;;  %s4942_s16 = sphi %s4975_s16, %s5741_s16   ;;  %s4938_s15 = sphi %s4973_s15, %s5740_s15  }
   0x3   : > { %p35_p1 = scmp.ge.s32.totalorder %s33_s18, 2  ;;  %p220_p2 = scmp.lt.s32.totalorder %s4946_s17, 3 }
   0x5   : > { %s5743_s18 = smov (%p35_p1, %s33_s18), 0  ;;  %p221_p3 = pnand %p3498_p0, %p220_p2 }
   0x6   : > { %v4844_v0 = vld [vmem:[%s5736_s1 + $0x40] sm:$0xff] (!%p221_p3)   ;;  %p266_p4 = scmp.lt.s32.totalorder (!%p221_p3), %s4938_s15, 1  ;;  %v4846_v2 = vld [vmem:[%s5736_s1 + $0x48] sm:$0xff] (!%p221_p3)   ;;  %v4848_v4 = vld [vmem:[%s5736_s1 + $0x50] sm:$0xff] (!%p221_p3)  }
   0x7   : > { %224 = sbr.rel (%p221_p3) target bundleno = 545 (0x221), region = 36  ;;  %v4845_v1 = vld [vmem:[%s5736_s1 + $0x100] sm:$0xff] (!%p221_p3)   ;;  %4115 = vmatprep.subr.bf16.mxu1 (!%p221_p3), %v4844_v0  ;;  %v4847_v3 = vld [vmem:[%s5736_s1 + $0x108] sm:$0xff] (!%p221_p3)   ;;  %v4849_v5 = vld [vmem:[%s5736_s1 + $0x110] sm:$0xff] (!%p221_p3)  }
   0x8   : > { %4307 = vmatprep.subr.bf16.mxu0 (!%p221_p3), %v4845_v1  ;;  %4116 = vmatpush3.bf16.msra.mxu1 (!%p221_p3), %v4844_v0  ;;  %v4850_v6 = vld [vmem:[%s5736_s1 + $0x58] sm:$0xff] (!%p221_p3)   ;;  %v4852_v8 = vld [vmem:[%s5736_s1 + $0x60] sm:$0xff] (!%p221_p3)   ;;  %v4854_v10 = vld [vmem:[%s5736_s1 + $0x68] sm:$0xff] (!%p221_p3)  }
   0x9   : > { %4308 = vmatpush3.bf16.msra.mxu0 (!%p221_p3), %v4845_v1  ;;  %4117 = vmatprep.subr.bf16.mxu1 (!%p221_p3), %v4846_v2  ;;  %v4851_v7 = vld [vmem:[%s5736_s1 + $0x118] sm:$0xff] (!%p221_p3)   ;;  %v4853_v9 = vld [vmem:[%s5736_s1 + $0x120] sm:$0xff] (!%p221_p3)   ;;  %v4855_v11 = vld [vmem:[%s5736_s1 + $0x128] sm:$0xff] (!%p221_p3)  }
   0xa   : > { %4309 = vmatprep.subr.bf16.mxu0 (!%p221_p3), %v4847_v3  ;;  %v4856_v18 = vld [vmem:[%s5736_s1 + $0x70] sm:$0xff] (!%p221_p3)   ;;  %v4858_v20 = vld [vmem:[%s5736_s1 + $0x78] sm:$0xff] (!%p221_p3)   ;;  %v4860_v22 = vld [vmem:[%s5736_s1] sm:$0xff] (!%p221_p3)  }
   0xb   : > { %v4857_v19 = vld [vmem:[%s5736_s1 + $0x130] sm:$0xff] (!%p221_p3)   ;;  %v4859_v21 = vld [vmem:[%s5736_s1 + $0x138] sm:$0xff] (!%p221_p3)   ;;  %v4861_v25 = vld [vmem:[%s5736_s1 + $0x140] sm:$0xff] (!%p221_p3)  }
   0xc   : > { %4118 = vmatpush3.bf16.msra.mxu1 (!%p221_p3), %v4846_v2  ;;  %v4862_v29 = vld [vmem:[%s5736_s1 + $0x148] sm:$0xff] (!%p221_p3)   ;;  %v4864_v34 = vld [vmem:[%s5736_s1 + $0x150] sm:$0xff] (!%p221_p3)   ;;  %v4865_v40 = vld [vmem:[%s5736_s1 + $0x158] sm:$0xff] (!%p221_p3)  }
   0xd   : > { %4310 = vmatpush3.bf16.msra.mxu0 (!%p221_p3), %v4847_v3  ;;  %4119 = vmatprep.subr.bf16.mxu1 (!%p221_p3), %v4848_v4  ;;  %v4863_v31 = vld [vmem:[%s5736_s1 + $0x8] sm:$0xff] (!%p221_p3)   ;;  %v4866_v36 = vld [vmem:[%s5736_s1 + $0x10] sm:$0xff] (!%p221_p3)   ;;  %v4869_v41 = vld [vmem:[%s5736_s1 + $0x18] sm:$0xff] (!%p221_p3)  }
   0xe   : > { %s5745_s15 = smov (!%p266_p4, %s4938_s15), 1  ;;  %4311 = vmatprep.subr.bf16.mxu0 %v4849_v5  ;;  %v4867_v44 = vld [vmem:[%s5736_s1 + $0x160] sm:$0xff]   ;;  %v4868_v50 = vld [vmem:[%s5736_s1 + $0x168] sm:$0xff]   ;;  %v4870_v54 = vld [vmem:[%s5736_s1 + $0x170] sm:$0xff]  }
   0xf   : > { %s4819_s9 = smul.u32 432, %s5745_s15  ;;  %v4872_v47 = vld [vmem:[%s5736_s1 + $0x20] sm:$0xff]   ;;  %v4874_v51 = vld [vmem:[%s5736_s1 + $0x28] sm:$0xff]   ;;  %v4876_v57 = vld [vmem:[%s5736_s1 + $0x30] sm:$0xff]   ;;  %s3898_s12 = sshll.u32 %s5745_s15, 8 }
  0x10   : > { %4120 = vmatpush3.bf16.msra.mxu1 %v4848_v4  ;;  %v4871_v60 = vld [vmem:[%s5736_s1 + $0x178] sm:$0xff]   ;;  %v4873_v4 = vld [vmem:[%s5736_s1 + $0x180] sm:$0xff]   ;;  %s5626_s19 = scalar_lea.vmem %s5739_s4, %s3898_s12 }
  0x11   : > { %4312 = vmatpush3.bf16.msra.mxu0 %v4849_v5  ;;  %4121 = vmatprep.subr.bf16.mxu1 %v4850_v6  ;;  %s5027_s20 = scalar_lea.vmem %s5735_s0, %s4819_s9  ;;  %v4878_v0 = vld [vmem:[%s5736_s1 + $0x38] sm:$0xff]  }
  0x12   : > { %4313 = vmatprep.subr.bf16.mxu0 %v4851_v7  ;;  %v398_v12 = vld [vmem:[%s5027_s20 + $0x1] sm:$0xff]  ;;  %v399_v13 = vld [vmem:[%s5027_s20 + $0x9] sm:$0xff]  ;;  %v3614_v14 = vld [vmem:[%s5027_s20 + $0x19] sm:$0xff] }
  0x13   : > { %v430_v15 = vpack.c.bf16 %v399_v13, %v398_v12  ;;  %v3615_v16 = vld [vmem:[%s5027_s20 + $0x21] sm:$0xff]  ;;  %v3616_v23 = vld [vmem:[%s5027_s20 + $0x31] sm:$0xff]  ;;  %v3617_v24 = vld [vmem:[%s5027_s20 + $0x39] sm:$0xff] }
  0x14   : > { %4122 = vmatpush3.bf16.msra.mxu1 %v4850_v6  ;;  %v1526_v17 = vpack.c.bf16 %v3615_v16, %v3614_v14  ;;  %v3618_v26 = vld [vmem:[%s5027_s20 + $0x49] sm:$0xff]  ;;  %v3619_v27 = vld [vmem:[%s5027_s20 + $0x51] sm:$0xff]  ;;  %v1527_v28 = vpack.c.bf16 %v3617_v24, %v3616_v23  ;;  %v3620_v32 = vld [vmem:[%s5027_s20 + $0x61] sm:$0xff] }
  0x15   : > { %4314 = vmatpush3.bf16.msra.mxu0 %v4851_v7  ;;  %4123 = vmatprep.subr.bf16.mxu1 %v4852_v8  ;;  %v1528_v30 = vpack.c.bf16 %v3619_v27, %v3618_v26  ;;  %v3621_v33 = vld [vmem:[%s5027_s20 + $0x69] sm:$0xff]  ;;  %v3622_v35 = vld [vmem:[%s5027_s20 + $0x79] sm:$0xff]  ;;  %v3623_v37 = vld [vmem:[%s5027_s20 + $0x81] sm:$0xff] }
  0x16   : > { %4315 = vmatprep.subr.bf16.mxu0 %v4853_v9  ;;  %4131 = vmatprep.mubr.bf16.mxu1 %v430_v15  ;;  %v1529_v38 = vpack.c.bf16 %v3621_v33, %v3620_v32  ;;  %v1530_v39 = vpack.c.bf16 %v3623_v37, %v3622_v35  ;;  %v3624_v42 = vld [vmem:[%s5027_s20 + $0x91] sm:$0xff]  ;;  %v3625_v43 = vld [vmem:[%s5027_s20 + $0x99] sm:$0xff]  ;;  %v3626_v45 = vld [vmem:[%s5027_s20 + $0xa9] sm:$0xff] }
  0x17   : > { %4323 = vmatprep.mubr.bf16.mxu0 %v1526_v17  ;;  %v3627_v46 = vld [vmem:[%s5027_s20 + $0xb1] sm:$0xff]  ;;  %v1531_v48 = vpack.c.bf16 %v3625_v43, %v3624_v42  ;;  %v3628_v52 = vld [vmem:[%s5027_s20 + $0xc1] sm:$0xff]  ;;  %v3629_v53 = vld [vmem:[%s5027_s20 + $0xc9] sm:$0xff] }
  0x18   : > { %4124 = vmatpush3.bf16.msra.mxu1 %v4852_v8  ;;  %v5093_v49 = vpack.c.bf16 %v3627_v46, %v3626_v45  ;;  %v3670_v55 = vld [vmem:[%s5027_s20 + $0x1a] sm:$0xff]  ;;  %v3671_v56 = vld [vmem:[%s5027_s20 + $0x22] sm:$0xff]  ;;  %v1533_v58 = vpack.c.bf16 %v3629_v53, %v3628_v52  ;;  %v3672_v63 = vld [vmem:[%s5027_s20 + $0x32] sm:$0xff] }
  0x19   : > { %4316 = vmatpush3.bf16.msra.mxu0 %v4853_v9  ;;  %4125 = vmatprep.subr.bf16.mxu1 %v4854_v10  ;;  %v5112_v59 = vpack.c.bf16 %v3671_v56, %v3670_v55  ;;  %v416_v61 = vld [vmem:[%s5027_s20 + $0xd9] sm:$0xff]  ;;  %v417_v62 = vld [vmem:[%s5027_s20 + $0xe1] sm:$0xff]  ;;  %v418_v2 = vld [vmem:[%s5027_s20 + $0xf1] sm:$0xff] }
  0x1a   : > { %4317 = vmatprep.subr.bf16.mxu0 %v4855_v11  ;;  %v3673_v1 = vld [vmem:[%s5027_s20 + $0x3a] sm:$0xff]  ;;  %v3674_v5 = vld [vmem:[%s5027_s20 + $0x4a] sm:$0xff]  ;;  %v3675_v6 = vld [vmem:[%s5027_s20 + $0x52] sm:$0xff]  ;;  %v5133_v7 = vpack.c.bf16 %v417_v62, %v416_v61 }
  0x1b   : > { %v419_v3 = vld [vmem:[%s5027_s20 + $0xf9] sm:$0xff]  ;;  %v5140_v9 = vpack.c.bf16 %v3673_v1, %v3672_v63  ;;  %v4875_v12 = vld [vmem:[%s5736_s1 + $0x188] sm:$0xff]   ;;  %v421_v14 = vld [vmem:[%s5027_s20 + $0x111] sm:$0xff] }
  0x1c   : > { %4126 = vmatpush3.bf16.msra.mxu1 %v4854_v10  ;;  %v5138_v8 = vld [vmem:[%s5736_s1 + $0x80] sm:$0xff]   ;;  %v5142_v10 = vpack.c.bf16 %v419_v3, %v418_v2  ;;  %v420_v13 = vld [vmem:[%s5027_s20 + $0x109] sm:$0xff]  ;;  %v4879_v27 = vld [vmem:[%s5736_s1 + $0x198] sm:$0xff]  }
  0x1d   : > { %4318 = vmatpush3.bf16.msra.mxu0 %v4855_v11  ;;  %4127 = vmatprep.subr.bf16.mxu1 %v4856_v18  ;;  %v5144_v11 = vpack.c.bf16 %v3675_v6, %v3674_v5  ;;  %v3676_v15 = vld [vmem:[%s5027_s20 + $0x62] sm:$0xff]  ;;  %v3677_v16 = vld [vmem:[%s5027_s20 + $0x6a] sm:$0xff]  ;;  %v424_v26 = vld [vmem:[%s5027_s20 + $0x139] sm:$0xff] }
  0x1e   : > { %4319 = vmatprep.subr.bf16.mxu0 %v4857_v19  ;;  %v5167_v23 = vpack.c.bf16 %v3677_v16, %v3676_v15  ;;  %v427_v32 = vld [vmem:[%s5027_s20 + $0x159] sm:$0xff]  ;;  %v3682_v33 = vld [vmem:[%s5027_s20 + $0xaa] sm:$0xff]  ;;  %v3684_v43 = vld [vmem:[%s5027_s20 + $0xc2] sm:$0xff] }
  0x1f   : > { %v4881_v35 = vld [vmem:[%s5736_s1 + $0x1a0] sm:$0xff]   ;;  %v4883_v42 = vld [vmem:[%s5736_s1 + $0x1a8] sm:$0xff]   ;;  %v336_v55 = vld [vmem:[%s5027_s20 + $0x18] sm:$0xff] }
  0x20   : > { %4128 = vmatpush3.bf16.msra.mxu1 %v4856_v18  ;;  %v423_v18 = vld [vmem:[%s5027_s20 + $0x129] sm:$0xff]  ;;  %v334_v45 = vld [vmem:[%s5027_s20] sm:$0xff]  ;;  %v339_v62 = vld [vmem:[%s5027_s20 + $0x38] sm:$0xff] }
  0x21   : > { %4320 = vmatpush3.bf16.msra.mxu0 %v4857_v19  ;;  %4129 = vmatprep.subr.bf16.mxu1 %v4858_v20  ;;  %v3678_v19 = vld [vmem:[%s5027_s20 + $0x7a] sm:$0xff]  ;;  %v335_v46 = vld [vmem:[%s5027_s20 + $0x8] sm:$0xff]  ;;  %v338_v61 = vld [vmem:[%s5027_s20 + $0x30] sm:$0xff] }
  0x22   : > { %4321 = vmatprep.subr.bf16.mxu0 %v4859_v21  ;;  %v366_v53 = vpack.c.bf16 %v335_v46, %v334_v45  ;;  %v337_v56 = vld [vmem:[%s5027_s20 + $0x20] sm:$0xff]  ;;  %v3690_v63 = vld [vmem:[%s5027_s20 + $0x10a] sm:$0xff] }
  0x23   : > { %v5240_v1 = vld [vmem:[%s5736_s1 + $0x1c0] sm:$0xff]   ;;  %v5242_v2 = vpack.c.bf16 %v337_v56, %v336_v55  ;;  %v340_v6 = vld [vmem:[%s5027_s20 + $0x48] sm:$0xff] }
  0x24   : > { %4130 = vmatpush3.bf16.msra.mxu1 %v4858_v20  ;;  %v3679_v20 = vld [vmem:[%s5027_s20 + $0x82] sm:$0xff]  ;;  %v3693_v15 = vld [vmem:[%s5027_s20 + $0x12a] sm:$0xff] }
  0x25   : > { %4322 = vmatpush3.bf16.msra.mxu0 %v4859_v21  ;;  %4163 = vmatprep.subr.bf16.mxu1 %v4860_v22  ;;  %v4877_v21 = vld [vmem:[%s5736_s1 + $0x190] sm:$0xff]   ;;  %v342_v16 = vld [vmem:[%s5027_s20 + $0x60] sm:$0xff]  ;;  %v4890_v46 = vld [vmem:[%s5736_s1 + $0xa8] sm:$0xff]  }
  0x26   : > { %4355 = vmatprep.subr.bf16.mxu0 %v4861_v25  ;;  %v350_v55 = vld [vmem:[%s5027_s20 + $0xc0] sm:$0xff]  ;;  %v351_v56 = vld [vmem:[%s5027_s20 + $0xc8] sm:$0xff] }
  0x27   : > { %4132 = vmatmul.mubr.bf16.vlgmr.msra.gmra.mrb[0].mxu1 %v1526_v17  ;;  %v422_v17 = vld [vmem:[%s5027_s20 + $0x121] sm:$0xff] }
  0x28   : > { %4324 = vmatmul.mubr.bf16.vlgmr.msra.gmra.mrb[0].mxu0 %v1527_v28  ;;  %4164 = vmatpush3.bf16.msra.mxu1 %v4860_v22  ;;  %v5165_v22 = vpack.c.bf16 %v421_v14, %v420_v13  ;;  %v5169_v24 = vpack.c.bf16 %v423_v18, %v422_v17  ;;  %v4882_v13 = vld [vmem:[%s5736_s1 + $0x88] sm:$0xff]   ;;  %v3694_v18 = vld [vmem:[%s5027_s20 + $0x13a] sm:$0xff] }
  0x29   : > { %4356 = vmatpush3.bf16.msra.mxu0 %v4861_v25  ;;  %4135 = vmatprep.mubr.bf16.mxu1 %v1527_v28  ;;  %v5171_v25 = vpack.c.bf16 %v3679_v20, %v3678_v19  ;;  %v425_v28 = vld [vmem:[%s5027_s20 + $0x141] sm:$0xff]  ;;  %v4884_v19 = vld [vmem:[%s5736_s1 + $0x90] sm:$0xff]  }
  0x2a   : > { %4357 = vmatprep.subr.bf16.mxu0 %v4862_v29  ;;  %4327 = vmatprep.mubr.bf16.mxu0 %v1528_v30  ;;  %v3692_v14 = vld [vmem:[%s5027_s20 + $0x122] sm:$0xff] }
  0x2b   : > { %4165 = vmatprep.subr.bf16.mxu1 %v4863_v31  ;;  %v343_v17 = vld [vmem:[%s5027_s20 + $0x68] sm:$0xff] }
  0x2c   : > { %4166 = vmatpush3.bf16.msra.mxu1 %v4863_v31  ;;  %v426_v31 = vld [vmem:[%s5027_s20 + $0x151] sm:$0xff]  ;;  %v3695_v20 = vld [vmem:[%s5027_s20 + $0x142] sm:$0xff] }
  0x2d   : > { %4358 = vmatpush3.bf16.msra.mxu0 %v4862_v29  ;;  %4167 = vmatprep.subr.bf16.mxu1 %v4866_v36  ;;  %v3680_v29 = vld [vmem:[%s5027_s20 + $0x92] sm:$0xff] }
  0x2e   : > { %4359 = vmatprep.subr.bf16.mxu0 %v4864_v34 }
  0x2f   : > { %4136 = vmatmul.mubr.bf16.gmra.mrb[4].mxu1 %v1528_v30  ;;  %v3681_v30 = vld [vmem:[%s5027_s20 + $0x9a] sm:$0xff] }
  0x30   : > { %4328 = vmatmul.mubr.bf16.gmra.mrb[4].mxu0 %v1529_v38  ;;  %4139 = vmatprep.mubr.bf16.mxu1 %v1529_v38  ;;  %v5193_v37 = vpack.c.bf16 %v3681_v30, %v3680_v29  ;;  %v5195_v38 = vpack.c.bf16 %v427_v32, %v426_v31  ;;  %v345_v29 = vld [vmem:[%s5027_s20 + $0x80] sm:$0xff]  ;;  %v4886_v30 = vld [vmem:[%s5736_s1 + $0x98] sm:$0xff]  }
  0x31   : > { %4360 = vmatpush3.bf16.msra.mxu0 %v4864_v34  ;;  %4331 = vmatprep.mubr.bf16.mxu0 %v1530_v39  ;;  %v3683_v34 = vld [vmem:[%s5027_s20 + $0xb2] sm:$0xff]  ;;  %v3697_v32 = vld [vmem:[%s5027_s20 + $0x15a] sm:$0xff] }
  0x32   : > { %4361 = vmatprep.subr.bf16.mxu0 %v4865_v40  ;;  %4168 = vmatpush3.bf16.msra.mxu1 %v4866_v36  ;;  %v5191_v36 = vpack.c.bf16 %v425_v28, %v424_v26  ;;  %v5274_v26 = vpack.c.bf16 %v343_v17, %v342_v16  ;;  %v344_v28 = vld [vmem:[%s5027_s20 + $0x78] sm:$0xff]  ;;  %v4891_v16 = vld [vmem:[%s5736_s1 + $0x1c8] sm:$0xff]  }
  0x33   : > { %4169 = vmatprep.subr.bf16.mxu1 %v4869_v41  ;;  %v3696_v31 = vld [vmem:[%s5027_s20 + $0x152] sm:$0xff]  ;;  %v356_v17 = vld [vmem:[%s5027_s20 + $0x108] sm:$0xff] }
  0x35   : > { %4362 = vmatpush3.bf16.msra.mxu0 %v4865_v40  ;;  %v428_v40 = vld [vmem:[%s5027_s20 + $0x169] sm:$0xff] }
  0x36   : > { %4363 = vmatprep.subr.bf16.mxu0 %v4867_v44  ;;  %4170 = vmatpush3.bf16.msra.mxu1 %v4869_v41  ;;  %v429_v41 = vld [vmem:[%s5027_s20 + $0x171] sm:$0xff] }
  0x37   : > { %4140 = vmatmul.mubr.bf16.gmra.mrb[8].mxu1 %v1530_v39  ;;  %4171 = vmatprep.subr.bf16.mxu1 %v4872_v47  ;;  %v5197_v39 = vpack.c.bf16 %v3683_v34, %v3682_v33  ;;  %v346_v33 = vld [vmem:[%s5027_s20 + $0x90] sm:$0xff]  ;;  %v347_v34 = vld [vmem:[%s5027_s20 + $0x98] sm:$0xff] }
  0x38   : > { %4332 = vmatmul.mubr.bf16.gmra.mrb[8].mxu0 %v1531_v48  ;;  %4143 = vmatprep.mubr.bf16.mxu1 %v1531_v48  ;;  %v3687_v48 = vld [vmem:[%s5027_s20 + $0xe2] sm:$0xff] }
  0x39   : > { %4364 = vmatpush3.bf16.msra.mxu0 %v4867_v44  ;;  %4335 = vmatprep.mubr.bf16.mxu0 %v5093_v49  ;;  %v3685_v44 = vld [vmem:[%s5027_s20 + $0xca] sm:$0xff] }
  0x3a   : > { %4365 = vmatprep.subr.bf16.mxu0 %v4868_v50  ;;  %4172 = vmatpush3.bf16.msra.mxu1 %v4872_v47  ;;  %v3686_v47 = vld [vmem:[%s5027_s20 + $0xda] sm:$0xff]  ;;  %v5219_v52 = vpack.c.bf16 %v3685_v44, %v3684_v43  ;;  %v5298_v43 = vpack.c.bf16 %v3697_v32, %v3696_v31  ;;  %v5300_v44 = vpack.c.bf16 %v347_v34, %v346_v33  ;;  %v362_v33 = vld [vmem:[%s5027_s20 + $0x150] sm:$0xff] }
  0x3b   : > { %4173 = vmatprep.subr.bf16.mxu1 %v4874_v51  ;;  %v360_v31 = vld [vmem:[%s5027_s20 + $0x138] sm:$0xff]  ;;  %v361_v32 = vld [vmem:[%s5027_s20 + $0x140] sm:$0xff] }
  0x3c   : > { %v363_v34 = vld [vmem:[%s5027_s20 + $0x158] sm:$0xff] }
  0x3d   : > { %4366 = vmatpush3.bf16.msra.mxu0 %v4868_v50  ;;  %v4885_v50 = vld [vmem:[%s5736_s1 + $0x1b0] sm:$0xff]  }
  0x3e   : > { %4367 = vmatprep.subr.bf16.mxu0 %v4870_v54  ;;  %4174 = vmatpush3.bf16.msra.mxu1 %v4874_v51  ;;  %v5217_v51 = vpack.c.bf16 %v429_v41, %v428_v40  ;;  %v3699_v40 = vld [vmem:[%s5027_s20 + $0x172] sm:$0xff]  ;;  %v4888_v41 = vld [vmem:[%s5736_s1 + $0xa0] sm:$0xff]  }
  0x3f   : > { %4144 = vmatmul.mubr.bf16.gmra.mrb[12].mxu1 %v5093_v49  ;;  %4175 = vmatprep.subr.bf16.mxu1 %v4876_v57 }
  0x40   : > { %4336 = vmatmul.mubr.bf16.gmra.mrb[12].mxu0 %v1533_v58  ;;  %4147 = vmatprep.mubr.bf16.mxu1 %v1533_v58  ;;  %v3688_v58 = vld [vmem:[%s5027_s20 + $0xf2] sm:$0xff] }
  0x41   : > { %4368 = vmatpush3.bf16.msra.mxu0 %v4870_v54  ;;  %4371 = vmatprep.mubr.bf16.mxu0 %v5112_v59  ;;  %v5221_v54 = vpack.c.bf16 %v3687_v48, %v3686_v47  ;;  %v348_v47 = vld [vmem:[%s5027_s20 + $0xa8] sm:$0xff]  ;;  %v349_v48 = vld [vmem:[%s5027_s20 + $0xb0] sm:$0xff] }
  0x42   : > { %4369 = vmatprep.subr.bf16.mxu0 %v4871_v60  ;;  %4176 = vmatpush3.bf16.msra.mxu1 %v4876_v57  ;;  %v4887_v57 = vld [vmem:[%s5736_s1 + $0x1b8] sm:$0xff]  }
  0x43   : > { %4177 = vmatprep.subr.bf16.mxu1 %v4878_v0 }
  0x45   : > { %4370 = vmatpush3.bf16.msra.mxu0 %v4871_v60  ;;  %v3689_v60 = vld [vmem:[%s5027_s20 + $0xfa] sm:$0xff] }
  0x46   : > { %4403 = vmatprep.subr.bf16.mxu0 %v4873_v4  ;;  %4178 = vmatpush3.bf16.msra.mxu1 %v4878_v0  ;;  %v3691_v0 = vld [vmem:[%s5027_s20 + $0x112] sm:$0xff]  ;;  %v5244_v3 = vpack.c.bf16 %v3689_v60, %v3688_v58  ;;  %v5320_v58 = vpack.c.bf16 %v349_v48, %v348_v47  ;;  %v364_v47 = vld [vmem:[%s5027_s20 + $0x168] sm:$0xff] }
  0x47   : > { %4148 = vmatmul.mubr.bf16.gmra.mrb[16].mxu1 %v5133_v7  ;;  %4211 = vmatprep.subr.bf16.mxu1 %v5138_v8  ;;  %v5248_v5 = vpack.c.bf16 %v3691_v0, %v3690_v63  ;;  %v352_v63 = vld [vmem:[%s5027_s20 + $0xd8] sm:$0xff]  ;;  %v353_v0 = vld [vmem:[%s5027_s20 + $0xe0] sm:$0xff]  ;;  %v365_v48 = vld [vmem:[%s5027_s20 + $0x170] sm:$0xff] }
  0x48   : > { %4372 = vmatmul.mubr.bf16.vlgmr.msra.gmra.mrb[0].mxu0 %v5140_v9  ;;  %4151 = vmatprep.mubr.bf16.mxu1 %v5142_v10 }
  0x49   : > { %4404 = vmatpush3.bf16.msra.mxu0 %v4873_v4  ;;  %4375 = vmatprep.mubr.bf16.mxu0 %v5144_v11  ;;  %v5246_v4 = vpack.c.bf16 %v339_v62, %v338_v61  ;;  %v5322_v61 = vpack.c.bf16 %v351_v56, %v350_v55  ;;  %v4894_v62 = vld [vmem:[%s5736_s1 + $0xb8] sm:$0xff]   ;;  %v4901_v55 = vld [vmem:[%s5736_s1 + $0x1f0] sm:$0xff]   ;;  %v5395_v56 = vpack.c.bf16 %v365_v48, %v364_v47 }
  0x4a   : > { %4405 = vmatprep.subr.bf16.mxu0 %v4875_v12  ;;  %v3790_v47 = vld [vmem:[%s5027_s20 + $0x91] sm:$0xff]  ;;  %v3791_v48 = vld [vmem:[%s5027_s20 + $0x99] sm:$0xff] }
  0x4d   : > { %4406 = vmatpush3.bf16.msra.mxu0 %v4875_v12  ;;  %v341_v12 = vld [vmem:[%s5027_s20 + $0x50] sm:$0xff] }
  0x4e   : > { %4407 = vmatprep.subr.bf16.mxu0 %v4877_v21 }
  0x4f   : > { %4152 = vmatmul.mubr.bf16.gmra.mrb[20].mxu1 %v5165_v22 }
  0x50   : > { %4376 = vmatmul.mubr.bf16.gmra.mrb[4].mxu0 %v5167_v23  ;;  %4155 = vmatprep.mubr.bf16.mxu1 %v5169_v24 }
  0x51   : > { %4379 = vmatprep.mubr.bf16.mxu0 %v5171_v25  ;;  %4408 = vmatpush3.bf16.msra.mxu0 %v4877_v21  ;;  %v5270_v21 = vpack.c.bf16 %v341_v12, %v340_v6  ;;  %v354_v6 = vld [vmem:[%s5027_s20 + $0xf0] sm:$0xff]  ;;  %v355_v12 = vld [vmem:[%s5027_s20 + $0xf8] sm:$0xff] }
  0x52   : > { %4409 = vmatprep.subr.bf16.mxu0 %v4879_v27 }
  0x55   : > { %4410 = vmatpush3.bf16.msra.mxu0 %v4879_v27  ;;  %v5276_v27 = vpack.c.bf16 %v3695_v20, %v3694_v18  ;;  %v357_v18 = vld [vmem:[%s5027_s20 + $0x110] sm:$0xff]  ;;  %v359_v20 = vld [vmem:[%s5027_s20 + $0x128] sm:$0xff] }
  0x56   : > { %4411 = vmatprep.subr.bf16.mxu0 %v4881_v35 }
  0x57   : > { %4156 = vmatmul.mubr.bf16.gmra.mrb[24].mxu1 %v5191_v36 }
  0x58   : > { %4380 = vmatmul.mubr.bf16.gmra.mrb[8].mxu0 %v5193_v37  ;;  %4159 = vmatprep.mubr.bf16.mxu1 %v5195_v38 }
  0x59   : > { %4383 = vmatprep.mubr.bf16.mxu0 %v5197_v39  ;;  %4412 = vmatpush3.bf16.msra.mxu0 %v4881_v35  ;;  %v3698_v35 = vld [vmem:[%s5027_s20 + $0x16a] sm:$0xff] }
  0x5a   : > { %4413 = vmatprep.subr.bf16.mxu0 %v4883_v42  ;;  %v5302_v45 = vpack.c.bf16 %v3699_v40, %v3698_v35  ;;  %v4897_v35 = vld [vmem:[%s5736_s1 + $0x1e0] sm:$0xff]   ;;  %v5377_v40 = vpack.c.bf16 %v361_v32, %v360_v31  ;;  %v3787_v32 = vld [vmem:[%s5027_s20 + $0x69] sm:$0xff] }
  0x5b   : > { %v3786_v31 = vld [vmem:[%s5027_s20 + $0x61] sm:$0xff] }
  0x5d   : > { %4414 = vmatpush3.bf16.msra.mxu0 %v4883_v42  ;;  %v5296_v42 = vpack.c.bf16 %v345_v29, %v344_v28  ;;  %v4893_v28 = vld [vmem:[%s5736_s1 + $0x1d0] sm:$0xff]   ;;  %v5359_v29 = vpack.c.bf16 %v357_v18, %v356_v17  ;;  %v3783_v18 = vld [vmem:[%s5027_s20 + $0x39] sm:$0xff] }
  0x5e   : > { %4415 = vmatprep.subr.bf16.mxu0 %v4885_v50  ;;  %v3782_v17 = vld [vmem:[%s5027_s20 + $0x31] sm:$0xff] }
  0x5f   : > { %4160 = vmatmul.mubr.bf16.gmra.mrb[28].mxu1 %v5217_v51 }
  0x60   : > { %4384 = vmatmul.mubr.bf16.gmra.mrb[12].mxu0 %v5219_v52  ;;  %4179 = vmatprep.mubr.bf16.mxu1 %v366_v53  ;;  %v3701_v53 = vld [vmem:[%s5027_s20 + $0x18a] sm:$0xff] }
  0x61   : > { %4387 = vmatprep.mubr.bf16.mxu0 %v5221_v54  ;;  %4416 = vmatpush3.bf16.msra.mxu0 %v4885_v50  ;;  %v3700_v50 = vld [vmem:[%s5027_s20 + $0x182] sm:$0xff] }
  0x62   : > { %4417 = vmatprep.subr.bf16.mxu0 %v4887_v57  ;;  %v1847_v60 = vpack.c.bf16 %v3701_v53, %v3700_v50  ;;  %v881_v50 = vld [vmem:[%s5027_s20 + $0x2] sm:$0xff]  ;;  %v882_v53 = vld [vmem:[%s5027_s20 + $0xa] sm:$0xff] }
  0x65   : > { %4418 = vmatpush3.bf16.msra.mxu0 %v4887_v57  ;;  %v4892_v57 = vld [vmem:[%s5736_s1 + $0xb0] sm:$0xff]  }
  0x66   : > { %4451 = vmatprep.subr.bf16.mxu0 %v5240_v1 }
  0x67   : > { %4180 = vmatmul.mubr.bf16.vlgmr.msra.gmra.mrb[0].mxu1 %v5242_v2 }
  0x68   : > { %4388 = vmatmul.mubr.bf16.gmra.mrb[16].mxu0 %v5244_v3  ;;  %4212 = vmatpush3.bf16.msra.mxu1 %v5138_v8  ;;  %v5272_v8 = vpack.c.bf16 %v3693_v15, %v3692_v14  ;;  %v5339_v14 = vpack.c.bf16 %v353_v0, %v352_v63  ;;  %v5341_v15 = vpack.c.bf16 %v355_v12, %v354_v6  ;;  %v4898_v63 = vld [vmem:[%s5736_s1 + $0xc8] sm:$0xff]   ;;  %v4900_v0 = vld [vmem:[%s5736_s1 + $0xd0] sm:$0xff]   ;;  %v4904_v12 = vld [vmem:[%s5736_s1 + $0xe0] sm:$0xff]  }
  0x69   : > { %4183 = vmatprep.mubr.bf16.mxu1 %v5246_v4  ;;  %4391 = vmatprep.mubr.bf16.mxu0 %v5248_v5  ;;  %v3755_v6 = vld [vmem:[%s5027_s20 + $0x188] sm:$0xff] }
  0x6a   : > { %4213 = vmatprep.subr.bf16.mxu1 %v4882_v13 }
  0x6c   : > { %4214 = vmatpush3.bf16.msra.mxu1 %v4882_v13  ;;  %v5337_v13 = vld [vmem:[%s5736_s1 + $0xc0] sm:$0xff]  }
  0x6d   : > { %4215 = vmatprep.subr.bf16.mxu1 %v4884_v19 }
  0x6f   : > { %4184 = vmatmul.mubr.bf16.gmra.mrb[4].mxu1 %v5270_v21 }
  0x70   : > { %4392 = vmatmul.mubr.bf16.gmra.mrb[20].mxu0 %v5272_v8  ;;  %4187 = vmatprep.mubr.bf16.mxu1 %v5274_v26 }
  0x71   : > { %4395 = vmatprep.mubr.bf16.mxu0 %v5276_v27  ;;  %4216 = vmatpush3.bf16.msra.mxu1 %v4884_v19  ;;  %v358_v19 = vld [vmem:[%s5027_s20 + $0x120] sm:$0xff] }
  0x72   : > { %4217 = vmatprep.subr.bf16.mxu1 %v4886_v30 }
  0x75   : > { %4218 = vmatpush3.bf16.msra.mxu1 %v4886_v30  ;;  %v5361_v30 = vpack.c.bf16 %v359_v20, %v358_v19  ;;  %v2445_v20 = vpack.c.bf16 %v3783_v18, %v3782_v17  ;;  %v3850_v17 = vld [vmem:[%s5027_s20 + $0xc2] sm:$0xff]  ;;  %v3851_v18 = vld [vmem:[%s5027_s20 + $0xca] sm:$0xff] }
  0x76   : > { %4219 = vmatprep.subr.bf16.mxu1 %v4888_v41 }
  0x77   : > { %4188 = vmatmul.mubr.bf16.gmra.mrb[8].mxu1 %v5296_v42 }
  0x78   : > { %4396 = vmatmul.mubr.bf16.gmra.mrb[24].mxu0 %v5298_v43  ;;  %4191 = vmatprep.mubr.bf16.mxu1 %v5300_v44 }
  0x79   : > { %4399 = vmatprep.mubr.bf16.mxu0 %v5302_v45  ;;  %4220 = vmatpush3.bf16.msra.mxu1 %v4888_v41  ;;  %v5379_v41 = vpack.c.bf16 %v363_v34, %v362_v33  ;;  %v2447_v34 = vpack.c.bf16 %v3787_v32, %v3786_v31 }
  0x7a   : > { %4221 = vmatprep.subr.bf16.mxu1 %v4890_v46 }
  0x7d   : > { %4222 = vmatpush3.bf16.msra.mxu1 %v4890_v46  ;;  %v4899_v46 = vld [vmem:[%s5736_s1 + $0x1e8] sm:$0xff]  }
  0x7e   : > { %4223 = vmatprep.subr.bf16.mxu1 %v4892_v57 }
  0x7f   : > { %4192 = vmatmul.mubr.bf16.gmra.mrb[12].mxu1 %v5320_v58 }
  0x80   : > { %4400 = vmatmul.mubr.bf16.gmra.mrb[28].mxu0 %v1847_v60  ;;  %4195 = vmatprep.mubr.bf16.mxu1 %v5322_v61  ;;  %v4903_v60 = vld [vmem:[%s5736_s1 + $0x1f8] sm:$0xff]  }
  0x81   : > { %4419 = vmatprep.mubr.bf16.mxu0 %v5246_v4  ;;  %4224 = vmatpush3.bf16.msra.mxu1 %v4892_v57  ;;  %v913_v57 = vpack.c.bf16 %v882_v53, %v881_v50  ;;  %v4909_v50 = vld [vmem:[%s5736_s1 + $0x210] sm:$0xff]  }
  0x82   : > { %4225 = vmatprep.subr.bf16.mxu1 %v4894_v62 }
  0x85   : > { %4226 = vmatpush3.bf16.msra.mxu1 %v4894_v62  ;;  %v4905_v62 = vld [vmem:[%s5736_s1 + $0x200] sm:$0xff]  }
  0x86   : > { %4259 = vmatprep.subr.bf16.mxu1 %v5337_v13 }
  0x87   : > { %4196 = vmatmul.mubr.bf16.gmra.mrb[16].mxu1 %v5339_v14 }
  0x88   : > { %4420 = vmatmul.mubr.bf16.vlgmr.msra.gmra.mrb[0].mxu0 %v5270_v21  ;;  %4199 = vmatprep.mubr.bf16.mxu1 %v5341_v15 }
  0x89   : > { %4452 = vmatpush3.bf16.msra.mxu0 %v5240_v1  ;;  %4423 = vmatprep.mubr.bf16.mxu0 %v5274_v26  ;;  %v4895_v1 = vld [vmem:[%s5736_s1 + $0x1d8] sm:$0xff]  }
  0x8a   : > { %4453 = vmatprep.subr.bf16.mxu0 %v4891_v16 }
  0x8d   : > { %4454 = vmatpush3.bf16.msra.mxu0 %v4891_v16  ;;  %v3757_v16 = vld [vmem:[%s5027_s20 + $0x1a0] sm:$0xff] }
  0x8e   : > { %4455 = vmatprep.subr.bf16.mxu0 %v4893_v28 }
  0x8f   : > { %4200 = vmatmul.mubr.bf16.gmra.mrb[20].mxu1 %v5359_v29 }
  0x90   : > { %4424 = vmatmul.mubr.bf16.gmra.mrb[4].mxu0 %v5296_v42  ;;  %4203 = vmatprep.mubr.bf16.mxu1 %v5361_v30 }
  0x91   : > { %4427 = vmatprep.mubr.bf16.mxu0 %v5300_v44  ;;  %4456 = vmatpush3.bf16.msra.mxu0 %v4893_v28  ;;  %v3784_v28 = vld [vmem:[%s5027_s20 + $0x49] sm:$0xff] }
  0x92   : > { %4457 = vmatprep.subr.bf16.mxu0 %v4895_v1 }
  0x95   : > { %4458 = vmatpush3.bf16.msra.mxu0 %v4895_v1  ;;  %v3785_v1 = vld [vmem:[%s5027_s20 + $0x51] sm:$0xff] }
  0x96   : > { %4459 = vmatprep.subr.bf16.mxu0 %v4897_v35  ;;  %v2446_v33 = vpack.c.bf16 %v3785_v1, %v3784_v28  ;;  %v3854_v28 = vld [vmem:[%s5027_s20 + $0xf2] sm:$0xff]  ;;  %v3855_v1 = vld [vmem:[%s5027_s20 + $0xfa] sm:$0xff] }
  0x97   : > { %4204 = vmatmul.mubr.bf16.gmra.mrb[24].mxu1 %v5377_v40  ;;  %v2759_v32 = vpack.c.bf16 %v3855_v1, %v3854_v28  ;;  %v5614_v28 = vld [vmem:[%s5738_s3] ss:$0 sm:$0xff] }
  0x98   : > { %4428 = vmatmul.mubr.bf16.gmra.mrb[8].mxu0 %v5320_v58  ;;  %4207 = vmatprep.mubr.bf16.mxu1 %v5379_v41 }
  0x99   : > { %4431 = vmatprep.mubr.bf16.mxu0 %v5322_v61  ;;  %4460 = vmatpush3.bf16.msra.mxu0 %v4897_v35  ;;  %v3788_v35 = vld [vmem:[%s5027_s20 + $0x79] sm:$0xff] }
  0x9a   : > { %4461 = vmatprep.subr.bf16.mxu0 %v4899_v46 }
  0x9d   : > { %4462 = vmatpush3.bf16.msra.mxu0 %v4899_v46  ;;  %v3789_v46 = vld [vmem:[%s5027_s20 + $0x81] sm:$0xff] }
  0x9e   : > { %4463 = vmatprep.subr.bf16.mxu0 %v4901_v55  ;;  %v2448_v53 = vpack.c.bf16 %v3789_v46, %v3788_v35  ;;  %v3635_v35 = vld [vmem:[%s5027_s20 + $0x111] sm:$0xff]  ;;  %v3858_v46 = vld [vmem:[%s5027_s20 + $0x122] sm:$0xff] }
  0x9f   : > { %4208 = vmatmul.mubr.bf16.gmra.mrb[28].mxu1 %v5395_v56 }
  0xa0   : > { %4432 = vmatmul.mubr.bf16.gmra.mrb[12].mxu0 %v5339_v14  ;;  %4227 = vmatprep.mubr.bf16.mxu1 %v913_v57  ;;  %v3795_v57 = vld [vmem:[%s5027_s20 + $0xc9] sm:$0xff] }
  0xa1   : > { %4435 = vmatprep.mubr.bf16.mxu0 %v5341_v15  ;;  %4464 = vmatpush3.bf16.msra.mxu0 %v4901_v55  ;;  %v2449_v55 = vpack.c.bf16 %v3791_v48, %v3790_v47  ;;  %v3859_v47 = vld [vmem:[%s5027_s20 + $0x12a] sm:$0xff] }
  0xa2   : > { %4465 = vmatprep.subr.bf16.mxu0 %v4903_v60 }
  0xa5   : > { %4466 = vmatpush3.bf16.msra.mxu0 %v4903_v60  ;;  %v4912_v60 = vld [vmem:[%s5736_s1 + $0x220] sm:$0xff]  }
  0xa6   : > { %4499 = vmatprep.subr.bf16.mxu0 %v4905_v62 }
  0xa7   : > { %4228 = vmatmul.mubr.bf16.vlgmr.msra.gmra.mrb[0].mxu1 %v5112_v59  ;;  %v4902_v59 = vld [vmem:[%s5736_s1 + $0xd8] sm:$0xff]  }
  0xa8   : > { %4436 = vmatmul.mubr.bf16.gmra.mrb[16].mxu0 %v5359_v29  ;;  %4260 = vmatpush3.bf16.msra.mxu1 %v5337_v13 }
  0xa9   : > { %4231 = vmatprep.mubr.bf16.mxu1 %v5140_v9  ;;  %4439 = vmatprep.mubr.bf16.mxu0 %v5361_v30  ;;  %v3754_v9 = vld [vmem:[%s5027_s20 + $0x180] sm:$0xff] }
  0xaa   : > { %4261 = vmatprep.subr.bf16.mxu1 %v4898_v63  ;;  %v5429_v13 = vpack.c.bf16 %v3755_v6, %v3754_v9  ;;  %v3845_v6 = vld [vmem:[%s5027_s20 + $0x82] sm:$0xff] }
  0xac   : > { %4262 = vmatpush3.bf16.msra.mxu1 %v4898_v63  ;;  %v4913_v63 = vld [vmem:[%s5736_s1 + $0x228] sm:$0xff]  }
  0xad   : > { %4263 = vmatprep.subr.bf16.mxu1 %v4900_v0 }
  0xaf   : > { %4232 = vmatmul.mubr.bf16.gmra.mrb[4].mxu1 %v5144_v11  ;;  %v4906_v11 = vld [vmem:[%s5736_s1 + $0xe8] sm:$0xff]  }
  0xb0   : > { %4440 = vmatmul.mubr.bf16.gmra.mrb[20].mxu0 %v5377_v40  ;;  %4235 = vmatprep.mubr.bf16.mxu1 %v5167_v23  ;;  %v3756_v23 = vld [vmem:[%s5027_s20 + $0x198] sm:$0xff] }
  0xb1   : > { %4443 = vmatprep.mubr.bf16.mxu0 %v5379_v41  ;;  %4264 = vmatpush3.bf16.msra.mxu1 %v4900_v0  ;;  %v2154_v19 = vpack.c.bf16 %v3757_v16, %v3756_v23  ;;  %v3843_v0 = vld [vmem:[%s5027_s20 + $0x6a] sm:$0xff] }
  0xb2   : > { %4265 = vmatprep.subr.bf16.mxu1 %v4902_v59 }
  0xb5   : > { %4266 = vmatpush3.bf16.msra.mxu1 %v4902_v59  ;;  %v4923_v59 = vld [vmem:[%s5736_s1 + $0x138] sm:$0xff]  }
  0xb6   : > { %4267 = vmatprep.subr.bf16.mxu1 %v4904_v12 }
  0xb7   : > { %4236 = vmatmul.mubr.bf16.gmra.mrb[8].mxu1 %v5171_v25  ;;  %v4908_v25 = vld [vmem:[%s5736_s1 + $0xf0] sm:$0xff]  }
  0xb8   : > { %4444 = vmatmul.mubr.bf16.gmra.mrb[24].mxu0 %v5395_v56  ;;  %4239 = vmatprep.mubr.bf16.mxu1 %v5193_v37  ;;  %v4910_v37 = vld [vmem:[%s5736_s1 + $0xf8] sm:$0xff]  }
  0xb9   : > { %4447 = vmatprep.mubr.bf16.mxu0 %v5429_v13  ;;  %4268 = vmatpush3.bf16.msra.mxu1 %v4904_v12  ;;  %v3846_v12 = vld [vmem:[%s5027_s20 + $0x92] sm:$0xff] }
  0xba   : > { %4269 = vmatprep.subr.bf16.mxu1 %v4906_v11 }
  0xbd   : > { %4270 = vmatpush3.bf16.msra.mxu1 %v4906_v11  ;;  %v3847_v11 = vld [vmem:[%s5027_s20 + $0x9a] sm:$0xff] }
  0xbe   : > { %4271 = vmatprep.subr.bf16.mxu1 %v4908_v25  ;;  %v2755_v16 = vpack.c.bf16 %v3847_v11, %v3846_v12 }
  0xbf   : > { %4240 = vmatmul.mubr.bf16.gmra.mrb[12].mxu1 %v5197_v39  ;;  %v4907_v39 = vld [vmem:[%s5736_s1 + $0x208] sm:$0xff]  }
  0xc0   : > { %4448 = vmatmul.mubr.bf16.gmra.mrb[28].mxu0 %v2154_v19  ;;  %4243 = vmatprep.mubr.bf16.mxu1 %v5219_v52  ;;  %v4916_v52 = vld [vmem:[%s5736_s1 + $0x100] sm:$0xff]   ;;  %v2757_v19 = vpack.c.bf16 %v3851_v18, %v3850_v17 }
  0xc1   : > { %4467 = vmatprep.mubr.bf16.mxu0 %v2445_v20  ;;  %4272 = vmatpush3.bf16.msra.mxu1 %v4908_v25  ;;  %v3630_v20 = vld [vmem:[%s5027_s20 + $0xd9] sm:$0xff] }
  0xc2   : > { %4273 = vmatprep.subr.bf16.mxu1 %v4910_v37 }
  0xc5   : > { %4274 = vmatpush3.bf16.msra.mxu1 %v4910_v37  ;;  %v3631_v37 = vld [vmem:[%s5027_s20 + $0xe1] sm:$0xff] }
  0xc6   : > { %4547 = vmatprep.subr.bf16.mxu1 %v4916_v52 }
  0xc7   : > { %4244 = vmatmul.mubr.bf16.gmra.mrb[16].mxu1 %v5221_v54  ;;  %v4911_v54 = vld [vmem:[%s5736_s1 + $0x218] sm:$0xff]  }
  0xc8   : > { %4468 = vmatmul.mubr.bf16.vlgmr.msra.gmra.mrb[0].mxu0 %v2446_v33  ;;  %4247 = vmatprep.mubr.bf16.mxu1 %v5244_v3  ;;  %v3794_v3 = vld [vmem:[%s5027_s20 + $0xc1] sm:$0xff]  ;;  %v3633_v33 = vld [vmem:[%s5027_s20 + $0xf9] sm:$0xff] }
  0xc9   : > { %4500 = vmatpush3.bf16.msra.mxu0 %v4905_v62  ;;  %4471 = vmatprep.mubr.bf16.mxu0 %v2447_v34  ;;  %v2451_v62 = vpack.c.bf16 %v3795_v57, %v3794_v3  ;;  %v3856_v34 = vld [vmem:[%s5027_s20 + $0x10a] sm:$0xff]  ;;  %v3860_v3 = vld [vmem:[%s5027_s20 + $0x13a] sm:$0xff]  ;;  %v3861_v57 = vld [vmem:[%s5027_s20 + $0x142] sm:$0xff] }
  0xca   : > { %4501 = vmatprep.subr.bf16.mxu0 %v4907_v39 }
  0xcd   : > { %4502 = vmatpush3.bf16.msra.mxu0 %v4907_v39  ;;  %v3857_v39 = vld [vmem:[%s5027_s20 + $0x112] sm:$0xff] }
  0xce   : > { %4503 = vmatprep.subr.bf16.mxu0 %v4909_v50  ;;  %v2760_v48 = vpack.c.bf16 %v3857_v39, %v3856_v34 }
  0xcf   : > { %4248 = vmatmul.mubr.bf16.gmra.mrb[20].mxu1 %v5248_v5  ;;  %v4914_v5 = vld [vmem:[%s5736_s1 + $0x230] sm:$0xff]  }
  0xd0   : > { %4472 = vmatmul.mubr.bf16.gmra.mrb[4].mxu0 %v2448_v53  ;;  %4251 = vmatprep.mubr.bf16.mxu1 %v5272_v8  ;;  %v4915_v8 = vld [vmem:[%s5736_s1 + $0x238] sm:$0xff]   ;;  %v2761_v53 = vpack.c.bf16 %v3859_v47, %v3858_v46 }
  0xd1   : > { %4475 = vmatprep.mubr.bf16.mxu0 %v2449_v55  ;;  %4504 = vmatpush3.bf16.msra.mxu0 %v4909_v50  ;;  %v3636_v55 = vld [vmem:[%s5027_s20 + $0x121] sm:$0xff] }
  0xd2   : > { %4505 = vmatprep.subr.bf16.mxu0 %v4911_v54 }
  0xd5   : > { %4506 = vmatpush3.bf16.msra.mxu0 %v4911_v54  ;;  %v3637_v54 = vld [vmem:[%s5027_s20 + $0x129] sm:$0xff] }
  0xd6   : > { %4507 = vmatprep.subr.bf16.mxu0 %v4912_v60 }
  0xd7   : > { %4252 = vmatmul.mubr.bf16.gmra.mrb[24].mxu1 %v5276_v27  ;;  %v4921_v27 = vld [vmem:[%s5736_s1 + $0x128] sm:$0xff]  }
  0xd8   : > { %4476 = vmatmul.mubr.bf16.gmra.mrb[8].mxu0 %v5093_v49  ;;  %4255 = vmatprep.mubr.bf16.mxu1 %v5298_v43  ;;  %v4917_v49 = vld [vmem:[%s5736_s1 + $0x108] sm:$0xff]   ;;  %v4922_v43 = vld [vmem:[%s5736_s1 + $0x130] sm:$0xff]  }
  0xd9   : > { %4479 = vmatprep.mubr.bf16.mxu0 %v2451_v62  ;;  %4508 = vmatpush3.bf16.msra.mxu0 %v4912_v60  ;;  %v3638_v60 = vld [vmem:[%s5027_s20 + $0x139] sm:$0xff]  ;;  %v3639_v62 = vld [vmem:[%s5027_s20 + $0x141] sm:$0xff] }
  0xda   : > { %4509 = vmatprep.subr.bf16.mxu0 %v4913_v63 }
  0xdd   : > { %4510 = vmatpush3.bf16.msra.mxu0 %v4913_v63  ;;  %v3862_v63 = vld [vmem:[%s5027_s20 + $0x152] sm:$0xff] }
  0xde   : > { %4511 = vmatprep.subr.bf16.mxu0 %v4914_v5 }
  0xdf   : > { %4256 = vmatmul.mubr.bf16.gmra.mrb[28].mxu1 %v5302_v45  ;;  %v3841_v45 = vld [vmem:[%s5027_s20 + $0x52] sm:$0xff] }
  0xe0   : > { %4480 = vmatmul.mubr.bf16.gmra.mrb[12].mxu0 %v5133_v7  ;;  %4275 = vmatprep.mubr.bf16.mxu1 %v5242_v2  ;;  %v4918_v7 = vld [vmem:[%s5736_s1 + $0x110] sm:$0xff]  }
  0xe1   : > { %4483 = vmatprep.mubr.bf16.mxu0 %v5142_v10  ;;  %4512 = vmatpush3.bf16.msra.mxu0 %v4914_v5  ;;  %v3810_v10 = vld [vmem:[%s5027_s20 + $0x181] sm:$0xff] }
  0xe2   : > { %4513 = vmatprep.subr.bf16.mxu0 %v4915_v8  ;;  %v3863_v5 = vld [vmem:[%s5027_s20 + $0x15a] sm:$0xff] }
  0xe5   : > { %4514 = vmatpush3.bf16.msra.mxu0 %v4915_v8  ;;  %v1537_v8 = vpack.c.bf16 %v3637_v54, %v3636_v55 }
  0xe7   : > { %4276 = vmatmul.mubr.bf16.vlgmr.msra.gmra.mrb[0].mxu1 %v5246_v4  ;;  %v3813_v4 = vld [vmem:[%s5027_s20 + $0x1a1] sm:$0xff] }
  0xe8   : > { %4484 = vmatmul.mubr.bf16.gmra.mrb[16].mxu0 %v5165_v22  ;;  %4555 = vmatpush3.bf16.msra.mxu1 %v4916_v52  ;;  %v3811_v22 = vld [vmem:[%s5027_s20 + $0x189] sm:$0xff] }
  0xe9   : > { %4279 = vmatprep.mubr.bf16.mxu1 %v5270_v21  ;;  %4487 = vmatprep.mubr.bf16.mxu0 %v5169_v24  ;;  %v4919_v24 = vld [vmem:[%s5736_s1 + $0x118] sm:$0xff]   ;;  %v5514_v2 = vpack.c.bf16 %v3811_v22, %v3810_v10  ;;  %v3634_v52 = vld [vmem:[%s5027_s20 + $0x109] sm:$0xff]  ;;  %v2763_v10 = vpack.c.bf16 %v3863_v5, %v3862_v63 }
  0xea   : > { %4548 = vmatprep.subr.bf16.mxu1 %v4917_v49  ;;  %v3838_v21 = vld [vmem:[%s5027_s20 + $0x32] sm:$0xff]  ;;  %v1536_v50 = vpack.c.bf16 %v3635_v35, %v3634_v52 }
  0xeb   : > { %v3640_v22 = vld [vmem:[%s5027_s20 + $0x151] sm:$0xff] }
  0xec   : > { %4556 = vmatpush3.bf16.msra.mxu1 %v4917_v49  ;;  %v2762_v49 = vpack.c.bf16 %v3861_v57, %v3860_v3 }
  0xed   : > { %4549 = vmatprep.subr.bf16.mxu1 %v4918_v7 }
  0xef   : > { %4280 = vmatmul.mubr.bf16.gmra.mrb[4].mxu1 %v5274_v26  ;;  %v3839_v26 = vld [vmem:[%s5027_s20 + $0x3a] sm:$0xff] }
  0xf0   : > { %4488 = vmatmul.mubr.bf16.gmra.mrb[20].mxu0 %v5191_v36  ;;  %4283 = vmatprep.mubr.bf16.mxu1 %v5296_v42  ;;  %v4920_v36 = vld [vmem:[%s5736_s1 + $0x120] sm:$0xff]  }
  0xf1   : > { %4491 = vmatprep.mubr.bf16.mxu0 %v5195_v38  ;;  %4557 = vmatpush3.bf16.msra.mxu1 %v4918_v7  ;;  %v3812_v38 = vld [vmem:[%s5027_s20 + $0x199] sm:$0xff]  ;;  %v1538_v7 = vpack.c.bf16 %v3639_v62, %v3638_v60 }
  0xf2   : > { %4550 = vmatprep.subr.bf16.mxu1 %v4919_v24  ;;  %v2460_v42 = vpack.c.bf16 %v3813_v4, %v3812_v38  ;;  %v3865_v38 = vld [vmem:[%s5027_s20 + $0x172] sm:$0xff]  ;;  %v3642_v4 = vld [vmem:[%s5027_s20 + $0x169] sm:$0xff] }
  0xf5   : > { %4558 = vmatpush3.bf16.msra.mxu1 %v4919_v24  ;;  %v3641_v24 = vld [vmem:[%s5027_s20 + $0x159] sm:$0xff] }
  0xf6   : > { %4551 = vmatprep.subr.bf16.mxu1 %v4920_v36 }
  0xf7   : > { %4284 = vmatmul.mubr.bf16.gmra.mrb[8].mxu1 %v5300_v44  ;;  %v3840_v44 = vld [vmem:[%s5027_s20 + $0x4a] sm:$0xff] }
  0xf8   : > { %4492 = vmatmul.mubr.bf16.gmra.mrb[24].mxu0 %v5217_v51  ;;  %4287 = vmatprep.mubr.bf16.mxu1 %v5320_v58  ;;  %v2751_v51 = vpack.c.bf16 %v3839_v26, %v3838_v21  ;;  %v3842_v58 = vld [vmem:[%s5027_s20 + $0x62] sm:$0xff]  ;;  %v2752_v9 = vpack.c.bf16 %v3841_v45, %v3840_v44  ;;  %v3643_v21 = vld [vmem:[%s5027_s20 + $0x171] sm:$0xff]  ;;  %v3868_v45 = vld [vmem:[%s5027_s20 + $0x19a] sm:$0xff] }
  0xf9   : > { %4495 = vmatprep.mubr.bf16.mxu0 %v5514_v2  ;;  %4559 = vmatpush3.bf16.msra.mxu1 %v4920_v36  ;;  %v3864_v36 = vld [vmem:[%s5027_s20 + $0x16a] sm:$0xff]  ;;  %v3866_v26 = vld [vmem:[%s5027_s20 + $0x182] sm:$0xff] }
  0xfa   : > { %4552 = vmatprep.subr.bf16.mxu1 %v4921_v27 }
  0xfd   : > { %4560 = vmatpush3.bf16.msra.mxu1 %v4921_v27  ;;  %v3867_v27 = vld [vmem:[%s5027_s20 + $0x18a] sm:$0xff] }
  0xfe   : > { %4553 = vmatprep.subr.bf16.mxu1 %v4922_v43  ;;  %v2765_v44 = vpack.c.bf16 %v3867_v27, %v3866_v26 }
  0xff   : > { %4288 = vmatmul.mubr.bf16.gmra.mrb[12].mxu1 %v5322_v61  ;;  %v2753_v61 = vpack.c.bf16 %v3843_v0, %v3842_v58  ;;  %v3869_v58 = vld [vmem:[%s5027_s20 + $0x1a2] sm:$0xff] }
 0x100   : > { %4496 = vmatmul.mubr.bf16.gmra.mrb[28].mxu0 %v2460_v42  ;;  %4291 = vmatprep.mubr.bf16.mxu1 %v5339_v14  ;;  %v3844_v14 = vld [vmem:[%s5027_s20 + $0x7a] sm:$0xff]  ;;  %v1539_v42 = vpack.c.bf16 %v3641_v24, %v3640_v22  ;;  %v2766_v0 = vpack.c.bf16 %v3869_v58, %v3868_v45 }
 0x101   : > { %4515 = vmatprep.mubr.bf16.mxu0 %v2751_v51  ;;  %4561 = vmatpush3.bf16.msra.mxu1 %v4922_v43  ;;  %v2754_v23 = vpack.c.bf16 %v3845_v6, %v3844_v14  ;;  %v2764_v51 = vpack.c.bf16 %v3865_v38, %v3864_v36  ;;  %v1540_v43 = vpack.c.bf16 %v3643_v21, %v3642_v4 }
 0x102   : > { %4554 = vmatprep.subr.bf16.mxu1 %v4923_v59 }
 0x105   : > { %4562 = vmatpush3.bf16.msra.mxu1 %v4923_v59 }
 0x107   : > { %4292 = vmatmul.mubr.bf16.gmra.mrb[16].mxu1 %v5341_v15  ;;  %v3848_v15 = vld [vmem:[%s5027_s20 + $0xaa] sm:$0xff] }
 0x108   : > { %4516 = vmatmul.mubr.bf16.vlgmr.msra.gmra.mrb[0].mxu0 %v2752_v9  ;;  %4295 = vmatprep.mubr.bf16.mxu1 %v5359_v29  ;;  %v3849_v29 = vld [vmem:[%s5027_s20 + $0xb2] sm:$0xff] }
 0x109   : > { %4519 = vmatprep.mubr.bf16.mxu0 %v2753_v61  ;;  %v2756_v25 = vpack.c.bf16 %v3849_v29, %v3848_v15 }
 0x10f   : > { %4296 = vmatmul.mubr.bf16.gmra.mrb[20].mxu1 %v5361_v30  ;;  %v3852_v30 = vld [vmem:[%s5027_s20 + $0xda] sm:$0xff] }
 0x110   : > { %4520 = vmatmul.mubr.bf16.gmra.mrb[4].mxu0 %v2754_v23  ;;  %4299 = vmatprep.mubr.bf16.mxu1 %v5377_v40  ;;  %v3853_v40 = vld [vmem:[%s5027_s20 + $0xe2] sm:$0xff] }
 0x111   : > { %4523 = vmatprep.mubr.bf16.mxu0 %v2755_v16  ;;  %v2758_v31 = vpack.c.bf16 %v3853_v40, %v3852_v30  ;;  %v5609_v40 = vld [vmem:[%s5737_s2] ss:$0 sm:$0xff] }
 0x117   : > { %4300 = vmatmul.mubr.bf16.gmra.mrb[24].mxu1 %v5379_v41  ;;  %v1534_v41 = vpack.c.bf16 %v3631_v37, %v3630_v20 }
 0x118   : > { %4524 = vmatmul.mubr.bf16.gmra.mrb[8].mxu0 %v2756_v25  ;;  %4303 = vmatprep.mubr.bf16.mxu1 %v5395_v56  ;;  %v3632_v56 = vld [vmem:[%s5027_s20 + $0xf1] sm:$0xff] }
 0x119   : > { %4527 = vmatprep.mubr.bf16.mxu0 %v2757_v19 }
 0x11f   : > { %4304 = vmatmul.mubr.bf16.gmra.mrb[28].mxu1 %v5429_v13  ;;  %v1535_v13 = vpack.c.bf16 %v3633_v33, %v3632_v56 }
 0x120   : > { %4528 = vmatmul.mubr.bf16.gmra.mrb[12].mxu0 %v2758_v31  ;;  %4339 = vmatprep.mubr.bf16.mxu1 %v1534_v41 }
 0x121   : > { %4531 = vmatprep.mubr.bf16.mxu0 %v2759_v32 }
 0x127   : > { %4340 = vmatmul.mubr.bf16.vlgmr.msra.gmra.mrb[16].mxu1 %v1535_v13 }
 0x128   : > { %4532 = vmatmul.mubr.bf16.gmra.mrb[16].mxu0 %v2760_v48  ;;  %4343 = vmatprep.mubr.bf16.mxu1 %v1536_v50 }
 0x129   : > { %4535 = vmatprep.mubr.bf16.mxu0 %v2761_v53 }
 0x12f   : > { %4344 = vmatmul.mubr.bf16.gmra.mrb[20].mxu1 %v1537_v8 }
 0x130   : > { %4536 = vmatmul.mubr.bf16.gmra.mrb[20].mxu0 %v2762_v49  ;;  %4347 = vmatprep.mubr.bf16.mxu1 %v1538_v7 }
 0x131   : > { %4539 = vmatprep.mubr.bf16.mxu0 %v2763_v10 }
 0x137   : > { %4348 = vmatmul.mubr.bf16.gmra.mrb[24].mxu1 %v1539_v42 }
 0x138   : > { %4540 = vmatmul.mubr.bf16.gmra.mrb[24].mxu0 %v2764_v51  ;;  %4351 = vmatprep.mubr.bf16.mxu1 %v1540_v43 }
 0x139   : > { %4543 = vmatprep.mubr.bf16.mxu0 %v2765_v44 }
 0x13f   : > { %4352 = vmatmul.mubr.bf16.gmra.mrb[28].mxu1 %v5514_v2 }
 0x140   : > { %4544 = vmatmul.mubr.bf16.gmra.mrb[28].mxu0 %v2766_v0 }
 0x1ba   : > { %v4277_v59 = vpop.f32.mrb[0].mxu1 }
 0x1bb   : > { %v1335_v9 = vpop.f32.mrb[1].mxu1 }
 0x1bc   : > { %v4278_v61 = vpop.f32.mrb[2].mxu1 }
 0x1bd   : > { %v1338_v14 = vpop.f32.mrb[3].mxu1 }
 0x1c2   : > { %v4281_v6 = vpop.f32.mrb[4].mxu1 }
 0x1c3   : > { %v1351_v12 = vpop.f32.mrb[5].mxu1 }
 0x1c4   : > { %v4282_v11 = vpop.f32.mrb[6].mxu1 }
 0x1c5   : > { %v1354_v23 = vpop.f32.mrb[7].mxu1 }
 0x1ca   : > { %v5590_v16 = vpop.f32.mrb[8].mxu1 }
 0x1cb   : > { %v5592_v15 = vpop.f32.mrb[9].mxu1 }
 0x1cc   : > { %v5594_v29 = vpop.f32.mrb[10].mxu1 }
 0x1cd   : > { %v5596_v17 = vpop.f32.mrb[11].mxu1 }
 0x1d2   : > { %v5598_v18 = vpop.f32.mrb[12].mxu1 }
 0x1d3   : > { %v5600_v2 = vpop.f32.mrb[13].mxu1 }
 0x1d4   : > { %v5602_v25 = vpop.f32.mrb[14].mxu1 }
 0x1d5   : > { %v5604_v19 = vpop.f32.mrb[15].mxu1 }
 0x1db   : > { %v4517_v30 = vpop.f32.mrb[0].mxu0 }
 0x1dc   : > { %v4563_v20 = vadd.f32 %v4517_v30, %v4277_v59  ;;  %v2866_v37 = vpop.f32.mrb[1].mxu0 }
 0x1dd   : > { %v4564_v1 = vadd.f32 %v2866_v37, %v1335_v9  ;;  %v4518_v31 = vpop.f32.mrb[2].mxu0 }
 0x1de   : > { %v3165_v41 = vmul.f32 %v4563_v20, %v5609_v40  ;;  %v4565_v32 = vadd.f32 %v4518_v31, %v4278_v61  ;;  %v2869_v56 = vpop.f32.mrb[3].mxu0 }
 0x1df   : > { %v3163_v33 = vmul.f32 %v4564_v1, %v5609_v40  ;;  %v4566_v34 = vadd.f32 %v2869_v56, %v1338_v14 }
 0x1e0   : > { %v3204_v39 = vadd.f32 %v5614_v28, %v3165_v41  ;;  %v3166_v52 = vmul.f32 %v4565_v32, %v5609_v40 }
 0x1e1   : > { %v3202_v35 = vadd.f32 %v5614_v28, %v3163_v33  ;;  %v3164_v46 = vmul.f32 %v4566_v34, %v5609_v40 }
 0x1e2   : > { %vm3236_vm0 = vcmp.gt.f32.partialorder %v3204_v39, 0.0  ;;  %v3268_v47 = vmul.f32 0.1, %v3204_v39  ;;  %v3205_v13 = vadd.f32 %v5614_v28, %v3166_v52 }
 0x1e3   : > { %vm3234_vm1 = vcmp.gt.f32.partialorder %v3202_v35, 0.0  ;;  %v3266_v48 = vmul.f32 0.1, %v3202_v35  ;;  %v3203_v50 = vadd.f32 %v5614_v28, %v3164_v46  ;;  %v4521_v53 = vpop.f32.mrb[4].mxu0 }
 0x1e4   : > { %v3300_v55 = vsel %vm3236_vm0, %v3204_v39, %v3268_v47  ;;  %vm3237_vm2 = vcmp.gt.f32.partialorder %v3205_v13, 0.0  ;;  %v3269_v54 = vmul.f32 0.1, %v3205_v13  ;;  %v4567_v3 = vadd.f32 %v4521_v53, %v4281_v6  ;;  %v2882_v57 = vpop.f32.mrb[5].mxu0 }
 0x1e5   : > { %3332 = vst [vmem:[%s5626_s19 + $0x10] sm:$0xff] %v3300_v55  ;;  %v3298_v60 = vsel %vm3234_vm1, %v3202_v35, %v3266_v48  ;;  %vm3235_vm3 = vcmp.gt.f32.partialorder %v3203_v50, 0.0  ;;  %v3267_v62 = vmul.f32 0.1, %v3203_v50  ;;  %v4568_v63 = vadd.f32 %v2882_v57, %v1351_v12  ;;  %v4522_v5 = vpop.f32.mrb[6].mxu0 }
 0x1e6   : > { %3330 = vst [vmem:[%s5626_s19] sm:$0xff] %v3298_v60  ;;  %v3301_v8 = vsel %vm3237_vm2, %v3205_v13, %v3269_v54  ;;  %v3169_v49 = vmul.f32 %v4567_v3, %v5609_v40  ;;  %v4569_v7 = vadd.f32 %v4522_v5, %v4282_v11  ;;  %v2885_v10 = vpop.f32.mrb[7].mxu0 }
 0x1e7   : > { %3333 = vst [vmem:[%s5626_s19 + $0x18] sm:$0xff] %v3301_v8  ;;  %v3299_v22 = vsel %vm3235_vm3, %v3203_v50, %v3267_v62  ;;  %v3167_v24 = vmul.f32 %v4568_v63, %v5609_v40  ;;  %v4570_v36 = vadd.f32 %v2885_v10, %v1354_v23 }
 0x1e8   : > { %3331 = vst [vmem:[%s5626_s19 + $0x8] sm:$0xff] %v3299_v22  ;;  %v3208_v38 = vadd.f32 %v5614_v28, %v3169_v49  ;;  %v3170_v4 = vmul.f32 %v4569_v7, %v5609_v40 }
 0x1e9   : > { %v3206_v21 = vadd.f32 %v5614_v28, %v3167_v24  ;;  %v3168_v26 = vmul.f32 %v4570_v36, %v5609_v40 }
 0x1ea   : > { %vm3240_vm4 = vcmp.gt.f32.partialorder %v3208_v38, 0.0  ;;  %v3272_v27 = vmul.f32 0.1, %v3208_v38  ;;  %v3209_v42 = vadd.f32 %v5614_v28, %v3170_v4 }
 0x1eb   : > { %vm3238_vm5 = vcmp.gt.f32.partialorder %v3206_v21, 0.0  ;;  %v3270_v51 = vmul.f32 0.1, %v3206_v21  ;;  %v3207_v43 = vadd.f32 %v5614_v28, %v3168_v26  ;;  %v4525_v44 = vpop.f32.mrb[8].mxu0 }
 0x1ec   : > { %v3304_v45 = vsel %vm3240_vm4, %v3208_v38, %v3272_v27  ;;  %vm3241_vm6 = vcmp.gt.f32.partialorder %v3209_v42, 0.0  ;;  %v3273_v58 = vmul.f32 0.1, %v3209_v42  ;;  %v4571_v0 = vadd.f32 %v4525_v44, %v5590_v16  ;;  %v2898_v59 = vpop.f32.mrb[9].mxu0 }
 0x1ed   : > { %3336 = vst [vmem:[%s5626_s19 + $0x30] sm:$0xff] %v3304_v45  ;;  %v3302_v9 = vsel %vm3238_vm5, %v3206_v21, %v3270_v51  ;;  %vm3239_vm7 = vcmp.gt.f32.partialorder %v3207_v43, 0.0  ;;  %v3271_v61 = vmul.f32 0.1, %v3207_v43  ;;  %v4572_v14 = vadd.f32 %v2898_v59, %v5592_v15  ;;  %v4526_v6 = vpop.f32.mrb[10].mxu0 }
 0x1ee   : > { %3334 = vst [vmem:[%s5626_s19 + $0x20] sm:$0xff] %v3302_v9  ;;  %v3305_v12 = vsel %vm3241_vm6, %v3209_v42, %v3273_v58  ;;  %v3173_v11 = vmul.f32 %v4571_v0, %v5609_v40  ;;  %v4573_v23 = vadd.f32 %v4526_v6, %v5594_v29  ;;  %v2901_v30 = vpop.f32.mrb[11].mxu0 }
 0x1ef   : > { %3337 = vst [vmem:[%s5626_s19 + $0x38] sm:$0xff] %v3305_v12  ;;  %v3303_v20 = vsel %vm3239_vm7, %v3207_v43, %v3271_v61  ;;  %v3171_v16 = vmul.f32 %v4572_v14, %v5609_v40  ;;  %v4574_v37 = vadd.f32 %v2901_v30, %v5596_v17 }
 0x1f0   : > { %3335 = vst [vmem:[%s5626_s19 + $0x28] sm:$0xff] %v3303_v20  ;;  %v3212_v1 = vadd.f32 %v5614_v28, %v3173_v11  ;;  %v3174_v15 = vmul.f32 %v4573_v23, %v5609_v40 }
 0x1f1   : > { %v3210_v31 = vadd.f32 %v5614_v28, %v3171_v16  ;;  %v3172_v41 = vmul.f32 %v4574_v37, %v5609_v40 }
 0x1f2   : > { %vm3244_vm8 = vcmp.gt.f32.partialorder %v3212_v1, 0.0  ;;  %v3276_v32 = vmul.f32 0.1, %v3212_v1  ;;  %v3213_v29 = vadd.f32 %v5614_v28, %v3174_v15 }
 0x1f3   : > { %vm3242_vm9 = vcmp.gt.f32.partialorder %v3210_v31, 0.0  ;;  %v3274_v56 = vmul.f32 0.1, %v3210_v31  ;;  %v3211_v33 = vadd.f32 %v5614_v28, %v3172_v41  ;;  %v4529_v17 = vpop.f32.mrb[12].mxu0 }
 0x1f4   : > { %v3308_v34 = vsel %vm3244_vm8, %v3212_v1, %v3276_v32  ;;  %vm3245_vm10 = vcmp.gt.f32.partialorder %v3213_v29, 0.0  ;;  %v3277_v39 = vmul.f32 0.1, %v3213_v29  ;;  %v4575_v52 = vadd.f32 %v4529_v17, %v5598_v18  ;;  %v2914_v35 = vpop.f32.mrb[13].mxu0 }
 0x1f5   : > { %3340 = vst [vmem:[%s5626_s19 + $0x50] sm:$0xff] %v3308_v34  ;;  %v3306_v46 = vsel %vm3242_vm9, %v3210_v31, %v3274_v56  ;;  %vm3243_vm11 = vcmp.gt.f32.partialorder %v3211_v33, 0.0  ;;  %v3275_v47 = vmul.f32 0.1, %v3211_v33  ;;  %v4576_v13 = vadd.f32 %v2914_v35, %v5600_v2  ;;  %v4530_v48 = vpop.f32.mrb[14].mxu0 }
 0x1f6   : > { %3338 = vst [vmem:[%s5626_s19 + $0x40] sm:$0xff] %v3306_v46  ;;  %v3309_v50 = vsel %vm3245_vm10, %v3213_v29, %v3277_v39  ;;  %v3177_v53 = vmul.f32 %v4575_v52, %v5609_v40  ;;  %v4577_v55 = vadd.f32 %v4530_v48, %v5602_v25  ;;  %v2917_v54 = vpop.f32.mrb[15].mxu0 }
 0x1f7   : > { %3341 = vst [vmem:[%s5626_s19 + $0x58] sm:$0xff] %v3309_v50  ;;  %v3307_v3 = vsel %vm3243_vm11, %v3211_v33, %v3275_v47  ;;  %v3175_v18 = vmul.f32 %v4576_v13, %v5609_v40  ;;  %v4578_v57 = vadd.f32 %v2917_v54, %v5604_v19 }
 0x1f8   : > { %3339 = vst [vmem:[%s5626_s19 + $0x48] sm:$0xff] %v3307_v3  ;;  %v3216_v60 = vadd.f32 %v5614_v28, %v3177_v53  ;;  %v3178_v62 = vmul.f32 %v4577_v55, %v5609_v40 }
 0x1f9   : > { %v3214_v2 = vadd.f32 %v5614_v28, %v3175_v18  ;;  %v3176_v63 = vmul.f32 %v4578_v57, %v5609_v40 }
 0x1fa   : > { %vm3248_vm12 = vcmp.gt.f32.partialorder %v3216_v60, 0.0  ;;  %v3280_v5 = vmul.f32 0.1, %v3216_v60  ;;  %v3217_v25 = vadd.f32 %v5614_v28, %v3178_v62  ;;  %v4341_v8 = vpop.f32.mrb[16].mxu1 }
 0x1fb   : > { %vm3246_vm13 = vcmp.gt.f32.partialorder %v3214_v2, 0.0  ;;  %v3278_v49 = vmul.f32 0.1, %v3214_v2  ;;  %v3215_v7 = vadd.f32 %v5614_v28, %v3176_v63  ;;  %v4533_v19 = vpop.f32.mrb[16].mxu0  ;;  %v1705_v10 = vpop.f32.mrb[17].mxu1 }
 0x1fc   : > { %v3312_v22 = vsel %vm3248_vm12, %v3216_v60, %v3280_v5  ;;  %vm3249_vm14 = vcmp.gt.f32.partialorder %v3217_v25, 0.0  ;;  %v3281_v24 = vmul.f32 0.1, %v3217_v25  ;;  %v4579_v36 = vadd.f32 %v4533_v19, %v4341_v8  ;;  %v2930_v38 = vpop.f32.mrb[17].mxu0  ;;  %v4342_v4 = vpop.f32.mrb[18].mxu1 }
 0x1fd   : > { %3344 = vst [vmem:[%s5626_s19 + $0x70] sm:$0xff] %v3312_v22  ;;  %v3310_v21 = vsel %vm3246_vm13, %v3214_v2, %v3278_v49  ;;  %vm3247_vm15 = vcmp.gt.f32.partialorder %v3215_v7, 0.0  ;;  %v3279_v26 = vmul.f32 0.1, %v3215_v7  ;;  %v4580_v27 = vadd.f32 %v2930_v38, %v1705_v10  ;;  %v4534_v42 = vpop.f32.mrb[18].mxu0  ;;  %v1708_v51 = vpop.f32.mrb[19].mxu1 }
 0x1fe   : > { %3342 = vst [vmem:[%s5626_s19 + $0x60] sm:$0xff] %v3310_v21  ;;  %v3313_v43 = vsel %vm3249_vm14, %v3217_v25, %v3281_v24  ;;  %v3181_v44 = vmul.f32 %v4579_v36, %v5609_v40  ;;  %v4581_v45 = vadd.f32 %v4534_v42, %v4342_v4  ;;  %v2933_v58 = vpop.f32.mrb[19].mxu0 }
 0x1ff   : > { %3345 = vst [vmem:[%s5626_s19 + $0x78] sm:$0xff] %v3313_v43  ;;  %v3311_v0 = vsel %vm3247_vm15, %v3215_v7, %v3279_v26  ;;  %v3179_v59 = vmul.f32 %v4580_v27, %v5609_v40  ;;  %v4582_v9 = vadd.f32 %v2933_v58, %v1708_v51 }
 0x200   : > { %3343 = vst [vmem:[%s5626_s19 + $0x68] sm:$0xff] %v3311_v0  ;;  %v3220_v61 = vadd.f32 %v5614_v28, %v3181_v44  ;;  %v3182_v14 = vmul.f32 %v4581_v45, %v5609_v40 }
 0x201   : > { %v3218_v6 = vadd.f32 %v5614_v28, %v3179_v59  ;;  %v3180_v12 = vmul.f32 %v4582_v9, %v5609_v40 }
 0x202   : > { %vm3252_vm0 = vcmp.gt.f32.partialorder %v3220_v61, 0.0  ;;  %v3284_v11 = vmul.f32 0.1, %v3220_v61  ;;  %v3221_v23 = vadd.f32 %v5614_v28, %v3182_v14  ;;  %v4345_v30 = vpop.f32.mrb[20].mxu1 }
 0x203   : > { %vm3250_vm1 = vcmp.gt.f32.partialorder %v3218_v6, 0.0  ;;  %v3282_v20 = vmul.f32 0.1, %v3218_v6  ;;  %v3219_v16 = vadd.f32 %v5614_v28, %v3180_v12  ;;  %v4537_v37 = vpop.f32.mrb[20].mxu0  ;;  %v1721_v1 = vpop.f32.mrb[21].mxu1 }
 0x204   : > { %v3316_v15 = vsel %vm3252_vm0, %v3220_v61, %v3284_v11  ;;  %vm3253_vm2 = vcmp.gt.f32.partialorder %v3221_v23, 0.0  ;;  %v3285_v31 = vmul.f32 0.1, %v3221_v23  ;;  %v4583_v41 = vadd.f32 %v4537_v37, %v4345_v30  ;;  %v2946_v32 = vpop.f32.mrb[21].mxu0  ;;  %v4346_v29 = vpop.f32.mrb[22].mxu1 }
 0x205   : > { %3348 = vst [vmem:[%s5626_s19 + $0x90] sm:$0xff] %v3316_v15  ;;  %v3314_v56 = vsel %vm3250_vm1, %v3218_v6, %v3282_v20  ;;  %vm3251_vm3 = vcmp.gt.f32.partialorder %v3219_v16, 0.0  ;;  %v3283_v33 = vmul.f32 0.1, %v3219_v16  ;;  %v4584_v17 = vadd.f32 %v2946_v32, %v1721_v1  ;;  %v4538_v34 = vpop.f32.mrb[22].mxu0  ;;  %v1724_v39 = vpop.f32.mrb[23].mxu1 }
 0x206   : > { %3346 = vst [vmem:[%s5626_s19 + $0x80] sm:$0xff] %v3314_v56  ;;  %v3317_v52 = vsel %vm3253_vm2, %v3221_v23, %v3285_v31  ;;  %v3185_v35 = vmul.f32 %v4583_v41, %v5609_v40  ;;  %v4585_v46 = vadd.f32 %v4538_v34, %v4346_v29  ;;  %v2949_v47 = vpop.f32.mrb[23].mxu0 }
 0x207   : > { %3349 = vst [vmem:[%s5626_s19 + $0x98] sm:$0xff] %v3317_v52  ;;  %v3315_v13 = vsel %vm3251_vm3, %v3219_v16, %v3283_v33  ;;  %v3183_v48 = vmul.f32 %v4584_v17, %v5609_v40  ;;  %v4586_v50 = vadd.f32 %v2949_v47, %v1724_v39 }
 0x208   : > { %3347 = vst [vmem:[%s5626_s19 + $0x88] sm:$0xff] %v3315_v13  ;;  %v3224_v53 = vadd.f32 %v5614_v28, %v3185_v35  ;;  %v3186_v55 = vmul.f32 %v4585_v46, %v5609_v40 }
 0x209   : > { %v3222_v54 = vadd.f32 %v5614_v28, %v3183_v48  ;;  %v3184_v3 = vmul.f32 %v4586_v50, %v5609_v40 }
 0x20a   : > { %vm3256_vm4 = vcmp.gt.f32.partialorder %v3224_v53, 0.0  ;;  %v3288_v18 = vmul.f32 0.1, %v3224_v53  ;;  %v3225_v57 = vadd.f32 %v5614_v28, %v3186_v55  ;;  %v4349_v60 = vpop.f32.mrb[24].mxu1 }
 0x20b   : > { %vm3254_vm5 = vcmp.gt.f32.partialorder %v3222_v54, 0.0  ;;  %v3286_v62 = vmul.f32 0.1, %v3222_v54  ;;  %v3223_v2 = vadd.f32 %v5614_v28, %v3184_v3  ;;  %v4541_v63 = vpop.f32.mrb[24].mxu0  ;;  %v1737_v5 = vpop.f32.mrb[25].mxu1 }
 0x20c   : > { %v3320_v25 = vsel %vm3256_vm4, %v3224_v53, %v3288_v18  ;;  %vm3257_vm6 = vcmp.gt.f32.partialorder %v3225_v57, 0.0  ;;  %v3289_v8 = vmul.f32 0.1, %v3225_v57  ;;  %v4587_v49 = vadd.f32 %v4541_v63, %v4349_v60  ;;  %v2962_v7 = vpop.f32.mrb[25].mxu0  ;;  %v4350_v19 = vpop.f32.mrb[26].mxu1 }
 0x20d   : > { %3352 = vst [vmem:[%s5626_s19 + $0xb0] sm:$0xff] %v3320_v25  ;;  %v3318_v10 = vsel %vm3254_vm5, %v3222_v54, %v3286_v62  ;;  %vm3255_vm7 = vcmp.gt.f32.partialorder %v3223_v2, 0.0  ;;  %v3287_v22 = vmul.f32 0.1, %v3223_v2  ;;  %v4588_v24 = vadd.f32 %v2962_v7, %v1737_v5  ;;  %v4542_v36 = vpop.f32.mrb[26].mxu0  ;;  %v1740_v38 = vpop.f32.mrb[27].mxu1 }
 0x20e   : > { %3350 = vst [vmem:[%s5626_s19 + $0xa0] sm:$0xff] %v3318_v10  ;;  %v3321_v4 = vsel %vm3257_vm6, %v3225_v57, %v3289_v8  ;;  %v3189_v21 = vmul.f32 %v4587_v49, %v5609_v40  ;;  %v4589_v26 = vadd.f32 %v4542_v36, %v4350_v19  ;;  %v2965_v27 = vpop.f32.mrb[27].mxu0 }
 0x20f   : > { %3353 = vst [vmem:[%s5626_s19 + $0xb8] sm:$0xff] %v3321_v4  ;;  %v3319_v42 = vsel %vm3255_vm7, %v3223_v2, %v3287_v22  ;;  %v3187_v51 = vmul.f32 %v4588_v24, %v5609_v40  ;;  %v4590_v43 = vadd.f32 %v2965_v27, %v1740_v38 }
 0x210   : > { %3351 = vst [vmem:[%s5626_s19 + $0xa8] sm:$0xff] %v3319_v42  ;;  %v3228_v44 = vadd.f32 %v5614_v28, %v3189_v21  ;;  %v3190_v45 = vmul.f32 %v4589_v26, %v5609_v40 }
 0x211   : > { %v3226_v58 = vadd.f32 %v5614_v28, %v3187_v51  ;;  %v3188_v0 = vmul.f32 %v4590_v43, %v5609_v40 }
 0x212   : > { %vm3260_vm8 = vcmp.gt.f32.partialorder %v3228_v44, 0.0  ;;  %v3292_v59 = vmul.f32 0.1, %v3228_v44  ;;  %v3229_v9 = vadd.f32 %v5614_v28, %v3190_v45  ;;  %v4353_v61 = vpop.f32.mrb[28].mxu1 }
 0x213   : > { %vm3258_vm9 = vcmp.gt.f32.partialorder %v3226_v58, 0.0  ;;  %v3290_v14 = vmul.f32 0.1, %v3226_v58  ;;  %v3227_v6 = vadd.f32 %v5614_v28, %v3188_v0  ;;  %v4545_v12 = vpop.f32.mrb[28].mxu0  ;;  %v1753_v11 = vpop.f32.mrb[29].mxu1 }
 0x214   : > { %v3324_v23 = vsel %vm3260_vm8, %v3228_v44, %v3292_v59  ;;  %vm3261_vm10 = vcmp.gt.f32.partialorder %v3229_v9, 0.0  ;;  %v3293_v30 = vmul.f32 0.1, %v3229_v9  ;;  %v4591_v20 = vadd.f32 %v4545_v12, %v4353_v61  ;;  %v2978_v16 = vpop.f32.mrb[29].mxu0  ;;  %v4354_v37 = vpop.f32.mrb[30].mxu1 }
 0x215   : > { %3356 = vst [vmem:[%s5626_s19 + $0xd0] sm:$0xff] %v3324_v23  ;;  %v3322_v1 = vsel %vm3258_vm9, %v3226_v58, %v3290_v14  ;;  %vm3259_vm11 = vcmp.gt.f32.partialorder %v3227_v6, 0.0  ;;  %v3291_v15 = vmul.f32 0.1, %v3227_v6  ;;  %v4592_v31 = vadd.f32 %v2978_v16, %v1753_v11  ;;  %v4546_v41 = vpop.f32.mrb[30].mxu0  ;;  %v1756_v32 = vpop.f32.mrb[31].mxu1 }
 0x216   : > { %3354 = vst [vmem:[%s5626_s19 + $0xc0] sm:$0xff] %v3322_v1  ;;  %v3325_v29 = vsel %vm3261_vm10, %v3229_v9, %v3293_v30  ;;  %v3193_v56 = vmul.f32 %v4591_v20, %v5609_v40  ;;  %v4593_v33 = vadd.f32 %v4546_v41, %v4354_v37  ;;  %v2981_v17 = vpop.f32.mrb[31].mxu0 }
 0x217   : > { %3357 = vst [vmem:[%s5626_s19 + $0xd8] sm:$0xff] %v3325_v29  ;;  %v3323_v34 = vsel %vm3259_vm11, %v3227_v6, %v3291_v15  ;;  %v3191_v39 = vmul.f32 %v4592_v31, %v5609_v40  ;;  %v4594_v52 = vadd.f32 %v2981_v17, %v1756_v32 }
 0x218   : > { %3355 = vst [vmem:[%s5626_s19 + $0xc8] sm:$0xff] %v3323_v34  ;;  %v3232_v35 = vadd.f32 %v5614_v28, %v3193_v56  ;;  %v3194_v46 = vmul.f32 %v4593_v33, %v5609_v40 }
 0x219   : > { %v3230_v47 = vadd.f32 %v5614_v28, %v3191_v39  ;;  %v3192_v13 = vmul.f32 %v4594_v52, %v5609_v40 }
 0x21a   : > { %vm3264_vm12 = vcmp.gt.f32.partialorder %v3232_v35, 0.0  ;;  %v3296_v48 = vmul.f32 0.1, %v3232_v35  ;;  %v3233_v50 = vadd.f32 %v5614_v28, %v3194_v46 }
 0x21b   : > { %vm3262_vm13 = vcmp.gt.f32.partialorder %v3230_v47, 0.0  ;;  %v3294_v53 = vmul.f32 0.1, %v3230_v47  ;;  %v3231_v55 = vadd.f32 %v5614_v28, %v3192_v13 }
 0x21c   : > { %v3328_v54 = vsel %vm3264_vm12, %v3232_v35, %v3296_v48  ;;  %vm3265_vm14 = vcmp.gt.f32.partialorder %v3233_v50, 0.0  ;;  %v3297_v3 = vmul.f32 0.1, %v3233_v50 }
 0x21d   : > { %3360 = vst [vmem:[%s5626_s19 + $0xf0] sm:$0xff] %v3328_v54  ;;  %v3326_v18 = vsel %vm3262_vm13, %v3230_v47, %v3294_v53  ;;  %vm3263_vm15 = vcmp.gt.f32.partialorder %v3231_v55, 0.0  ;;  %v3295_v57 = vmul.f32 0.1, %v3231_v55 }
 0x21e   : > { %3358 = vst [vmem:[%s5626_s19 + $0xe0] sm:$0xff] %v3326_v18  ;;  %v3329_v60 = vsel %vm3265_vm14, %v3233_v50, %v3297_v3 }
 0x21f   : > { %3361 = vst [vmem:[%s5626_s19 + $0xf8] sm:$0xff] %v3329_v60  ;;  %v3327_v40 = vsel %vm3263_vm15, %v3231_v55, %v3295_v57 }
 0x220   : > { %3359 = vst [vmem:[%s5626_s19 + $0xe8] sm:$0xff] %v3327_v40 }
 0x221 PF: > { %s14_s17 = sadd.s32 1, %s4946_s17   ;;  %s5740_s15 = smov %s4942_s16 }
 0x222   : > { %p11_p5 = scmp.ge.s32.totalorder %s14_s17, 4   ;;  %s5741_s16 = smov %s5743_s18 }
 0x224   :  { %13 = sbr.rel (!%p11_p5) target bundleno = 2 (0x2), region = 93 }

// kernel: darknet_forward.18
= control target key start
LH: loop header
LB: loop body
LE: loop exit
PB: predicated region body
PF: predicated region fallthrough
CT: control target
= control target key end

     0   :  { %s1396_s15 = smov 0   ;;  %s1398_s16 = smov 0   ;;  %s1711_s0 = inlined_call_operand.vmem [shape: f32[2,16,16,256], index: 0, kind: input, shape index: {}]   ;;  %s1712_s1 = inlined_call_operand.vmem [shape: bf16[1,256,128], index: 1, kind: input, shape index: {}]   ;;  %s1713_s2 = inlined_call_operand.vmem [shape: f32[1,128], index: 2, kind: input, shape index: {}]   ;;  %s1714_s3 = inlined_call_operand.vmem [shape: f32[1,128], index: 3, kind: input, shape index: {}]   ;;  %s1715_s4 = inlined_call_operand.vmem [shape: f32[2,16,16,128], index: 4, kind: output, shape index: {}]  }
   0x1   :  { %s1400_s17 = smov 0   ;;  %s1402_s18 = smov 0  }
   0x2   :  { %s1404_s19 = smov 0   ;;  %s1406_s20 = smov 0  }
   0x3   :  { %s1408_s21 = smov 0  }
   0x4 LB: > { %s26_s22 = sadd.s32 1, %s1360_s19  ;;  %s33_s23 = sadd.s32 1, %s1364_s20  ;;  %s1368_s21 = sphi %s1408_s21, %s14_s21   ;;  %s1364_s20 = sphi %s1406_s20, %s1721_s20   ;;  %s1360_s19 = sphi %s1404_s19, %s1720_s19   ;;  %s1356_s18 = sphi %s1402_s18, %s1719_s18   ;;  %s1352_s17 = sphi %s1400_s17, %s1718_s17   ;;  %s1348_s16 = sphi %s1398_s16, %s1717_s16   ;;  %s1344_s15 = sphi %s1396_s15, %s1716_s15  }
   0x5   : > { %p27_p0 = scmp.ge.s32.totalorder %s26_s22, 2  ;;  %p49_p1 = scmp.ne.s32.totalorder %s1348_s16, %s1344_s15 }
   0x6   : > { %p50_p2 = scmp.eq.s32.totalorder %s1368_s21, 0  ;;  %s42_s27 = sadd.s32 1, %s1348_s16 }
   0x7   : > { %s1723_s22 = smov (%p27_p0, %s26_s22), 0  ;;  %s1725_s23 = smov (!%p27_p0, %s33_s23), %s1364_s20 }
   0x8   : > { %p51_p3 = por %p50_p2, %p49_p1  ;;  %p35_p4 = scmp.ge.s32.totalorder %s1725_s23, 2 }
   0x9   : > { %s38_s24 = ssub.s32 %s1360_s19, %s1723_s22  ;;  %p1136_p6 = scmp.ge.s32.totalorder %s1368_s21, 4 }
   0xa   : > { %s1727_s23 = smov (%p35_p4, %s1725_s23), 0 }
   0xb   : > { %s37_s25 = ssub.s32 %s1364_s20, %s1727_s23  ;;  %195 = sbr.rel (%p1136_p6) target bundleno = 40 (0x28), region = 24 }
   0xc   : > { %s39_s26 = sor.u32 %s38_s24, %s37_s25 }
   0xd   : > { %p40_p5 = scmp.eq.s32.totalorder %s39_s26, 0 }
   0xf   : > { %s1447_s28 = scalar_select %p40_p5, %s1348_s16, %s42_s27  }
  0x12   : > { %198 = sbr.rel (!%p51_p3) target bundleno = 40 (0x28), region = 28  ;;  %s200_s29 = sand.u32 (%p51_p3), 1, %s1348_s16  }
  0x13   : > { %s1138_s30 = sshll.u32 (%p51_p3), %s1364_s20, 6  ;;  %s1137_s5 = sshll.u32 (%p51_p3), %s200_s29, 8 }
  0x14   : > { %s204_s6 = sadd.s32 (%p51_p3), %s1360_s19, %s1138_s30  ;;  %s1461_s11 = scalar_lea.vmem (%p51_p3), [#allocation3], %s1137_s5 }
  0x15   : > { %s1139_s7 = sshll.u32 (%p51_p3), %s204_s6, 3 }
  0x16   : > { %s1456_s10 = scalar_lea.vmem (%p51_p3), %s1711_s0, %s1139_s7 }
  0x17   : > { %v296_v0 = vld [vmem:[%s1456_s10] sm:$0xff] (%p51_p3)  ;;  %v298_v1 = vld [vmem:[%s1456_s10 + $0x10] sm:$0xff] (%p51_p3) }
  0x18   : > { %v300_v2 = vld [vmem:[%s1456_s10 + $0x20] sm:$0xff] (%p51_p3)  ;;  %297 = vst [vmem:[%s1461_s11] sm:$0xff] (%p51_p3), %v296_v0  ;;  %299 = vst [vmem:[%s1461_s11 + $0x8] sm:$0xff] (%p51_p3), %v298_v1  ;;  %v302_v3 = vld [vmem:[%s1456_s10 + $0x30] sm:$0xff] (%p51_p3) }
  0x19   : > { %301 = vst [vmem:[%s1461_s11 + $0x10] sm:$0xff] %v300_v2  ;;  %v304_v4 = vld [vmem:[%s1456_s10 + $0x40] sm:$0xff]  ;;  %v306_v5 = vld [vmem:[%s1456_s10 + $0x50] sm:$0xff]  ;;  %303 = vst [vmem:[%s1461_s11 + $0x18] sm:$0xff] %v302_v3 }
  0x1a   : > { %305 = vst [vmem:[%s1461_s11 + $0x20] sm:$0xff] %v304_v4  ;;  %307 = vst [vmem:[%s1461_s11 + $0x28] sm:$0xff] %v306_v5  ;;  %v308_v6 = vld [vmem:[%s1456_s10 + $0x60] sm:$0xff]  ;;  %v310_v7 = vld [vmem:[%s1456_s10 + $0x70] sm:$0xff] }
  0x1b   : > { %v312_v8 = vld [vmem:[%s1456_s10 + $0x80] sm:$0xff]  ;;  %309 = vst [vmem:[%s1461_s11 + $0x30] sm:$0xff] %v308_v6  ;;  %311 = vst [vmem:[%s1461_s11 + $0x38] sm:$0xff] %v310_v7  ;;  %v314_v9 = vld [vmem:[%s1456_s10 + $0x90] sm:$0xff] }
  0x1c   : > { %313 = vst [vmem:[%s1461_s11 + $0x40] sm:$0xff] %v312_v8  ;;  %v316_v10 = vld [vmem:[%s1456_s10 + $0xa0] sm:$0xff]  ;;  %v318_v11 = vld [vmem:[%s1456_s10 + $0xb0] sm:$0xff]  ;;  %315 = vst [vmem:[%s1461_s11 + $0x48] sm:$0xff] %v314_v9 }
  0x1d   : > { %317 = vst [vmem:[%s1461_s11 + $0x50] sm:$0xff] %v316_v10  ;;  %319 = vst [vmem:[%s1461_s11 + $0x58] sm:$0xff] %v318_v11  ;;  %v320_v12 = vld [vmem:[%s1456_s10 + $0xc0] sm:$0xff]  ;;  %v322_v13 = vld [vmem:[%s1456_s10 + $0xd0] sm:$0xff] }
  0x1e   : > { %v324_v14 = vld [vmem:[%s1456_s10 + $0xe0] sm:$0xff]  ;;  %321 = vst [vmem:[%s1461_s11 + $0x60] sm:$0xff] %v320_v12  ;;  %323 = vst [vmem:[%s1461_s11 + $0x68] sm:$0xff] %v322_v13  ;;  %v326_v15 = vld [vmem:[%s1456_s10 + $0xf0] sm:$0xff] }
  0x1f   : > { %325 = vst [vmem:[%s1461_s11 + $0x70] sm:$0xff] %v324_v14  ;;  %v328_v16 = vld [vmem:[%s1456_s10 + $0x100] sm:$0xff]  ;;  %v330_v17 = vld [vmem:[%s1456_s10 + $0x110] sm:$0xff]  ;;  %327 = vst [vmem:[%s1461_s11 + $0x78] sm:$0xff] %v326_v15 }
  0x20   : > { %329 = vst [vmem:[%s1461_s11 + $0x80] sm:$0xff] %v328_v16  ;;  %331 = vst [vmem:[%s1461_s11 + $0x88] sm:$0xff] %v330_v17  ;;  %v332_v18 = vld [vmem:[%s1456_s10 + $0x120] sm:$0xff]  ;;  %v334_v19 = vld [vmem:[%s1456_s10 + $0x130] sm:$0xff] }
  0x21   : > { %v336_v20 = vld [vmem:[%s1456_s10 + $0x140] sm:$0xff]  ;;  %333 = vst [vmem:[%s1461_s11 + $0x90] sm:$0xff] %v332_v18  ;;  %335 = vst [vmem:[%s1461_s11 + $0x98] sm:$0xff] %v334_v19  ;;  %v338_v21 = vld [vmem:[%s1456_s10 + $0x150] sm:$0xff] }
  0x22   : > { %337 = vst [vmem:[%s1461_s11 + $0xa0] sm:$0xff] %v336_v20  ;;  %v340_v22 = vld [vmem:[%s1456_s10 + $0x160] sm:$0xff]  ;;  %v342_v23 = vld [vmem:[%s1456_s10 + $0x170] sm:$0xff]  ;;  %339 = vst [vmem:[%s1461_s11 + $0xa8] sm:$0xff] %v338_v21 }
  0x23   : > { %341 = vst [vmem:[%s1461_s11 + $0xb0] sm:$0xff] %v340_v22  ;;  %343 = vst [vmem:[%s1461_s11 + $0xb8] sm:$0xff] %v342_v23  ;;  %v344_v24 = vld [vmem:[%s1456_s10 + $0x180] sm:$0xff]  ;;  %v346_v25 = vld [vmem:[%s1456_s10 + $0x190] sm:$0xff] }
  0x24   : > { %v348_v26 = vld [vmem:[%s1456_s10 + $0x1a0] sm:$0xff]  ;;  %345 = vst [vmem:[%s1461_s11 + $0xc0] sm:$0xff] %v344_v24  ;;  %347 = vst [vmem:[%s1461_s11 + $0xc8] sm:$0xff] %v346_v25  ;;  %v350_v27 = vld [vmem:[%s1456_s10 + $0x1b0] sm:$0xff] }
  0x25   : > { %349 = vst [vmem:[%s1461_s11 + $0xd0] sm:$0xff] %v348_v26  ;;  %v352_v28 = vld [vmem:[%s1456_s10 + $0x1c0] sm:$0xff]  ;;  %v354_v29 = vld [vmem:[%s1456_s10 + $0x1d0] sm:$0xff]  ;;  %351 = vst [vmem:[%s1461_s11 + $0xd8] sm:$0xff] %v350_v27 }
  0x26   : > { %353 = vst [vmem:[%s1461_s11 + $0xe0] sm:$0xff] %v352_v28  ;;  %355 = vst [vmem:[%s1461_s11 + $0xe8] sm:$0xff] %v354_v29  ;;  %v356_v30 = vld [vmem:[%s1456_s10 + $0x1e0] sm:$0xff]  ;;  %v358_v31 = vld [vmem:[%s1456_s10 + $0x1f0] sm:$0xff] }
  0x27   : > { %357 = vst [vmem:[%s1461_s11 + $0xf0] sm:$0xff] %v356_v30  ;;  %359 = vst [vmem:[%s1461_s11 + $0xf8] sm:$0xff] %v358_v31 }
  0x28 PF: > { %p1140_p7 = scmp.ge.s32.totalorder %s1368_s21, 1  ;;  %p376_p8 = scmp.lt.s32.totalorder %s1368_s21, 5 }
  0x2a   : > { %p377_p9 = pnand %p1140_p7, %p376_p8 }
  0x2b   : > { %s383_s12 = sand.u32 (!%p377_p9), 1, %s1344_s15   ;;  %s1142_s13 = sshll.u32 (!%p377_p9), %s1352_s17, 4 }
  0x2c   : > { %380 = sbr.rel (%p377_p9) target bundleno = 359 (0x167), region = 70  ;;  %s1141_s14 = sshll.u32 (!%p377_p9), %s383_s12, 8 }
  0x2d   : > { %p426_p10 = scmp.lt.s32.totalorder (!%p377_p9), %s1142_s13, 31  ;;  %p440_p11 = scmp.lt.s32.totalorder (!%p377_p9), %s1356_s18, 1 }
  0x2e   : > { %s1540_s7 = scalar_lea.vmem (!%p377_p9), [#allocation3], %s1141_s14  ;;  %p1146_p12 = scmp.ne.s32.totalorder (!%p377_p9), %s1352_s17, 0 }
  0x33   : > { %s1729_s13 = smov (!%p426_p10, %s1142_s13), 31  ;;  %s1731_s18 = smov (!%p440_p11, %s1356_s18), 1 }
  0x34   : > { %s1143_s24 = sshll.u32 %s1729_s13, 2  ;;  %s1160_s29 = sshll.u32 %s1731_s18, 8  ;;  %v1370_v32 = vmov (!%p1146_p12), 0.0  }
  0x35   : > { %s1533_s27 = scalar_lea.vmem %s1712_s1, %s1143_s24  ;;  %s1538_s6 = scalar_lea.vmem %s1715_s4, %s1160_s29  ;;  %453 = vst [vmem:[#allocation2] sm:$0xff] (!%p1146_p12), %v1370_v32  ;;  %454 = vst [vmem:[#allocation2 + $0x8] sm:$0xff] (!%p1146_p12), %v1370_v32 }
  0x36   : > { %452 = sbr.rel (%p1146_p12) target bundleno = 69 (0x45), region = 78  ;;  %455 = vst [vmem:[#allocation2 + $0x10] sm:$0xff] (!%p1146_p12), %v1370_v32  ;;  %456 = vst [vmem:[#allocation2 + $0x18] sm:$0xff] (!%p1146_p12), %v1370_v32 }
  0x37   : > { %457 = vst [vmem:[#allocation2 + $0x20] sm:$0xff] (!%p1146_p12), %v1370_v32  ;;  %458 = vst [vmem:[#allocation2 + $0x28] sm:$0xff] (!%p1146_p12), %v1370_v32 }
  0x38   : > { %459 = vst [vmem:[#allocation2 + $0x30] sm:$0xff] (!%p1146_p12), %v1370_v32  ;;  %460 = vst [vmem:[#allocation2 + $0x38] sm:$0xff] (!%p1146_p12), %v1370_v32 }
  0x39   : > { %461 = vst [vmem:[#allocation2 + $0x40] sm:$0xff] (!%p1146_p12), %v1370_v32  ;;  %462 = vst [vmem:[#allocation2 + $0x48] sm:$0xff] (!%p1146_p12), %v1370_v32 }
  0x3a   : > { %463 = vst [vmem:[#allocation2 + $0x50] sm:$0xff] (!%p1146_p12), %v1370_v32  ;;  %464 = vst [vmem:[#allocation2 + $0x58] sm:$0xff] (!%p1146_p12), %v1370_v32 }
  0x3b   : > { %465 = vst [vmem:[#allocation2 + $0x60] sm:$0xff] (!%p1146_p12), %v1370_v32  ;;  %466 = vst [vmem:[#allocation2 + $0x68] sm:$0xff] (!%p1146_p12), %v1370_v32 }
  0x3c   : > { %467 = vst [vmem:[#allocation2 + $0x70] sm:$0xff] (!%p1146_p12), %v1370_v32  ;;  %468 = vst [vmem:[#allocation2 + $0x78] sm:$0xff] (!%p1146_p12), %v1370_v32 }
  0x3d   : > { %469 = vst [vmem:[#allocation2 + $0x80] sm:$0xff] %v1370_v32  ;;  %470 = vst [vmem:[#allocation2 + $0x88] sm:$0xff] %v1370_v32 }
  0x3e   : > { %471 = vst [vmem:[#allocation2 + $0x90] sm:$0xff] %v1370_v32  ;;  %472 = vst [vmem:[#allocation2 + $0x98] sm:$0xff] %v1370_v32 }
  0x3f   : > { %473 = vst [vmem:[#allocation2 + $0xa0] sm:$0xff] %v1370_v32  ;;  %474 = vst [vmem:[#allocation2 + $0xa8] sm:$0xff] %v1370_v32 }
  0x40   : > { %475 = vst [vmem:[#allocation2 + $0xb0] sm:$0xff] %v1370_v32  ;;  %476 = vst [vmem:[#allocation2 + $0xb8] sm:$0xff] %v1370_v32 }
  0x41   : > { %477 = vst [vmem:[#allocation2 + $0xc0] sm:$0xff] %v1370_v32  ;;  %478 = vst [vmem:[#allocation2 + $0xc8] sm:$0xff] %v1370_v32 }
  0x42   : > { %479 = vst [vmem:[#allocation2 + $0xd0] sm:$0xff] %v1370_v32  ;;  %480 = vst [vmem:[#allocation2 + $0xd8] sm:$0xff] %v1370_v32 }
  0x43   : > { %481 = vst [vmem:[#allocation2 + $0xe0] sm:$0xff] %v1370_v32  ;;  %482 = vst [vmem:[#allocation2 + $0xe8] sm:$0xff] %v1370_v32 }
  0x44   : > { %483 = vst [vmem:[#allocation2 + $0xf0] sm:$0xff] %v1370_v32  ;;  %484 = vst [vmem:[#allocation2 + $0xf8] sm:$0xff] %v1370_v32 }
  0x45 PF: > { %v1306_v33 = vld [vmem:[%s1533_s27] sm:$0xff]   ;;  %v1307_v34 = vld [vmem:[%s1533_s27 + $0x8] sm:$0xff]   ;;  %v1308_v35 = vld [vmem:[%s1533_s27 + $0x10] sm:$0xff]   ;;  %p1155_p13 = scmp.ne.s32.totalorder %s1352_s17, 1 }
  0x46   : > { %1185 = vmatprep.subr.bf16.mxu0 %v1306_v33  ;;  %1233 = vmatprep.subr.bf16.mxu1 %v1306_v33  ;;  %v1309_v36 = vld [vmem:[%s1533_s27 + $0x18] sm:$0xff]   ;;  %v485_v37 = vld [vmem:[%s1540_s7] sm:$0xff]  ;;  %v486_v38 = vld [vmem:[%s1540_s7 + $0x8] sm:$0xff] }
  0x47   : > { %1186 = vmatpush3.bf16.msra.mxu0 %v1306_v33  ;;  %1241 = vmatpush3.bf16.msra.mxu1 %v1306_v33  ;;  %v501_v39 = vld [vmem:[%s1540_s7 + $0x80] sm:$0xff]  ;;  %v517_v40 = vpack.c.bf16 %v486_v38, %v485_v37  ;;  %v502_v41 = vld [vmem:[%s1540_s7 + $0x88] sm:$0xff]  ;;  %v1310_v43 = vld [vmem:[%s1533_s27 + $0x20] sm:$0xff]  }
  0x48   : > { %1187 = vmatprep.subr.bf16.mxu0 %v1307_v34  ;;  %1234 = vmatprep.subr.bf16.mxu1 %v1307_v34  ;;  %v525_v42 = vpack.c.bf16 %v502_v41, %v501_v39  ;;  %v1311_v44 = vld [vmem:[%s1533_s27 + $0x28] sm:$0xff]   ;;  %v1312_v45 = vld [vmem:[%s1533_s27 + $0x30] sm:$0xff]   ;;  %v1313_v46 = vld [vmem:[%s1533_s27 + $0x38] sm:$0xff]  }
  0x49   : > { %1201 = vmatprep.mubr.bf16.mxu0 %v517_v40  ;;  %v487_v47 = vld [vmem:[%s1540_s7 + $0x10] sm:$0xff]  ;;  %v488_v48 = vld [vmem:[%s1540_s7 + $0x18] sm:$0xff]  ;;  %v489_v51 = vld [vmem:[%s1540_s7 + $0x20] sm:$0xff] }
  0x4a   : > { %1217 = vmatprep.mubr.bf16.mxu1 %v525_v42  ;;  %v503_v49 = vld [vmem:[%s1540_s7 + $0x90] sm:$0xff]  ;;  %v504_v50 = vld [vmem:[%s1540_s7 + $0x98] sm:$0xff]  ;;  %v490_v52 = vld [vmem:[%s1540_s7 + $0x28] sm:$0xff]  ;;  %v518_v55 = vpack.c.bf16 %v488_v48, %v487_v47 }
  0x4b   : > { %1188 = vmatpush3.bf16.msra.mxu0 %v1307_v34  ;;  %1242 = vmatpush3.bf16.msra.mxu1 %v1307_v34  ;;  %v505_v53 = vld [vmem:[%s1540_s7 + $0xa0] sm:$0xff]  ;;  %v506_v54 = vld [vmem:[%s1540_s7 + $0xa8] sm:$0xff]  ;;  %v526_v56 = vpack.c.bf16 %v504_v50, %v503_v49  ;;  %v519_v57 = vpack.c.bf16 %v490_v52, %v489_v51  ;;  %v491_v59 = vld [vmem:[%s1540_s7 + $0x30] sm:$0xff] }
  0x4c   : > { %1189 = vmatprep.subr.bf16.mxu0 %v1308_v35  ;;  %1235 = vmatprep.subr.bf16.mxu1 %v1308_v35  ;;  %v527_v58 = vpack.c.bf16 %v506_v54, %v505_v53  ;;  %v492_v60 = vld [vmem:[%s1540_s7 + $0x38] sm:$0xff]  ;;  %v507_v61 = vld [vmem:[%s1540_s7 + $0xb0] sm:$0xff]  ;;  %v493_v63 = vld [vmem:[%s1540_s7 + $0x40] sm:$0xff] }
  0x4d   : > { %v508_v62 = vld [vmem:[%s1540_s7 + $0xb8] sm:$0xff]  ;;  %v494_v0 = vld [vmem:[%s1540_s7 + $0x48] sm:$0xff]  ;;  %v509_v1 = vld [vmem:[%s1540_s7 + $0xc0] sm:$0xff]  ;;  %v520_v3 = vpack.c.bf16 %v492_v60, %v491_v59 }
  0x4e   : > { %v510_v2 = vld [vmem:[%s1540_s7 + $0xc8] sm:$0xff]  ;;  %v528_v4 = vpack.c.bf16 %v508_v62, %v507_v61  ;;  %v521_v5 = vpack.c.bf16 %v494_v0, %v493_v63  ;;  %v495_v7 = vld [vmem:[%s1540_s7 + $0x50] sm:$0xff]  ;;  %v496_v8 = vld [vmem:[%s1540_s7 + $0x58] sm:$0xff] }
  0x4f   : > { %1190 = vmatpush3.bf16.msra.mxu0 %v1308_v35  ;;  %1243 = vmatpush3.bf16.msra.mxu1 %v1308_v35  ;;  %v529_v6 = vpack.c.bf16 %v510_v2, %v509_v1  ;;  %v511_v9 = vld [vmem:[%s1540_s7 + $0xd0] sm:$0xff]  ;;  %v512_v10 = vld [vmem:[%s1540_s7 + $0xd8] sm:$0xff]  ;;  %v497_v11 = vld [vmem:[%s1540_s7 + $0x60] sm:$0xff]  ;;  %v522_v15 = vpack.c.bf16 %v496_v8, %v495_v7 }
  0x50   : > { %1191 = vmatprep.subr.bf16.mxu0 %v1309_v36  ;;  %1236 = vmatprep.subr.bf16.mxu1 %v1309_v36  ;;  %v498_v12 = vld [vmem:[%s1540_s7 + $0x68] sm:$0xff]  ;;  %v513_v13 = vld [vmem:[%s1540_s7 + $0xe0] sm:$0xff]  ;;  %v530_v16 = vpack.c.bf16 %v512_v10, %v511_v9  ;;  %v499_v19 = vld [vmem:[%s1540_s7 + $0x70] sm:$0xff] }
  0x51   : > { %v514_v14 = vld [vmem:[%s1540_s7 + $0xe8] sm:$0xff]  ;;  %v523_v17 = vpack.c.bf16 %v498_v12, %v497_v11  ;;  %v500_v20 = vld [vmem:[%s1540_s7 + $0x78] sm:$0xff]  ;;  %v515_v21 = vld [vmem:[%s1540_s7 + $0xf0] sm:$0xff] }
  0x52   : > { %v531_v18 = vpack.c.bf16 %v514_v14, %v513_v13  ;;  %v516_v22 = vld [vmem:[%s1540_s7 + $0xf8] sm:$0xff]  ;;  %v524_v23 = vpack.c.bf16 %v500_v20, %v499_v19  ;;  %v760_v25 = vld [vmem:[#allocation2 + $0x10] sm:$0xff]  ;;  %v758_v27 = vld [vmem:[#allocation2] sm:$0xff] }
  0x53   : > { %1192 = vmatpush3.bf16.msra.mxu0 %v1309_v36  ;;  %1244 = vmatpush3.bf16.msra.mxu1 %v1309_v36  ;;  %v532_v24 = vpack.c.bf16 %v516_v22, %v515_v21  ;;  %v776_v26 = vld [vmem:[#allocation2 + $0x90] sm:$0xff]  ;;  %v774_v28 = vld [vmem:[#allocation2 + $0x80] sm:$0xff]  ;;  %v761_v31 = vld [vmem:[#allocation2 + $0x18] sm:$0xff] }
  0x54   : > { %1193 = vmatprep.subr.bf16.mxu0 %v1310_v43  ;;  %1237 = vmatprep.subr.bf16.mxu1 %v1310_v43  ;;  %v777_v32 = vld [vmem:[#allocation2 + $0x98] sm:$0xff]  ;;  %v759_v37 = vld [vmem:[#allocation2 + $0x8] sm:$0xff]  ;;  %v764_v49 = vld [vmem:[#allocation2 + $0x30] sm:$0xff] }
  0x55   : > { %v775_v38 = vld [vmem:[#allocation2 + $0x88] sm:$0xff]  ;;  %v780_v50 = vld [vmem:[#allocation2 + $0xb0] sm:$0xff]  ;;  %v762_v51 = vld [vmem:[#allocation2 + $0x20] sm:$0xff] }
  0x56   : > { %v778_v52 = vld [vmem:[#allocation2 + $0xa0] sm:$0xff]  ;;  %v763_v61 = vld [vmem:[#allocation2 + $0x28] sm:$0xff]  ;;  %v768_v9 = vld [vmem:[#allocation2 + $0x50] sm:$0xff] }
  0x57   : > { %1194 = vmatpush3.bf16.msra.mxu0 %v1310_v43  ;;  %1245 = vmatpush3.bf16.msra.mxu1 %v1310_v43  ;;  %v779_v62 = vld [vmem:[#allocation2 + $0xa8] sm:$0xff]  ;;  %v784_v10 = vld [vmem:[#allocation2 + $0xd0] sm:$0xff]  ;;  %v766_v11 = vld [vmem:[#allocation2 + $0x40] sm:$0xff] }
  0x58   : > { %1195 = vmatprep.subr.bf16.mxu0 %v1311_v44  ;;  %1238 = vmatprep.subr.bf16.mxu1 %v1311_v44  ;;  %v782_v12 = vld [vmem:[#allocation2 + $0xc0] sm:$0xff]  ;;  %v767_v21 = vld [vmem:[#allocation2 + $0x48] sm:$0xff] }
  0x59   : > { %v783_v22 = vld [vmem:[#allocation2 + $0xc8] sm:$0xff] }
  0x5b   : > { %1196 = vmatpush3.bf16.msra.mxu0 %v1311_v44  ;;  %1246 = vmatpush3.bf16.msra.mxu1 %v1311_v44 }
  0x5c   : > { %1197 = vmatprep.subr.bf16.mxu0 %v1312_v45  ;;  %1239 = vmatprep.subr.bf16.mxu1 %v1312_v45 }
  0x5f   : > { %1198 = vmatpush3.bf16.msra.mxu0 %v1312_v45  ;;  %1247 = vmatpush3.bf16.msra.mxu1 %v1312_v45 }
  0x60   : > { %1199 = vmatprep.subr.bf16.mxu0 %v1313_v46  ;;  %1240 = vmatprep.subr.bf16.mxu1 %v1313_v46 }
  0x63   : > { %1200 = vmatpush3.bf16.msra.mxu0 %v1313_v46  ;;  %1248 = vmatpush3.bf16.msra.mxu1 %v1313_v46 }
  0x66   : > { %1202 = vmatmul.mubr.bf16.vlgmr.msra.gmra.mrb[0].mxu0 %v518_v55  ;;  %1218 = vmatmul.mubr.bf16.vlgmr.msra.gmra.mrb[0].mxu1 %v526_v56  ;;  %v765_v55 = vld [vmem:[#allocation2 + $0x38] sm:$0xff] }
  0x67   : > { %1205 = vmatprep.mubr.bf16.mxu0 %v519_v57  ;;  %1221 = vmatprep.mubr.bf16.mxu1 %v527_v58  ;;  %v781_v56 = vld [vmem:[#allocation2 + $0xb8] sm:$0xff] }
  0x6e   : > { %1206 = vmatmul.mubr.bf16.gmra.mrb[4].mxu0 %v520_v3  ;;  %1222 = vmatmul.mubr.bf16.gmra.mrb[4].mxu1 %v528_v4 }
  0x6f   : > { %1209 = vmatprep.mubr.bf16.mxu0 %v521_v5  ;;  %1225 = vmatprep.mubr.bf16.mxu1 %v529_v6 }
  0x76   : > { %1210 = vmatmul.mubr.bf16.gmra.mrb[8].mxu0 %v522_v15  ;;  %1226 = vmatmul.mubr.bf16.gmra.mrb[8].mxu1 %v530_v16  ;;  %v769_v15 = vld [vmem:[#allocation2 + $0x58] sm:$0xff] }
  0x77   : > { %1213 = vmatprep.mubr.bf16.mxu0 %v523_v17  ;;  %1229 = vmatprep.mubr.bf16.mxu1 %v531_v18  ;;  %v785_v16 = vld [vmem:[#allocation2 + $0xd8] sm:$0xff] }
  0x7e   : > { %1214 = vmatmul.mubr.bf16.gmra.mrb[12].mxu0 %v524_v23  ;;  %1230 = vmatmul.mubr.bf16.gmra.mrb[12].mxu1 %v532_v24 }
 0x139   : > { %v1203_v29 = vpop.f32.mrb[0].mxu0  ;;  %v1219_v30 = vpop.f32.mrb[0].mxu1 }
 0x13a   : > { %v792_v33 = vadd.f32 %v1203_v29, %v760_v25  ;;  %v808_v34 = vadd.f32 %v1219_v30, %v776_v26  ;;  %v631_v35 = vpop.f32.mrb[1].mxu0  ;;  %v695_v36 = vpop.f32.mrb[1].mxu1 }
 0x13b   : > { %v790_v39 = vadd.f32 %v758_v27, %v631_v35  ;;  %v806_v40 = vadd.f32 %v774_v28, %v695_v36  ;;  %v1204_v41 = vpop.f32.mrb[2].mxu0  ;;  %v1220_v42 = vpop.f32.mrb[2].mxu1  ;;  %v770_v35 = vld [vmem:[#allocation2 + $0x60] sm:$0xff] }
 0x13c   : > { %824 = vst [vmem:[#allocation2 + $0x10] sm:$0xff] %v792_v33  ;;  %840 = vst [vmem:[#allocation2 + $0x90] sm:$0xff] %v808_v34  ;;  %v793_v43 = vadd.f32 %v1204_v41, %v761_v31  ;;  %v809_v44 = vadd.f32 %v1220_v42, %v777_v32  ;;  %v634_v45 = vpop.f32.mrb[3].mxu0  ;;  %v698_v46 = vpop.f32.mrb[3].mxu1  ;;  %v772_v33 = vld [vmem:[#allocation2 + $0x70] sm:$0xff]  ;;  %v786_v36 = vld [vmem:[#allocation2 + $0xe0] sm:$0xff] }
 0x13d   : > { %822 = vst [vmem:[#allocation2] sm:$0xff] %v790_v39  ;;  %838 = vst [vmem:[#allocation2 + $0x80] sm:$0xff] %v806_v40  ;;  %v791_v47 = vadd.f32 %v759_v37, %v634_v45  ;;  %v807_v48 = vadd.f32 %v775_v38, %v698_v46  ;;  %v788_v34 = vld [vmem:[#allocation2 + $0xf0] sm:$0xff]  ;;  %v773_v39 = vld [vmem:[#allocation2 + $0x78] sm:$0xff] }
 0x13e   : > { %825 = vst [vmem:[#allocation2 + $0x18] sm:$0xff] %v793_v43  ;;  %841 = vst [vmem:[#allocation2 + $0x98] sm:$0xff] %v809_v44  ;;  %v789_v40 = vld [vmem:[#allocation2 + $0xf8] sm:$0xff]  ;;  %v771_v45 = vld [vmem:[#allocation2 + $0x68] sm:$0xff] }
 0x13f   : > { %823 = vst [vmem:[#allocation2 + $0x8] sm:$0xff] %v791_v47  ;;  %839 = vst [vmem:[#allocation2 + $0x88] sm:$0xff] %v807_v48  ;;  %v787_v46 = vld [vmem:[#allocation2 + $0xe8] sm:$0xff] }
 0x141   : > { %v1207_v53 = vpop.f32.mrb[4].mxu0  ;;  %v1223_v54 = vpop.f32.mrb[4].mxu1 }
 0x142   : > { %v796_v57 = vadd.f32 %v1207_v53, %v764_v49  ;;  %v812_v58 = vadd.f32 %v1223_v54, %v780_v50  ;;  %v647_v59 = vpop.f32.mrb[5].mxu0  ;;  %v711_v60 = vpop.f32.mrb[5].mxu1 }
 0x143   : > { %v794_v63 = vadd.f32 %v762_v51, %v647_v59  ;;  %v810_v0 = vadd.f32 %v778_v52, %v711_v60  ;;  %v1208_v1 = vpop.f32.mrb[6].mxu0  ;;  %v1224_v2 = vpop.f32.mrb[6].mxu1  ;;  %v1592_v59 = vld [vmem:[%s1714_s3] ss:$0 sm:$0xff] (!%p1155_p13) }
 0x144   : > { %828 = vst [vmem:[#allocation2 + $0x30] sm:$0xff] %v796_v57  ;;  %844 = vst [vmem:[#allocation2 + $0xb0] sm:$0xff] %v812_v58  ;;  %v797_v3 = vadd.f32 %v1208_v1, %v765_v55  ;;  %v813_v4 = vadd.f32 %v1224_v2, %v781_v56  ;;  %v650_v5 = vpop.f32.mrb[7].mxu0  ;;  %v714_v6 = vpop.f32.mrb[7].mxu1  ;;  %v858_v57 = vld [vmem:[#allocation2] sm:$0xff] (!%p1155_p13) }
 0x145   : > { %826 = vst [vmem:[#allocation2 + $0x20] sm:$0xff] %v794_v63  ;;  %842 = vst [vmem:[#allocation2 + $0xa0] sm:$0xff] %v810_v0  ;;  %v795_v7 = vadd.f32 %v763_v61, %v650_v5  ;;  %v811_v8 = vadd.f32 %v779_v62, %v714_v6  ;;  %v1587_v58 = vld [vmem:[%s1713_s2] ss:$0 sm:$0xff] (!%p1155_p13)  ;;  %v860_v62 = vld [vmem:[#allocation2 + $0x10] sm:$0xff] (!%p1155_p13) }
 0x146   : > { %829 = vst [vmem:[#allocation2 + $0x38] sm:$0xff] %v797_v3  ;;  %845 = vst [vmem:[#allocation2 + $0xb8] sm:$0xff] %v813_v4  ;;  %v897_v60 = vmul.f32 (!%p1155_p13), %v1587_v58, %v858_v57  ;;  %v859_v61 = vld [vmem:[#allocation2 + $0x8] sm:$0xff] (!%p1155_p13)  ;;  %v861_v63 = vld [vmem:[#allocation2 + $0x18] sm:$0xff] (!%p1155_p13)  ;;  %v899_v1 = vmul.f32 (!%p1155_p13), %v1587_v58, %v860_v62 }
 0x147   : > { %827 = vst [vmem:[#allocation2 + $0x28] sm:$0xff] %v795_v7  ;;  %843 = vst [vmem:[#allocation2 + $0xa8] sm:$0xff] %v811_v8  ;;  %v898_v0 = vmul.f32 (!%p1155_p13), %v1587_v58, %v859_v61  ;;  %v900_v2 = vmul.f32 (!%p1155_p13), %v1587_v58, %v861_v63 }
 0x148   : > { %v936_v6 = vadd.f32 (!%p1155_p13), %v1592_v59, %v897_v60 }
 0x149   : > { %v1211_v13 = vpop.f32.mrb[8].mxu0  ;;  %v1227_v14 = vpop.f32.mrb[8].mxu1 }
 0x14a   : > { %v800_v17 = vadd.f32 %v1211_v13, %v768_v9  ;;  %v816_v18 = vadd.f32 %v1227_v14, %v784_v10  ;;  %v663_v19 = vpop.f32.mrb[9].mxu0  ;;  %v727_v20 = vpop.f32.mrb[9].mxu1  ;;  %v937_v13 = vadd.f32 (!%p1155_p13), %v1592_v59, %v898_v0  ;;  %v938_v14 = vadd.f32 (!%p1155_p13), %v1592_v59, %v899_v1  ;;  %968 = vst [vmem:[%s1538_s6] sm:$0xff] (!%p1155_p13), %v936_v6 }
 0x14b   : > { %v798_v23 = vadd.f32 %v766_v11, %v663_v19  ;;  %v814_v24 = vadd.f32 %v782_v12, %v727_v20  ;;  %v1212_v25 = vpop.f32.mrb[10].mxu0  ;;  %v1228_v26 = vpop.f32.mrb[10].mxu1  ;;  %v864_v5 = vld [vmem:[#allocation2 + $0x30] sm:$0xff] (!%p1155_p13) }
 0x14c   : > { %832 = vst [vmem:[#allocation2 + $0x50] sm:$0xff] %v800_v17  ;;  %848 = vst [vmem:[#allocation2 + $0xd0] sm:$0xff] %v816_v18  ;;  %v801_v27 = vadd.f32 %v1212_v25, %v769_v15  ;;  %v817_v28 = vadd.f32 %v1228_v26, %v785_v16  ;;  %v666_v29 = vpop.f32.mrb[11].mxu0  ;;  %v730_v30 = vpop.f32.mrb[11].mxu1  ;;  %v862_v3 = vld [vmem:[#allocation2 + $0x20] sm:$0xff] (!%p1155_p13)  ;;  %v903_v9 = vmul.f32 (!%p1155_p13), %v1587_v58, %v864_v5 }
 0x14d   : > { %830 = vst [vmem:[#allocation2 + $0x40] sm:$0xff] %v798_v23  ;;  %846 = vst [vmem:[#allocation2 + $0xc0] sm:$0xff] %v814_v24  ;;  %v799_v31 = vadd.f32 %v767_v21, %v666_v29  ;;  %v815_v32 = vadd.f32 %v783_v22, %v730_v30  ;;  %v901_v7 = vmul.f32 (!%p1155_p13), %v1587_v58, %v862_v3  ;;  %v865_v10 = vld [vmem:[#allocation2 + $0x38] sm:$0xff] (!%p1155_p13) }
 0x14e   : > { %833 = vst [vmem:[#allocation2 + $0x58] sm:$0xff] %v801_v27  ;;  %849 = vst [vmem:[#allocation2 + $0xd8] sm:$0xff] %v817_v28  ;;  %v863_v4 = vld [vmem:[#allocation2 + $0x28] sm:$0xff] (!%p1155_p13)  ;;  %v939_v15 = vadd.f32 (!%p1155_p13), %v1592_v59, %v900_v2  ;;  %v904_v16 = vmul.f32 (!%p1155_p13), %v1587_v58, %v865_v10  ;;  %v942_v22 = vadd.f32 (!%p1155_p13), %v1592_v59, %v903_v9 }
 0x14f   : > { %831 = vst [vmem:[#allocation2 + $0x48] sm:$0xff] %v799_v31  ;;  %847 = vst [vmem:[#allocation2 + $0xc8] sm:$0xff] %v815_v32  ;;  %v902_v8 = vmul.f32 (!%p1155_p13), %v1587_v58, %v863_v4  ;;  %v940_v20 = vadd.f32 (!%p1155_p13), %v1592_v59, %v901_v7  ;;  %v874_v31 = vld [vmem:[#allocation2 + $0x80] sm:$0xff] (!%p1155_p13) }
 0x150   : > { %969 = vst [vmem:[%s1538_s6 + $0x8] sm:$0xff] (!%p1155_p13), %v937_v13  ;;  %970 = vst [vmem:[%s1538_s6 + $0x10] sm:$0xff] (!%p1155_p13), %v938_v14  ;;  %v943_v27 = vadd.f32 (!%p1155_p13), %v1592_v59, %v904_v16 }
 0x151   : > { %v1215_v37 = vpop.f32.mrb[12].mxu0  ;;  %v1231_v38 = vpop.f32.mrb[12].mxu1  ;;  %857 = sbr.rel (%p1155_p13) target bundleno = 359 (0x167), region = 82  ;;  %v941_v21 = vadd.f32 (!%p1155_p13), %v1592_v59, %v902_v8  ;;  %971 = vst [vmem:[%s1538_s6 + $0x18] sm:$0xff] (!%p1155_p13), %v939_v15  ;;  %972 = vst [vmem:[%s1538_s6 + $0x20] sm:$0xff] (!%p1155_p13), %v940_v20 }
 0x152   : > { %v804_v41 = vadd.f32 %v1215_v37, %v772_v33  ;;  %v820_v42 = vadd.f32 %v1231_v38, %v788_v34  ;;  %v679_v43 = vpop.f32.mrb[13].mxu0  ;;  %v743_v44 = vpop.f32.mrb[13].mxu1  ;;  %974 = vst [vmem:[%s1538_s6 + $0x30] sm:$0xff] (!%p1155_p13), %v942_v22  ;;  %v876_v37 = vld [vmem:[#allocation2 + $0x90] sm:$0xff] (!%p1155_p13)  ;;  %v877_v38 = vld [vmem:[#allocation2 + $0x98] sm:$0xff] (!%p1155_p13)  ;;  %975 = vst [vmem:[%s1538_s6 + $0x38] sm:$0xff] (!%p1155_p13), %v943_v27 }
 0x153   : > { %v802_v47 = vadd.f32 %v770_v35, %v679_v43  ;;  %v818_v48 = vadd.f32 %v786_v36, %v743_v44  ;;  %v1216_v49 = vpop.f32.mrb[14].mxu0  ;;  %v1232_v50 = vpop.f32.mrb[14].mxu1  ;;  %v868_v17 = vld [vmem:[#allocation2 + $0x50] sm:$0xff] (!%p1155_p13)  ;;  %973 = vst [vmem:[%s1538_s6 + $0x28] sm:$0xff] (!%p1155_p13), %v941_v21  ;;  %v875_v36 = vld [vmem:[#allocation2 + $0x88] sm:$0xff] (!%p1155_p13)  ;;  %v878_v43 = vld [vmem:[#allocation2 + $0xa0] sm:$0xff] (!%p1155_p13) }
 0x154   : > { %836 = vst [vmem:[#allocation2 + $0x70] sm:$0xff] %v804_v41  ;;  %852 = vst [vmem:[#allocation2 + $0xf0] sm:$0xff] %v820_v42  ;;  %v805_v51 = vadd.f32 %v1216_v49, %v773_v39  ;;  %v821_v52 = vadd.f32 %v1232_v50, %v789_v40  ;;  %v682_v53 = vpop.f32.mrb[15].mxu0  ;;  %v746_v54 = vpop.f32.mrb[15].mxu1  ;;  %v866_v11 = vld [vmem:[#allocation2 + $0x40] sm:$0xff] (!%p1155_p13)  ;;  %v907_v29 = vmul.f32 (!%p1155_p13), %v1587_v58, %v868_v17  ;;  %v879_v44 = vld [vmem:[#allocation2 + $0xa8] sm:$0xff] (!%p1155_p13) }
 0x155   : > { %834 = vst [vmem:[#allocation2 + $0x60] sm:$0xff] %v802_v47  ;;  %850 = vst [vmem:[#allocation2 + $0xe0] sm:$0xff] %v818_v48  ;;  %v803_v55 = vadd.f32 %v771_v45, %v682_v53  ;;  %v819_v56 = vadd.f32 %v787_v46, %v746_v54  ;;  %v869_v18 = vld [vmem:[#allocation2 + $0x58] sm:$0xff] (!%p1155_p13)  ;;  %v905_v23 = vmul.f32 (!%p1155_p13), %v1587_v58, %v866_v11  ;;  %v880_v45 = vld [vmem:[#allocation2 + $0xb0] sm:$0xff] (!%p1155_p13) }
 0x156   : > { %837 = vst [vmem:[#allocation2 + $0x78] sm:$0xff] %v805_v51  ;;  %853 = vst [vmem:[#allocation2 + $0xf8] sm:$0xff] %v821_v52  ;;  %v867_v12 = vld [vmem:[#allocation2 + $0x48] sm:$0xff] (!%p1155_p13)  ;;  %v908_v30 = vmul.f32 (!%p1155_p13), %v1587_v58, %v869_v18  ;;  %v946_v40 = vadd.f32 (!%p1155_p13), %v1592_v59, %v907_v29  ;;  %v913_v49 = vmul.f32 (!%p1155_p13), %v1587_v58, %v874_v31  ;;  %v881_v50 = vld [vmem:[#allocation2 + $0xb8] sm:$0xff] (!%p1155_p13) }
 0x157   : > { %835 = vst [vmem:[#allocation2 + $0x68] sm:$0xff] %v803_v55  ;;  %851 = vst [vmem:[#allocation2 + $0xe8] sm:$0xff] %v819_v56  ;;  %v906_v28 = vmul.f32 (!%p1155_p13), %v1587_v58, %v867_v12  ;;  %v944_v32 = vadd.f32 (!%p1155_p13), %v1592_v59, %v905_v23  ;;  %v914_v52 = vmul.f32 (!%p1155_p13), %v1587_v58, %v875_v36  ;;  %v882_v55 = vld [vmem:[#allocation2 + $0xc0] sm:$0xff] (!%p1155_p13)  ;;  %v883_v62 = vld [vmem:[#allocation2 + $0xc8] sm:$0xff] (!%p1155_p13) }
 0x158   : > { %v947_v41 = vadd.f32 %v1592_v59, %v908_v30  ;;  %978 = vst [vmem:[%s1538_s6 + $0x50] sm:$0xff] %v946_v40  ;;  %v915_v53 = vmul.f32 %v1587_v58, %v876_v37  ;;  %v916_v54 = vmul.f32 %v1587_v58, %v877_v38  ;;  %v952_v56 = vadd.f32 %v1592_v59, %v913_v49  ;;  %v884_v63 = vld [vmem:[#allocation2 + $0xd0] sm:$0xff]  ;;  %v885_v0 = vld [vmem:[#allocation2 + $0xd8] sm:$0xff] }
 0x159   : > { %v945_v39 = vadd.f32 %v1592_v59, %v906_v28  ;;  %976 = vst [vmem:[%s1538_s6 + $0x40] sm:$0xff] %v944_v32  ;;  %v917_v57 = vmul.f32 %v1587_v58, %v878_v43  ;;  %v918_v60 = vmul.f32 %v1587_v58, %v879_v44  ;;  %v919_v61 = vmul.f32 %v1587_v58, %v880_v45 }
 0x15a   : > { %979 = vst [vmem:[%s1538_s6 + $0x58] sm:$0xff] %v947_v41  ;;  %v953_v1 = vadd.f32 %v1592_v59, %v914_v52  ;;  %v954_v2 = vadd.f32 %v1592_v59, %v915_v53  ;;  %v955_v3 = vadd.f32 %v1592_v59, %v916_v54  ;;  %v920_v4 = vmul.f32 %v1587_v58, %v881_v50 }
 0x15b   : > { %v872_v25 = vld [vmem:[#allocation2 + $0x70] sm:$0xff]  ;;  %977 = vst [vmem:[%s1538_s6 + $0x48] sm:$0xff] %v945_v39  ;;  %984 = vst [vmem:[%s1538_s6 + $0x80] sm:$0xff] %v952_v56  ;;  %v956_v8 = vadd.f32 %v1592_v59, %v917_v57  ;;  %v957_v9 = vadd.f32 %v1592_v59, %v918_v60  ;;  %v958_v10 = vadd.f32 %v1592_v59, %v919_v61 }
 0x15c   : > { %v870_v19 = vld [vmem:[#allocation2 + $0x60] sm:$0xff]  ;;  %v911_v35 = vmul.f32 %v1587_v58, %v872_v25  ;;  %v888_v7 = vld [vmem:[#allocation2 + $0xf0] sm:$0xff]  ;;  %v921_v11 = vmul.f32 %v1587_v58, %v882_v55  ;;  %985 = vst [vmem:[%s1538_s6 + $0x88] sm:$0xff] %v953_v1  ;;  %986 = vst [vmem:[%s1538_s6 + $0x90] sm:$0xff] %v954_v2  ;;  %v959_v13 = vadd.f32 %v1592_v59, %v920_v4 }
 0x15d   : > { %v873_v26 = vld [vmem:[#allocation2 + $0x78] sm:$0xff]  ;;  %v909_v33 = vmul.f32 %v1587_v58, %v870_v19  ;;  %v886_v5 = vld [vmem:[#allocation2 + $0xe0] sm:$0xff]  ;;  %987 = vst [vmem:[%s1538_s6 + $0x98] sm:$0xff] %v955_v3  ;;  %v922_v14 = vmul.f32 %v1587_v58, %v883_v62  ;;  %v923_v15 = vmul.f32 %v1587_v58, %v884_v63  ;;  %v924_v16 = vmul.f32 %v1587_v58, %v885_v0 }
 0x15e   : > { %v871_v24 = vld [vmem:[#allocation2 + $0x68] sm:$0xff]  ;;  %v912_v42 = vmul.f32 %v1587_v58, %v873_v26  ;;  %v950_v48 = vadd.f32 %v1592_v59, %v911_v35  ;;  %v889_v12 = vld [vmem:[#allocation2 + $0xf8] sm:$0xff]  ;;  %988 = vst [vmem:[%s1538_s6 + $0xa0] sm:$0xff] %v956_v8  ;;  %989 = vst [vmem:[%s1538_s6 + $0xa8] sm:$0xff] %v957_v9  ;;  %v960_v17 = vadd.f32 %v1592_v59, %v921_v11 }
 0x15f   : > { %v910_v34 = vmul.f32 %v1587_v58, %v871_v24  ;;  %v948_v46 = vadd.f32 %v1592_v59, %v909_v33  ;;  %v887_v6 = vld [vmem:[#allocation2 + $0xe8] sm:$0xff]  ;;  %990 = vst [vmem:[%s1538_s6 + $0xb0] sm:$0xff] %v958_v10  ;;  %v925_v18 = vmul.f32 %v1587_v58, %v886_v5  ;;  %v927_v20 = vmul.f32 %v1587_v58, %v888_v7 }
 0x160   : > { %v951_v51 = vadd.f32 %v1592_v59, %v912_v42  ;;  %982 = vst [vmem:[%s1538_s6 + $0x70] sm:$0xff] %v950_v48  ;;  %v926_v19 = vmul.f32 %v1587_v58, %v887_v6  ;;  %991 = vst [vmem:[%s1538_s6 + $0xb8] sm:$0xff] %v959_v13  ;;  %v961_v21 = vadd.f32 %v1592_v59, %v922_v14 }
 0x161   : > { %v949_v47 = vadd.f32 %v1592_v59, %v910_v34  ;;  %980 = vst [vmem:[%s1538_s6 + $0x60] sm:$0xff] %v948_v46  ;;  %v962_v22 = vadd.f32 %v1592_v59, %v923_v15  ;;  %v963_v23 = vadd.f32 %v1592_v59, %v924_v16  ;;  %v928_v24 = vmul.f32 %v1587_v58, %v889_v12 }
 0x162   : > { %983 = vst [vmem:[%s1538_s6 + $0x78] sm:$0xff] %v951_v51  ;;  %992 = vst [vmem:[%s1538_s6 + $0xc0] sm:$0xff] %v960_v17  ;;  %v964_v25 = vadd.f32 %v1592_v59, %v925_v18  ;;  %v965_v26 = vadd.f32 %v1592_v59, %v926_v19  ;;  %v966_v27 = vadd.f32 %v1592_v59, %v927_v20 }
 0x163   : > { %981 = vst [vmem:[%s1538_s6 + $0x68] sm:$0xff] %v949_v47  ;;  %993 = vst [vmem:[%s1538_s6 + $0xc8] sm:$0xff] %v961_v21  ;;  %v967_v28 = vadd.f32 %v1592_v59, %v928_v24 }
 0x164   : > { %994 = vst [vmem:[%s1538_s6 + $0xd0] sm:$0xff] %v962_v22  ;;  %995 = vst [vmem:[%s1538_s6 + $0xd8] sm:$0xff] %v963_v23 }
 0x165   : > { %996 = vst [vmem:[%s1538_s6 + $0xe0] sm:$0xff] %v964_v25  ;;  %997 = vst [vmem:[%s1538_s6 + $0xe8] sm:$0xff] %v965_v26 }
 0x166   : > { %998 = vst [vmem:[%s1538_s6 + $0xf0] sm:$0xff] %v966_v27  ;;  %999 = vst [vmem:[%s1538_s6 + $0xf8] sm:$0xff] %v967_v28 }
 0x167 PF: > { %s14_s21 = sadd.s32 1, %s1368_s21   ;;  %s1716_s15 = smov %s1348_s16 }
 0x168   : > { %p11_p0 = scmp.ge.s32.totalorder %s14_s21, 6   ;;  %s1717_s16 = smov %s1447_s28 }
 0x169   : > { %s1718_s17 = smov %s1360_s19  ;;  %s1719_s18 = smov %s1364_s20 }
 0x16a   : > { %s1720_s19 = smov %s1723_s22  ;;  %s1721_s20 = smov %s1727_s23 }
 0x16b   :  { %13 = sbr.rel (!%p11_p0) target bundleno = 4 (0x4), region = 126 }

// kernel: darknet_forward.19
= control target key start
LH: loop header
LB: loop body
LE: loop exit
PB: predicated region body
PF: predicated region fallthrough
CT: control target
= control target key end

     0   :  { %s1019_s9 = smov 0   ;;  %s1513_s0 = inlined_call_operand.vmem [shape: f32[2,16,16,128], index: 0, kind: input, shape index: {}]   ;;  %s1514_s1 = inlined_call_operand.vmem [shape: f32[1,1,128], index: 1, kind: input, shape index: {}]   ;;  %s1515_s2 = inlined_call_operand.vmem [shape: f32[2,16,16,128], index: 2, kind: output, shape index: {}]  }
   0x1 LB: > { %s746_s10 = sadd.s32 4294967295, %s1001_s9   ;;  %p750_p0 = scmp.ge.s32.totalorder %s1001_s9, 1  ;;  %s1001_s9 = sphi %s1019_s9, %s12_s9  }
   0x2   : > { %p112_p1 = scmp.lt.s32.totalorder %s1001_s9, 3 }
   0x4   : > { %p113_p2 = pnand %p750_p0, %p112_p1 }
   0x5   : > { %p134_p3 = scmp.lt.s32.totalorder (!%p113_p2), %s746_s10, 1  ;;  %v176_v0 = vlaneseq (!%p113_p2)  ;;  %v1089_v57 = vld [vmem:[%s1514_s1] ss:$0 sm:$0xff] (!%p113_p2) }
   0x6   : > { %116 = sbr.rel (%p113_p2) target bundleno = 140 (0x8c), region = 28 }
   0x7   : > { %v177_v1 = vand.u32 (!%p113_p2), 127, %v176_v0  ;;  %v211_v27 = vshrl.u32 (!%p113_p2), %v176_v0, 7 }
   0x9   : > { %v1030_v2 = vmul.u32.u64.low (!%p113_p2), 3817748708, %v177_v1  ;;  %v1031_v3 = vmul.u32.u64.high 3817748708, %v177_v1, %v1030_v2  ;;  %v212_v43 = vadd.s32 (!%p113_p2), 8, %v211_v27  ;;  %v1079_v53 = vcvt.s32.f32 (!%p113_p2), %v211_v27 }
   0xb   : > { %v184_v10 = vshrl.u32 (!%p113_p2), %v1031_v3, 3  ;;  %v1081_v54 = vcvt.s32.f32 (!%p113_p2), %v212_v43 }
   0xd   : > { %s1519_s10 = smov (!%p134_p3, %s746_s10), 1  ;;  %v185_v15 = vmul.u32 9, %v184_v10  ;;  %v1003_v10 = vmov 0.0  }
   0xe   : > { %s790_s11 = sshll.u32 %s1519_s10, 8 }
   0xf   : > { %s1038_s14 = scalar_lea.vmem %s1513_s0, %s790_s11  ;;  %v186_v18 = vsub.s32 %v177_v1, %v185_v15  ;;  %s1128_s19 = scalar_lea.vmem %s1515_s2, %s790_s11 }
  0x10   : > { %v144_v4 = vld [vmem:[%s1038_s14] sm:$0xff]  ;;  %v145_v5 = vld [vmem:[%s1038_s14 + $0x8] sm:$0xff]  ;;  %v146_v6 = vld [vmem:[%s1038_s14 + $0x10] sm:$0xff] }
  0x11   : > { %v756_v7 = vmul.f32 -1.442695, %v144_v4  ;;  %v757_v8 = vmul.f32 -1.442695, %v145_v5  ;;  %v758_v9 = vmul.f32 -1.442695, %v146_v6 }
  0x12   : > { %v147_v11 = vld [vmem:[%s1038_s14 + $0x18] sm:$0xff]  ;;  %v148_v12 = vld [vmem:[%s1038_s14 + $0x20] sm:$0xff]  ;;  %v149_v14 = vld [vmem:[%s1038_s14 + $0x28] sm:$0xff]  ;;  %vm189_vm0 = vcmp.ne.s32.totalorder %v186_v18, 0  ;;  %vm190_vm1 = vcmp.lt.s32.totalorder %v186_v18, 0  ;;  %v192_v22 = vadd.s32 9, %v186_v18 }
  0x13   : > { %803 = vpow2.f32 %v756_v7  ;;  %v759_v13 = vmul.f32 -1.442695, %v147_v11  ;;  %v760_v16 = vmul.f32 -1.442695, %v148_v12  ;;  %v1048_v17 = vld [vmem:[%s1038_s14 + $0x30] sm:$0xff]  ;;  %v1052_v21 = vld [vmem:[%s1038_s14 + $0x38] sm:$0xff]  ;;  %vm191_vm2 = vmand %vm190_vm1, %vm189_vm0 }
  0x14   : > { %805 = vpow2.f32 %v757_v8  ;;  %v761_v19 = vmul.f32 -1.442695, %v149_v14  ;;  %v762_v20 = vmul.f32 -1.442695, %v1048_v17  ;;  %v1054_v23 = vsel %vm191_vm2, %v192_v22, %v186_v18  ;;  %v152_v51 = vld [vmem:[%s1038_s14 + $0x40] sm:$0xff]  ;;  %v1084_v56 = vld [vmem:[%s1038_s14 + $0x48] sm:$0xff] }
  0x15   : > { %807 = vpow2.f32 %v758_v9  ;;  %v763_v24 = vmul.f32 -1.442695, %v1052_v21  ;;  %vm215_vm3 = vcmp.eq.s32.totalorder %v1054_v23, 2  ;;  %vm216_vm4 = vcmp.eq.s32.totalorder %v1054_v23, 3  ;;  %v1096_v60 = vld [vmem:[%s1038_s14 + $0x50] sm:$0xff]  ;;  %v1101_v2 = vld [vmem:[%s1038_s14 + $0x58] sm:$0xff] }
  0x16   : > { %809 = vpow2.f32 %v759_v13  ;;  %vm1059_vm5 = vmor %vm215_vm3, %vm216_vm4  ;;  %vm577_vm6 = vcmp.eq.s32.totalorder %v1054_v23, 0  ;;  %vm578_vm7 = vcmp.eq.s32.totalorder %v1054_v23, 1  ;;  %v764_v63 = vmul.f32 -1.442695, %v152_v51  ;;  %v1104_v3 = vld [vmem:[%s1038_s14 + $0x60] sm:$0xff] }
  0x17   : > { %811 = vpow2.f32 %v760_v16  ;;  %v218_v28 = vsel %vm1059_vm5, %v144_v4, 0.0  ;;  %v219_v29 = vsel %vm1059_vm5, %v145_v5, 0.0  ;;  %v220_v30 = vsel %vm1059_vm5, %v146_v6, 0.0 }
  0x18   : > { %813 = vpow2.f32 %v761_v19  ;;  %v250_v32 = vmul.f32 1.442695, %v218_v28  ;;  %v252_v34 = vmul.f32 1.442695, %v219_v29  ;;  %v221_v37 = vsel %vm1059_vm5, %v147_v11, 0.0 }
  0x19   : > { %815 = vpow2.f32 %v762_v20  ;;  %v254_v39 = vmul.f32 1.442695, %v220_v30  ;;  %v222_v41 = vsel %vm1059_vm5, %v148_v12, 0.0  ;;  %v256_v44 = vmul.f32 1.442695, %v221_v37 }
  0x1a   : > { %817 = vpow2.f32 %v763_v24  ;;  %v223_v46 = vsel %vm1059_vm5, %v149_v14, 0.0  ;;  %v258_v48 = vmul.f32 1.442695, %v222_v41  ;;  %v224_v50 = vsel %vm1059_vm5, %v1048_v17, 0.0 }
  0x1b   : > { %819 = vpow2.f32 %v250_v32  ;;  %v260_v55 = vmul.f32 1.442695, %v223_v46  ;;  %v225_v59 = vsel %vm1059_vm5, %v1052_v21, 0.0  ;;  %v262_v62 = vmul.f32 1.442695, %v224_v50  ;;  %v1136_v21 = vld [vmem:[%s1038_s14 + $0x68] sm:$0xff] }
  0x1c   : > { %v765_v1 = vmul.f32 -1.442695, %v1084_v56  ;;  %v595_v5 = vsel %vm577_vm6, %v1079_v53, 0.0  ;;  %v264_v6 = vmul.f32 1.442695, %v225_v59  ;;  %v580_v11 = vsel %vm578_vm7, 1.0, %v1003_v10 }
  0x1d   : > { %v804_v26 = vpop.eup %803  ;;  %v766_v7 = vmul.f32 -1.442695, %v1096_v60  ;;  %v596_v14 = vsel %vm577_vm6, %v1081_v54, 0.0  ;;  %v1118_v15 = vmul.f32 -1.442695, %v1101_v2  ;;  %v226_v20 = vsel %vm1059_vm5, %v152_v51, 0.0 }
  0x1e   : > { %v806_v31 = vpop.eup %805  ;;  %v449_v33 = vadd.f32 1.0, %v804_v26  ;;  %v1121_v16 = vmul.f32 -1.442695, %v1104_v3  ;;  %v597_v26 = vsel %vm577_vm6, %v1079_v53, %v580_v11  ;;  %v581_v27 = vsel %vm578_vm7, 2.0, %v1003_v10  ;;  %v158_v50 = vld [vmem:[%s1038_s14 + $0x70] sm:$0xff] }
  0x1f   : > { %v808_v35 = vpop.eup %807  ;;  %v450_v36 = vadd.f32 1.0, %v806_v31  ;;  %v227_v31 = vsel %vm1059_vm5, %v1084_v56, 0.0  ;;  %v599_v43 = vsel %vm577_vm6, %v1079_v53, %v581_v27 }
  0x20   : > { %v810_v38 = vpop.eup %809  ;;  %821 = vrcp.f32 %v449_v33  ;;  %v451_v40 = vadd.f32 1.0, %v808_v35  ;;  %v266_v35 = vmul.f32 1.442695, %v226_v20 }
  0x21   : > { %v812_v42 = vpop.eup %811  ;;  %823 = vpow2.f32 %v252_v34  ;;  %v452_v45 = vadd.f32 1.0, %v810_v38  ;;  %v598_v34 = vsel %vm577_vm6, %v1081_v54, %v580_v11 }
  0x22   : > { %825 = vrcp.f32 %v450_v36  ;;  %v814_v47 = vpop.eup %813  ;;  %v453_v49 = vadd.f32 1.0, %v812_v42  ;;  %v769_v36 = vmul.f32 -1.442695, %v1136_v21 }
  0x23   : > { %827 = vpow2.f32 %v254_v39  ;;  %v816_v52 = vpop.eup %815  ;;  %v454_v58 = vadd.f32 1.0, %v814_v47 }
  0x24   : > { %829 = vrcp.f32 %v451_v40  ;;  %v818_v61 = vpop.eup %817  ;;  %v455_v0 = vadd.f32 1.0, %v816_v52  ;;  %v228_v40 = vsel %vm1059_vm5, %v1096_v60, 0.0 }
  0x25   : > { %831 = vpow2.f32 %v256_v44  ;;  %v820_v4 = vpop.eup %819  ;;  %v456_v12 = vadd.f32 1.0, %v818_v61  ;;  %v600_v44 = vsel %vm577_vm6, %v1081_v54, %v581_v27  ;;  %v270_v56 = vmul.f32 1.442695, %v228_v40 }
  0x26   : > { %833 = vrcp.f32 %v452_v45  ;;  %v321_v9 = vmul.f32 %v820_v4, %v1089_v57  ;;  %v268_v45 = vmul.f32 1.442695, %v227_v31  ;;  %v230_v61 = vsel %vm1059_vm5, %v1104_v3, 0.0 }
  0x27   : > { %835 = vpow2.f32 %v258_v48 }
  0x28   : > { %837 = vrcp.f32 %v453_v49  ;;  %v229_v49 = vsel %vm1059_vm5, %v1101_v2, 0.0 }
  0x29   : > { %839 = vpow2.f32 %v260_v55  ;;  %v582_v55 = vsel %vm578_vm7, 3.0, %v1003_v10 }
  0x2a   : > { %v822_v8 = vpop.eup %821  ;;  %841 = vrcp.f32 %v454_v58 }
  0x2b   : > { %v824_v13 = vpop.eup %823  ;;  %843 = vpow2.f32 %v262_v62  ;;  %v545_v18 = vsel %vm1059_vm5, %v321_v9, %v822_v8  ;;  %v274_v8 = vmul.f32 1.442695, %v230_v61  ;;  %v231_v9 = vsel %vm1059_vm5, %v1136_v21, 0.0 }
  0x2c   : > { %v826_v17 = vpop.eup %825  ;;  %v322_v19 = vmul.f32 %v824_v13, %v1089_v57  ;;  %845 = vrcp.f32 %v455_v0  ;;  %v627_v24 = vadd.f32 %v595_v5, %v545_v18  ;;  %v272_v0 = vmul.f32 1.442695, %v229_v49 }
  0x2d   : > { %v828_v22 = vpop.eup %827  ;;  %847 = vpow2.f32 %v264_v6  ;;  %v601_v6 = vsel %vm577_vm6, %v1079_v53, %v582_v55  ;;  %v276_v20 = vmul.f32 1.442695, %v231_v9 }
  0x2e   : > { %v830_v28 = vpop.eup %829  ;;  %v546_v29 = vsel %vm1059_vm5, %v322_v19, %v826_v17  ;;  %v323_v30 = vmul.f32 %v828_v22, %v1089_v57  ;;  %849 = vrcp.f32 %v456_v12  ;;  %659 = vst [vmem:[%s1128_s19] sm:$0xff] %v627_v24  ;;  %v159_v17 = vld [vmem:[%s1038_s14 + $0x78] sm:$0xff]  ;;  %v232_v24 = vsel %vm1059_vm5, %v158_v50, 0.0 }
  0x2f   : > { %v832_v32 = vpop.eup %831  ;;  %v628_v33 = vadd.f32 %v596_v14, %v546_v29  ;;  %851 = vpow2.f32 %v764_v63  ;;  %v602_v14 = vsel %vm577_vm6, %v1081_v54, %v582_v55 }
  0x30   : > { %v834_v37 = vpop.eup %833  ;;  %v547_v38 = vsel %vm1059_vm5, %v323_v30, %v830_v28  ;;  %v324_v39 = vmul.f32 %v832_v32, %v1089_v57  ;;  %853 = vpow2.f32 %v765_v1  ;;  %v770_v1 = vmul.f32 -1.442695, %v158_v50  ;;  %v160_v30 = vld [vmem:[%s1038_s14 + $0x80] sm:$0xff] }
  0x31   : > { %v836_v41 = vpop.eup %835  ;;  %660 = vst [vmem:[%s1128_s19 + $0x8] sm:$0xff] %v628_v33  ;;  %v629_v42 = vadd.f32 %v597_v26, %v547_v38  ;;  %855 = vpow2.f32 %v266_v35  ;;  %v771_v26 = vmul.f32 -1.442695, %v159_v17  ;;  %v583_v28 = vsel %vm578_vm7, 4.0, %v1003_v10 }
  0x32   : > { %v838_v46 = vpop.eup %837  ;;  %v548_v47 = vsel %vm1059_vm5, %v324_v39, %v834_v37  ;;  %v325_v48 = vmul.f32 %v836_v41, %v1089_v57  ;;  %857 = vpow2.f32 %v766_v7  ;;  %v584_v32 = vsel %vm578_vm7, 5.0, %v1003_v10 }
  0x33   : > { %v840_v51 = vpop.eup %839  ;;  %661 = vst [vmem:[%s1128_s19 + $0x10] sm:$0xff] %v629_v42  ;;  %v630_v52 = vadd.f32 %v598_v34, %v548_v47  ;;  %859 = vpow2.f32 %v268_v45  ;;  %v278_v33 = vmul.f32 1.442695, %v232_v24  ;;  %v233_v37 = vsel %vm1059_vm5, %v159_v17, 0.0 }
  0x34   : > { %v842_v58 = vpop.eup %841  ;;  %v549_v59 = vsel %vm1059_vm5, %v325_v48, %v838_v46  ;;  %v326_v60 = vmul.f32 %v840_v51, %v1089_v57  ;;  %861 = vpow2.f32 %v1118_v15  ;;  %v603_v39 = vsel %vm577_vm6, %v1079_v53, %v583_v28  ;;  %v161_v46 = vld [vmem:[%s1038_s14 + $0x88] sm:$0xff] }
  0x35   : > { %v844_v62 = vpop.eup %843  ;;  %662 = vst [vmem:[%s1128_s19 + $0x18] sm:$0xff] %v630_v52  ;;  %v631_v63 = vadd.f32 %v599_v43, %v549_v59  ;;  %863 = vpow2.f32 %v270_v56  ;;  %v604_v40 = vsel %vm577_vm6, %v1081_v54, %v583_v28  ;;  %v772_v41 = vmul.f32 -1.442695, %v160_v30 }
  0x36   : > { %v846_v2 = vpop.eup %845  ;;  %v550_v4 = vsel %vm1059_vm5, %v326_v60, %v842_v58  ;;  %v327_v5 = vmul.f32 %v844_v62, %v1089_v57  ;;  %865 = vpow2.f32 %v1121_v16  ;;  %v1233_v43 = vsel %vm577_vm6, %v1079_v53, %v584_v32  ;;  %v162_v58 = vld [vmem:[%s1038_s14 + $0x90] sm:$0xff] }
  0x37   : > { %v848_v3 = vpop.eup %847  ;;  %663 = vst [vmem:[%s1128_s19 + $0x20] sm:$0xff] %v631_v63  ;;  %v632_v7 = vadd.f32 %v600_v44, %v550_v4  ;;  %867 = vpow2.f32 %v272_v0  ;;  %v1238_v45 = vsel %vm577_vm6, %v1081_v54, %v584_v32  ;;  %v280_v49 = vmul.f32 1.442695, %v233_v37  ;;  %v163_v4 = vld [vmem:[%s1038_s14 + $0x98] sm:$0xff]  ;;  %v165_v32 = vld [vmem:[%s1038_s14 + $0xa8] sm:$0xff] }
  0x38   : > { %v850_v11 = vpop.eup %849  ;;  %v551_v12 = vsel %vm1059_vm5, %v327_v5, %v846_v2  ;;  %v328_v13 = vmul.f32 %v848_v3, %v1089_v57  ;;  %869 = vpow2.f32 %v769_v36  ;;  %v585_v36 = vsel %vm578_vm7, 6.0, %v1003_v10 }
  0x39   : > { %664 = vst [vmem:[%s1128_s19 + $0x28] sm:$0xff] %v632_v7  ;;  %v633_v15 = vadd.f32 %v601_v6, %v551_v12  ;;  %v852_v18 = vpop.eup %851  ;;  %871 = vpow2.f32 %v274_v8  ;;  %v1244_v48 = vsel %vm577_vm6, %v1079_v53, %v585_v36  ;;  %v234_v50 = vsel %vm1059_vm5, %v160_v30, 0.0 }
  0x3a   : > { %v552_v19 = vsel %vm1059_vm5, %v328_v13, %v850_v11  ;;  %v457_v22 = vadd.f32 1.0, %v852_v18  ;;  %v854_v16 = vpop.eup %853  ;;  %873 = vpow2.f32 %v770_v1  ;;  %v1251_v55 = vsel %vm577_vm6, %v1081_v54, %v585_v36  ;;  %v164_v18 = vld [vmem:[%s1038_s14 + $0xa0] sm:$0xff] }
  0x3b   : > { %665 = vst [vmem:[%s1128_s19 + $0x30] sm:$0xff] %v633_v15  ;;  %v634_v21 = vadd.f32 %v602_v14, %v552_v19  ;;  %v856_v27 = vpop.eup %855  ;;  %v458_v29 = vadd.f32 1.0, %v854_v16  ;;  %v235_v56 = vsel %vm1059_vm5, %v161_v46, 0.0  ;;  %v773_v61 = vmul.f32 -1.442695, %v161_v46 }
  0x3c   : > { %875 = vrcp.f32 %v457_v22  ;;  %v858_v31 = vpop.eup %857  ;;  %v329_v60 = vmul.f32 %v856_v27, %v1089_v57  ;;  %v236_v62 = vsel %vm1059_vm5, %v162_v58, 0.0  ;;  %v1262_v1 = vsel %vm578_vm7, 7.0, %v1003_v10 }
  0x3d   : > { %666 = vst [vmem:[%s1128_s19 + $0x38] sm:$0xff] %v634_v21  ;;  %877 = vpow2.f32 %v276_v20  ;;  %v860_v34 = vpop.eup %859  ;;  %v459_v35 = vadd.f32 1.0, %v858_v31  ;;  %v282_v2 = vmul.f32 1.442695, %v234_v50  ;;  %v284_v3 = vmul.f32 1.442695, %v235_v56 }
  0x3e   : > { %879 = vrcp.f32 %v458_v29  ;;  %v862_v38 = vpop.eup %861  ;;  %v330_v6 = vmul.f32 %v860_v34, %v1089_v57  ;;  %v774_v7 = vmul.f32 -1.442695, %v162_v58  ;;  %v286_v11 = vmul.f32 1.442695, %v236_v62 }
  0x3f   : > { %881 = vpow2.f32 %v771_v26  ;;  %v864_v42 = vpop.eup %863  ;;  %v460_v44 = vadd.f32 1.0, %v862_v38  ;;  %v237_v12 = vsel %vm1059_vm5, %v163_v4, 0.0  ;;  %v775_v17 = vmul.f32 -1.442695, %v163_v4 }
  0x40   : > { %883 = vrcp.f32 %v459_v35  ;;  %v866_v47 = vpop.eup %865  ;;  %v331_v15 = vmul.f32 %v864_v42, %v1089_v57  ;;  %v238_v21 = vsel %vm1059_vm5, %v164_v18, 0.0  ;;  %v1277_v22 = vsel %vm578_vm7, 12.0, %v1003_v10 }
  0x41   : > { %885 = vpow2.f32 %v278_v33  ;;  %v868_v51 = vpop.eup %867  ;;  %v461_v52 = vadd.f32 1.0, %v866_v47  ;;  %v1286_v27 = vsel %vm577_vm6, %v1079_v53, %v1277_v22  ;;  %v288_v31 = vmul.f32 1.442695, %v237_v12 }
  0x42   : > { %887 = vrcp.f32 %v460_v44  ;;  %v870_v59 = vpop.eup %869  ;;  %v332_v26 = vmul.f32 %v868_v51, %v1089_v57  ;;  %v776_v36 = vmul.f32 -1.442695, %v164_v18  ;;  %v777_v46 = vmul.f32 -1.442695, %v165_v32 }
  0x43   : > { %889 = vpow2.f32 %v772_v41  ;;  %v872_v63 = vpop.eup %871  ;;  %v462_v0 = vadd.f32 1.0, %v870_v59  ;;  %v1306_v51 = vsel %vm578_vm7, 13.0, %v1003_v10  ;;  %v610_v62 = vsel %vm577_vm6, %v1081_v54, %v1262_v1 }
  0x44   : > { %891 = vrcp.f32 %v461_v52  ;;  %v874_v5 = vpop.eup %873  ;;  %v333_v35 = vmul.f32 %v872_v63, %v1089_v57 }
  0x45   : > { %893 = vpow2.f32 %v280_v49  ;;  %v463_v9 = vadd.f32 1.0, %v874_v5 }
  0x46   : > { %v876_v8 = vpop.eup %875  ;;  %895 = vrcp.f32 %v462_v0 }
  0x47   : > { %v878_v13 = vpop.eup %877  ;;  %v553_v14 = vsel %vm1059_vm5, %v329_v60, %v876_v8  ;;  %897 = vpow2.f32 %v773_v61  ;;  %v609_v61 = vsel %vm577_vm6, %v1079_v53, %v1262_v1 }
  0x48   : > { %v880_v19 = vpop.eup %879  ;;  %v635_v20 = vadd.f32 %v603_v39, %v553_v14  ;;  %899 = vrcp.f32 %v463_v9  ;;  %v290_v39 = vmul.f32 1.442695, %v238_v21  ;;  %v334_v44 = vmul.f32 %v878_v13, %v1089_v57  ;;  %v168_v14 = vld [vmem:[%s1038_s14 + $0xc0] sm:$0xff] }
  0x49   : > { %v882_v24 = vpop.eup %881  ;;  %v554_v16 = vsel %vm1059_vm5, %v330_v6, %v880_v19  ;;  %901 = vpow2.f32 %v282_v2 }
  0x4a   : > { %v884_v28 = vpop.eup %883  ;;  %667 = vst [vmem:[%s1128_s19 + $0x40] sm:$0xff] %v635_v20  ;;  %v636_v29 = vadd.f32 %v604_v40, %v554_v16  ;;  %v464_v30 = vadd.f32 1.0, %v882_v24  ;;  %903 = vpow2.f32 %v774_v7  ;;  %v239_v40 = vsel %vm1059_vm5, %v165_v32, 0.0 }
  0x4b   : > { %v886_v33 = vpop.eup %885  ;;  %v555_v34 = vsel %vm1059_vm5, %v331_v15, %v884_v28  ;;  %905 = vpow2.f32 %v284_v3  ;;  %v292_v2 = vmul.f32 1.442695, %v239_v40  ;;  %v1345_v15 = vsel %vm578_vm7, 14.0, %v1003_v10 }
  0x4c   : > { %v888_v37 = vpop.eup %887  ;;  %668 = vst [vmem:[%s1128_s19 + $0x48] sm:$0xff] %v636_v29  ;;  %v637_v38 = vadd.f32 %v1233_v43, %v555_v34  ;;  %907 = vrcp.f32 %v464_v30  ;;  %v166_v43 = vld [vmem:[%s1038_s14 + $0xb0] sm:$0xff]  ;;  %v335_v58 = vmul.f32 %v886_v33, %v1089_v57  ;;  %v1351_v20 = vsel %vm577_vm6, %v1079_v53, %v1345_v15  ;;  %v169_v30 = vld [vmem:[%s1038_s14 + $0xc8] sm:$0xff] }
  0x4d   : > { %v890_v41 = vpop.eup %889  ;;  %v556_v42 = vsel %vm1059_vm5, %v332_v26, %v888_v37  ;;  %909 = vpow2.f32 %v775_v17  ;;  %v778_v4 = vmul.f32 -1.442695, %v166_v43  ;;  %v240_v1 = vsel %vm1059_vm5, %v166_v43, 0.0 }
  0x4e   : > { %v892_v47 = vpop.eup %891  ;;  %669 = vst [vmem:[%s1128_s19 + $0x50] sm:$0xff] %v637_v38  ;;  %v638_v49 = vadd.f32 %v1238_v45, %v556_v42  ;;  %v465_v50 = vadd.f32 1.0, %v890_v41  ;;  %911 = vpow2.f32 %v286_v11  ;;  %v1315_v45 = vsel %vm577_vm6, %v1079_v53, %v1306_v51  ;;  %v170_v42 = vld [vmem:[%s1038_s14 + $0xd0] sm:$0xff] }
  0x4f   : > { %v894_v52 = vpop.eup %893  ;;  %v557_v56 = vsel %vm1059_vm5, %v333_v35, %v892_v47  ;;  %913 = vpow2.f32 %v776_v36  ;;  %v587_v11 = vsel %vm578_vm7, 8.0, %v1003_v10  ;;  %v294_v19 = vmul.f32 1.442695, %v240_v1 }
  0x50   : > { %v896_v59 = vpop.eup %895  ;;  %670 = vst [vmem:[%s1128_s19 + $0x58] sm:$0xff] %v638_v49  ;;  %v639_v60 = vadd.f32 %v1244_v48, %v557_v56  ;;  %915 = vrcp.f32 %v465_v50  ;;  %v167_v48 = vld [vmem:[%s1038_s14 + $0xb8] sm:$0xff]  ;;  %v336_v9 = vmul.f32 %v894_v52, %v1089_v57  ;;  %v780_v29 = vmul.f32 -1.442695, %v168_v14 }
  0x51   : > { %v898_v63 = vpop.eup %897  ;;  %v558_v0 = vsel %vm1059_vm5, %v334_v44, %v896_v59  ;;  %917 = vpow2.f32 %v288_v31  ;;  %v779_v13 = vmul.f32 -1.442695, %v167_v48  ;;  %v241_v24 = vsel %vm1059_vm5, %v167_v48, 0.0 }
  0x52   : > { %v900_v5 = vpop.eup %899  ;;  %671 = vst [vmem:[%s1128_s19 + $0x60] sm:$0xff] %v639_v60  ;;  %v640_v6 = vadd.f32 %v1251_v55, %v558_v0  ;;  %v466_v3 = vadd.f32 1.0, %v898_v63  ;;  %919 = vpow2.f32 %v777_v46  ;;  %v611_v33 = vsel %vm577_vm6, %v1079_v53, %v587_v11  ;;  %v171_v63 = vld [vmem:[%s1038_s14 + $0xd8] sm:$0xff] }
  0x53   : > { %v902_v7 = vpop.eup %901  ;;  %v559_v8 = vsel %vm1059_vm5, %v335_v58, %v900_v5  ;;  %921 = vpow2.f32 %v290_v39  ;;  %v296_v36 = vmul.f32 1.442695, %v241_v24  ;;  %v242_v37 = vsel %vm1059_vm5, %v168_v14, 0.0 }
  0x54   : > { %v904_v12 = vpop.eup %903  ;;  %672 = vst [vmem:[%s1128_s19 + $0x68] sm:$0xff] %v640_v6  ;;  %v641_v55 = vadd.f32 %v609_v61, %v559_v8  ;;  %923 = vrcp.f32 %v466_v3  ;;  %v337_v28 = vmul.f32 %v902_v7, %v1089_v57  ;;  %v1368_v38 = vsel %vm578_vm7, 15.0, %v1003_v10  ;;  %v172_v7 = vld [vmem:[%s1038_s14 + $0xe0] sm:$0xff] }
  0x55   : > { %v906_v17 = vpop.eup %905  ;;  %v467_v18 = vadd.f32 1.0, %v904_v12  ;;  %925 = vpow2.f32 %v778_v4  ;;  %v781_v41 = vmul.f32 -1.442695, %v169_v30  ;;  %v1376_v44 = vsel %vm577_vm6, %v1079_v53, %v1368_v38 }
  0x56   : > { %v908_v21 = vpop.eup %907  ;;  %673 = vst [vmem:[%s1128_s19 + $0x70] sm:$0xff] %v641_v55  ;;  %927 = vpow2.f32 %v292_v2  ;;  %v338_v49 = vmul.f32 %v906_v17, %v1089_v57  ;;  %v588_v50 = vsel %vm578_vm7, 9.0, %v1003_v10  ;;  %v298_v56 = vmul.f32 1.442695, %v242_v37 }
  0x57   : > { %v910_v16 = vpop.eup %909  ;;  %v560_v26 = vsel %vm1059_vm5, %v336_v9, %v908_v21  ;;  %929 = vrcp.f32 %v467_v18  ;;  %v243_v58 = vsel %vm1059_vm5, %v169_v30, 0.0  ;;  %v612_v60 = vsel %vm577_vm6, %v1081_v54, %v587_v11 }
  0x58   : > { %v912_v31 = vpop.eup %911  ;;  %v642_v32 = vadd.f32 %v610_v62, %v560_v26  ;;  %v468_v34 = vadd.f32 1.0, %v910_v16  ;;  %931 = vpow2.f32 %v779_v13  ;;  %v782_v62 = vmul.f32 -1.442695, %v170_v42  ;;  %v173_v16 = vld [vmem:[%s1038_s14 + $0xe8] sm:$0xff] }
  0x59   : > { %v914_v35 = vpop.eup %913  ;;  %933 = vpow2.f32 %v294_v19  ;;  %v339_v2 = vmul.f32 %v912_v31, %v1089_v57  ;;  %v613_v4 = vsel %vm577_vm6, %v1079_v53, %v588_v50  ;;  %v614_v48 = vsel %vm577_vm6, %v1081_v54, %v588_v50 }
  0x5a   : > { %v916_v39 = vpop.eup %915  ;;  %674 = vst [vmem:[%s1128_s19 + $0x78] sm:$0xff] %v642_v32  ;;  %935 = vrcp.f32 %v468_v34  ;;  %v469_v40 = vadd.f32 1.0, %v914_v35  ;;  %v300_v3 = vmul.f32 1.442695, %v243_v58  ;;  %v244_v1 = vsel %vm1059_vm5, %v170_v42, 0.0 }
  0x5b   : > { %v918_v46 = vpop.eup %917  ;;  %v561_v47 = vsel %vm1059_vm5, %v337_v28, %v916_v39  ;;  %937 = vpow2.f32 %v780_v29  ;;  %v783_v12 = vmul.f32 -1.442695, %v171_v63  ;;  %v589_v14 = vsel %vm578_vm7, 10.0, %v1003_v10 }
  0x5c   : > { %v920_v43 = vpop.eup %919  ;;  %v643_v52 = vadd.f32 %v611_v33, %v561_v47  ;;  %939 = vrcp.f32 %v469_v40  ;;  %v340_v13 = vmul.f32 %v918_v46, %v1089_v57  ;;  %v245_v17 = vsel %vm1059_vm5, %v171_v63, 0.0  ;;  %v174_v46 = vld [vmem:[%s1038_s14 + $0xf0] sm:$0xff] }
  0x5d   : > { %v922_v59 = vpop.eup %921  ;;  %v470_v61 = vadd.f32 1.0, %v920_v43  ;;  %941 = vpow2.f32 %v296_v36  ;;  %v302_v21 = vmul.f32 1.442695, %v244_v1  ;;  %v784_v24 = vmul.f32 -1.442695, %v172_v7 }
  0x5e   : > { %v924_v0 = vpop.eup %923  ;;  %675 = vst [vmem:[%s1128_s19 + $0x80] sm:$0xff] %v643_v52  ;;  %943 = vpow2.f32 %v781_v41  ;;  %v341_v29 = vmul.f32 %v922_v59, %v1089_v57  ;;  %v615_v32 = vsel %vm577_vm6, %v1079_v53, %v589_v14  ;;  %v304_v33 = vmul.f32 1.442695, %v245_v17 }
  0x5f   : > { %v926_v5 = vpop.eup %925  ;;  %v562_v6 = vsel %vm1059_vm5, %v338_v49, %v924_v0  ;;  %945 = vrcp.f32 %v470_v61  ;;  %v246_v36 = vsel %vm1059_vm5, %v172_v7, 0.0  ;;  %v785_v37 = vmul.f32 -1.442695, %v173_v16  ;;  %v175_v0 = vld [vmem:[%s1038_s14 + $0xf8] sm:$0xff] }
  0x60   : > { %v928_v8 = vpop.eup %927  ;;  %v644_v9 = vadd.f32 %v612_v60, %v562_v6  ;;  %v471_v11 = vadd.f32 1.0, %v926_v5  ;;  %947 = vpow2.f32 %v298_v56  ;;  %v616_v50 = vsel %vm577_vm6, %v1081_v54, %v589_v14 }
  0x61   : > { %v930_v55 = vpop.eup %929  ;;  %949 = vpow2.f32 %v782_v62  ;;  %v342_v41 = vmul.f32 %v928_v8, %v1089_v57  ;;  %v590_v43 = vsel %vm578_vm7, 11.0, %v1003_v10  ;;  %v306_v58 = vmul.f32 1.442695, %v246_v36 }
  0x62   : > { %v932_v18 = vpop.eup %931  ;;  %676 = vst [vmem:[%s1128_s19 + $0x88] sm:$0xff] %v644_v9  ;;  %v563_v19 = vsel %vm1059_vm5, %v339_v2, %v930_v55  ;;  %951 = vrcp.f32 %v471_v11  ;;  %v247_v59 = vsel %vm1059_vm5, %v173_v16, 0.0  ;;  %v786_v63 = vmul.f32 -1.442695, %v174_v46 }
  0x63   : > { %v934_v26 = vpop.eup %933  ;;  %v645_v28 = vadd.f32 %v613_v4, %v563_v19  ;;  %v472_v30 = vadd.f32 1.0, %v932_v18  ;;  %953 = vpow2.f32 %v300_v3  ;;  %v617_v4 = vsel %vm577_vm6, %v1079_v53, %v590_v43 }
  0x64   : > { %v936_v31 = vpop.eup %935  ;;  %955 = vpow2.f32 %v783_v12  ;;  %v343_v61 = vmul.f32 %v934_v26, %v1089_v57  ;;  %v308_v6 = vmul.f32 1.442695, %v247_v59  ;;  %v248_v3 = vsel %vm1059_vm5, %v174_v46, 0.0 }
  0x65   : > { %v938_v34 = vpop.eup %937  ;;  %677 = vst [vmem:[%s1128_s19 + $0x90] sm:$0xff] %v645_v28  ;;  %v564_v35 = vsel %vm1059_vm5, %v340_v13, %v936_v31  ;;  %957 = vrcp.f32 %v472_v30  ;;  %v787_v9 = vmul.f32 -1.442695, %v175_v0  ;;  %v618_v13 = vsel %vm577_vm6, %v1081_v54, %v590_v43 }
  0x66   : > { %v940_v39 = vpop.eup %939  ;;  %v646_v40 = vadd.f32 %v614_v48, %v564_v35  ;;  %v473_v42 = vadd.f32 1.0, %v938_v34  ;;  %959 = vpow2.f32 %v302_v21  ;;  %v310_v14 = vmul.f32 1.442695, %v248_v3 }
  0x67   : > { %v942_v47 = vpop.eup %941  ;;  %v565_v49 = vsel %vm1059_vm5, %v341_v29, %v940_v39  ;;  %961 = vpow2.f32 %v784_v24  ;;  %v249_v21 = vsel %vm1059_vm5, %v175_v0, 0.0  ;;  %v622_v59 = vsel %vm577_vm6, %v1081_v54, %v1306_v51 }
  0x68   : > { %v944_v52 = vpop.eup %943  ;;  %678 = vst [vmem:[%s1128_s19 + $0x98] sm:$0xff] %v646_v40  ;;  %v647_v56 = vadd.f32 %v615_v32, %v565_v49  ;;  %963 = vrcp.f32 %v473_v42  ;;  %v344_v7 = vmul.f32 %v942_v47, %v1089_v57  ;;  %v312_v32 = vmul.f32 1.442695, %v249_v21 }
  0x69   : > { %v946_v60 = vpop.eup %945  ;;  %v474_v62 = vadd.f32 1.0, %v944_v52  ;;  %965 = vpow2.f32 %v304_v33 }
  0x6a   : > { %v948_v2 = vpop.eup %947  ;;  %679 = vst [vmem:[%s1128_s19 + $0xa0] sm:$0xff] %v647_v56  ;;  %v566_v10 = vsel %vm1059_vm5, %v342_v41, %v946_v60  ;;  %967 = vpow2.f32 %v785_v37  ;;  %v620_v37 = vsel %vm577_vm6, %v1081_v54, %v1277_v22 }
  0x6b   : > { %v950_v48 = vpop.eup %949  ;;  %v648_v5 = vadd.f32 %v616_v50, %v566_v10  ;;  %969 = vrcp.f32 %v474_v62  ;;  %v345_v18 = vmul.f32 %v948_v2, %v1089_v57 }
  0x6c   : > { %v952_v1 = vpop.eup %951  ;;  %v475_v8 = vadd.f32 1.0, %v950_v48  ;;  %971 = vpow2.f32 %v306_v58 }
  0x6d   : > { %v954_v11 = vpop.eup %953  ;;  %680 = vst [vmem:[%s1128_s19 + $0xa8] sm:$0xff] %v648_v5  ;;  %v567_v53 = vsel %vm1059_vm5, %v343_v61, %v952_v1  ;;  %973 = vpow2.f32 %v786_v63  ;;  %v624_v5 = vsel %vm577_vm6, %v1081_v54, %v1345_v15  ;;  %v626_v15 = vsel %vm577_vm6, %v1081_v54, %v1368_v38 }
  0x6e   : > { %v956_v12 = vpop.eup %955  ;;  %v649_v55 = vadd.f32 %v617_v4, %v567_v53  ;;  %975 = vrcp.f32 %v475_v8  ;;  %v346_v30 = vmul.f32 %v954_v11, %v1089_v57 }
  0x6f   : > { %v958_v17 = vpop.eup %957  ;;  %v476_v19 = vadd.f32 1.0, %v956_v12  ;;  %977 = vpow2.f32 %v308_v6 }
  0x70   : > { %v960_v24 = vpop.eup %959  ;;  %681 = vst [vmem:[%s1128_s19 + $0xb0] sm:$0xff] %v649_v55  ;;  %v568_v16 = vsel %vm1059_vm5, %v344_v7, %v958_v17  ;;  %979 = vpow2.f32 %v787_v9 }
  0x71   : > { %v962_v26 = vpop.eup %961  ;;  %v650_v28 = vadd.f32 %v618_v13, %v568_v16  ;;  %981 = vrcp.f32 %v476_v19  ;;  %v347_v40 = vmul.f32 %v960_v24, %v1089_v57 }
  0x72   : > { %v964_v29 = vpop.eup %963  ;;  %v477_v31 = vadd.f32 1.0, %v962_v26  ;;  %983 = vpow2.f32 %v310_v14 }
  0x73   : > { %v966_v33 = vpop.eup %965  ;;  %682 = vst [vmem:[%s1128_s19 + $0xb8] sm:$0xff] %v650_v28  ;;  %v569_v34 = vsel %vm1059_vm5, %v345_v18, %v964_v29 }
  0x74   : > { %v968_v35 = vpop.eup %967  ;;  %v651_v36 = vadd.f32 %v1286_v27, %v569_v34  ;;  %985 = vrcp.f32 %v477_v31  ;;  %v348_v50 = vmul.f32 %v966_v33, %v1089_v57 }
  0x75   : > { %v970_v39 = vpop.eup %969  ;;  %v478_v41 = vadd.f32 1.0, %v968_v35  ;;  %987 = vpow2.f32 %v312_v32 }
  0x76   : > { %v972_v42 = vpop.eup %971  ;;  %683 = vst [vmem:[%s1128_s19 + $0xc0] sm:$0xff] %v651_v36  ;;  %v570_v46 = vsel %vm1059_vm5, %v346_v30, %v970_v39 }
  0x77   : > { %v974_v47 = vpop.eup %973  ;;  %v652_v27 = vadd.f32 %v620_v37, %v570_v46  ;;  %989 = vrcp.f32 %v478_v41  ;;  %v349_v61 = vmul.f32 %v972_v42, %v1089_v57 }
  0x78   : > { %v976_v49 = vpop.eup %975  ;;  %v479_v22 = vadd.f32 1.0, %v974_v47 }
  0x79   : > { %v978_v43 = vpop.eup %977  ;;  %684 = vst [vmem:[%s1128_s19 + $0xc8] sm:$0xff] %v652_v27  ;;  %v571_v52 = vsel %vm1059_vm5, %v347_v40, %v976_v49 }
  0x7a   : > { %v980_v56 = vpop.eup %979  ;;  %v653_v58 = vadd.f32 %v1315_v45, %v571_v52  ;;  %991 = vrcp.f32 %v479_v22  ;;  %v350_v10 = vmul.f32 %v978_v43, %v1089_v57 }
  0x7b   : > { %v982_v60 = vpop.eup %981  ;;  %v480_v62 = vadd.f32 1.0, %v980_v56 }
  0x7c   : > { %685 = vst [vmem:[%s1128_s19 + $0xd0] sm:$0xff] %v653_v58  ;;  %v572_v63 = vsel %vm1059_vm5, %v348_v50, %v982_v60  ;;  %v984_v0 = vpop.eup %983 }
  0x7d   : > { %v654_v2 = vadd.f32 %v622_v59, %v572_v63  ;;  %993 = vrcp.f32 %v480_v62  ;;  %v351_v3 = vmul.f32 %v984_v0, %v1089_v57 }
  0x7e   : > { %v986_v45 = vpop.eup %985 }
  0x7f   : > { %686 = vst [vmem:[%s1128_s19 + $0xd8] sm:$0xff] %v654_v2  ;;  %v573_v51 = vsel %vm1059_vm5, %v349_v61, %v986_v45  ;;  %v988_v4 = vpop.eup %987 }
  0x80   : > { %v655_v48 = vadd.f32 %v1351_v20, %v573_v51  ;;  %v352_v9 = vmul.f32 %v988_v4, %v1089_v57 }
  0x81   : > { %v990_v6 = vpop.eup %989 }
  0x82   : > { %687 = vst [vmem:[%s1128_s19 + $0xe0] sm:$0xff] %v655_v48  ;;  %v574_v1 = vsel %vm1059_vm5, %v350_v10, %v990_v6 }
  0x83   : > { %v656_v7 = vadd.f32 %v624_v5, %v574_v1 }
  0x84   : > { %v992_v8 = vpop.eup %991 }
  0x85   : > { %688 = vst [vmem:[%s1128_s19 + $0xe8] sm:$0xff] %v656_v7  ;;  %v575_v20 = vsel %vm1059_vm5, %v351_v3, %v992_v8 }
  0x86   : > { %v657_v11 = vadd.f32 %v1376_v44, %v575_v20 }
  0x87   : > { %v994_v53 = vpop.eup %993 }
  0x88   : > { %689 = vst [vmem:[%s1128_s19 + $0xf0] sm:$0xff] %v657_v11  ;;  %v576_v12 = vsel %vm1059_vm5, %v352_v9, %v994_v53 }
  0x89   : > { %v658_v55 = vadd.f32 %v626_v15, %v576_v12 }
  0x8b   : > { %690 = vst [vmem:[%s1128_s19 + $0xf8] sm:$0xff] %v658_v55 }
  0x8c PF: > { %s12_s9 = sadd.s32 1, %s1001_s9  }
  0x8d   : > { %p9_p4 = scmp.ge.s32.totalorder %s12_s9, 4  }
  0x8f   :  { %11 = sbr.rel (!%p9_p4) target bundleno = 1 (0x1), region = 58 }

// kernel: darknet_forward.17
= control target key start
LH: loop header
LB: loop body
LE: loop exit
PB: predicated region body
PF: predicated region fallthrough
CT: control target
= control target key end

     0   :  { %s2770_s6 = smov 0   ;;  %s3574_s0 = inlined_call_operand.vmem [shape: f32[2,8,8,128], index: 0, kind: input, shape index: {}]   ;;  %s3575_s1 = inlined_call_operand.vmem [shape: f32[2,8,2,8,2,128], index: 1, kind: output, shape index: {}]  }
   0x1 LB: > { %s2473_s7 = sadd.s32 4294967295, %s2757_s6   ;;  %p2477_p0 = scmp.ge.s32.totalorder %s2757_s6, 1  ;;  %s2757_s6 = sphi %s2770_s6, %s11_s6  }
   0x2   : > { %p87_p1 = scmp.lt.s32.totalorder %s2757_s6, 3 }
   0x4   : > { %p88_p2 = pnand %p2477_p0, %p87_p1 }
   0x5   : > { %p107_p3 = scmp.lt.s32.totalorder (!%p88_p2), %s2473_s7, 1  ;;  %v157_v0 = vlaneseq (!%p88_p2)  ;;  %v2759_v1 = vmov (!%p88_p2), 1966171168  }
   0x6   : > { %91 = sbr.rel (%p88_p2) target bundleno = 197 (0xc5), region = 24  ;;  %v315_v2 = vunpack.c.l.s4 (!%p88_p2), %v2759_v1 }
   0x7   : > { %v2780_v3 = vshrl.u32 (!%p88_p2), %v157_v0, 7 }
   0x8   : > { %v316_v4 = vunpack.c.0.s8 (!%p88_p2), %v315_v2 }
   0x9   : > { %vm159_vm0 = vcmp.eq.s32.totalorder (!%p88_p2), %v2780_v3, 0  ;;  %vm176_vm1 = vcmp.eq.s32.totalorder (!%p88_p2), %v2780_v3, 7 }
   0xa   : > { %v2791_v6 = vsub.s32 (!%p88_p2), %v316_v4, %v2780_v3 }
   0xd   : > { %s3577_s7 = smov (!%p107_p3, %s2473_s7), 1 }
   0xe   : > { %s2676_s8 = sshll.u32 %s3577_s7, 6  ;;  %s2677_s12 = sshll.u32 %s3577_s7, 8 }
   0xf   : > { %s2786_s11 = scalar_lea.vmem %s3574_s0, %s2676_s8  ;;  %s2888_s15 = scalar_lea.vmem %s3575_s1, %s2677_s12 }
  0x10   : > { %v117_v5 = vld [vmem:[%s2786_s11] sm:$0xff]  ;;  %v118_v7 = vld [vmem:[%s2786_s11 + $0x8] sm:$0xff]  ;;  %v119_v8 = vld [vmem:[%s2786_s11 + $0x10] sm:$0xff] }
  0x11   : > { %v2795_v9 = vmul.f32 0.75, %v117_v5  ;;  %v133_v10 = vmul.f32 0.25, %v117_v5  ;;  %v2797_v11 = vmul.f32 0.75, %v118_v7  ;;  %v2799_v12 = vmul.f32 0.75, %v119_v8  ;;  %v120_v13 = vld [vmem:[%s2786_s11 + $0x18] sm:$0xff]  ;;  %v121_v14 = vld [vmem:[%s2786_s11 + $0x20] sm:$0xff] }
  0x12   : > { %v2803_v15 = vmul.f32 0.25, %v118_v7  ;;  %v2805_v16 = vmul.f32 0.75, %v120_v13  ;;  %v2807_v17 = vmul.f32 0.25, %v119_v8  ;;  %v2809_v18 = vmul.f32 0.75, %v121_v14  ;;  %v122_v19 = vld [vmem:[%s2786_s11 + $0x28] sm:$0xff]  ;;  %v2813_v20 = vld [vmem:[%s2786_s11 + $0x30] sm:$0xff] }
  0x13   : > { %v2816_v21 = vadd.f32 %v133_v10, %v2795_v9  ;;  %v2819_v22 = vadd.f32 %v133_v10, %v2797_v11  ;;  %v2821_v23 = vmul.f32 0.25, %v120_v13  ;;  %v2823_v24 = vmul.f32 0.75, %v122_v19 }
  0x14   : > { %v2827_v25 = vadd.f32 %v2803_v15, %v2799_v12  ;;  %v2831_v26 = vadd.f32 %v2807_v17, %v2805_v16  ;;  %v2833_v27 = vmul.f32 0.25, %v121_v14  ;;  %v2836_v28 = vmul.f32 0.75, %v2813_v20 }
  0x15   : > { %v160_v29 = vrot.slane %v2816_v21, 7  ;;  %v2840_v30 = vmul.f32 0.75, %v2816_v21  ;;  %v161_v31 = vrot.slane %v2819_v22, 7  ;;  %v2844_v32 = vmul.f32 0.75, %v2819_v22 }
  0x16   : > { %v162_v33 = vrot.slane %v2827_v25, 7  ;;  %v2848_v34 = vmul.f32 0.75, %v2827_v25  ;;  %v163_v35 = vrot.slane %v2831_v26, 7  ;;  %v2852_v36 = vmul.f32 0.75, %v2831_v26 }
  0x17   : > { %v168_v37 = vsel %vm159_vm0, %v2816_v21, %v160_v29  ;;  %v169_v38 = vsel %vm159_vm0, %v2819_v22, %v161_v31  ;;  %v2862_v39 = vadd.f32 %v2821_v23, %v2809_v18  ;;  %v2866_v40 = vadd.f32 %v2833_v27, %v2823_v24 }
  0x18   : > { %v201_v41 = vmul.f32 0.25, %v168_v37  ;;  %v202_v42 = vmul.f32 0.25, %v169_v38  ;;  %v170_v43 = vsel %vm159_vm0, %v2827_v25, %v162_v33  ;;  %v171_v44 = vsel %vm159_vm0, %v2831_v26, %v163_v35 }
  0x19   : > { %v203_v45 = vmul.f32 0.25, %v170_v43  ;;  %v204_v46 = vmul.f32 0.25, %v171_v44  ;;  %v164_v47 = vrot.slane %v2862_v39, 7  ;;  %v2877_v48 = vmul.f32 0.75, %v2862_v39 }
  0x1a   : > { %v209_v49 = vadd.f32 %v201_v41, %v2840_v30  ;;  %v210_v50 = vadd.f32 %v202_v42, %v2844_v32  ;;  %v165_v51 = vrot.slane %v2866_v40, 7  ;;  %v2883_v52 = vmul.f32 0.75, %v2866_v40 }
  0x1b   : > { %v211_v53 = vadd.f32 %v203_v45, %v2848_v34  ;;  %v212_v54 = vadd.f32 %v204_v46, %v2852_v36  ;;  %v172_v55 = vsel %vm159_vm0, %v2862_v39, %v164_v47  ;;  %v2895_v56 = vmul.f32 0.25, %v122_v19 }
  0x1c   : > { %v320_v57 = vrot.slane %v209_v49, %v2791_v6  ;;  %v313_v58 = vcombine.high %v209_v49, %v209_v49  ;;  %v369_v59 = vrot.slane %v210_v50, %v2791_v6  ;;  %v362_v60 = vcombine.high %v210_v50, %v210_v50 }
  0x1d   : > { %v418_v61 = vrot.slane %v211_v53, %v2791_v6  ;;  %v411_v62 = vcombine.high %v211_v53, %v211_v53  ;;  %v467_v63 = vrot.slane %v212_v54, %v2791_v6  ;;  %v460_v0 = vcombine.high %v212_v54, %v212_v54 }
  0x1e   : > { %2482 = vst.sshfl [vmem:[%s2888_s15] sm:$0x1 pattern:$0x73625140] %v320_v57  ;;  %v328_v1 = vcombine.high %v320_v57, %v320_v57  ;;  %v336_v2 = vrot.slane %v320_v57, %v2791_v6  ;;  %v327_v4 = vrot.slane %v313_v58, %v2791_v6  ;;  %v377_v5 = vcombine.high %v369_v59, %v369_v59 }
  0x1f   : > { %2486 = vst.sshfl [vmem:[%s2888_s15 + $0x20] sm:$0x1 pattern:$0x73625140] %v369_v59  ;;  %v385_v7 = vrot.slane %v369_v59, %v2791_v6  ;;  %v376_v8 = vrot.slane %v362_v60, %v2791_v6  ;;  %v426_v10 = vcombine.high %v418_v61, %v418_v61  ;;  %v434_v13 = vrot.slane %v418_v61, %v2791_v6 }
  0x20   : > { %2490 = vst.sshfl [vmem:[%s2888_s15 + $0x40] sm:$0x1 pattern:$0x73625140] %v418_v61  ;;  %v358_v14 = vcombine.high %v336_v2, %v336_v2  ;;  %v350_v19 = vrot.slane %v328_v1, %v2791_v6  ;;  %v329_v29 = vcombine.high %v327_v4, %v327_v4  ;;  %v343_v31 = vrot.slane %v327_v4, %v2791_v6 }
  0x21   : > { %2494 = vst.sshfl [vmem:[%s2888_s15 + $0x60] sm:$0x1 pattern:$0x73625140] %v467_v63  ;;  %v407_v33 = vcombine.high %v385_v7, %v385_v7  ;;  %v399_v35 = vrot.slane %v377_v5, %v2791_v6  ;;  %v378_v37 = vcombine.high %v376_v8, %v376_v8  ;;  %v392_v38 = vrot.slane %v376_v8, %v2791_v6  ;;  %v2950_v7 = vld [vmem:[%s2786_s11 + $0x38] sm:$0xff] }
  0x22   : > { %2483 = vst.sshfl [vmem:[%s2888_s15 + $0x2] sm:$0x1 pattern:$0x73625140] %v328_v1  ;;  %771 = vst [vmem:[%s2888_s15 + $0x4] sm:$0x1] %v358_v14  ;;  %v360_v41 = vcombine.high %v350_v19, %v350_v19  ;;  %v359_v42 = vcombine.high %v343_v31, %v343_v31  ;;  %v357_v43 = vrot.slane %v329_v29, %v2791_v6 }
  0x23   : > { %2484 = vst.sshfl [vmem:[%s2888_s15 + $0x8] sm:$0x1 pattern:$0x73625140] %v327_v4  ;;  %v456_v44 = vcombine.high %v434_v13, %v434_v13  ;;  %779 = vst [vmem:[%s2888_s15 + $0x24] sm:$0x1] %v407_v33  ;;  %v409_v45 = vcombine.high %v399_v35, %v399_v35  ;;  %v408_v46 = vcombine.high %v392_v38, %v392_v38 }
  0x24   : > { %2487 = vst.sshfl [vmem:[%s2888_s15 + $0x22] sm:$0x1 pattern:$0x73625140] %v377_v5  ;;  %v406_v47 = vrot.slane %v378_v37, %v2791_v6  ;;  %v448_v49 = vrot.slane %v426_v10, %v2791_v6  ;;  %772 = vst [vmem:[%s2888_s15 + $0x6] sm:$0x1] %v360_v41  ;;  %v361_v50 = vcombine.high %v357_v43, %v357_v43 }
  0x25   : > { %2488 = vst.sshfl [vmem:[%s2888_s15 + $0x28] sm:$0x1 pattern:$0x73625140] %v376_v8  ;;  %775 = vst [vmem:[%s2888_s15 + $0xc] sm:$0x1] %v359_v42  ;;  %v425_v53 = vrot.slane %v411_v62, %v2791_v6  ;;  %v475_v54 = vcombine.high %v467_v63, %v467_v63  ;;  %v483_v57 = vrot.slane %v467_v63, %v2791_v6 }
  0x26   : > { %2491 = vst.sshfl [vmem:[%s2888_s15 + $0x42] sm:$0x1 pattern:$0x73625140] %v426_v10  ;;  %787 = vst [vmem:[%s2888_s15 + $0x44] sm:$0x1] %v456_v44  ;;  %v410_v58 = vcombine.high %v406_v47, %v406_v47  ;;  %v458_v59 = vcombine.high %v448_v49, %v448_v49  ;;  %v474_v60 = vrot.slane %v460_v0, %v2791_v6 }
  0x27   : > { %2485 = vst.sshfl [vmem:[%s2888_s15 + $0xa] sm:$0x1 pattern:$0x73625140] %v329_v29  ;;  %780 = vst [vmem:[%s2888_s15 + $0x26] sm:$0x1] %v409_v45  ;;  %v427_v1 = vcombine.high %v425_v53, %v425_v53  ;;  %v441_v62 = vrot.slane %v425_v53, %v2791_v6  ;;  %v505_v2 = vcombine.high %v483_v57, %v483_v57 }
  0x28   : > { %2489 = vst.sshfl [vmem:[%s2888_s15 + $0x2a] sm:$0x1 pattern:$0x73625140] %v378_v37  ;;  %783 = vst [vmem:[%s2888_s15 + $0x2c] sm:$0x1] %v408_v46  ;;  %v497_v63 = vrot.slane %v475_v54, %v2791_v6  ;;  %v476_v4 = vcombine.high %v474_v60, %v474_v60  ;;  %v490_v0 = vrot.slane %v474_v60, %v2791_v6 }
  0x29   : > { %v205_v61 = vmul.f32 0.25, %v172_v55  ;;  %776 = vst [vmem:[%s2888_s15 + $0xe] sm:$0x1] %v361_v50  ;;  %784 = vst [vmem:[%s2888_s15 + $0x2e] sm:$0x1] %v410_v58  ;;  %v173_v5 = vsel %vm159_vm0, %v2866_v40, %v165_v51  ;;  %v457_v8 = vcombine.high %v441_v62, %v441_v62  ;;  %v455_v10 = vrot.slane %v427_v1, %v2791_v6 }
  0x2a   : > { %2492 = vst.sshfl [vmem:[%s2888_s15 + $0x48] sm:$0x1 pattern:$0x73625140] %v425_v53  ;;  %788 = vst [vmem:[%s2888_s15 + $0x46] sm:$0x1] %v458_v59  ;;  %v507_v13 = vcombine.high %v497_v63, %v497_v63  ;;  %v506_v19 = vcombine.high %v490_v0, %v490_v0  ;;  %v504_v29 = vrot.slane %v476_v4, %v2791_v6 }
  0x2b   : > { %2495 = vst.sshfl [vmem:[%s2888_s15 + $0x62] sm:$0x1 pattern:$0x73625140] %v475_v54  ;;  %v213_v55 = vadd.f32 %v205_v61, %v2877_v48  ;;  %795 = vst [vmem:[%s2888_s15 + $0x64] sm:$0x1] %v505_v2  ;;  %v459_v33 = vcombine.high %v455_v10, %v455_v10  ;;  %v2964_v37 = vadd.f32 %v2895_v56, %v2836_v28 }
  0x2c   : > { %2496 = vst.sshfl [vmem:[%s2888_s15 + $0x68] sm:$0x1 pattern:$0x73625140] %v474_v60  ;;  %v206_v14 = vmul.f32 0.25, %v173_v5  ;;  %v2967_v38 = vmul.f32 0.75, %v2950_v7  ;;  %v508_v41 = vcombine.high %v504_v29, %v504_v29 }
  0x2d   : > { %2493 = vst.sshfl [vmem:[%s2888_s15 + $0x4a] sm:$0x1 pattern:$0x73625140] %v427_v1  ;;  %v516_v51 = vrot.slane %v213_v55, %v2791_v6  ;;  %v509_v31 = vcombine.high %v213_v55, %v213_v55  ;;  %791 = vst [vmem:[%s2888_s15 + $0x4c] sm:$0x1] %v457_v8 }
  0x2e   : > { %2497 = vst.sshfl [vmem:[%s2888_s15 + $0x6a] sm:$0x1 pattern:$0x73625140] %v476_v4  ;;  %796 = vst [vmem:[%s2888_s15 + $0x66] sm:$0x1] %v507_v13  ;;  %v214_v35 = vadd.f32 %v206_v14, %v2883_v52 }
  0x2f   : > { %799 = vst [vmem:[%s2888_s15 + $0x6c] sm:$0x1] %v506_v19  ;;  %2498 = vst.sshfl [vmem:[%s2888_s15 + $0x80] sm:$0x1 pattern:$0x73625140] %v516_v51  ;;  %v524_v42 = vcombine.high %v516_v51, %v516_v51  ;;  %v532_v43 = vrot.slane %v516_v51, %v2791_v6  ;;  %v523_v44 = vrot.slane %v509_v31, %v2791_v6 }
  0x30   : > { %792 = vst [vmem:[%s2888_s15 + $0x4e] sm:$0x1] %v459_v33  ;;  %v565_v45 = vrot.slane %v214_v35, %v2791_v6  ;;  %v558_v46 = vcombine.high %v214_v35, %v214_v35  ;;  %v166_v47 = vrot.slane %v2964_v37, 7  ;;  %v2977_v49 = vmul.f32 0.75, %v2964_v37  ;;  %800 = vst [vmem:[%s2888_s15 + $0x6e] sm:$0x1] %v508_v41 }
  0x31   : > { %2499 = vst.sshfl [vmem:[%s2888_s15 + $0x82] sm:$0x1 pattern:$0x73625140] %v524_v42  ;;  %v554_v50 = vcombine.high %v532_v43, %v532_v43  ;;  %v546_v53 = vrot.slane %v524_v42, %v2791_v6  ;;  %v525_v54 = vcombine.high %v523_v44, %v523_v44  ;;  %v539_v57 = vrot.slane %v523_v44, %v2791_v6 }
  0x32   : > { %2500 = vst.sshfl [vmem:[%s2888_s15 + $0x88] sm:$0x1 pattern:$0x73625140] %v523_v44  ;;  %v573_v58 = vcombine.high %v565_v45, %v565_v45  ;;  %v581_v59 = vrot.slane %v565_v45, %v2791_v6  ;;  %v572_v60 = vrot.slane %v558_v46, %v2791_v6  ;;  %v174_v61 = vsel %vm159_vm0, %v2964_v37, %v166_v47 }
  0x33   : > { %2502 = vst.sshfl [vmem:[%s2888_s15 + $0xa0] sm:$0x1 pattern:$0x73625140] %v565_v45  ;;  %803 = vst [vmem:[%s2888_s15 + $0x84] sm:$0x1] %v554_v50  ;;  %v556_v1 = vcombine.high %v546_v53, %v546_v53  ;;  %v555_v62 = vcombine.high %v539_v57, %v539_v57  ;;  %v553_v2 = vrot.slane %v525_v54, %v2791_v6 }
  0x34   : > { %2501 = vst.sshfl [vmem:[%s2888_s15 + $0x8a] sm:$0x1 pattern:$0x73625140] %v525_v54  ;;  %v207_v63 = vmul.f32 0.25, %v174_v61  ;;  %v603_v4 = vcombine.high %v581_v59, %v581_v59  ;;  %v595_v0 = vrot.slane %v573_v58, %v2791_v6  ;;  %v574_v55 = vcombine.high %v572_v60, %v572_v60 }
  0x35   : > { %2503 = vst.sshfl [vmem:[%s2888_s15 + $0xa2] sm:$0x1 pattern:$0x73625140] %v573_v58  ;;  %v588_v5 = vrot.slane %v572_v60, %v2791_v6  ;;  %804 = vst [vmem:[%s2888_s15 + $0x86] sm:$0x1] %v556_v1  ;;  %v557_v8 = vcombine.high %v553_v2, %v553_v2 }
  0x36   : > { %2504 = vst.sshfl [vmem:[%s2888_s15 + $0xa8] sm:$0x1 pattern:$0x73625140] %v572_v60  ;;  %807 = vst [vmem:[%s2888_s15 + $0x8c] sm:$0x1] %v555_v62  ;;  %v215_v10 = vadd.f32 %v207_v63, %v2977_v49  ;;  %v605_v19 = vcombine.high %v595_v0, %v595_v0  ;;  %v602_v51 = vrot.slane %v574_v55, %v2791_v6 }
  0x37   : > { %v3001_v13 = vmul.f32 0.25, %v2813_v20  ;;  %v177_v14 = vrot.slane %v2816_v21, 1  ;;  %811 = vst [vmem:[%s2888_s15 + $0xa4] sm:$0x1] %v603_v4  ;;  %v604_v29 = vcombine.high %v588_v5, %v588_v5  ;;  %v178_v31 = vrot.slane %v2819_v22, 1 }
  0x38   : > { %2505 = vst.sshfl [vmem:[%s2888_s15 + $0xaa] sm:$0x1 pattern:$0x73625140] %v574_v55  ;;  %808 = vst [vmem:[%s2888_s15 + $0x8e] sm:$0x1] %v557_v8  ;;  %v614_v33 = vrot.slane %v215_v10, %v2791_v6  ;;  %v607_v35 = vcombine.high %v215_v10, %v215_v10  ;;  %v606_v42 = vcombine.high %v602_v51, %v602_v51 }
  0x39   : > { %v3012_v20 = vadd.f32 %v3001_v13, %v2967_v38  ;;  %v185_v41 = vsel %vm176_vm1, %v2816_v21, %v177_v14  ;;  %812 = vst [vmem:[%s2888_s15 + $0xa6] sm:$0x1] %v605_v19  ;;  %815 = vst [vmem:[%s2888_s15 + $0xac] sm:$0x1] %v604_v29  ;;  %v186_v44 = vsel %vm176_vm1, %v2819_v22, %v178_v31  ;;  %v179_v45 = vrot.slane %v2827_v25, 1 }
  0x3a   : > { %v217_v43 = vmul.f32 0.25, %v185_v41  ;;  %2506 = vst.sshfl [vmem:[%s2888_s15 + $0xc0] sm:$0x1 pattern:$0x73625140] %v614_v33  ;;  %v622_v46 = vcombine.high %v614_v33, %v614_v33  ;;  %v630_v47 = vrot.slane %v614_v33, %v2791_v6  ;;  %v621_v50 = vrot.slane %v607_v35, %v2791_v6 }
  0x3b   : > { %v167_v21 = vrot.slane %v3012_v20, 7  ;;  %816 = vst [vmem:[%s2888_s15 + $0xae] sm:$0x1] %v606_v42  ;;  %v3029_v53 = vmul.f32 0.75, %v3012_v20  ;;  %v218_v57 = vmul.f32 0.25, %v186_v44  ;;  %v187_v22 = vsel %vm176_vm1, %v2827_v25, %v179_v45 }
  0x3c   : > { %v225_v54 = vadd.f32 %v217_v43, %v2840_v30  ;;  %2507 = vst.sshfl [vmem:[%s2888_s15 + $0xc2] sm:$0x1 pattern:$0x73625140] %v622_v46  ;;  %v652_v58 = vcombine.high %v630_v47, %v630_v47  ;;  %v644_v59 = vrot.slane %v622_v46, %v2791_v6  ;;  %v623_v60 = vcombine.high %v621_v50, %v621_v50 }
  0x3d   : > { %2508 = vst.sshfl [vmem:[%s2888_s15 + $0xc8] sm:$0x1 pattern:$0x73625140] %v621_v50  ;;  %v637_v61 = vrot.slane %v621_v50, %v2791_v6  ;;  %v175_v1 = vsel %vm159_vm0, %v3012_v20, %v167_v21  ;;  %v226_v25 = vadd.f32 %v218_v57, %v2844_v32  ;;  %v219_v29 = vmul.f32 0.25, %v187_v22 }
  0x3e   : > { %v848_v30 = vrot.slane %v225_v54, %v2791_v6  ;;  %v841_v62 = vcombine.high %v225_v54, %v225_v54  ;;  %819 = vst [vmem:[%s2888_s15 + $0xc4] sm:$0x1] %v652_v58  ;;  %v654_v2 = vcombine.high %v644_v59, %v644_v59  ;;  %2509 = vst.sshfl [vmem:[%s2888_s15 + $0xca] sm:$0x1 pattern:$0x73625140] %v623_v60 }
  0x3f   : > { %v653_v63 = vcombine.high %v637_v61, %v637_v61  ;;  %v651_v4 = vrot.slane %v623_v60, %v2791_v6  ;;  %v208_v0 = vmul.f32 0.25, %v175_v1  ;;  %v897_v10 = vrot.slane %v226_v25, %v2791_v6 }
  0x40   : > { %2514 = vst.sshfl [vmem:[%s2888_s15 + $0x1] sm:$0x1 pattern:$0x73625140] %v848_v30  ;;  %v856_v55 = vcombine.high %v848_v30, %v848_v30  ;;  %v864_v5 = vrot.slane %v848_v30, %v2791_v6  ;;  %v855_v8 = vrot.slane %v841_v62, %v2791_v6  ;;  %820 = vst [vmem:[%s2888_s15 + $0xc6] sm:$0x1] %v654_v2 }
  0x41   : > { %823 = vst [vmem:[%s2888_s15 + $0xcc] sm:$0x1] %v653_v63  ;;  %v655_v32 = vcombine.high %v651_v4, %v651_v4  ;;  %v216_v14 = vadd.f32 %v208_v0, %v3029_v53  ;;  %v890_v19 = vcombine.high %v226_v25, %v226_v25  ;;  %2518 = vst.sshfl [vmem:[%s2888_s15 + $0x21] sm:$0x1 pattern:$0x73625140] %v897_v10 }
  0x42   : > { %2515 = vst.sshfl [vmem:[%s2888_s15 + $0x3] sm:$0x1 pattern:$0x73625140] %v856_v55  ;;  %v886_v51 = vcombine.high %v864_v5, %v864_v5  ;;  %v878_v31 = vrot.slane %v856_v55, %v2791_v6  ;;  %v857_v33 = vcombine.high %v855_v8, %v855_v8  ;;  %v871_v35 = vrot.slane %v855_v8, %v2791_v6 }
  0x43   : > { %2516 = vst.sshfl [vmem:[%s2888_s15 + $0x9] sm:$0x1 pattern:$0x73625140] %v855_v8  ;;  %824 = vst [vmem:[%s2888_s15 + $0xce] sm:$0x1] %v655_v32  ;;  %v663_v41 = vrot.slane %v216_v14, %v2791_v6  ;;  %v656_v42 = vcombine.high %v216_v14, %v216_v14  ;;  %v905_v43 = vcombine.high %v897_v10, %v897_v10 }
  0x44   : > { %v913_v44 = vrot.slane %v897_v10, %v2791_v6  ;;  %1299 = vst [vmem:[%s2888_s15 + $0x5] sm:$0x1] %v886_v51  ;;  %v888_v45 = vcombine.high %v878_v31, %v878_v31  ;;  %2517 = vst.sshfl [vmem:[%s2888_s15 + $0xb] sm:$0x1 pattern:$0x73625140] %v857_v33  ;;  %v887_v46 = vcombine.high %v871_v35, %v871_v35 }
  0x45   : > { %v885_v47 = vrot.slane %v857_v33, %v2791_v6  ;;  %v904_v50 = vrot.slane %v890_v19, %v2791_v6  ;;  %2510 = vst.sshfl [vmem:[%s2888_s15 + $0xe0] sm:$0x1 pattern:$0x73625140] %v663_v41  ;;  %v671_v21 = vcombine.high %v663_v41, %v663_v41  ;;  %v679_v54 = vrot.slane %v663_v41, %v2791_v6 }
  0x46   : > { %v670_v57 = vrot.slane %v656_v42, %v2791_v6  ;;  %2519 = vst.sshfl [vmem:[%s2888_s15 + $0x23] sm:$0x1 pattern:$0x73625140] %v905_v43  ;;  %v935_v22 = vcombine.high %v913_v44, %v913_v44  ;;  %1300 = vst [vmem:[%s2888_s15 + $0x7] sm:$0x1] %v888_v45  ;;  %v927_v59 = vrot.slane %v905_v43, %v2791_v6 }
  0x47   : > { %1303 = vst [vmem:[%s2888_s15 + $0xd] sm:$0x1] %v887_v46  ;;  %v889_v58 = vcombine.high %v885_v47, %v885_v47  ;;  %2520 = vst.sshfl [vmem:[%s2888_s15 + $0x29] sm:$0x1 pattern:$0x73625140] %v904_v50  ;;  %v906_v60 = vcombine.high %v904_v50, %v904_v50  ;;  %v920_v61 = vrot.slane %v904_v50, %v2791_v6 }
  0x48   : > { %2511 = vst.sshfl [vmem:[%s2888_s15 + $0xe2] sm:$0x1 pattern:$0x73625140] %v671_v21  ;;  %v701_v1 = vcombine.high %v679_v54, %v679_v54  ;;  %v693_v30 = vrot.slane %v671_v21, %v2791_v6  ;;  %v672_v62 = vcombine.high %v670_v57, %v670_v57  ;;  %v686_v25 = vrot.slane %v670_v57, %v2791_v6 }
  0x49   : > { %2512 = vst.sshfl [vmem:[%s2888_s15 + $0xe8] sm:$0x1 pattern:$0x73625140] %v670_v57  ;;  %1307 = vst [vmem:[%s2888_s15 + $0x25] sm:$0x1] %v935_v22  ;;  %v937_v2 = vcombine.high %v927_v59, %v927_v59  ;;  %v936_v63 = vcombine.high %v920_v61, %v920_v61  ;;  %v934_v4 = vrot.slane %v906_v60, %v2791_v6 }
  0x4a   : > { %1304 = vst [vmem:[%s2888_s15 + $0xf] sm:$0x1] %v889_v58  ;;  %2521 = vst.sshfl [vmem:[%s2888_s15 + $0x2b] sm:$0x1 pattern:$0x73625140] %v906_v60  ;;  %v227_v0 = vadd.f32 %v219_v29, %v2848_v34  ;;  %v703_v55 = vcombine.high %v693_v30, %v693_v30  ;;  %v702_v5 = vcombine.high %v686_v25, %v686_v25 }
  0x4b   : > { %827 = vst [vmem:[%s2888_s15 + $0xe4] sm:$0x1] %v701_v1  ;;  %2513 = vst.sshfl [vmem:[%s2888_s15 + $0xea] sm:$0x1 pattern:$0x73625140] %v672_v62  ;;  %v700_v8 = vrot.slane %v672_v62, %v2791_v6  ;;  %v938_v32 = vcombine.high %v934_v4, %v934_v4 }
  0x4c   : > { %v180_v10 = vrot.slane %v2831_v26, 1  ;;  %1308 = vst [vmem:[%s2888_s15 + $0x27] sm:$0x1] %v937_v2  ;;  %1311 = vst [vmem:[%s2888_s15 + $0x2d] sm:$0x1] %v936_v63  ;;  %v946_v14 = vrot.slane %v227_v0, %v2791_v6  ;;  %v939_v19 = vcombine.high %v227_v0, %v227_v0  ;;  %v181_v51 = vrot.slane %v2862_v39, 1 }
  0x4d   : > { %828 = vst [vmem:[%s2888_s15 + $0xe6] sm:$0x1] %v703_v55  ;;  %831 = vst [vmem:[%s2888_s15 + $0xec] sm:$0x1] %v702_v5  ;;  %v704_v34 = vcombine.high %v700_v8, %v700_v8  ;;  %v182_v31 = vrot.slane %v2866_v40, 1  ;;  %v183_v33 = vrot.slane %v2964_v37, 1 }
  0x4e   : > { %v188_v29 = vsel %vm176_vm1, %v2831_v26, %v180_v10  ;;  %1312 = vst [vmem:[%s2888_s15 + $0x2f] sm:$0x1] %v938_v32  ;;  %2522 = vst.sshfl [vmem:[%s2888_s15 + $0x41] sm:$0x1 pattern:$0x73625140] %v946_v14  ;;  %v954_v35 = vcombine.high %v946_v14, %v946_v14  ;;  %v962_v41 = vrot.slane %v946_v14, %v2791_v6 }
  0x4f   : > { %v953_v42 = vrot.slane %v939_v19, %v2791_v6  ;;  %v220_v43 = vmul.f32 0.25, %v188_v29  ;;  %832 = vst [vmem:[%s2888_s15 + $0xee] sm:$0x1] %v704_v34  ;;  %v189_v44 = vsel %vm176_vm1, %v2862_v39, %v181_v51  ;;  %v190_v26 = vsel %vm176_vm1, %v2866_v40, %v182_v31 }
  0x50   : > { %v191_v45 = vsel %vm176_vm1, %v2964_v37, %v183_v33  ;;  %v184_v46 = vrot.slane %v3012_v20, 1  ;;  %2523 = vst.sshfl [vmem:[%s2888_s15 + $0x43] sm:$0x1 pattern:$0x73625140] %v954_v35  ;;  %v984_v47 = vcombine.high %v962_v41, %v962_v41  ;;  %v976_v50 = vrot.slane %v954_v35, %v2791_v6 }
  0x51   : > { %2524 = vst.sshfl [vmem:[%s2888_s15 + $0x49] sm:$0x1 pattern:$0x73625140] %v953_v42  ;;  %v955_v21 = vcombine.high %v953_v42, %v953_v42  ;;  %v969_v39 = vrot.slane %v953_v42, %v2791_v6  ;;  %v228_v54 = vadd.f32 %v220_v43, %v2852_v36  ;;  %v221_v57 = vmul.f32 0.25, %v189_v44 }
  0x52   : > { %v222_v40 = vmul.f32 0.25, %v190_v26  ;;  %v223_v22 = vmul.f32 0.25, %v191_v45  ;;  %1315 = vst [vmem:[%s2888_s15 + $0x45] sm:$0x1] %v984_v47  ;;  %v986_v37 = vcombine.high %v976_v50, %v976_v50  ;;  %v192_v60 = vsel %vm176_vm1, %v3012_v20, %v184_v46 }
  0x53   : > { %2525 = vst.sshfl [vmem:[%s2888_s15 + $0x4b] sm:$0x1 pattern:$0x73625140] %v955_v21  ;;  %v985_v58 = vcombine.high %v969_v39, %v969_v39  ;;  %v983_v59 = vrot.slane %v955_v21, %v2791_v6  ;;  %v995_v61 = vrot.slane %v228_v54, %v2791_v6  ;;  %v988_v1 = vcombine.high %v228_v54, %v228_v54 }
  0x54   : > { %v229_v36 = vadd.f32 %v221_v57, %v2877_v48  ;;  %v230_v30 = vadd.f32 %v222_v40, %v2883_v52  ;;  %1316 = vst [vmem:[%s2888_s15 + $0x47] sm:$0x1] %v986_v37  ;;  %v3131_v25 = vadd.f32 %v223_v22, %v2977_v49  ;;  %v3133_v2 = vmul.f32 0.25, %v192_v60 }
  0x55   : > { %1319 = vst [vmem:[%s2888_s15 + $0x4d] sm:$0x1] %v985_v58  ;;  %v987_v62 = vcombine.high %v983_v59, %v983_v59  ;;  %v3137_v20 = vadd.f32 %v2803_v15, %v2795_v9  ;;  %2526 = vst.sshfl [vmem:[%s2888_s15 + $0x61] sm:$0x1 pattern:$0x73625140] %v995_v61  ;;  %v1003_v63 = vcombine.high %v995_v61, %v995_v61 }
  0x56   : > { %v1011_v48 = vrot.slane %v995_v61, %v2791_v6  ;;  %v1002_v52 = vrot.slane %v988_v1, %v2791_v6  ;;  %v1044_v4 = vrot.slane %v229_v36, %v2791_v6  ;;  %v1037_v49 = vcombine.high %v229_v36, %v229_v36 }
  0x57   : > { %1320 = vst [vmem:[%s2888_s15 + $0x4f] sm:$0x1] %v987_v62  ;;  %v1093_v0 = vrot.slane %v230_v30, %v2791_v6  ;;  %v1086_v55 = vcombine.high %v230_v30, %v230_v30  ;;  %v1142_v9 = vrot.slane %v3131_v25, %v2791_v6  ;;  %2527 = vst.sshfl [vmem:[%s2888_s15 + $0x63] sm:$0x1 pattern:$0x73625140] %v1003_v63 }
  0x58   : > { %v1033_v15 = vcombine.high %v1011_v48, %v1011_v48  ;;  %v1025_v5 = vrot.slane %v1003_v63, %v2791_v6  ;;  %2528 = vst.sshfl [vmem:[%s2888_s15 + $0x69] sm:$0x1 pattern:$0x73625140] %v1002_v52  ;;  %v1004_v8 = vcombine.high %v1002_v52, %v1002_v52  ;;  %v1018_v10 = vrot.slane %v1002_v52, %v2791_v6 }
  0x59   : > { %2530 = vst.sshfl [vmem:[%s2888_s15 + $0x81] sm:$0x1 pattern:$0x73625140] %v1044_v4  ;;  %v1052_v32 = vcombine.high %v1044_v4, %v1044_v4  ;;  %v1060_v14 = vrot.slane %v1044_v4, %v2791_v6  ;;  %v1051_v19 = vrot.slane %v1037_v49, %v2791_v6  ;;  %v1101_v51 = vcombine.high %v1093_v0, %v1093_v0 }
  0x5a   : > { %2534 = vst.sshfl [vmem:[%s2888_s15 + $0xa1] sm:$0x1 pattern:$0x73625140] %v1093_v0  ;;  %1323 = vst [vmem:[%s2888_s15 + $0x65] sm:$0x1] %v1033_v15  ;;  %v1035_v34 = vcombine.high %v1025_v5, %v1025_v5  ;;  %v1034_v29 = vcombine.high %v1018_v10, %v1018_v10  ;;  %v1032_v31 = vrot.slane %v1004_v8, %v2791_v6 }
  0x5b   : > { %2538 = vst.sshfl [vmem:[%s2888_s15 + $0xc1] sm:$0x1 pattern:$0x73625140] %v1142_v9  ;;  %v1109_v33 = vrot.slane %v1093_v0, %v2791_v6  ;;  %v1082_v35 = vcombine.high %v1060_v14, %v1060_v14  ;;  %v1074_v41 = vrot.slane %v1052_v32, %v2791_v6  ;;  %v1053_v42 = vcombine.high %v1051_v19, %v1051_v19 }
  0x5c   : > { %2529 = vst.sshfl [vmem:[%s2888_s15 + $0x6b] sm:$0x1 pattern:$0x73625140] %v1004_v8  ;;  %v1067_v43 = vrot.slane %v1051_v19, %v2791_v6  ;;  %1324 = vst [vmem:[%s2888_s15 + $0x67] sm:$0x1] %v1035_v34  ;;  %v1036_v44 = vcombine.high %v1032_v31, %v1032_v31  ;;  %v1123_v45 = vrot.slane %v1101_v51, %v2791_v6 }
  0x5d   : > { %2531 = vst.sshfl [vmem:[%s2888_s15 + $0x83] sm:$0x1 pattern:$0x73625140] %v1052_v32  ;;  %1327 = vst [vmem:[%s2888_s15 + $0x6d] sm:$0x1] %v1034_v29  ;;  %v1131_v26 = vcombine.high %v1109_v33, %v1109_v33  ;;  %v1100_v46 = vrot.slane %v1086_v55, %v2791_v6  ;;  %v1084_v47 = vcombine.high %v1074_v41, %v1074_v41 }
  0x5e   : > { %2532 = vst.sshfl [vmem:[%s2888_s15 + $0x89] sm:$0x1 pattern:$0x73625140] %v1051_v19  ;;  %1331 = vst [vmem:[%s2888_s15 + $0x85] sm:$0x1] %v1082_v35  ;;  %v1083_v50 = vcombine.high %v1067_v43, %v1067_v43  ;;  %v1081_v21 = vrot.slane %v1053_v42, %v2791_v6  ;;  %v1150_v39 = vcombine.high %v1142_v9, %v1142_v9 }
  0x5f   : > { %2535 = vst.sshfl [vmem:[%s2888_s15 + $0xa3] sm:$0x1 pattern:$0x73625140] %v1101_v51  ;;  %1328 = vst [vmem:[%s2888_s15 + $0x6f] sm:$0x1] %v1036_v44  ;;  %v1133_v54 = vcombine.high %v1123_v45, %v1123_v45  ;;  %v1102_v57 = vcombine.high %v1100_v46, %v1100_v46  ;;  %v1116_v40 = vrot.slane %v1100_v46, %v2791_v6 }
  0x60   : > { %2533 = vst.sshfl [vmem:[%s2888_s15 + $0x8b] sm:$0x1 pattern:$0x73625140] %v1053_v42  ;;  %1339 = vst [vmem:[%s2888_s15 + $0xa5] sm:$0x1] %v1131_v26  ;;  %v1158_v22 = vrot.slane %v1142_v9, %v2791_v6  ;;  %v1085_v37 = vcombine.high %v1081_v21, %v1081_v21  ;;  %v1172_v58 = vrot.slane %v1150_v39, %v2791_v6 }
  0x61   : > { %2536 = vst.sshfl [vmem:[%s2888_s15 + $0xa9] sm:$0x1 pattern:$0x73625140] %v1100_v46  ;;  %1332 = vst [vmem:[%s2888_s15 + $0x87] sm:$0x1] %v1084_v47  ;;  %v1135_v59 = vcombine.high %v3131_v25, %v3131_v25  ;;  %v232_v60 = vadd.f32 %v3133_v2, %v3029_v53  ;;  %v1132_v61 = vcombine.high %v1116_v40, %v1116_v40 }
  0x62   : > { %1335 = vst [vmem:[%s2888_s15 + $0x8d] sm:$0x1] %v1083_v50  ;;  %2539 = vst.sshfl [vmem:[%s2888_s15 + $0xc3] sm:$0x1 pattern:$0x73625140] %v1150_v39  ;;  %v1130_v1 = vrot.slane %v1102_v57, %v2791_v6  ;;  %v1180_v36 = vcombine.high %v1158_v22, %v1158_v22  ;;  %v1182_v62 = vcombine.high %v1172_v58, %v1172_v58 }
  0x63   : > { %1340 = vst [vmem:[%s2888_s15 + $0xa7] sm:$0x1] %v1133_v54  ;;  %2537 = vst.sshfl [vmem:[%s2888_s15 + $0xab] sm:$0x1 pattern:$0x73625140] %v1102_v57  ;;  %v1149_v63 = vrot.slane %v1135_v59, %v2791_v6  ;;  %v1191_v25 = vrot.slane %v232_v60, %v2791_v6  ;;  %v1184_v48 = vcombine.high %v232_v60, %v232_v60 }
  0x64   : > { %v233_v30 = vrot.slane %v3137_v20, 7  ;;  %1336 = vst [vmem:[%s2888_s15 + $0x8f] sm:$0x1] %v1085_v37  ;;  %1343 = vst [vmem:[%s2888_s15 + $0xad] sm:$0x1] %v1132_v61  ;;  %v1134_v53 = vcombine.high %v1130_v1, %v1130_v1  ;;  %v3198_v52 = vmul.f32 0.75, %v3137_v20  ;;  %v3202_v4 = vadd.f32 %v2807_v17, %v2797_v11 }
  0x65   : > { %1347 = vst [vmem:[%s2888_s15 + $0xc5] sm:$0x1] %v1180_v36  ;;  %1348 = vst [vmem:[%s2888_s15 + $0xc7] sm:$0x1] %v1182_v62  ;;  %v1151_v49 = vcombine.high %v1149_v63, %v1149_v63  ;;  %v1165_v0 = vrot.slane %v1149_v63, %v2791_v6  ;;  %v1199_v55 = vcombine.high %v1191_v25, %v1191_v25 }
  0x66   : > { %v241_v2 = vsel %vm159_vm0, %v3137_v20, %v233_v30  ;;  %2540 = vst.sshfl [vmem:[%s2888_s15 + $0xc9] sm:$0x1 pattern:$0x73625140] %v1149_v63  ;;  %v1207_v9 = vrot.slane %v1191_v25, %v2791_v6  ;;  %1344 = vst [vmem:[%s2888_s15 + $0xaf] sm:$0x1] %v1134_v53  ;;  %v1198_v15 = vrot.slane %v1184_v48, %v2791_v6 }
  0x67   : > { %2542 = vst.sshfl [vmem:[%s2888_s15 + $0xe1] sm:$0x1 pattern:$0x73625140] %v1191_v25  ;;  %v273_v5 = vmul.f32 0.25, %v241_v2  ;;  %v234_v11 = vrot.slane %v3202_v4, 7  ;;  %v1181_v8 = vcombine.high %v1165_v0, %v1165_v0  ;;  %v1179_v10 = vrot.slane %v1151_v49, %v2791_v6 }
  0x68   : > { %v3213_v17 = vmul.f32 0.75, %v3202_v4  ;;  %2541 = vst.sshfl [vmem:[%s2888_s15 + $0xcb] sm:$0x1 pattern:$0x73625140] %v1151_v49  ;;  %v1229_v32 = vcombine.high %v1207_v9, %v1207_v9  ;;  %v1221_v14 = vrot.slane %v1199_v55, %v2791_v6  ;;  %v1200_v19 = vcombine.high %v1198_v15, %v1198_v15 }
  0x69   : > { %2543 = vst.sshfl [vmem:[%s2888_s15 + $0xe3] sm:$0x1 pattern:$0x73625140] %v1199_v55  ;;  %v1214_v51 = vrot.slane %v1198_v15, %v2791_v6  ;;  %v281_v34 = vadd.f32 %v273_v5, %v3198_v52  ;;  %v242_v29 = vsel %vm159_vm0, %v3202_v4, %v234_v11  ;;  %1351 = vst [vmem:[%s2888_s15 + $0xcd] sm:$0x1] %v1181_v8 }
  0x6a   : > { %2544 = vst.sshfl [vmem:[%s2888_s15 + $0xe9] sm:$0x1 pattern:$0x73625140] %v1198_v15  ;;  %v1183_v31 = vcombine.high %v1179_v10, %v1179_v10  ;;  %1355 = vst [vmem:[%s2888_s15 + $0xe5] sm:$0x1] %v1229_v32  ;;  %v1231_v33 = vcombine.high %v1221_v14, %v1221_v14  ;;  %v3229_v41 = vadd.f32 %v2821_v23, %v2799_v12 }
  0x6b   : > { %v274_v35 = vmul.f32 0.25, %v242_v29  ;;  %2545 = vst.sshfl [vmem:[%s2888_s15 + $0xeb] sm:$0x1 pattern:$0x73625140] %v1200_v19  ;;  %v1230_v42 = vcombine.high %v1214_v51, %v1214_v51  ;;  %v1228_v43 = vrot.slane %v1200_v19, %v2791_v6  ;;  %v1376_v44 = vrot.slane %v281_v34, %v2791_v6 }
  0x6c   : > { %v1369_v26 = vcombine.high %v281_v34, %v281_v34  ;;  %1352 = vst [vmem:[%s2888_s15 + $0xcf] sm:$0x1] %v1183_v31  ;;  %1356 = vst [vmem:[%s2888_s15 + $0xe7] sm:$0x1] %v1231_v33  ;;  %v235_v46 = vrot.slane %v3229_v41, 7  ;;  %v3239_v47 = vmul.f32 0.75, %v3229_v41  ;;  %v3243_v12 = vadd.f32 %v2833_v27, %v2805_v16 }
  0x6d   : > { %v282_v45 = vadd.f32 %v274_v35, %v3213_v17  ;;  %1359 = vst [vmem:[%s2888_s15 + $0xed] sm:$0x1] %v1230_v42  ;;  %v1232_v23 = vcombine.high %v1228_v43, %v1228_v43  ;;  %2678 = vst.sshfl [vmem:[%s2888_s15 + $0x10] sm:$0x1 pattern:$0x73625140] %v1376_v44  ;;  %v1384_v50 = vcombine.high %v1376_v44, %v1376_v44 }
  0x6e   : > { %v1392_v21 = vrot.slane %v1376_v44, %v2791_v6  ;;  %v1383_v39 = vrot.slane %v1369_v26, %v2791_v6  ;;  %v243_v40 = vsel %vm159_vm0, %v3229_v41, %v235_v46  ;;  %v236_v16 = vrot.slane %v3243_v12, 7 }
  0x6f   : > { %v1425_v54 = vrot.slane %v282_v45, %v2791_v6  ;;  %v1418_v57 = vcombine.high %v282_v45, %v282_v45  ;;  %1360 = vst [vmem:[%s2888_s15 + $0xef] sm:$0x1] %v1232_v23  ;;  %2679 = vst.sshfl [vmem:[%s2888_s15 + $0x12] sm:$0x1 pattern:$0x73625140] %v1384_v50  ;;  %v1406_v22 = vrot.slane %v1384_v50, %v2791_v6 }
  0x70   : > { %v1414_v27 = vcombine.high %v1392_v21, %v1392_v21  ;;  %2680 = vst.sshfl [vmem:[%s2888_s15 + $0x18] sm:$0x1 pattern:$0x73625140] %v1383_v39  ;;  %v1385_v37 = vcombine.high %v1383_v39, %v1383_v39  ;;  %v1399_v58 = vrot.slane %v1383_v39, %v2791_v6  ;;  %v275_v1 = vmul.f32 0.25, %v243_v40 }
  0x71   : > { %2682 = vst.sshfl [vmem:[%s2888_s15 + $0x30] sm:$0x1 pattern:$0x73625140] %v1425_v54  ;;  %v1433_v59 = vcombine.high %v1425_v54, %v1425_v54  ;;  %v1441_v60 = vrot.slane %v1425_v54, %v2791_v6  ;;  %v1432_v61 = vrot.slane %v1418_v57, %v2791_v6  ;;  %v1416_v36 = vcombine.high %v1406_v22, %v1406_v22 }
  0x72   : > { %2548 = vst [vmem:[%s2888_s15 + $0x14] sm:$0x1] %v1414_v27  ;;  %2681 = vst.sshfl [vmem:[%s2888_s15 + $0x1a] sm:$0x1 pattern:$0x73625140] %v1385_v37  ;;  %v1415_v30 = vcombine.high %v1399_v58, %v1399_v58  ;;  %v1413_v62 = vrot.slane %v1385_v37, %v2791_v6  ;;  %v244_v63 = vsel %vm159_vm0, %v3243_v12, %v236_v16 }
  0x73   : > { %2683 = vst.sshfl [vmem:[%s2888_s15 + $0x32] sm:$0x1 pattern:$0x73625140] %v1433_v59  ;;  %v1463_v25 = vcombine.high %v1441_v60, %v1441_v60  ;;  %v1455_v48 = vrot.slane %v1433_v59, %v2791_v6  ;;  %v1434_v53 = vcombine.high %v1432_v61, %v1432_v61  ;;  %v1448_v2 = vrot.slane %v1432_v61, %v2791_v6 }
  0x74   : > { %2684 = vst.sshfl [vmem:[%s2888_s15 + $0x38] sm:$0x1 pattern:$0x73625140] %v1432_v61  ;;  %2549 = vst [vmem:[%s2888_s15 + $0x16] sm:$0x1] %v1416_v36  ;;  %v1417_v49 = vcombine.high %v1413_v62, %v1413_v62  ;;  %v283_v0 = vadd.f32 %v275_v1, %v3239_v47  ;;  %v3283_v8 = vadd.f32 %v2895_v56, %v2809_v18 }
  0x75   : > { %2552 = vst [vmem:[%s2888_s15 + $0x1c] sm:$0x1] %v1415_v30  ;;  %v3276_v55 = vmul.f32 0.75, %v3243_v12  ;;  %v276_v9 = vmul.f32 0.25, %v244_v63  ;;  %2556 = vst [vmem:[%s2888_s15 + $0x34] sm:$0x1] %v1463_v25  ;;  %v1465_v15 = vcombine.high %v1455_v48, %v1455_v48  ;;  %v1464_v5 = vcombine.high %v1448_v2, %v1448_v2 }
  0x76   : > { %2685 = vst.sshfl [vmem:[%s2888_s15 + $0x3a] sm:$0x1 pattern:$0x73625140] %v1434_v53  ;;  %v1462_v11 = vrot.slane %v1434_v53, %v2791_v6  ;;  %2553 = vst [vmem:[%s2888_s15 + $0x1e] sm:$0x1] %v1417_v49  ;;  %v1474_v10 = vrot.slane %v283_v0, %v2791_v6  ;;  %v1467_v32 = vcombine.high %v283_v0, %v283_v0 }
  0x77   : > { %v284_v14 = vadd.f32 %v276_v9, %v3276_v55  ;;  %v3290_v19 = vadd.f32 %v3001_v13, %v2823_v24  ;;  %2557 = vst [vmem:[%s2888_s15 + $0x36] sm:$0x1] %v1465_v15  ;;  %2560 = vst [vmem:[%s2888_s15 + $0x3c] sm:$0x1] %v1464_v5  ;;  %v237_v34 = vrot.slane %v3283_v8, 7  ;;  %v3296_v18 = vmul.f32 0.75, %v3283_v8 }
  0x78   : > { %v1466_v51 = vcombine.high %v1462_v11, %v1462_v11  ;;  %v148_v56 = vmul.f32 0.25, %v2950_v7  ;;  %2686 = vst.sshfl [vmem:[%s2888_s15 + $0x50] sm:$0x1 pattern:$0x73625140] %v1474_v10  ;;  %v1482_v29 = vcombine.high %v1474_v10, %v1474_v10  ;;  %v1490_v31 = vrot.slane %v1474_v10, %v2791_v6 }
  0x79   : > { %v1481_v24 = vrot.slane %v1467_v32, %v2791_v6  ;;  %v1523_v13 = vrot.slane %v284_v14, %v2791_v6  ;;  %v1516_v33 = vcombine.high %v284_v14, %v284_v14  ;;  %v245_v35 = vsel %vm159_vm0, %v3283_v8, %v237_v34 }
  0x7a   : > { %2561 = vst [vmem:[%s2888_s15 + $0x3e] sm:$0x1] %v1466_v51  ;;  %v238_v42 = vrot.slane %v3290_v19, 7  ;;  %v3309_v7 = vmul.f32 0.75, %v3290_v19  ;;  %v1512_v43 = vcombine.high %v1490_v31, %v1490_v31  ;;  %v1504_v44 = vrot.slane %v1482_v29, %v2791_v6 }
  0x7b   : > { %2687 = vst.sshfl [vmem:[%s2888_s15 + $0x52] sm:$0x1 pattern:$0x73625140] %v1482_v29  ;;  %v1483_v26 = vcombine.high %v1481_v24, %v1481_v24  ;;  %v1497_v45 = vrot.slane %v1481_v24, %v2791_v6  ;;  %v1531_v46 = vcombine.high %v1523_v13, %v1523_v13  ;;  %v1539_v23 = vrot.slane %v1523_v13, %v2791_v6 }
  0x7c   : > { %2688 = vst.sshfl [vmem:[%s2888_s15 + $0x58] sm:$0x1 pattern:$0x73625140] %v1481_v24  ;;  %v1530_v50 = vrot.slane %v1516_v33, %v2791_v6  ;;  %v277_v21 = vmul.f32 0.25, %v245_v35  ;;  %v1514_v39 = vcombine.high %v1504_v44, %v1504_v44  ;;  %v246_v40 = vsel %vm159_vm0, %v3290_v19, %v238_v42 }
  0x7d   : > { %2690 = vst.sshfl [vmem:[%s2888_s15 + $0x70] sm:$0x1 pattern:$0x73625140] %v1523_v13  ;;  %2564 = vst [vmem:[%s2888_s15 + $0x54] sm:$0x1] %v1512_v43  ;;  %v1513_v54 = vcombine.high %v1497_v45, %v1497_v45  ;;  %v1511_v57 = vrot.slane %v1483_v26, %v2791_v6  ;;  %v1561_v16 = vcombine.high %v1539_v23, %v1539_v23 }
  0x7e   : > { %2689 = vst.sshfl [vmem:[%s2888_s15 + $0x5a] sm:$0x1 pattern:$0x73625140] %v1483_v26  ;;  %v1553_v27 = vrot.slane %v1531_v46, %v2791_v6  ;;  %v1532_v22 = vcombine.high %v1530_v50, %v1530_v50  ;;  %v1546_v37 = vrot.slane %v1530_v50, %v2791_v6  ;;  %2565 = vst [vmem:[%s2888_s15 + $0x56] sm:$0x1] %v1514_v39 }
  0x7f   : > { %2691 = vst.sshfl [vmem:[%s2888_s15 + $0x72] sm:$0x1 pattern:$0x73625140] %v1531_v46  ;;  %2568 = vst [vmem:[%s2888_s15 + $0x5c] sm:$0x1] %v1513_v54  ;;  %v1515_v58 = vcombine.high %v1511_v57, %v1511_v57  ;;  %v285_v59 = vadd.f32 %v277_v21, %v3296_v18  ;;  %v3332_v61 = vadd.f32 %v148_v56, %v2836_v28 }
  0x80   : > { %2692 = vst.sshfl [vmem:[%s2888_s15 + $0x78] sm:$0x1 pattern:$0x73625140] %v1530_v50  ;;  %v278_v60 = vmul.f32 0.25, %v246_v40  ;;  %v1563_v1 = vcombine.high %v1553_v27, %v1553_v27  ;;  %v1562_v36 = vcombine.high %v1546_v37, %v1546_v37  ;;  %v1560_v30 = vrot.slane %v1532_v22, %v2791_v6 }
  0x81   : > { %2572 = vst [vmem:[%s2888_s15 + $0x74] sm:$0x1] %v1561_v16  ;;  %2693 = vst.sshfl [vmem:[%s2888_s15 + $0x7a] sm:$0x1 pattern:$0x73625140] %v1532_v22  ;;  %v3338_v62 = vadd.f32 %v148_v56, %v2967_v38  ;;  %v1572_v63 = vrot.slane %v285_v59, %v2791_v6  ;;  %v1565_v25 = vcombine.high %v285_v59, %v285_v59 }
  0x82   : > { %2569 = vst [vmem:[%s2888_s15 + $0x5e] sm:$0x1] %v1515_v58  ;;  %v286_v48 = vadd.f32 %v278_v60, %v3309_v7  ;;  %v239_v28 = vrot.slane %v3332_v61, 7  ;;  %2573 = vst [vmem:[%s2888_s15 + $0x76] sm:$0x1] %v1563_v1  ;;  %v1564_v53 = vcombine.high %v1560_v30, %v1560_v30  ;;  %v3347_v2 = vmul.f32 0.75, %v3332_v61 }
  0x83   : > { %2576 = vst [vmem:[%s2888_s15 + $0x7c] sm:$0x1] %v1562_v36  ;;  %v240_v38 = vrot.slane %v3338_v62, 7  ;;  %v3351_v49 = vmul.f32 0.75, %v3338_v62  ;;  %v1580_v0 = vcombine.high %v1572_v63, %v1572_v63  ;;  %v1588_v9 = vrot.slane %v1572_v63, %v2791_v6 }
  0x84   : > { %2694 = vst.sshfl [vmem:[%s2888_s15 + $0x90] sm:$0x1 pattern:$0x73625140] %v1572_v63  ;;  %v1579_v15 = vrot.slane %v1565_v25, %v2791_v6  ;;  %v1621_v5 = vrot.slane %v286_v48, %v2791_v6  ;;  %2577 = vst [vmem:[%s2888_s15 + $0x7e] sm:$0x1] %v1564_v53  ;;  %v1614_v11 = vcombine.high %v286_v48, %v286_v48 }
  0x85   : > { %v247_v10 = vsel %vm159_vm0, %v3332_v61, %v239_v28  ;;  %v248_v32 = vsel %vm159_vm0, %v3338_v62, %v240_v38  ;;  %v249_v14 = vrot.slane %v3137_v20, 1  ;;  %2695 = vst.sshfl [vmem:[%s2888_s15 + $0x92] sm:$0x1 pattern:$0x73625140] %v1580_v0  ;;  %v1610_v51 = vcombine.high %v1588_v9, %v1588_v9 }
  0x86   : > { %v1602_v34 = vrot.slane %v1580_v0, %v2791_v6  ;;  %2696 = vst.sshfl [vmem:[%s2888_s15 + $0x98] sm:$0x1 pattern:$0x73625140] %v1579_v15  ;;  %v1581_v56 = vcombine.high %v1579_v15, %v1579_v15  ;;  %v1595_v29 = vrot.slane %v1579_v15, %v2791_v6  ;;  %v1629_v31 = vcombine.high %v1621_v5, %v1621_v5 }
  0x87   : > { %2698 = vst.sshfl [vmem:[%s2888_s15 + $0xb0] sm:$0x1 pattern:$0x73625140] %v1621_v5  ;;  %v1637_v24 = vrot.slane %v1621_v5, %v2791_v6  ;;  %v1628_v13 = vrot.slane %v1614_v11, %v2791_v6  ;;  %v279_v33 = vmul.f32 0.25, %v247_v10  ;;  %v280_v44 = vmul.f32 0.25, %v248_v32 }
  0x88   : > { %2580 = vst [vmem:[%s2888_s15 + $0x94] sm:$0x1] %v1610_v51  ;;  %v1612_v35 = vcombine.high %v1602_v34, %v1602_v34  ;;  %2697 = vst.sshfl [vmem:[%s2888_s15 + $0x9a] sm:$0x1 pattern:$0x73625140] %v1581_v56  ;;  %v1611_v42 = vcombine.high %v1595_v29, %v1595_v29  ;;  %v1609_v43 = vrot.slane %v1581_v56, %v2791_v6 }
  0x89   : > { %2699 = vst.sshfl [vmem:[%s2888_s15 + $0xb2] sm:$0x1 pattern:$0x73625140] %v1629_v31  ;;  %v1659_v26 = vcombine.high %v1637_v24, %v1637_v24  ;;  %v1651_v45 = vrot.slane %v1629_v31, %v2791_v6  ;;  %v1630_v46 = vcombine.high %v1628_v13, %v1628_v13  ;;  %v1644_v23 = vrot.slane %v1628_v13, %v2791_v6 }
  0x8a   : > { %2700 = vst.sshfl [vmem:[%s2888_s15 + $0xb8] sm:$0x1 pattern:$0x73625140] %v1628_v13  ;;  %2581 = vst [vmem:[%s2888_s15 + $0x96] sm:$0x1] %v1612_v35  ;;  %v1613_v50 = vcombine.high %v1609_v43, %v1609_v43  ;;  %v287_v21 = vadd.f32 %v279_v33, %v3347_v2  ;;  %v288_v39 = vadd.f32 %v280_v44, %v3351_v49 }
  0x8b   : > { %2584 = vst [vmem:[%s2888_s15 + $0x9c] sm:$0x1] %v1611_v42  ;;  %v257_v54 = vsel %vm176_vm1, %v3137_v20, %v249_v14  ;;  %2588 = vst [vmem:[%s2888_s15 + $0xb4] sm:$0x1] %v1659_v26  ;;  %v1661_v57 = vcombine.high %v1651_v45, %v1651_v45  ;;  %v1660_v40 = vcombine.high %v1644_v23, %v1644_v23  ;;  %v250_v1 = vrot.slane %v3202_v4, 1 }
  0x8c   : > { %2701 = vst.sshfl [vmem:[%s2888_s15 + $0xba] sm:$0x1 pattern:$0x73625140] %v1630_v46  ;;  %v1658_v16 = vrot.slane %v1630_v46, %v2791_v6  ;;  %v289_v27 = vmul.f32 0.25, %v257_v54  ;;  %v1670_v22 = vrot.slane %v287_v21, %v2791_v6  ;;  %v1663_v37 = vcombine.high %v287_v21, %v287_v21 }
  0x8d   : > { %2585 = vst [vmem:[%s2888_s15 + $0x9e] sm:$0x1] %v1613_v50  ;;  %v1719_v58 = vrot.slane %v288_v39, %v2791_v6  ;;  %v1712_v59 = vcombine.high %v288_v39, %v288_v39  ;;  %2589 = vst [vmem:[%s2888_s15 + $0xb6] sm:$0x1] %v1661_v57  ;;  %v251_v36 = vrot.slane %v3229_v41, 1  ;;  %v258_v44 = vsel %vm176_vm1, %v3202_v4, %v250_v1 }
  0x8e   : > { %2592 = vst [vmem:[%s2888_s15 + $0xbc] sm:$0x1] %v1660_v40  ;;  %v1662_v20 = vcombine.high %v1658_v16, %v1658_v16  ;;  %v297_v60 = vadd.f32 %v289_v27, %v3198_v52  ;;  %2702 = vst.sshfl [vmem:[%s2888_s15 + $0xd0] sm:$0x1 pattern:$0x73625140] %v1670_v22  ;;  %v1678_v30 = vcombine.high %v1670_v22, %v1670_v22 }
  0x8f   : > { %v1686_v63 = vrot.slane %v1670_v22, %v2791_v6  ;;  %v1677_v25 = vrot.slane %v1663_v37, %v2791_v6  ;;  %2706 = vst.sshfl [vmem:[%s2888_s15 + $0xf0] sm:$0x1 pattern:$0x73625140] %v1719_v58  ;;  %v1727_v48 = vcombine.high %v1719_v58, %v1719_v58  ;;  %v1735_v28 = vrot.slane %v1719_v58, %v2791_v6 }
  0x90   : > { %2593 = vst [vmem:[%s2888_s15 + $0xbe] sm:$0x1] %v1662_v20  ;;  %v1726_v52 = vrot.slane %v1712_v59, %v2791_v6  ;;  %v1905_v53 = vrot.slane %v297_v60, %v2791_v6  ;;  %v1898_v38 = vcombine.high %v297_v60, %v297_v60  ;;  %2703 = vst.sshfl [vmem:[%s2888_s15 + $0xd2] sm:$0x1 pattern:$0x73625140] %v1678_v30 }
  0x91   : > { %v1708_v0 = vcombine.high %v1686_v63, %v1686_v63  ;;  %v1700_v9 = vrot.slane %v1678_v30, %v2791_v6  ;;  %2704 = vst.sshfl [vmem:[%s2888_s15 + $0xd8] sm:$0x1 pattern:$0x73625140] %v1677_v25  ;;  %v1679_v15 = vcombine.high %v1677_v25, %v1677_v25  ;;  %v1693_v5 = vrot.slane %v1677_v25, %v2791_v6 }
  0x92   : > { %2707 = vst.sshfl [vmem:[%s2888_s15 + $0xf2] sm:$0x1 pattern:$0x73625140] %v1727_v48  ;;  %v1757_v11 = vcombine.high %v1735_v28, %v1735_v28  ;;  %v1749_v10 = vrot.slane %v1727_v48, %v2791_v6  ;;  %v1728_v32 = vcombine.high %v1726_v52, %v1726_v52  ;;  %v1742_v14 = vrot.slane %v1726_v52, %v2791_v6 }
  0x93   : > { %2708 = vst.sshfl [vmem:[%s2888_s15 + $0xf8] sm:$0x1 pattern:$0x73625140] %v1726_v52  ;;  %2596 = vst [vmem:[%s2888_s15 + $0xd4] sm:$0x1] %v1708_v0  ;;  %v1710_v51 = vcombine.high %v1700_v9, %v1700_v9  ;;  %v1709_v34 = vcombine.high %v1693_v5, %v1693_v5  ;;  %v1707_v56 = vrot.slane %v1679_v15, %v2791_v6 }
  0x94   : > { %2710 = vst.sshfl [vmem:[%s2888_s15 + $0x11] sm:$0x1 pattern:$0x73625140] %v1905_v53  ;;  %v1913_v29 = vcombine.high %v1905_v53, %v1905_v53  ;;  %2604 = vst [vmem:[%s2888_s15 + $0xf4] sm:$0x1] %v1757_v11  ;;  %v1759_v31 = vcombine.high %v1749_v10, %v1749_v10  ;;  %v1758_v24 = vcombine.high %v1742_v14, %v1742_v14 }
  0x95   : > { %2705 = vst.sshfl [vmem:[%s2888_s15 + $0xda] sm:$0x1 pattern:$0x73625140] %v1679_v15  ;;  %v1756_v13 = vrot.slane %v1728_v32, %v2791_v6  ;;  %v1921_v33 = vrot.slane %v1905_v53, %v2791_v6  ;;  %2597 = vst [vmem:[%s2888_s15 + $0xd6] sm:$0x1] %v1710_v51  ;;  %v1711_v35 = vcombine.high %v1707_v56, %v1707_v56 }
  0x96   : > { %2709 = vst.sshfl [vmem:[%s2888_s15 + $0xfa] sm:$0x1 pattern:$0x73625140] %v1728_v32  ;;  %2600 = vst [vmem:[%s2888_s15 + $0xdc] sm:$0x1] %v1709_v34  ;;  %v1935_v42 = vrot.slane %v1913_v29, %v2791_v6  ;;  %v1912_v43 = vrot.slane %v1898_v38, %v2791_v6  ;;  %v259_v23 = vsel %vm176_vm1, %v3229_v41, %v251_v36 }
  0x97   : > { %2711 = vst.sshfl [vmem:[%s2888_s15 + $0x13] sm:$0x1 pattern:$0x73625140] %v1913_v29  ;;  %2605 = vst [vmem:[%s2888_s15 + $0xf6] sm:$0x1] %v1759_v31  ;;  %v1760_v26 = vcombine.high %v1756_v13, %v1756_v13  ;;  %v1943_v45 = vcombine.high %v1921_v33, %v1921_v33 }
  0x98   : > { %2608 = vst [vmem:[%s2888_s15 + $0xfc] sm:$0x1] %v1758_v24  ;;  %v290_v46 = vmul.f32 0.25, %v258_v44  ;;  %2601 = vst [vmem:[%s2888_s15 + $0xde] sm:$0x1] %v1711_v35  ;;  %v1945_v50 = vcombine.high %v1935_v42, %v1935_v42  ;;  %v1914_v21 = vcombine.high %v1912_v43, %v1912_v43  ;;  %v1928_v39 = vrot.slane %v1912_v43, %v2791_v6 }
  0x99   : > { %2712 = vst.sshfl [vmem:[%s2888_s15 + $0x19] sm:$0x1 pattern:$0x73625140] %v1912_v43  ;;  %v291_v54 = vmul.f32 0.25, %v259_v23  ;;  %v252_v57 = vrot.slane %v3243_v12, 1 }
  0x9a   : > { %2609 = vst [vmem:[%s2888_s15 + $0xfe] sm:$0x1] %v1760_v26  ;;  %2612 = vst [vmem:[%s2888_s15 + $0x15] sm:$0x1] %v1943_v45  ;;  %v298_v4 = vadd.f32 %v290_v46, %v3213_v17  ;;  %v253_v40 = vrot.slane %v3283_v8, 1  ;;  %v254_v16 = vrot.slane %v3290_v19, 1  ;;  %v1944_v41 = vcombine.high %v1928_v39, %v1928_v39 }
  0x9b   : > { %2613 = vst [vmem:[%s2888_s15 + $0x17] sm:$0x1] %v1945_v50  ;;  %2713 = vst.sshfl [vmem:[%s2888_s15 + $0x1b] sm:$0x1 pattern:$0x73625140] %v1914_v21  ;;  %v1942_v27 = vrot.slane %v1914_v21, %v2791_v6  ;;  %v299_v22 = vadd.f32 %v291_v54, %v3239_v47  ;;  %v260_v59 = vsel %vm176_vm1, %v3243_v12, %v252_v57 }
  0x9c   : > { %v255_v37 = vrot.slane %v3332_v61, 1  ;;  %v1954_v17 = vrot.slane %v298_v4, %v2791_v6  ;;  %v1947_v58 = vcombine.high %v298_v4, %v298_v4  ;;  %v261_v20 = vsel %vm176_vm1, %v3283_v8, %v253_v40  ;;  %2616 = vst [vmem:[%s2888_s15 + $0x1d] sm:$0x1] %v1944_v41 }
  0x9d   : > { %v1946_v60 = vcombine.high %v1942_v27, %v1942_v27  ;;  %v2003_v47 = vrot.slane %v299_v22, %v2791_v6  ;;  %v1996_v1 = vcombine.high %v299_v22, %v299_v22  ;;  %v292_v36 = vmul.f32 0.25, %v260_v59 }
  0x9e   : > { %2714 = vst.sshfl [vmem:[%s2888_s15 + $0x31] sm:$0x1 pattern:$0x73625140] %v1954_v17  ;;  %v1962_v30 = vcombine.high %v1954_v17, %v1954_v17  ;;  %v1970_v63 = vrot.slane %v1954_v17, %v2791_v6  ;;  %v1961_v25 = vrot.slane %v1947_v58, %v2791_v6  ;;  %v293_v12 = vmul.f32 0.25, %v261_v20 }
  0x9f   : > { %2617 = vst [vmem:[%s2888_s15 + $0x1f] sm:$0x1] %v1946_v60  ;;  %2718 = vst.sshfl [vmem:[%s2888_s15 + $0x51] sm:$0x1 pattern:$0x73625140] %v2003_v47  ;;  %v2011_v8 = vcombine.high %v2003_v47, %v2003_v47  ;;  %v2019_v48 = vrot.slane %v2003_v47, %v2791_v6  ;;  %v2010_v28 = vrot.slane %v1996_v1, %v2791_v6 }
  0xa0   : > { %v300_v52 = vadd.f32 %v292_v36, %v3276_v55  ;;  %2715 = vst.sshfl [vmem:[%s2888_s15 + $0x33] sm:$0x1 pattern:$0x73625140] %v1962_v30  ;;  %v1992_v53 = vcombine.high %v1970_v63, %v1970_v63  ;;  %v1984_v38 = vrot.slane %v1962_v30, %v2791_v6  ;;  %v1963_v0 = vcombine.high %v1961_v25, %v1961_v25 }
  0xa1   : > { %2716 = vst.sshfl [vmem:[%s2888_s15 + $0x39] sm:$0x1 pattern:$0x73625140] %v1961_v25  ;;  %v1977_v9 = vrot.slane %v1961_v25, %v2791_v6  ;;  %v2041_v15 = vcombine.high %v2019_v48, %v2019_v48  ;;  %v2033_v5 = vrot.slane %v2011_v8, %v2791_v6  ;;  %v2012_v11 = vcombine.high %v2010_v28, %v2010_v28 }
  0xa2   : > { %2719 = vst.sshfl [vmem:[%s2888_s15 + $0x53] sm:$0x1 pattern:$0x73625140] %v2011_v8  ;;  %v2026_v55 = vrot.slane %v2010_v28, %v2791_v6  ;;  %2620 = vst [vmem:[%s2888_s15 + $0x35] sm:$0x1] %v1992_v53  ;;  %v1994_v10 = vcombine.high %v1984_v38, %v1984_v38  ;;  %v1991_v14 = vrot.slane %v1963_v0, %v2791_v6 }
  0xa3   : > { %2720 = vst.sshfl [vmem:[%s2888_s15 + $0x59] sm:$0x1 pattern:$0x73625140] %v2010_v28  ;;  %v1993_v32 = vcombine.high %v1977_v9, %v1977_v9  ;;  %v2052_v51 = vrot.slane %v300_v52, %v2791_v6  ;;  %2628 = vst [vmem:[%s2888_s15 + $0x55] sm:$0x1] %v2041_v15  ;;  %v2043_v34 = vcombine.high %v2033_v5, %v2033_v5 }
  0xa4   : > { %2717 = vst.sshfl [vmem:[%s2888_s15 + $0x3b] sm:$0x1 pattern:$0x73625140] %v1963_v0  ;;  %v2042_v56 = vcombine.high %v2026_v55, %v2026_v55  ;;  %v2040_v29 = vrot.slane %v2012_v11, %v2791_v6  ;;  %v2045_v31 = vcombine.high %v300_v52, %v300_v52  ;;  %2621 = vst [vmem:[%s2888_s15 + $0x37] sm:$0x1] %v1994_v10 }
  0xa5   : > { %2721 = vst.sshfl [vmem:[%s2888_s15 + $0x5b] sm:$0x1 pattern:$0x73625140] %v2012_v11  ;;  %2624 = vst [vmem:[%s2888_s15 + $0x3d] sm:$0x1] %v1993_v32  ;;  %v1995_v24 = vcombine.high %v1991_v14, %v1991_v14  ;;  %v2060_v13 = vcombine.high %v2052_v51, %v2052_v51  ;;  %v2068_v33 = vrot.slane %v2052_v51, %v2791_v6 }
  0xa6   : > { %2722 = vst.sshfl [vmem:[%s2888_s15 + $0x71] sm:$0x1 pattern:$0x73625140] %v2052_v51  ;;  %v301_v35 = vadd.f32 %v293_v12, %v3296_v18  ;;  %2629 = vst [vmem:[%s2888_s15 + $0x57] sm:$0x1] %v2043_v34  ;;  %v2044_v42 = vcombine.high %v2040_v29, %v2040_v29  ;;  %v2059_v43 = vrot.slane %v2045_v31, %v2791_v6 }
  0xa7   : > { %2632 = vst [vmem:[%s2888_s15 + $0x5d] sm:$0x1] %v2042_v56  ;;  %v262_v44 = vsel %vm176_vm1, %v3290_v19, %v254_v16  ;;  %v263_v26 = vsel %vm176_vm1, %v3332_v61, %v255_v37  ;;  %2625 = vst [vmem:[%s2888_s15 + $0x3f] sm:$0x1] %v1995_v24  ;;  %v2090_v18 = vcombine.high %v2068_v33, %v2068_v33  ;;  %v256_v52 = vrot.slane %v3338_v62, 1 }
  0xa8   : > { %2723 = vst.sshfl [vmem:[%s2888_s15 + $0x73] sm:$0x1 pattern:$0x73625140] %v2060_v13  ;;  %v2082_v45 = vrot.slane %v2060_v13, %v2791_v6  ;;  %v2101_v46 = vrot.slane %v301_v35, %v2791_v6  ;;  %v2094_v23 = vcombine.high %v301_v35, %v301_v35  ;;  %2633 = vst [vmem:[%s2888_s15 + $0x5f] sm:$0x1] %v2044_v42 }
  0xa9   : > { %2724 = vst.sshfl [vmem:[%s2888_s15 + $0x79] sm:$0x1 pattern:$0x73625140] %v2059_v43  ;;  %v2061_v50 = vcombine.high %v2059_v43, %v2059_v43  ;;  %v2075_v19 = vrot.slane %v2059_v43, %v2791_v6  ;;  %v294_v21 = vmul.f32 0.25, %v262_v44  ;;  %v295_v39 = vmul.f32 0.25, %v263_v26 }
  0xaa   : > { %2636 = vst [vmem:[%s2888_s15 + $0x75] sm:$0x1] %v2090_v18  ;;  %v2092_v61 = vcombine.high %v2082_v45, %v2082_v45  ;;  %2726 = vst.sshfl [vmem:[%s2888_s15 + $0x91] sm:$0x1 pattern:$0x73625140] %v2101_v46  ;;  %v2109_v54 = vcombine.high %v2101_v46, %v2101_v46  ;;  %v2117_v4 = vrot.slane %v2101_v46, %v2791_v6 }
  0xab   : > { %v2108_v57 = vrot.slane %v2094_v23, %v2791_v6  ;;  %2725 = vst.sshfl [vmem:[%s2888_s15 + $0x7b] sm:$0x1 pattern:$0x73625140] %v2061_v50  ;;  %v2091_v40 = vcombine.high %v2075_v19, %v2075_v19  ;;  %v2089_v16 = vrot.slane %v2061_v50, %v2791_v6  ;;  %v302_v41 = vadd.f32 %v294_v21, %v3309_v7 }
  0xac   : > { %v303_v27 = vadd.f32 %v295_v39, %v3347_v2  ;;  %2637 = vst [vmem:[%s2888_s15 + $0x77] sm:$0x1] %v2092_v61  ;;  %2727 = vst.sshfl [vmem:[%s2888_s15 + $0x93] sm:$0x1 pattern:$0x73625140] %v2109_v54  ;;  %v2139_v22 = vcombine.high %v2117_v4, %v2117_v4  ;;  %v2131_v37 = vrot.slane %v2109_v54, %v2791_v6 }
  0xad   : > { %2728 = vst.sshfl [vmem:[%s2888_s15 + $0x99] sm:$0x1 pattern:$0x73625140] %v2108_v57  ;;  %v2110_v17 = vcombine.high %v2108_v57, %v2108_v57  ;;  %v2124_v58 = vrot.slane %v2108_v57, %v2791_v6  ;;  %2640 = vst [vmem:[%s2888_s15 + $0x7d] sm:$0x1] %v2091_v40  ;;  %v2093_v59 = vcombine.high %v2089_v16, %v2089_v16 }
  0xae   : > { %v2150_v20 = vrot.slane %v302_v41, %v2791_v6  ;;  %v2143_v7 = vcombine.high %v302_v41, %v302_v41  ;;  %v2199_v2 = vrot.slane %v303_v27, %v2791_v6  ;;  %2644 = vst [vmem:[%s2888_s15 + $0x95] sm:$0x1] %v2139_v22  ;;  %v2141_v60 = vcombine.high %v2131_v37, %v2131_v37 }
  0xaf   : > { %2729 = vst.sshfl [vmem:[%s2888_s15 + $0x9b] sm:$0x1 pattern:$0x73625140] %v2110_v17  ;;  %v2140_v47 = vcombine.high %v2124_v58, %v2124_v58  ;;  %v2138_v1 = vrot.slane %v2110_v17, %v2791_v6  ;;  %v2192_v36 = vcombine.high %v303_v27, %v303_v27  ;;  %2641 = vst [vmem:[%s2888_s15 + $0x7f] sm:$0x1] %v2093_v59 }
  0xb0   : > { %2730 = vst.sshfl [vmem:[%s2888_s15 + $0xb1] sm:$0x1 pattern:$0x73625140] %v2150_v20  ;;  %v2158_v30 = vcombine.high %v2150_v20, %v2150_v20  ;;  %v2166_v63 = vrot.slane %v2150_v20, %v2791_v6  ;;  %v2157_v25 = vrot.slane %v2143_v7, %v2791_v6  ;;  %v2207_v12 = vcombine.high %v2199_v2, %v2199_v2 }
  0xb1   : > { %2734 = vst.sshfl [vmem:[%s2888_s15 + $0xd1] sm:$0x1 pattern:$0x73625140] %v2199_v2  ;;  %2645 = vst [vmem:[%s2888_s15 + $0x97] sm:$0x1] %v2141_v60  ;;  %v2142_v8 = vcombine.high %v2138_v1, %v2138_v1  ;;  %v2215_v48 = vrot.slane %v2199_v2, %v2791_v6  ;;  %v2206_v28 = vrot.slane %v2192_v36, %v2791_v6 }
  0xb2   : > { %2648 = vst [vmem:[%s2888_s15 + $0x9d] sm:$0x1] %v2140_v47  ;;  %2731 = vst.sshfl [vmem:[%s2888_s15 + $0xb3] sm:$0x1 pattern:$0x73625140] %v2158_v30  ;;  %v2188_v53 = vcombine.high %v2166_v63, %v2166_v63  ;;  %v2180_v38 = vrot.slane %v2158_v30, %v2791_v6  ;;  %v2159_v0 = vcombine.high %v2157_v25, %v2157_v25 }
  0xb3   : > { %2732 = vst.sshfl [vmem:[%s2888_s15 + $0xb9] sm:$0x1 pattern:$0x73625140] %v2157_v25  ;;  %v2173_v9 = vrot.slane %v2157_v25, %v2791_v6  ;;  %2649 = vst [vmem:[%s2888_s15 + $0x9f] sm:$0x1] %v2142_v8  ;;  %v2237_v15 = vcombine.high %v2215_v48, %v2215_v48  ;;  %v2229_v5 = vrot.slane %v2207_v12, %v2791_v6 }
  0xb4   : > { %2735 = vst.sshfl [vmem:[%s2888_s15 + $0xd3] sm:$0x1 pattern:$0x73625140] %v2207_v12  ;;  %v2208_v11 = vcombine.high %v2206_v28, %v2206_v28  ;;  %v2222_v55 = vrot.slane %v2206_v28, %v2791_v6  ;;  %2652 = vst [vmem:[%s2888_s15 + $0xb5] sm:$0x1] %v2188_v53  ;;  %v2190_v10 = vcombine.high %v2180_v38, %v2180_v38 }
  0xb5   : > { %2736 = vst.sshfl [vmem:[%s2888_s15 + $0xd9] sm:$0x1 pattern:$0x73625140] %v2206_v28  ;;  %v2189_v32 = vcombine.high %v2173_v9, %v2173_v9  ;;  %v2187_v14 = vrot.slane %v2159_v0, %v2791_v6  ;;  %v264_v51 = vsel %vm176_vm1, %v3338_v62, %v256_v52  ;;  %2660 = vst [vmem:[%s2888_s15 + $0xd5] sm:$0x1] %v2237_v15 }
  0xb6   : > { %2733 = vst.sshfl [vmem:[%s2888_s15 + $0xbb] sm:$0x1 pattern:$0x73625140] %v2159_v0  ;;  %v2239_v34 = vcombine.high %v2229_v5, %v2229_v5  ;;  %v2238_v56 = vcombine.high %v2222_v55, %v2222_v55  ;;  %v2236_v29 = vrot.slane %v2208_v11, %v2791_v6  ;;  %v296_v31 = vmul.f32 0.25, %v264_v51 }
  0xb7   : > { %2737 = vst.sshfl [vmem:[%s2888_s15 + $0xdb] sm:$0x1 pattern:$0x73625140] %v2208_v11  ;;  %2653 = vst [vmem:[%s2888_s15 + $0xb7] sm:$0x1] %v2190_v10  ;;  %v2191_v24 = vcombine.high %v2187_v14, %v2187_v14 }
  0xb8   : > { %2656 = vst [vmem:[%s2888_s15 + $0xbd] sm:$0x1] %v2189_v32  ;;  %2661 = vst [vmem:[%s2888_s15 + $0xd7] sm:$0x1] %v2239_v34  ;;  %v2240_v13 = vcombine.high %v2236_v29, %v2236_v29  ;;  %v304_v3 = vadd.f32 %v296_v31, %v3351_v49 }
  0xb9   : > { %2664 = vst [vmem:[%s2888_s15 + $0xdd] sm:$0x1] %v2238_v56  ;;  %2657 = vst [vmem:[%s2888_s15 + $0xbf] sm:$0x1] %v2191_v24 }
  0xba   : > { %2665 = vst [vmem:[%s2888_s15 + $0xdf] sm:$0x1] %v2240_v13  ;;  %v2248_v62 = vrot.slane %v304_v3, %v2791_v6  ;;  %v2241_v33 = vcombine.high %v304_v3, %v304_v3 }
  0xbc   : > { %2738 = vst.sshfl [vmem:[%s2888_s15 + $0xf1] sm:$0x1 pattern:$0x73625140] %v2248_v62  ;;  %v2256_v35 = vcombine.high %v2248_v62, %v2248_v62  ;;  %v2264_v42 = vrot.slane %v2248_v62, %v2791_v6  ;;  %v2255_v43 = vrot.slane %v2241_v33, %v2791_v6 }
  0xbe   : > { %2739 = vst.sshfl [vmem:[%s2888_s15 + $0xf3] sm:$0x1 pattern:$0x73625140] %v2256_v35  ;;  %v2286_v44 = vcombine.high %v2264_v42, %v2264_v42  ;;  %v2278_v26 = vrot.slane %v2256_v35, %v2791_v6  ;;  %v2257_v49 = vcombine.high %v2255_v43, %v2255_v43  ;;  %v2271_v18 = vrot.slane %v2255_v43, %v2791_v6 }
  0xbf   : > { %2740 = vst.sshfl [vmem:[%s2888_s15 + $0xf9] sm:$0x1 pattern:$0x73625140] %v2255_v43 }
  0xc0   : > { %2668 = vst [vmem:[%s2888_s15 + $0xf5] sm:$0x1] %v2286_v44  ;;  %v2288_v45 = vcombine.high %v2278_v26, %v2278_v26  ;;  %2741 = vst.sshfl [vmem:[%s2888_s15 + $0xfb] sm:$0x1 pattern:$0x73625140] %v2257_v49  ;;  %v2287_v46 = vcombine.high %v2271_v18, %v2271_v18  ;;  %v2285_v23 = vrot.slane %v2257_v49, %v2791_v6 }
  0xc2   : > { %2669 = vst [vmem:[%s2888_s15 + $0xf7] sm:$0x1] %v2288_v45  ;;  %2672 = vst [vmem:[%s2888_s15 + $0xfd] sm:$0x1] %v2287_v46  ;;  %v2289_v50 = vcombine.high %v2285_v23, %v2285_v23 }
  0xc4   : > { %2673 = vst [vmem:[%s2888_s15 + $0xff] sm:$0x1] %v2289_v50 }
  0xc5 PF: > { %s11_s6 = sadd.s32 1, %s2757_s6  }
  0xc6   : > { %p8_p4 = scmp.ge.s32.totalorder %s11_s6, 4  }
  0xc8   :  { %10 = sbr.rel (!%p8_p4) target bundleno = 1 (0x1), region = 55 }

</bundles_post_ra>
